<compile_context>
chip_gen: v5e
topology: v5e:2x2
jax: 0.10.0
libtpu: 0.0.40
codegen_flags: <defaults>
</compile_context>

<pallas_src>
import functools

import jax
import jax.numpy as jnp
from jax import lax
from jax.experimental import pallas as pl
from jax.experimental.pallas import tpu as pltpu

EPS = 1e-5


def _bottleneck_kernel(N, H, W,
                       x_ref, w1_ref, w2_ref, w3_ref,
                       g1_ref, b1_ref, g2_ref, b2_ref, g3_ref, b3_ref,
                       o_ref, pad_ref):
    NHW = N * H * W
    x = x_ref[...]                                      # (NHW, Cin) f32
    inv_n = jnp.float32(1.0 / NHW)
    ones_row = jnp.ones((1, NHW), jnp.float32)          # MXU column-sum vector

    def bn(h, g_ref, b_ref):
        # Single-pass training-mode BatchNorm statistics (biased variance).
        # Column sums run as tiny matmuls on the MXU instead of two
        # cross-sublane XLU reductions per call.
        s1 = jnp.dot(ones_row, h, preferred_element_type=jnp.float32)      # (1, C)
        s2 = jnp.dot(ones_row, h * h, preferred_element_type=jnp.float32)  # (1, C)
        mu = s1 * inv_n
        var = jnp.maximum(s2 * inv_n - mu * mu, 0.0)
        return (h - mu) * lax.rsqrt(var + EPS) * g_ref[...] + b_ref[...]

    # ---- conv1: 1x1 -> row matmul on the MXU + BN + ReLU ----
    h1 = jnp.dot(x, w1_ref[...], preferred_element_type=jnp.float32)  # (NHW, P)
    h1 = jnp.maximum(bn(h1, g1_ref, b1_ref), 0.0)
    P = h1.shape[1]

    # ---- conv2: 3x3, stride 1, pad 1 --------------------------------------
    # Zero-padded halo buffer: boundaries are handled by the zero border, so
    # every tap is a plain slice read (no rolls, no masks).  The 9 taps are
    # concatenated along lanes into an (NHW, 9P) slab and contracted against
    # w2 (reshaped wrapper-side to (9P, P)) in a single MXU matmul.
    # (Reshapes below only merge/split leading dims with W a multiple of 8,
    #  so they are layout no-ops.)
    pad_ref[...] = jnp.zeros_like(pad_ref)
    pad_ref[:, 1:H + 1, 1:W + 1, :] = h1.reshape(N, H, W, P)
    taps = []
    for ky in range(3):
        for kx in range(3):
            t = pad_ref[:, ky:ky + H, kx:kx + W, :]     # (N, H, W, P)
            taps.append(t.reshape(NHW, P))
    slab = jnp.concatenate(taps, axis=1)                # (NHW, 9P)
    h2 = jnp.dot(slab, w2_ref[...], preferred_element_type=jnp.float32)  # (NHW, P)
    h2 = jnp.maximum(bn(h2, g2_ref, b2_ref), 0.0)

    # ---- conv3: 1x1 + BN + residual + ReLU ----
    h3 = jnp.dot(h2, w3_ref[...], preferred_element_type=jnp.float32)   # (NHW, Cout)
    h3 = bn(h3, g3_ref, b3_ref)
    o_ref[...] = jnp.maximum(h3 + x, 0.0)


def bottleneck_pallas(x_nchw, params):
    (w1, w2, w3, g1, b1, g2, b2, g3, b3) = params
    N, Cin, H, W = x_nchw.shape
    P = w1.shape[1]
    Cout = w3.shape[1]
    assert Cout == Cin, "downsample is None -> inplanes must equal planes*4"
    assert W % 8 == 0, "W should be a multiple of 8 for free in-kernel reshapes"

    NHW = N * H * W
    x2d = jnp.transpose(x_nchw, (0, 2, 3, 1)).reshape(NHW, Cin)
    # (tap, cin, cout) -> (tap*P + cin, cout): matches the slab column order.
    w2_flat = w2.reshape(9 * P, P)

    def full(shape):
        return pl.BlockSpec(shape, lambda i, _s=shape: tuple(0 for _ in _s))

    out2d = pl.pallas_call(
        functools.partial(_bottleneck_kernel, N, H, W),
        out_shape=jax.ShapeDtypeStruct((NHW, Cout), jnp.float32),
        grid=(1,),
        in_specs=[
            full((NHW, Cin)),                     # x
            full((Cin, P)),                       # w1
            full((9 * P, P)),                     # w2 (taps folded into K)
            full((P, Cout)),                      # w3
            full((1, P)), full((1, P)),           # bn1 gamma/beta
            full((1, P)), full((1, P)),           # bn2 gamma/beta
            full((1, Cout)), full((1, Cout)),     # bn3 gamma/beta
        ],
        out_specs=full((NHW, Cout)),
        scratch_shapes=[pltpu.VMEM((N, H + 2, W + 2, P), jnp.float32)],
        compiler_params=pltpu.CompilerParams(
            dimension_semantics=("arbitrary",),
            vmem_limit_bytes=48 * 1024 * 1024),
    )(x2d, w1, w2_flat, w3, g1, b1, g2, b2, g3, b3)

    return jnp.transpose(out2d.reshape(N, H, W, Cout), (0, 3, 1, 2))


def bottleneck_reference(x_nchw, params):
    """Pure-JAX reference (matches PyTorch training-mode forward)."""
    (w1, w2, w3, g1, b1, g2, b2, g3, b3) = params
    P = w1.shape[1]
    x = jnp.transpose(x_nchw, (0, 2, 3, 1))          # NHWC

    def bn(h, g, b):
        mu = h.mean(axis=(0, 1, 2))
        var = ((h - mu) ** 2).mean(axis=(0, 1, 2))
        return (h - mu) * lax.rsqrt(var + EPS) * g + b

    h = jnp.einsum('nhwc,cd->nhwd', x, w1)
    h = jax.nn.relu(bn(h, g1[0], b1[0]))
    w2_hwio = w2.reshape(3, 3, P, P)
    h = lax.conv_general_dilated(h, w2_hwio, (1, 1), 'SAME',
                                 dimension_numbers=('NHWC', 'HWIO', 'NHWC'))
    h = jax.nn.relu(bn(h, g2[0], b2[0]))
    h = jnp.einsum('nhwc,cd->nhwd', h, w3)
    h = bn(h, g3[0], b3[0])
    out = jax.nn.relu(h + x)
    return jnp.transpose(out, (0, 3, 1, 2))


def make_params(key, inplanes, planes):
    """Deterministic parameter init, converted from PyTorch layouts."""
    cout = planes * 4
    ks = jax.random.split(key, 9)
    # torch conv weights: (out, in, kh, kw)
    w1_t = 0.2 * jax.random.normal(ks[0], (planes, inplanes, 1, 1), jnp.float32)
    w2_t = 0.2 * jax.random.normal(ks[1], (planes, planes, 3, 3), jnp.float32)
    w3_t = 0.2 * jax.random.normal(ks[2], (cout, planes, 1, 1), jnp.float32)
    w1 = jnp.transpose(w1_t[:, :, 0, 0], (1, 0))                        # (Cin, P)
    w2 = jnp.transpose(w2_t, (2, 3, 1, 0)).reshape(9, planes, planes)   # (9, Ci, Co)
    w3 = jnp.transpose(w3_t[:, :, 0, 0], (1, 0))                        # (P, Cout)
    g1 = 1.0 + 0.1 * jax.random.normal(ks[3], (1, planes), jnp.float32)
    b1 = 0.1 * jax.random.normal(ks[4], (1, planes), jnp.float32)
    g2 = 1.0 + 0.1 * jax.random.normal(ks[5], (1, planes), jnp.float32)
    b2 = 0.1 * jax.random.normal(ks[6], (1, planes), jnp.float32)
    g3 = 1.0 + 0.1 * jax.random.normal(ks[7], (1, cout), jnp.float32)
    b3 = 0.1 * jax.random.normal(ks[8], (1, cout), jnp.float32)
    return (w1, w2, w3, g1, b1, g2, b2, g3, b3)


if __name__ == "__main__":
    # Bottleneck(inplanes=16, planes=4, stride=1, downsample=None)
    N, inplanes, planes, Hs, Ws = 2, 16, 4, 16, 16
    key = jax.random.PRNGKey(0)
    kx, kp = jax.random.split(key)
    x = jax.random.normal(kx, (N, inplanes, Hs, Ws), jnp.float32)   # NCHW
    params = make_params(kp, inplanes, planes)

    out = bottleneck_pallas(x, params)
    out = jax.block_until_ready(out)

    ref = jax.block_until_ready(bottleneck_reference(x, params))
    assert out.shape == (N, inplanes, Hs, Ws)
    assert jnp.allclose(out, ref, rtol=1e-4, atol=1e-4), \
        f"max abs err {jnp.max(jnp.abs(out - ref))}"
    print("KERNEL_OK")
</pallas_src>

<mosaic_0001>
module attributes {stable_mosaic.version = 11 : i64} {
  func.func @_bottleneck_kernel(%arg0: i32, %arg1: memref<512x16xf32, #tpu.memory_space<vmem>>, %arg2: memref<16x4xf32, #tpu.memory_space<vmem>>, %arg3: memref<36x4xf32, #tpu.memory_space<vmem>>, %arg4: memref<4x16xf32, #tpu.memory_space<vmem>>, %arg5: memref<1x4xf32, #tpu.memory_space<vmem>>, %arg6: memref<1x4xf32, #tpu.memory_space<vmem>>, %arg7: memref<1x4xf32, #tpu.memory_space<vmem>>, %arg8: memref<1x4xf32, #tpu.memory_space<vmem>>, %arg9: memref<1x16xf32, #tpu.memory_space<vmem>>, %arg10: memref<1x16xf32, #tpu.memory_space<vmem>>, %arg11: memref<512x16xf32, #tpu.memory_space<vmem>>, %arg12: memref<2x18x18x4xf32, #tpu.memory_space<vmem>>) attributes {dimension_semantics = [#tpu.dimension_semantics<arbitrary>], iteration_bounds = array<i64: 1>, scalar_prefetch = 0 : i64, scratch_operands = 1 : i64, tpu.core_type = #tpu.core_type<tc>, window_params = [{pipeline_mode = #tpu.pipeline_mode<synchronous>, transform_indices = @transform_0, window_bounds = array<i64: 512, 16>}, {pipeline_mode = #tpu.pipeline_mode<synchronous>, transform_indices = @transform_1, window_bounds = array<i64: 16, 4>}, {pipeline_mode = #tpu.pipeline_mode<synchronous>, transform_indices = @transform_2, window_bounds = array<i64: 36, 4>}, {pipeline_mode = #tpu.pipeline_mode<synchronous>, transform_indices = @transform_3, window_bounds = array<i64: 4, 16>}, {pipeline_mode = #tpu.pipeline_mode<synchronous>, transform_indices = @transform_4, window_bounds = array<i64: 1, 4>}, {pipeline_mode = #tpu.pipeline_mode<synchronous>, transform_indices = @transform_5, window_bounds = array<i64: 1, 4>}, {pipeline_mode = #tpu.pipeline_mode<synchronous>, transform_indices = @transform_6, window_bounds = array<i64: 1, 4>}, {pipeline_mode = #tpu.pipeline_mode<synchronous>, transform_indices = @transform_7, window_bounds = array<i64: 1, 4>}, {pipeline_mode = #tpu.pipeline_mode<synchronous>, transform_indices = @transform_8, window_bounds = array<i64: 1, 16>}, {pipeline_mode = #tpu.pipeline_mode<synchronous>, transform_indices = @transform_9, window_bounds = array<i64: 1, 16>}, {pipeline_mode = #tpu.pipeline_mode<synchronous>, transform_indices = @transform_10, window_bounds = array<i64: 512, 16>}]} {
    %c0 = arith.constant 0 : index
    %c0_0 = arith.constant 0 : index
    %0 = vector.load %arg1[%c0, %c0_0] : memref<512x16xf32, #tpu.memory_space<vmem>>, vector<512x16xf32>
    %cst = arith.constant 1.000000e+00 : f32
    %1 = vector.broadcast %cst : f32 to vector<1x512xf32>
    %c0_1 = arith.constant 0 : index
    %c0_2 = arith.constant 0 : index
    %2 = vector.load %arg2[%c0_1, %c0_2] : memref<16x4xf32, #tpu.memory_space<vmem>>, vector<16x4xf32>
    %cst_3 = arith.constant dense<0.000000e+00> : vector<512x4xf32>
    %3 = tpu.matmul %0, %2, %cst_3 {dimension_numbers = #tpu.dot_dimension_numbers<[1], [0], [0], [1], [0, 0, 1, 1], [], []>} : vector<512x16xf32>, vector<16x4xf32>, vector<512x4xf32> -> vector<512x4xf32>
    %cst_4 = arith.constant dense<0.000000e+00> : vector<1x4xf32>
    %4 = tpu.matmul %1, %3, %cst_4 {dimension_numbers = #tpu.dot_dimension_numbers<[1], [0], [0], [1], [0, 0, 1, 1], [], []>} : vector<1x512xf32>, vector<512x4xf32>, vector<1x4xf32> -> vector<1x4xf32>
    %5 = arith.mulf %3, %3 : vector<512x4xf32>
    %cst_5 = arith.constant dense<0.000000e+00> : vector<1x4xf32>
    %6 = tpu.matmul %1, %5, %cst_5 {dimension_numbers = #tpu.dot_dimension_numbers<[1], [0], [0], [1], [0, 0, 1, 1], [], []>} : vector<1x512xf32>, vector<512x4xf32>, vector<1x4xf32> -> vector<1x4xf32>
    %cst_6 = arith.constant 0.001953125 : f32
    %7 = vector.broadcast %cst_6 : f32 to vector<1x4xf32>
    %8 = arith.mulf %4, %7 : vector<1x4xf32>
    %cst_7 = arith.constant 0.001953125 : f32
    %9 = vector.broadcast %cst_7 : f32 to vector<1x4xf32>
    %10 = arith.mulf %6, %9 : vector<1x4xf32>
    %11 = arith.mulf %8, %8 : vector<1x4xf32>
    %12 = arith.subf %10, %11 : vector<1x4xf32>
    %cst_8 = arith.constant 0.000000e+00 : f32
    %13 = vector.broadcast %cst_8 : f32 to vector<1x4xf32>
    %14 = arith.maximumf %12, %13 : vector<1x4xf32>
    %15 = vector.broadcast %8 : vector<1x4xf32> to vector<512x4xf32>
    %16 = arith.subf %3, %15 : vector<512x4xf32>
    %cst_9 = arith.constant 9.99999974E-6 : f32
    %17 = vector.broadcast %cst_9 : f32 to vector<1x4xf32>
    %18 = arith.addf %14, %17 : vector<1x4xf32>
    %19 = math.rsqrt %18 : vector<1x4xf32>
    %20 = vector.broadcast %19 : vector<1x4xf32> to vector<512x4xf32>
    %21 = arith.mulf %16, %20 : vector<512x4xf32>
    %c0_10 = arith.constant 0 : index
    %c0_11 = arith.constant 0 : index
    %22 = vector.load %arg5[%c0_10, %c0_11] : memref<1x4xf32, #tpu.memory_space<vmem>>, vector<1x4xf32>
    %23 = vector.broadcast %22 : vector<1x4xf32> to vector<512x4xf32>
    %24 = arith.mulf %21, %23 : vector<512x4xf32>
    %c0_12 = arith.constant 0 : index
    %c0_13 = arith.constant 0 : index
    %25 = vector.load %arg6[%c0_12, %c0_13] : memref<1x4xf32, #tpu.memory_space<vmem>>, vector<1x4xf32>
    %26 = vector.broadcast %25 : vector<1x4xf32> to vector<512x4xf32>
    %27 = arith.addf %24, %26 : vector<512x4xf32>
    %cst_14 = arith.constant 0.000000e+00 : f32
    %28 = vector.broadcast %cst_14 : f32 to vector<512x4xf32>
    %29 = arith.maximumf %27, %28 : vector<512x4xf32>
    %cst_15 = arith.constant 0.000000e+00 : f32
    %30 = vector.broadcast %cst_15 : f32 to vector<2x18x18x4xf32>
    %c0_16 = arith.constant 0 : index
    %c0_17 = arith.constant 0 : index
    %c0_18 = arith.constant 0 : index
    %c0_19 = arith.constant 0 : index
    %31 = vector.load %arg12[%c0_16, %c0_17, %c0_18, %c0_19] : memref<2x18x18x4xf32, #tpu.memory_space<vmem>>, vector<2x18x18x4xf32>
    tpu.vector_store %arg12[%c0_16, %c0_17, %c0_18, %c0_19], %30 {strides = array<i32>} : memref<2x18x18x4xf32, #tpu.memory_space<vmem>>, vector<2x18x18x4xf32>,
    %32 = vector.shape_cast %29 : vector<512x4xf32> to vector<2x16x16x4xf32>
    %c0_20 = arith.constant 0 : index
    %c1 = arith.constant 1 : index
    %c1_21 = arith.constant 1 : index
    %c0_22 = arith.constant 0 : index
    %33 = vector.load %arg12[%c0_20, %c1, %c1_21, %c0_22] : memref<2x18x18x4xf32, #tpu.memory_space<vmem>>, vector<2x16x16x4xf32>
    tpu.vector_store %arg12[%c0_20, %c1, %c1_21, %c0_22], %32 {strides = array<i32>} : memref<2x18x18x4xf32, #tpu.memory_space<vmem>>, vector<2x16x16x4xf32>,
    %c0_23 = arith.constant 0 : index
    %c0_24 = arith.constant 0 : index
    %c0_25 = arith.constant 0 : index
    %c0_26 = arith.constant 0 : index
    %34 = vector.load %arg12[%c0_23, %c0_24, %c0_25, %c0_26] : memref<2x18x18x4xf32, #tpu.memory_space<vmem>>, vector<2x16x16x4xf32>
    %35 = vector.shape_cast %34 : vector<2x16x16x4xf32> to vector<512x4xf32>
    %c0_27 = arith.constant 0 : index
    %c0_28 = arith.constant 0 : index
    %c1_29 = arith.constant 1 : index
    %c0_30 = arith.constant 0 : index
    %36 = vector.load %arg12[%c0_27, %c0_28, %c1_29, %c0_30] : memref<2x18x18x4xf32, #tpu.memory_space<vmem>>, vector<2x16x16x4xf32>
    %37 = vector.shape_cast %36 : vector<2x16x16x4xf32> to vector<512x4xf32>
    %c0_31 = arith.constant 0 : index
    %c0_32 = arith.constant 0 : index
    %c2 = arith.constant 2 : index
    %c0_33 = arith.constant 0 : index
    %38 = vector.load %arg12[%c0_31, %c0_32, %c2, %c0_33] : memref<2x18x18x4xf32, #tpu.memory_space<vmem>>, vector<2x16x16x4xf32>
    %39 = vector.shape_cast %38 : vector<2x16x16x4xf32> to vector<512x4xf32>
    %c0_34 = arith.constant 0 : index
    %c1_35 = arith.constant 1 : index
    %c0_36 = arith.constant 0 : index
    %c0_37 = arith.constant 0 : index
    %40 = vector.load %arg12[%c0_34, %c1_35, %c0_36, %c0_37] : memref<2x18x18x4xf32, #tpu.memory_space<vmem>>, vector<2x16x16x4xf32>
    %41 = vector.shape_cast %40 : vector<2x16x16x4xf32> to vector<512x4xf32>
    %c0_38 = arith.constant 0 : index
    %c1_39 = arith.constant 1 : index
    %c1_40 = arith.constant 1 : index
    %c0_41 = arith.constant 0 : index
    %42 = vector.load %arg12[%c0_38, %c1_39, %c1_40, %c0_41] : memref<2x18x18x4xf32, #tpu.memory_space<vmem>>, vector<2x16x16x4xf32>
    %43 = vector.shape_cast %42 : vector<2x16x16x4xf32> to vector<512x4xf32>
    %c0_42 = arith.constant 0 : index
    %c1_43 = arith.constant 1 : index
    %c2_44 = arith.constant 2 : index
    %c0_45 = arith.constant 0 : index
    %44 = vector.load %arg12[%c0_42, %c1_43, %c2_44, %c0_45] : memref<2x18x18x4xf32, #tpu.memory_space<vmem>>, vector<2x16x16x4xf32>
    %45 = vector.shape_cast %44 : vector<2x16x16x4xf32> to vector<512x4xf32>
    %c0_46 = arith.constant 0 : index
    %c2_47 = arith.constant 2 : index
    %c0_48 = arith.constant 0 : index
    %c0_49 = arith.constant 0 : index
    %46 = vector.load %arg12[%c0_46, %c2_47, %c0_48, %c0_49] : memref<2x18x18x4xf32, #tpu.memory_space<vmem>>, vector<2x16x16x4xf32>
    %47 = vector.shape_cast %46 : vector<2x16x16x4xf32> to vector<512x4xf32>
    %c0_50 = arith.constant 0 : index
    %c2_51 = arith.constant 2 : index
    %c1_52 = arith.constant 1 : index
    %c0_53 = arith.constant 0 : index
    %48 = vector.load %arg12[%c0_50, %c2_51, %c1_52, %c0_53] : memref<2x18x18x4xf32, #tpu.memory_space<vmem>>, vector<2x16x16x4xf32>
    %49 = vector.shape_cast %48 : vector<2x16x16x4xf32> to vector<512x4xf32>
    %c0_54 = arith.constant 0 : index
    %c2_55 = arith.constant 2 : index
    %c2_56 = arith.constant 2 : index
    %c0_57 = arith.constant 0 : index
    %50 = vector.load %arg12[%c0_54, %c2_55, %c2_56, %c0_57] : memref<2x18x18x4xf32, #tpu.memory_space<vmem>>, vector<2x16x16x4xf32>
    %51 = vector.shape_cast %50 : vector<2x16x16x4xf32> to vector<512x4xf32>
    %52 = tpu.concatenate %35, %37, %39, %41, %43, %45, %47, %49, %51 in 1 : vector<512x4xf32>, vector<512x4xf32>, vector<512x4xf32>, vector<512x4xf32>, vector<512x4xf32>, vector<512x4xf32>, vector<512x4xf32>, vector<512x4xf32>, vector<512x4xf32> -> vector<512x36xf32>
    %c0_58 = arith.constant 0 : index
    %c0_59 = arith.constant 0 : index
    %53 = vector.load %arg3[%c0_58, %c0_59] : memref<36x4xf32, #tpu.memory_space<vmem>>, vector<36x4xf32>
    %cst_60 = arith.constant dense<0.000000e+00> : vector<512x4xf32>
    %54 = tpu.matmul %52, %53, %cst_60 {dimension_numbers = #tpu.dot_dimension_numbers<[1], [0], [0], [1], [0, 0, 1, 1], [], []>} : vector<512x36xf32>, vector<36x4xf32>, vector<512x4xf32> -> vector<512x4xf32>
    %cst_61 = arith.constant dense<0.000000e+00> : vector<1x4xf32>
    %55 = tpu.matmul %1, %54, %cst_61 {dimension_numbers = #tpu.dot_dimension_numbers<[1], [0], [0], [1], [0, 0, 1, 1], [], []>} : vector<1x512xf32>, vector<512x4xf32>, vector<1x4xf32> -> vector<1x4xf32>
    %56 = arith.mulf %54, %54 : vector<512x4xf32>
    %cst_62 = arith.constant dense<0.000000e+00> : vector<1x4xf32>
    %57 = tpu.matmul %1, %56, %cst_62 {dimension_numbers = #tpu.dot_dimension_numbers<[1], [0], [0], [1], [0, 0, 1, 1], [], []>} : vector<1x512xf32>, vector<512x4xf32>, vector<1x4xf32> -> vector<1x4xf32>
    %cst_63 = arith.constant 0.001953125 : f32
    %58 = vector.broadcast %cst_63 : f32 to vector<1x4xf32>
    %59 = arith.mulf %55, %58 : vector<1x4xf32>
    %cst_64 = arith.constant 0.001953125 : f32
    %60 = vector.broadcast %cst_64 : f32 to vector<1x4xf32>
    %61 = arith.mulf %57, %60 : vector<1x4xf32>
    %62 = arith.mulf %59, %59 : vector<1x4xf32>
    %63 = arith.subf %61, %62 : vector<1x4xf32>
    %cst_65 = arith.constant 0.000000e+00 : f32
    %64 = vector.broadcast %cst_65 : f32 to vector<1x4xf32>
    %65 = arith.maximumf %63, %64 : vector<1x4xf32>
    %66 = vector.broadcast %59 : vector<1x4xf32> to vector<512x4xf32>
    %67 = arith.subf %54, %66 : vector<512x4xf32>
    %cst_66 = arith.constant 9.99999974E-6 : f32
    %68 = vector.broadcast %cst_66 : f32 to vector<1x4xf32>
    %69 = arith.addf %65, %68 : vector<1x4xf32>
    %70 = math.rsqrt %69 : vector<1x4xf32>
    %71 = vector.broadcast %70 : vector<1x4xf32> to vector<512x4xf32>
    %72 = arith.mulf %67, %71 : vector<512x4xf32>
    %c0_67 = arith.constant 0 : index
    %c0_68 = arith.constant 0 : index
    %73 = vector.load %arg7[%c0_67, %c0_68] : memref<1x4xf32, #tpu.memory_space<vmem>>, vector<1x4xf32>
    %74 = vector.broadcast %73 : vector<1x4xf32> to vector<512x4xf32>
    %75 = arith.mulf %72, %74 : vector<512x4xf32>
    %c0_69 = arith.constant 0 : index
    %c0_70 = arith.constant 0 : index
    %76 = vector.load %arg8[%c0_69, %c0_70] : memref<1x4xf32, #tpu.memory_space<vmem>>, vector<1x4xf32>
    %77 = vector.broadcast %76 : vector<1x4xf32> to vector<512x4xf32>
    %78 = arith.addf %75, %77 : vector<512x4xf32>
    %cst_71 = arith.constant 0.000000e+00 : f32
    %79 = vector.broadcast %cst_71 : f32 to vector<512x4xf32>
    %80 = arith.maximumf %78, %79 : vector<512x4xf32>
    %c0_72 = arith.constant 0 : index
    %c0_73 = arith.constant 0 : index
    %81 = vector.load %arg4[%c0_72, %c0_73] : memref<4x16xf32, #tpu.memory_space<vmem>>, vector<4x16xf32>
    %cst_74 = arith.constant dense<0.000000e+00> : vector<512x16xf32>
    %82 = tpu.matmul %80, %81, %cst_74 {dimension_numbers = #tpu.dot_dimension_numbers<[1], [0], [0], [1], [0, 0, 1, 1], [], []>} : vector<512x4xf32>, vector<4x16xf32>, vector<512x16xf32> -> vector<512x16xf32>
    %cst_75 = arith.constant dense<0.000000e+00> : vector<1x16xf32>
    %83 = tpu.matmul %1, %82, %cst_75 {dimension_numbers = #tpu.dot_dimension_numbers<[1], [0], [0], [1], [0, 0, 1, 1], [], []>} : vector<1x512xf32>, vector<512x16xf32>, vector<1x16xf32> -> vector<1x16xf32>
    %84 = arith.mulf %82, %82 : vector<512x16xf32>
    %cst_76 = arith.constant dense<0.000000e+00> : vector<1x16xf32>
    %85 = tpu.matmul %1, %84, %cst_76 {dimension_numbers = #tpu.dot_dimension_numbers<[1], [0], [0], [1], [0, 0, 1, 1], [], []>} : vector<1x512xf32>, vector<512x16xf32>, vector<1x16xf32> -> vector<1x16xf32>
    %cst_77 = arith.constant 0.001953125 : f32
    %86 = vector.broadcast %cst_77 : f32 to vector<1x16xf32>
    %87 = arith.mulf %83, %86 : vector<1x16xf32>
    %cst_78 = arith.constant 0.001953125 : f32
    %88 = vector.broadcast %cst_78 : f32 to vector<1x16xf32>
    %89 = arith.mulf %85, %88 : vector<1x16xf32>
    %90 = arith.mulf %87, %87 : vector<1x16xf32>
    %91 = arith.subf %89, %90 : vector<1x16xf32>
    %cst_79 = arith.constant 0.000000e+00 : f32
    %92 = vector.broadcast %cst_79 : f32 to vector<1x16xf32>
    %93 = arith.maximumf %91, %92 : vector<1x16xf32>
    %94 = vector.broadcast %87 : vector<1x16xf32> to vector<512x16xf32>
    %95 = arith.subf %82, %94 : vector<512x16xf32>
    %cst_80 = arith.constant 9.99999974E-6 : f32
    %96 = vector.broadcast %cst_80 : f32 to vector<1x16xf32>
    %97 = arith.addf %93, %96 : vector<1x16xf32>
    %98 = math.rsqrt %97 : vector<1x16xf32>
    %99 = vector.broadcast %98 : vector<1x16xf32> to vector<512x16xf32>
    %100 = arith.mulf %95, %99 : vector<512x16xf32>
    %c0_81 = arith.constant 0 : index
    %c0_82 = arith.constant 0 : index
    %101 = vector.load %arg9[%c0_81, %c0_82] : memref<1x16xf32, #tpu.memory_space<vmem>>, vector<1x16xf32>
    %102 = vector.broadcast %101 : vector<1x16xf32> to vector<512x16xf32>
    %103 = arith.mulf %100, %102 : vector<512x16xf32>
    %c0_83 = arith.constant 0 : index
    %c0_84 = arith.constant 0 : index
    %104 = vector.load %arg10[%c0_83, %c0_84] : memref<1x16xf32, #tpu.memory_space<vmem>>, vector<1x16xf32>
    %105 = vector.broadcast %104 : vector<1x16xf32> to vector<512x16xf32>
    %106 = arith.addf %103, %105 : vector<512x16xf32>
    %107 = arith.addf %106, %0 : vector<512x16xf32>
    %cst_85 = arith.constant 0.000000e+00 : f32
    %108 = vector.broadcast %cst_85 : f32 to vector<512x16xf32>
    %109 = arith.maximumf %107, %108 : vector<512x16xf32>
    %c0_86 = arith.constant 0 : index
    %c0_87 = arith.constant 0 : index
    %110 = vector.load %arg11[%c0_86, %c0_87] : memref<512x16xf32, #tpu.memory_space<vmem>>, vector<512x16xf32>
    tpu.vector_store %arg11[%c0_86, %c0_87], %109 {strides = array<i32>} : memref<512x16xf32, #tpu.memory_space<vmem>>, vector<512x16xf32>,
    return
  }
  func.func @transform_0(%arg0: i32) -> (i32, i32) {
    %c0_i32 = arith.constant 0 : i32
    %c0_i32_0 = arith.constant 0 : i32
    %c0_i32_1 = arith.constant 0 : i32
    return %c0_i32, %c0_i32_0 : i32, i32
  }
  func.func @transform_1(%arg0: i32) -> (i32, i32) {
    %c0_i32 = arith.constant 0 : i32
    %c0_i32_0 = arith.constant 0 : i32
    %c0_i32_1 = arith.constant 0 : i32
    return %c0_i32, %c0_i32_0 : i32, i32
  }
  func.func @transform_2(%arg0: i32) -> (i32, i32) {
    %c0_i32 = arith.constant 0 : i32
    %c0_i32_0 = arith.constant 0 : i32
    %c0_i32_1 = arith.constant 0 : i32
    return %c0_i32, %c0_i32_0 : i32, i32
  }
  func.func @transform_3(%arg0: i32) -> (i32, i32) {
    %c0_i32 = arith.constant 0 : i32
    %c0_i32_0 = arith.constant 0 : i32
    %c0_i32_1 = arith.constant 0 : i32
    return %c0_i32, %c0_i32_0 : i32, i32
  }
  func.func @transform_4(%arg0: i32) -> (i32, i32) {
    %c0_i32 = arith.constant 0 : i32
    %c0_i32_0 = arith.constant 0 : i32
    %c0_i32_1 = arith.constant 0 : i32
    return %c0_i32, %c0_i32_0 : i32, i32
  }
  func.func @transform_5(%arg0: i32) -> (i32, i32) {
    %c0_i32 = arith.constant 0 : i32
    %c0_i32_0 = arith.constant 0 : i32
    %c0_i32_1 = arith.constant 0 : i32
    return %c0_i32, %c0_i32_0 : i32, i32
  }
  func.func @transform_6(%arg0: i32) -> (i32, i32) {
    %c0_i32 = arith.constant 0 : i32
    %c0_i32_0 = arith.constant 0 : i32
    %c0_i32_1 = arith.constant 0 : i32
    return %c0_i32, %c0_i32_0 : i32, i32
  }
  func.func @transform_7(%arg0: i32) -> (i32, i32) {
    %c0_i32 = arith.constant 0 : i32
    %c0_i32_0 = arith.constant 0 : i32
    %c0_i32_1 = arith.constant 0 : i32
    return %c0_i32, %c0_i32_0 : i32, i32
  }
  func.func @transform_8(%arg0: i32) -> (i32, i32) {
    %c0_i32 = arith.constant 0 : i32
    %c0_i32_0 = arith.constant 0 : i32
    %c0_i32_1 = arith.constant 0 : i32
    return %c0_i32, %c0_i32_0 : i32, i32
  }
  func.func @transform_9(%arg0: i32) -> (i32, i32) {
    %c0_i32 = arith.constant 0 : i32
    %c0_i32_0 = arith.constant 0 : i32
    %c0_i32_1 = arith.constant 0 : i32
    return %c0_i32, %c0_i32_0 : i32, i32
  }
  func.func @transform_10(%arg0: i32) -> (i32, i32) {
    %c0_i32 = arith.constant 0 : i32
    %c0_i32_0 = arith.constant 0 : i32
    %c0_i32_1 = arith.constant 0 : i32
    return %c0_i32, %c0_i32_0 : i32, i32
  }
}

</mosaic_0001>

<bundles_post_ra>
// kernel: tpu_custom_call.1
= control target key start
LH: loop header
LB: loop body
LE: loop exit
PB: predicated region body
PF: predicated region fallthrough
CT: control target
= control target key end

     0   :  { %vm101_vm0 = vcmask 130048   ;;  %vm1073_vm1 = vcmask 31744   ;;  %v6761_v15 = vmov 0.0   ;;  %vm1076_vm2 = vcmask 25600   ;;  %s6763_s19 = smov 4   ;;  %s6764_s20 = smov 8   ;;  %s12738_s1 = inlined_call_operand.vmem [shape: f32[16,4], index: 1, kind: input, shape index: {}]   ;;  %s12739_s0 = inlined_call_operand.vmem [shape: f32[512,16], index: 0, kind: input, shape index: {}]   ;;  %s12740_s4 = inlined_call_operand.vmem [shape: f32[1,4], index: 4, kind: input, shape index: {}]   ;;  %s12741_s5 = inlined_call_operand.vmem [shape: f32[1,4], index: 5, kind: input, shape index: {}]   ;;  %s12742_s2 = inlined_call_operand.vmem [shape: f32[36,4], index: 2, kind: input, shape index: {}]   ;;  %s12743_s6 = inlined_call_operand.vmem [shape: f32[1,4], index: 6, kind: input, shape index: {}]   ;;  %s12744_s7 = inlined_call_operand.vmem [shape: f32[1,4], index: 7, kind: input, shape index: {}]   ;;  %s12745_s3 = inlined_call_operand.vmem [shape: f32[4,16], index: 3, kind: input, shape index: {}]   ;;  %s12746_s8 = inlined_call_operand.vmem [shape: f32[1,16], index: 8, kind: input, shape index: {}]   ;;  %s12747_s9 = inlined_call_operand.vmem [shape: f32[1,16], index: 9, kind: input, shape index: {}]   ;;  %s12748_s10 = inlined_call_operand.vmem [shape: f32[512,16], index: 10, kind: output, shape index: {}]  }
   0x1   :  { %v100_v0 = vld [vmem:[%s12738_s1 + $0x8] sm:$0xff]  ;;  %v99_v1 = vld [vmem:[%s12738_s1] sm:$0xff]  ;;  %v37_v4 = vld [vmem:[%s12739_s0 + $0x10] sm:$0xff]  ;;  %1078 = vst.msk [vmem:[#allocation2 + $0x18] sm:$0xff] %vm1073_vm1, %v6761_v15  ;;  %s6765_s21 = smov 32   ;;  %s6767_s24 = smov 24  }
   0x2   :  { %308 = vmatpush.msra.mxu0 %v100_v0  ;;  %v35_v2 = vld [vmem:[%s12739_s0] sm:$0xff]  ;;  %v36_v3 = vld [vmem:[%s12739_s0 + $0x8] sm:$0xff]  ;;  %v38_v5 = vld [vmem:[%s12739_s0 + $0x18] sm:$0xff]  ;;  %1079 = vst.msk [vmem:[#allocation2 + $0x20] sm:$0xff] %vm1073_vm1, %v6761_v15  ;;  %s6768_s25 = smov 20   ;;  %s6769_s26 = smov 12  }
   0x3   :  { %v39_v6 = vld [vmem:[%s12739_s0 + $0x20] sm:$0xff]  ;;  %v40_v7 = vld [vmem:[%s12739_s0 + $0x28] sm:$0xff]  ;;  %v41_v8 = vld [vmem:[%s12739_s0 + $0x30] sm:$0xff]  ;;  %1074 = vst.msk [vmem:[#allocation2] sm:$0xff] %vm1073_vm1, %v6761_v15  ;;  %s6770_s27 = smov 16   ;;  %vm4589_vm6 = vcmask 1043456  }
   0x4   :  { %309 = vmatpush.msra.mxu0 %v99_v1  ;;  %v42_v9 = vld [vmem:[%s12739_s0 + $0x38] sm:$0xff]  ;;  %v43_v10 = vld [vmem:[%s12739_s0 + $0x40] sm:$0xff]  ;;  %v44_v11 = vld [vmem:[%s12739_s0 + $0x48] sm:$0xff]  ;;  %1075 = vst.msk [vmem:[#allocation2 + $0x8] sm:$0xff] %vm1073_vm1, %v6761_v15  ;;  %vm3937_vm7 = vcmask 64512   ;;  %vm4002_vm8 = vcmask 97280  }
   0x5   :  { %6479 = vmatmul.msk.f32.vlgmr.msra.gmra.mxu0 %vm101_vm0, %v35_v2  ;;  %v45_v12 = vld [vmem:[%s12739_s0 + $0x50] sm:$0xff]  ;;  %v46_v13 = vld [vmem:[%s12739_s0 + $0x58] sm:$0xff]  ;;  %v47_v14 = vld [vmem:[%s12739_s0 + $0x60] sm:$0xff]  ;;  %1081 = vst.msk [vmem:[#allocation2 + $0x30] sm:$0xff] %vm1073_vm1, %v6761_v15  ;;  %vm4131_vm9 = vcmask 162816   ;;  %vm4196_vm10 = vcmask 195584  }
   0x6   :  { %1082 = vst.msk [vmem:[#allocation2 + $0x38] sm:$0xff] %vm1073_vm1, %v6761_v15  ;;  %v48_v16 = vld [vmem:[%s12739_s0 + $0x68] sm:$0xff]  ;;  %v49_v17 = vld [vmem:[%s12739_s0 + $0x70] sm:$0xff]  ;;  %v50_v18 = vld [vmem:[%s12739_s0 + $0x78] sm:$0xff]  ;;  %vm4261_vm11 = vcmask 228352   ;;  %vm4326_vm12 = vcmask 261120  }
   0x7   :  { %1084 = vst.msk [vmem:[#allocation2 + $0x48] sm:$0xff] %vm1073_vm1, %v6761_v15  ;;  %v51_v20 = vld [vmem:[%s12739_s0 + $0x80] sm:$0xff]  ;;  %v52_v22 = vld [vmem:[%s12739_s0 + $0x88] sm:$0xff]  ;;  %v53_v24 = vld [vmem:[%s12739_s0 + $0x90] sm:$0xff]  ;;  %vm4396_vm13 = vcmask 293888  }
   0x8   :  { %1085 = vst.msk [vmem:[#allocation2 + $0x50] sm:$0xff] %vm1073_vm1, %v6761_v15  ;;  %v54_v26 = vld [vmem:[%s12739_s0 + $0x98] sm:$0xff]  ;;  %v55_v28 = vld [vmem:[%s12739_s0 + $0xa0] sm:$0xff]  ;;  %v56_v30 = vld [vmem:[%s12739_s0 + $0xa8] sm:$0xff] }
   0x9   :  { %1087 = vst.msk [vmem:[#allocation2 + $0x60] sm:$0xff] %vm1073_vm1, %v6761_v15  ;;  %v57_v32 = vld [vmem:[%s12739_s0 + $0xb0] sm:$0xff]  ;;  %v58_v34 = vld [vmem:[%s12739_s0 + $0xb8] sm:$0xff]  ;;  %v59_v36 = vld [vmem:[%s12739_s0 + $0xc0] sm:$0xff] }
   0xa   :  { %1088 = vst.msk [vmem:[#allocation2 + $0x68] sm:$0xff] %vm1073_vm1, %v6761_v15  ;;  %v60_v38 = vld [vmem:[%s12739_s0 + $0xc8] sm:$0xff]  ;;  %v61_v40 = vld [vmem:[%s12739_s0 + $0xd0] sm:$0xff]  ;;  %v62_v42 = vld [vmem:[%s12739_s0 + $0xd8] sm:$0xff] }
   0xb   :  { %1090 = vst.msk [vmem:[#allocation2 + $0x78] sm:$0xff] %vm1073_vm1, %v6761_v15  ;;  %v63_v44 = vld [vmem:[%s12739_s0 + $0xe0] sm:$0xff]  ;;  %v64_v46 = vld [vmem:[%s12739_s0 + $0xe8] sm:$0xff]  ;;  %v65_v48 = vld [vmem:[%s12739_s0 + $0xf0] sm:$0xff] }
   0xc   :  { %1091 = vst.msk [vmem:[#allocation2 + $0x80] sm:$0xff] %vm1073_vm1, %v6761_v15  ;;  %v66_v50 = vld [vmem:[%s12739_s0 + $0xf8] sm:$0xff]  ;;  %v67_v52 = vld [vmem:[%s12739_s0 + $0x100] sm:$0xff]  ;;  %v68_v54 = vld [vmem:[%s12739_s0 + $0x108] sm:$0xff] }
   0xd   :  { %6480 = vmatmul.msk.f32.gmra.mxu0 %vm101_vm0, %v36_v3  ;;  %1093 = vst.msk [vmem:[#allocation2 + $0x90] sm:$0xff] %vm1073_vm1, %v6761_v15  ;;  %v69_v56 = vld [vmem:[%s12739_s0 + $0x110] sm:$0xff]  ;;  %v70_v58 = vld [vmem:[%s12739_s0 + $0x118] sm:$0xff]  ;;  %v71_v60 = vld [vmem:[%s12739_s0 + $0x120] sm:$0xff] }
   0xe   :  { %1094 = vst.msk [vmem:[#allocation2 + $0x98] sm:$0xff] %vm1073_vm1, %v6761_v15  ;;  %v72_v62 = vld [vmem:[%s12739_s0 + $0x128] sm:$0xff]  ;;  %v73_v0 = vld [vmem:[%s12739_s0 + $0x130] sm:$0xff]  ;;  %v74_v2 = vld [vmem:[%s12739_s0 + $0x138] sm:$0xff] }
   0xf   :  { %1096 = vst.msk [vmem:[#allocation2 + $0xa8] sm:$0xff] %vm1073_vm1, %v6761_v15 }
  0x10   :  { %1097 = vst.msk [vmem:[#allocation2 + $0xb0] sm:$0xff] %vm1073_vm1, %v6761_v15 }
  0x11   :  { %1099 = vst.msk [vmem:[#allocation2 + $0xc0] sm:$0xff] %vm1073_vm1, %v6761_v15 }
  0x12   :  { %1100 = vst.msk [vmem:[#allocation2 + $0xc8] sm:$0xff] %vm1073_vm1, %v6761_v15 }
  0x13   :  { %1102 = vst.msk [vmem:[#allocation2 + $0xd8] sm:$0xff] %vm1073_vm1, %v6761_v15 }
  0x14   :  { %1103 = vst.msk [vmem:[#allocation2 + $0xe0] sm:$0xff] %vm1073_vm1, %v6761_v15 }
  0x15   :  { %6481 = vmatmul.msk.f32.gmra.mxu0 %vm101_vm0, %v37_v4  ;;  %1105 = vst.msk [vmem:[#allocation2 + $0xf0] sm:$0xff] %vm1073_vm1, %v6761_v15  ;;  %v75_v4 = vld [vmem:[%s12739_s0 + $0x140] sm:$0xff] }
  0x16   :  { %1106 = vst.msk [vmem:[#allocation2 + $0xf8] sm:$0xff] %vm1073_vm1, %v6761_v15 }
  0x17   :  { %1108 = vst.msk [vmem:[#allocation2 + $0x108] sm:$0xff] %vm1073_vm1, %v6761_v15 }
  0x18   :  { %1109 = vst.msk [vmem:[#allocation2 + $0x110] sm:$0xff] %vm1073_vm1, %v6761_v15 }
  0x19   :  { %1111 = vst.msk [vmem:[#allocation2 + $0x120] sm:$0xff] %vm1073_vm1, %v6761_v15 }
  0x1a   :  { %1112 = vst.msk [vmem:[#allocation2 + $0x128] sm:$0xff] %vm1073_vm1, %v6761_v15 }
  0x1b   :  { %1114 = vst.msk [vmem:[#allocation2 + $0x138] sm:$0xff] %vm1073_vm1, %v6761_v15 }
  0x1c   :  { %1115 = vst.msk [vmem:[#allocation2 + $0x140] sm:$0xff] %vm1073_vm1, %v6761_v15 }
  0x1d   :  { %6482 = vmatmul.msk.f32.gmra.mxu0 %vm101_vm0, %v38_v5  ;;  %1117 = vst.msk [vmem:[#allocation2 + $0x150] sm:$0xff] %vm1073_vm1, %v6761_v15 }
  0x1e   :  { %1118 = vst.msk [vmem:[#allocation2 + $0x158] sm:$0xff] %vm1073_vm1, %v6761_v15 }
  0x1f   :  { %1120 = vst.msk [vmem:[#allocation2 + $0x168] sm:$0xff] %vm1073_vm1, %v6761_v15 }
  0x20   :  { %1121 = vst.msk [vmem:[#allocation2 + $0x170] sm:$0xff] %vm1073_vm1, %v6761_v15 }
  0x21   :  { %1123 = vst.msk [vmem:[#allocation2 + $0x180] sm:$0xff] %vm1073_vm1, %v6761_v15 }
  0x22   :  { %1124 = vst.msk [vmem:[#allocation2 + $0x188] sm:$0xff] %vm1073_vm1, %v6761_v15 }
  0x23   :  { %1126 = vst.msk [vmem:[#allocation2 + $0x198] sm:$0xff] %vm1073_vm1, %v6761_v15 }
  0x24   :  { %1127 = vst.msk [vmem:[#allocation2 + $0x1a0] sm:$0xff] %vm1073_vm1, %v6761_v15 }
  0x25   :  { %6483 = vmatmul.msk.f32.gmra.mxu0 %vm101_vm0, %v39_v6  ;;  %1129 = vst.msk [vmem:[#allocation2 + $0x1b0] sm:$0xff] %vm1073_vm1, %v6761_v15  ;;  %v76_v6 = vld [vmem:[%s12739_s0 + $0x148] sm:$0xff] }
  0x26   :  { %1130 = vst.msk [vmem:[#allocation2 + $0x1b8] sm:$0xff] %vm1073_vm1, %v6761_v15 }
  0x27   :  { %1132 = vst.msk [vmem:[#allocation2 + $0x1c8] sm:$0xff] %vm1073_vm1, %v6761_v15 }
  0x28   :  { %1133 = vst.msk [vmem:[#allocation2 + $0x1d0] sm:$0xff] %vm1073_vm1, %v6761_v15 }
  0x29   :  { %1135 = vst.msk [vmem:[#allocation2 + $0x1e0] sm:$0xff] %vm1073_vm1, %v6761_v15 }
  0x2a   :  { %1136 = vst.msk [vmem:[#allocation2 + $0x1e8] sm:$0xff] %vm1073_vm1, %v6761_v15 }
  0x2b   :  { %1138 = vst.msk [vmem:[#allocation2 + $0x1f8] sm:$0xff] %vm1073_vm1, %v6761_v15 }
  0x2c   :  { %1139 = vst.msk [vmem:[#allocation2 + $0x200] sm:$0xff] %vm1073_vm1, %v6761_v15 }
  0x2d   :  { %6484 = vmatmul.msk.f32.gmra.mxu0 %vm101_vm0, %v40_v7  ;;  %1141 = vst.msk [vmem:[#allocation2 + $0x210] sm:$0xff] %vm1073_vm1, %v6761_v15 }
  0x2e   :  { %1142 = vst.msk [vmem:[#allocation2 + $0x218] sm:$0xff] %vm1073_vm1, %v6761_v15 }
  0x2f   :  { %1144 = vst.msk [vmem:[#allocation2 + $0x228] sm:$0xff] %vm1073_vm1, %v6761_v15 }
  0x30   :  { %1145 = vst.msk [vmem:[#allocation2 + $0x230] sm:$0xff] %vm1073_vm1, %v6761_v15 }
  0x31   :  { %1147 = vst.msk [vmem:[#allocation2 + $0x240] sm:$0xff] %vm1073_vm1, %v6761_v15 }
  0x32   :  { %1148 = vst.msk [vmem:[#allocation2 + $0x248] sm:$0xff] %vm1073_vm1, %v6761_v15 }
  0x33   :  { %1150 = vst.msk [vmem:[#allocation2 + $0x258] sm:$0xff] %vm1073_vm1, %v6761_v15 }
  0x34   :  { %1151 = vst.msk [vmem:[#allocation2 + $0x260] sm:$0xff] %vm1073_vm1, %v6761_v15 }
  0x35   :  { %6485 = vmatmul.msk.f32.gmra.mxu0 %vm101_vm0, %v41_v8  ;;  %1153 = vst.msk [vmem:[#allocation2 + $0x270] sm:$0xff] %vm1073_vm1, %v6761_v15  ;;  %v77_v8 = vld [vmem:[%s12739_s0 + $0x150] sm:$0xff] }
  0x36   :  { %1154 = vst.msk [vmem:[#allocation2 + $0x278] sm:$0xff] %vm1073_vm1, %v6761_v15 }
  0x37   :  { %1156 = vst.msk [vmem:[#allocation2 + $0x288] sm:$0xff] %vm1073_vm1, %v6761_v15 }
  0x38   :  { %1157 = vst.msk [vmem:[#allocation2 + $0x290] sm:$0xff] %vm1073_vm1, %v6761_v15 }
  0x39   :  { %1159 = vst.msk [vmem:[#allocation2 + $0x2a0] sm:$0xff] %vm1073_vm1, %v6761_v15 }
  0x3a   :  { %1160 = vst.msk [vmem:[#allocation2 + $0x2a8] sm:$0xff] %vm1073_vm1, %v6761_v15 }
  0x3b   :  { %1162 = vst.msk [vmem:[#allocation2 + $0x2b8] sm:$0xff] %vm1073_vm1, %v6761_v15 }
  0x3c   :  { %1163 = vst.msk [vmem:[#allocation2 + $0x2c0] sm:$0xff] %vm1073_vm1, %v6761_v15 }
  0x3d   :  { %6486 = vmatmul.msk.f32.gmra.mxu0 %vm101_vm0, %v42_v9  ;;  %1165 = vst.msk [vmem:[#allocation2 + $0x2d0] sm:$0xff] %vm1073_vm1, %v6761_v15 }
  0x3e   :  { %1166 = vst.msk [vmem:[#allocation2 + $0x2d8] sm:$0xff] %vm1073_vm1, %v6761_v15 }
  0x3f   :  { %1168 = vst.msk [vmem:[#allocation2 + $0x2e8] sm:$0xff] %vm1073_vm1, %v6761_v15 }
  0x40   :  { %1169 = vst.msk [vmem:[#allocation2 + $0x2f0] sm:$0xff] %vm1073_vm1, %v6761_v15 }
  0x41   :  { %1171 = vst.msk [vmem:[#allocation2 + $0x300] sm:$0xff] %vm1073_vm1, %v6761_v15 }
  0x42   :  { %1172 = vst.msk [vmem:[#allocation2 + $0x308] sm:$0xff] %vm1073_vm1, %v6761_v15 }
  0x43   :  { %1174 = vst.msk [vmem:[#allocation2 + $0x318] sm:$0xff] %vm1073_vm1, %v6761_v15 }
  0x44   :  { %1175 = vst.msk [vmem:[#allocation2 + $0x320] sm:$0xff] %vm1073_vm1, %v6761_v15 }
  0x45   :  { %6487 = vmatmul.msk.f32.gmra.mxu0 %vm101_vm0, %v43_v10  ;;  %1177 = vst.msk [vmem:[#allocation2 + $0x330] sm:$0xff] %vm1073_vm1, %v6761_v15  ;;  %v78_v10 = vld [vmem:[%s12739_s0 + $0x158] sm:$0xff] }
  0x46   :  { %1178 = vst.msk [vmem:[#allocation2 + $0x338] sm:$0xff] %vm1073_vm1, %v6761_v15 }
  0x47   :  { %1180 = vst.msk [vmem:[#allocation2 + $0x348] sm:$0xff] %vm1073_vm1, %v6761_v15 }
  0x48   :  { %1181 = vst.msk [vmem:[#allocation2 + $0x350] sm:$0xff] %vm1073_vm1, %v6761_v15 }
  0x49   :  { %1080 = vst.msk [vmem:[#allocation2 + $0x28] sm:$0x3] %vm1076_vm2, %v6761_v15 }
  0x4a   :  { %1077 = vst.msk [vmem:[#allocation2 + $0x10] sm:$0x3] %vm1076_vm2, %v6761_v15 }
  0x4b   :  { %1083 = vst.msk [vmem:[#allocation2 + $0x40] sm:$0x3] %vm1076_vm2, %v6761_v15 }
  0x4c   :  { %1086 = vst.msk [vmem:[#allocation2 + $0x58] sm:$0x3] %vm1076_vm2, %v6761_v15 }
  0x4d   :  { %6488 = vmatmul.msk.f32.gmra.mxu0 %vm101_vm0, %v44_v11  ;;  %1089 = vst.msk [vmem:[#allocation2 + $0x70] sm:$0x3] %vm1076_vm2, %v6761_v15 }
  0x4e   :  { %1092 = vst.msk [vmem:[#allocation2 + $0x88] sm:$0x3] %vm1076_vm2, %v6761_v15 }
  0x4f   :  { %1095 = vst.msk [vmem:[#allocation2 + $0xa0] sm:$0x3] %vm1076_vm2, %v6761_v15 }
  0x50   :  { %1098 = vst.msk [vmem:[#allocation2 + $0xb8] sm:$0x3] %vm1076_vm2, %v6761_v15 }
  0x51   :  { %1101 = vst.msk [vmem:[#allocation2 + $0xd0] sm:$0x3] %vm1076_vm2, %v6761_v15 }
  0x52   :  { %1104 = vst.msk [vmem:[#allocation2 + $0xe8] sm:$0x3] %vm1076_vm2, %v6761_v15 }
  0x53   :  { %1107 = vst.msk [vmem:[#allocation2 + $0x100] sm:$0x3] %vm1076_vm2, %v6761_v15 }
  0x54   :  { %1110 = vst.msk [vmem:[#allocation2 + $0x118] sm:$0x3] %vm1076_vm2, %v6761_v15 }
  0x55   :  { %6489 = vmatmul.msk.f32.gmra.mxu0 %vm101_vm0, %v45_v12  ;;  %1113 = vst.msk [vmem:[#allocation2 + $0x130] sm:$0x3] %vm1076_vm2, %v6761_v15  ;;  %v79_v12 = vld [vmem:[%s12739_s0 + $0x160] sm:$0xff] }
  0x56   :  { %1116 = vst.msk [vmem:[#allocation2 + $0x148] sm:$0x3] %vm1076_vm2, %v6761_v15 }
  0x57   :  { %1119 = vst.msk [vmem:[#allocation2 + $0x160] sm:$0x3] %vm1076_vm2, %v6761_v15 }
  0x58   :  { %1122 = vst.msk [vmem:[#allocation2 + $0x178] sm:$0x3] %vm1076_vm2, %v6761_v15 }
  0x59   :  { %1125 = vst.msk [vmem:[#allocation2 + $0x190] sm:$0x3] %vm1076_vm2, %v6761_v15 }
  0x5a   :  { %1128 = vst.msk [vmem:[#allocation2 + $0x1a8] sm:$0x3] %vm1076_vm2, %v6761_v15 }
  0x5b   :  { %1131 = vst.msk [vmem:[#allocation2 + $0x1c0] sm:$0x3] %vm1076_vm2, %v6761_v15 }
  0x5c   :  { %1134 = vst.msk [vmem:[#allocation2 + $0x1d8] sm:$0x3] %vm1076_vm2, %v6761_v15 }
  0x5d   :  { %6490 = vmatmul.msk.f32.gmra.mxu0 %vm101_vm0, %v46_v13  ;;  %1137 = vst.msk [vmem:[#allocation2 + $0x1f0] sm:$0x3] %vm1076_vm2, %v6761_v15 }
  0x5e   :  { %1140 = vst.msk [vmem:[#allocation2 + $0x208] sm:$0x3] %vm1076_vm2, %v6761_v15 }
  0x5f   :  { %1143 = vst.msk [vmem:[#allocation2 + $0x220] sm:$0x3] %vm1076_vm2, %v6761_v15 }
  0x60   :  { %1146 = vst.msk [vmem:[#allocation2 + $0x238] sm:$0x3] %vm1076_vm2, %v6761_v15 }
  0x61   :  { %1149 = vst.msk [vmem:[#allocation2 + $0x250] sm:$0x3] %vm1076_vm2, %v6761_v15 }
  0x62   :  { %1152 = vst.msk [vmem:[#allocation2 + $0x268] sm:$0x3] %vm1076_vm2, %v6761_v15 }
  0x63   :  { %1155 = vst.msk [vmem:[#allocation2 + $0x280] sm:$0x3] %vm1076_vm2, %v6761_v15 }
  0x64   :  { %1158 = vst.msk [vmem:[#allocation2 + $0x298] sm:$0x3] %vm1076_vm2, %v6761_v15 }
  0x65   :  { %6491 = vmatmul.msk.f32.gmra.mxu0 %vm101_vm0, %v47_v14  ;;  %1161 = vst.msk [vmem:[#allocation2 + $0x2b0] sm:$0x3] %vm1076_vm2, %v6761_v15  ;;  %v80_v14 = vld [vmem:[%s12739_s0 + $0x168] sm:$0xff] }
  0x66   :  { %1164 = vst.msk [vmem:[#allocation2 + $0x2c8] sm:$0x3] %vm1076_vm2, %v6761_v15 }
  0x67   :  { %1167 = vst.msk [vmem:[#allocation2 + $0x2e0] sm:$0x3] %vm1076_vm2, %v6761_v15 }
  0x68   :  { %1170 = vst.msk [vmem:[#allocation2 + $0x2f8] sm:$0x3] %vm1076_vm2, %v6761_v15 }
  0x69   :  { %1173 = vst.msk [vmem:[#allocation2 + $0x310] sm:$0x3] %vm1076_vm2, %v6761_v15 }
  0x6a   :  { %1176 = vst.msk [vmem:[#allocation2 + $0x328] sm:$0x3] %vm1076_vm2, %v6761_v15 }
  0x6b   :  { %1179 = vst.msk [vmem:[#allocation2 + $0x340] sm:$0x3] %vm1076_vm2, %v6761_v15 }
  0x6c   :  { %1182 = vst.msk [vmem:[#allocation2 + $0x358] sm:$0x3] %vm1076_vm2, %v6761_v15 }
  0x6d   :  { %6492 = vmatmul.msk.f32.gmra.mxu0 %vm101_vm0, %v48_v16  ;;  %v81_v16 = vld [vmem:[%s12739_s0 + $0x170] sm:$0xff] }
  0x75   :  { %6493 = vmatmul.msk.f32.gmra.mxu0 %vm101_vm0, %v49_v17 }
  0x7d   :  { %6494 = vmatmul.msk.f32.gmra.mxu0 %vm101_vm0, %v50_v18  ;;  %v82_v18 = vld [vmem:[%s12739_s0 + $0x178] sm:$0xff] }
  0x82   :  { %v6958_v19 = vpop.f32.mrf.mxu0 }
  0x85   :  { %6495 = vmatmul.msk.f32.gmra.mxu0 %vm101_vm0, %v51_v20 }
  0x8a   :  { %v6982_v21 = vpop.f32.mrf.mxu0 }
  0x8d   :  { %6496 = vmatmul.msk.f32.gmra.mxu0 %vm101_vm0, %v52_v22 }
  0x92   :  { %v7004_v23 = vpop.f32.mrf.mxu0 }
  0x95   :  { %6497 = vmatmul.msk.f32.gmra.mxu0 %vm101_vm0, %v53_v24 }
  0x9a   :  { %v7026_v25 = vpop.f32.mrf.mxu0 }
  0x9d   :  { %6498 = vmatmul.msk.f32.gmra.mxu0 %vm101_vm0, %v54_v26 }
  0xa2   :  { %v7048_v27 = vpop.f32.mrf.mxu0 }
  0xa5   :  { %6499 = vmatmul.msk.f32.gmra.mxu0 %vm101_vm0, %v55_v28 }
  0xaa   :  { %v7070_v29 = vpop.f32.mrf.mxu0 }
  0xad   :  { %6500 = vmatmul.msk.f32.gmra.mxu0 %vm101_vm0, %v56_v30  ;;  %v83_v30 = vld [vmem:[%s12739_s0 + $0x180] sm:$0xff] }
  0xb2   :  { %v7092_v31 = vpop.f32.mrf.mxu0 }
  0xb5   :  { %6501 = vmatmul.msk.f32.gmra.mxu0 %vm101_vm0, %v57_v32 }
  0xba   :  { %v7114_v33 = vpop.f32.mrf.mxu0 }
  0xbd   :  { %6502 = vmatmul.msk.f32.gmra.mxu0 %vm101_vm0, %v58_v34 }
  0xc2   :  { %v7136_v35 = vpop.f32.mrf.mxu0 }
  0xc5   :  { %6503 = vmatmul.msk.f32.gmra.mxu0 %vm101_vm0, %v59_v36 }
  0xca   :  { %v7158_v37 = vpop.f32.mrf.mxu0 }
  0xcd   :  { %6504 = vmatmul.msk.f32.gmra.mxu0 %vm101_vm0, %v60_v38 }
  0xd2   :  { %v7172_v39 = vpop.f32.mrf.mxu0 }
  0xd5   :  { %6505 = vmatmul.msk.f32.gmra.mxu0 %vm101_vm0, %v61_v40 }
  0xda   :  { %v7178_v41 = vpop.f32.mrf.mxu0 }
  0xdd   :  { %6506 = vmatmul.msk.f32.gmra.mxu0 %vm101_vm0, %v62_v42  ;;  %v84_v42 = vld [vmem:[%s12739_s0 + $0x188] sm:$0xff] }
  0xe2   :  { %v7184_v43 = vpop.f32.mrf.mxu0 }
  0xe5   :  { %6507 = vmatmul.msk.f32.gmra.mxu0 %vm101_vm0, %v63_v44 }
  0xea   :  { %v7190_v45 = vpop.f32.mrf.mxu0 }
  0xed   :  { %6508 = vmatmul.msk.f32.gmra.mxu0 %vm101_vm0, %v64_v46 }
  0xf2   :  { %v7196_v47 = vpop.f32.mrf.mxu0 }
  0xf5   :  { %6509 = vmatmul.msk.f32.gmra.mxu0 %vm101_vm0, %v65_v48 }
  0xfa   :  { %v7202_v49 = vpop.f32.mrf.mxu0 }
  0xfb   :  { %503 = vmatpush.msra.mxu1 %v7202_v49 }
  0xfd   :  { %6510 = vmatmul.msk.f32.gmra.mxu0 %vm101_vm0, %v66_v50  ;;  %504 = vmatpush.msra.mxu1 %v7196_v47 }
  0xff   :  { %505 = vmatpush.msra.mxu1 %v7190_v45 }
 0x101   :  { %506 = vmatpush.msra.mxu1 %v7184_v43 }
 0x102   :  { %v7212_v51 = vpop.f32.mrf.mxu0 }
 0x103   :  { %507 = vmatpush.msra.mxu1 %v7178_v41 }
 0x105   :  { %6511 = vmatmul.msk.f32.gmra.mxu0 %vm101_vm0, %v67_v52  ;;  %508 = vmatpush.msra.mxu1 %v7172_v39 }
 0x107   :  { %509 = vmatpush.msra.mxu1 %v7158_v37 }
 0x109   :  { %510 = vmatpush.msra.mxu1 %v7136_v35 }
 0x10a   :  { %v7222_v53 = vpop.f32.mrf.mxu0 }
 0x10b   :  { %511 = vmatpush.msra.mxu1 %v7114_v33 }
 0x10d   :  { %6512 = vmatmul.msk.f32.gmra.mxu0 %vm101_vm0, %v68_v54  ;;  %512 = vmatpush.msra.mxu1 %v7092_v31  ;;  %v85_v54 = vld [vmem:[%s12739_s0 + $0x190] sm:$0xff] }
 0x10f   :  { %513 = vmatpush.msra.mxu1 %v7070_v29 }
 0x111   :  { %514 = vmatpush.msra.mxu1 %v7048_v27 }
 0x112   :  { %v7232_v55 = vpop.f32.mrf.mxu0 }
 0x113   :  { %515 = vmatpush.msra.mxu1 %v7026_v25 }
 0x115   :  { %6513 = vmatmul.msk.f32.gmra.mxu0 %vm101_vm0, %v69_v56  ;;  %516 = vmatpush.msra.mxu1 %v7004_v23 }
 0x117   :  { %517 = vmatpush.msra.mxu1 %v6982_v21 }
 0x119   :  { %518 = vmatpush.msra.mxu1 %v6958_v19 }
 0x11a   :  { %v7242_v57 = vpop.f32.mrf.mxu0 }
 0x11b   :  { %v602_v56 = vmul.f32 %v7242_v57, %v7242_v57 }
 0x11d   :  { %6514 = vmatmul.msk.f32.gmra.mxu0 %vm101_vm0, %v70_v58  ;;  %v601_v58 = vmul.f32 %v7232_v55, %v7232_v55 }
 0x122   :  { %v7248_v59 = vpop.f32.mrf.mxu0 }
 0x123   :  { %v603_v52 = vmul.f32 %v7248_v59, %v7248_v59 }
 0x125   :  { %6515 = vmatmul.msk.f32.gmra.mxu0 %vm101_vm0, %v71_v60  ;;  %v600_v60 = vmul.f32 %v7222_v53, %v7222_v53 }
 0x12a   :  { %v7254_v61 = vpop.f32.mrf.mxu0 }
 0x12b   :  { %v604_v48 = vmul.f32 %v7254_v61, %v7254_v61 }
 0x12d   :  { %6516 = vmatmul.msk.f32.gmra.mxu0 %vm101_vm0, %v72_v62  ;;  %v598_v62 = vmul.f32 %v7202_v49, %v7202_v49 }
 0x132   :  { %v7260_v63 = vpop.f32.mrf.mxu0 }
 0x133   :  { %v605_v46 = vmul.f32 %v7260_v63, %v7260_v63 }
 0x135   :  { %6517 = vmatmul.msk.f32.gmra.mxu0 %vm101_vm0, %v73_v0 }
 0x13a   :  { %v7266_v1 = vpop.f32.mrf.mxu0 }
 0x13b   :  { %v606_v44 = vmul.f32 %v7266_v1, %v7266_v1 }
 0x13d   :  { %6518 = vmatmul.msk.f32.gmra.mxu0 %vm101_vm0, %v74_v2  ;;  %v599_v2 = vmul.f32 %v7212_v51, %v7212_v51 }
 0x142   :  { %v7272_v3 = vpop.f32.mrf.mxu0 }
 0x143   :  { %v607_v40 = vmul.f32 %v7272_v3, %v7272_v3 }
 0x145   :  { %6519 = vmatmul.msk.f32.gmra.mxu0 %vm101_vm0, %v75_v4  ;;  %v597_v4 = vmul.f32 %v7196_v47, %v7196_v47 }
 0x14a   :  { %v7278_v5 = vpop.f32.mrf.mxu0 }
 0x14b   :  { %v608_v36 = vmul.f32 %v7278_v5, %v7278_v5 }
 0x14d   :  { %6520 = vmatmul.msk.f32.gmra.mxu0 %vm101_vm0, %v76_v6  ;;  %v86_v6 = vld [vmem:[%s12739_s0 + $0x198] sm:$0xff] }
 0x152   :  { %v7284_v7 = vpop.f32.mrf.mxu0 }
 0x153   :  { %v609_v34 = vmul.f32 %v7284_v7, %v7284_v7 }
 0x155   :  { %6521 = vmatmul.msk.f32.gmra.mxu0 %vm101_vm0, %v77_v8  ;;  %v596_v8 = vmul.f32 %v7190_v45, %v7190_v45 }
 0x15a   :  { %v7290_v9 = vpop.f32.mrf.mxu0 }
 0x15b   :  { %12903 = vst [vmem:[#allocation3_spill] sm:$0xff] %v7290_v9  ;;  %v610_v32 = vmul.f32 %v7290_v9, %v7290_v9 }
 0x15d   :  { %6522 = vmatmul.msk.f32.gmra.mxu0 %vm101_vm0, %v78_v10  ;;  %v595_v10 = vmul.f32 %v7184_v43, %v7184_v43 }
 0x162   :  { %v7296_v11 = vpop.f32.mrf.mxu0 }
 0x163   :  { %12904 = vst [vmem:[#allocation4_spill] sm:$0xff] %v7296_v11  ;;  %v611_v28 = vmul.f32 %v7296_v11, %v7296_v11 }
 0x165   :  { %6523 = vmatmul.msk.f32.gmra.mxu0 %vm101_vm0, %v79_v12  ;;  %v594_v12 = vmul.f32 %v7178_v41, %v7178_v41 }
 0x16a   :  { %v7302_v13 = vpop.f32.mrf.mxu0 }
 0x16b   :  { %12905 = vst [vmem:[#allocation5_spill] sm:$0xff] %v7302_v13  ;;  %v612_v24 = vmul.f32 %v7302_v13, %v7302_v13 }
 0x16d   :  { %6524 = vmatmul.msk.f32.gmra.mxu0 %vm101_vm0, %v80_v14 }
 0x172   :  { %v7308_v15 = vpop.f32.mrf.mxu0 }
 0x173   :  { %12906 = vst [vmem:[#allocation6_spill] sm:$0xff] %v7308_v15  ;;  %v613_v22 = vmul.f32 %v7308_v15, %v7308_v15 }
 0x175   :  { %6525 = vmatmul.msk.f32.gmra.mxu0 %vm101_vm0, %v81_v16  ;;  %v593_v16 = vmul.f32 %v7172_v39, %v7172_v39 }
 0x17a   :  { %v7314_v17 = vpop.f32.mrf.mxu0 }
 0x17b   :  { %12907 = vst [vmem:[#allocation7_spill] sm:$0xff] %v7314_v17  ;;  %523 = vmatpush.msra.mxu2 %v7314_v17  ;;  %v614_v20 = vmul.f32 %v7314_v17, %v7314_v17 }
 0x17d   :  { %6526 = vmatmul.msk.f32.gmra.mxu0 %vm101_vm0, %v82_v18  ;;  %524 = vmatpush.msra.mxu2 %v7308_v15  ;;  %v87_v18 = vld [vmem:[%s12739_s0 + $0x1a0] sm:$0xff] }
 0x17e   :  { %667 = vmatpush.msra.mxu3 %v614_v20  ;;  %v592_v20 = vmul.f32 %v7158_v37, %v7158_v37 }
 0x17f   :  { %525 = vmatpush.msra.mxu2 %v7302_v13 }
 0x180   :  { %668 = vmatpush.msra.mxu3 %v613_v22  ;;  %v591_v22 = vmul.f32 %v7136_v35, %v7136_v35 }
 0x181   :  { %526 = vmatpush.msra.mxu2 %v7296_v11 }
 0x182   :  { %669 = vmatpush.msra.mxu3 %v612_v24  ;;  %v7330_v26 = vpop.f32.mrf.mxu0  ;;  %v590_v24 = vmul.f32 %v7114_v33, %v7114_v33 }
 0x183   :  { %527 = vmatpush.msra.mxu2 %v7290_v9 }
 0x184   :  { %670 = vmatpush.msra.mxu3 %v611_v28 }
 0x185   :  { %6527 = vmatmul.msk.f32.gmra.mxu0 %vm101_vm0, %v83_v30  ;;  %528 = vmatpush.msra.mxu2 %v7284_v7  ;;  %v589_v30 = vmul.f32 %v7092_v31, %v7092_v31 }
 0x186   :  { %671 = vmatpush.msra.mxu3 %v610_v32  ;;  %v88_v32 = vld [vmem:[%s12739_s0 + $0x1a8] sm:$0xff] }
 0x187   :  { %529 = vmatpush.msra.mxu2 %v7278_v5 }
 0x188   :  { %672 = vmatpush.msra.mxu3 %v609_v34  ;;  %v588_v34 = vmul.f32 %v7070_v29, %v7070_v29 }
 0x189   :  { %530 = vmatpush.msra.mxu2 %v7272_v3 }
 0x18a   :  { %673 = vmatpush.msra.mxu3 %v608_v36  ;;  %v7348_v38 = vpop.f32.mrf.mxu0  ;;  %v587_v36 = vmul.f32 %v7048_v27, %v7048_v27 }
 0x18b   :  { %531 = vmatpush.msra.mxu2 %v7266_v1 }
 0x18c   :  { %674 = vmatpush.msra.mxu3 %v607_v40  ;;  %v586_v40 = vmul.f32 %v7026_v25, %v7026_v25 }
 0x18d   :  { %6528 = vmatmul.msk.f32.gmra.mxu0 %vm101_vm0, %v84_v42  ;;  %532 = vmatpush.msra.mxu2 %v7260_v63 }
 0x18e   :  { %675 = vmatpush.msra.mxu3 %v606_v44  ;;  %v585_v44 = vmul.f32 %v7004_v23, %v7004_v23 }
 0x18f   :  { %533 = vmatpush.msra.mxu2 %v7254_v61 }
 0x190   :  { %676 = vmatpush.msra.mxu3 %v605_v46  ;;  %v89_v46 = vld [vmem:[%s12739_s0 + $0x1b0] sm:$0xff] }
 0x191   :  { %534 = vmatpush.msra.mxu2 %v7248_v59 }
 0x192   :  { %677 = vmatpush.msra.mxu3 %v604_v48  ;;  %v7366_v50 = vpop.f32.mrf.mxu0  ;;  %v584_v48 = vmul.f32 %v6982_v21, %v6982_v21 }
 0x193   :  { %535 = vmatpush.msra.mxu2 %v7242_v57 }
 0x194   :  { %678 = vmatpush.msra.mxu3 %v603_v52  ;;  %v583_v52 = vmul.f32 %v6958_v19, %v6958_v19 }
 0x195   :  { %6529 = vmatmul.msk.f32.gmra.mxu0 %vm101_vm0, %v85_v54  ;;  %536 = vmatpush.msra.mxu2 %v7232_v55 }
 0x196   :  { %679 = vmatpush.msra.mxu3 %v602_v56  ;;  %v90_v56 = vld [vmem:[%s12739_s0 + $0x1b8] sm:$0xff] }
 0x197   :  { %537 = vmatpush.msra.mxu2 %v7222_v53 }
 0x198   :  { %680 = vmatpush.msra.mxu3 %v601_v58 }
 0x199   :  { %538 = vmatpush.msra.mxu2 %v7212_v51 }
 0x19a   :  { %681 = vmatpush.msra.mxu3 %v600_v60  ;;  %v7386_v0 = vpop.f32.mrf.mxu0  ;;  %v91_v60 = vld [vmem:[%s12739_s0 + $0x1c0] sm:$0xff] }
 0x19b   :  { %647 = vmatpush.msrb.mxu2 %v598_v62 }
 0x19c   :  { %682 = vmatpush.msra.mxu3 %v599_v2  ;;  %v92_v2 = vld [vmem:[%s12739_s0 + $0x1c8] sm:$0xff] }
 0x19d   :  { %648 = vmatpush.msrb.mxu2 %v597_v4  ;;  %6530 = vmatmul.msk.f32.gmra.mxu0 %vm101_vm0, %v86_v6  ;;  %v93_v6 = vld [vmem:[%s12739_s0 + $0x1d0] sm:$0xff] }
 0x19f   :  { %649 = vmatpush.msrb.mxu2 %v596_v8 }
 0x1a1   :  { %650 = vmatpush.msrb.mxu2 %v595_v10  ;;  %v94_v10 = vld [vmem:[%s12739_s0 + $0x1d8] sm:$0xff] }
 0x1a2   :  { %v7402_v14 = vpop.f32.mrf.mxu0 }
 0x1a3   :  { %651 = vmatpush.msrb.mxu2 %v594_v12 }
 0x1a5   :  { %652 = vmatpush.msrb.mxu2 %v593_v16  ;;  %6531 = vmatmul.msk.f32.gmra.mxu0 %vm101_vm0, %v87_v18  ;;  %v95_v16 = vld [vmem:[%s12739_s0 + $0x1e0] sm:$0xff] }
 0x1a7   :  { %653 = vmatpush.msrb.mxu2 %v592_v20  ;;  %v96_v20 = vld [vmem:[%s12739_s0 + $0x1e8] sm:$0xff] }
 0x1a9   :  { %654 = vmatpush.msrb.mxu2 %v591_v22 }
 0x1aa   :  { %v7416_v28 = vpop.f32.mrf.mxu0 }
 0x1ab   :  { %655 = vmatpush.msrb.mxu2 %v590_v24  ;;  %v97_v24 = vld [vmem:[%s12739_s0 + $0x1f0] sm:$0xff] }
 0x1ad   :  { %656 = vmatpush.msrb.mxu2 %v589_v30  ;;  %6532 = vmatmul.msk.f32.gmra.mxu0 %vm101_vm0, %v88_v32  ;;  %v98_v32 = vld [vmem:[%s12739_s0 + $0x1f8] sm:$0xff] }
 0x1af   :  { %657 = vmatpush.msrb.mxu2 %v588_v34 }
 0x1b1   :  { %658 = vmatpush.msrb.mxu2 %v587_v36 }
 0x1b2   :  { %v7430_v42 = vpop.f32.mrf.mxu0 }
 0x1b3   :  { %659 = vmatpush.msrb.mxu2 %v586_v40 }
 0x1b5   :  { %660 = vmatpush.msrb.mxu2 %v585_v44  ;;  %6533 = vmatmul.msk.f32.gmra.mxu0 %vm101_vm0, %v89_v46 }
 0x1b7   :  { %661 = vmatpush.msrb.mxu2 %v584_v48 }
 0x1b9   :  { %662 = vmatpush.msrb.mxu2 %v583_v52 }
 0x1ba   :  { %v7442_v54 = vpop.f32.mrf.mxu0 }
 0x1bd   :  { %6534 = vmatmul.msk.f32.gmra.mxu0 %vm101_vm0, %v90_v56 }
 0x1c2   :  { %v7448_v58 = vpop.f32.mrf.mxu0 }
 0x1c5   :  { %6535 = vmatmul.msk.f32.gmra.mxu0 %vm101_vm0, %v91_v60 }
 0x1ca   :  { %v7454_v62 = vpop.f32.mrf.mxu0 }
 0x1cd   :  { %6536 = vmatmul.msk.f32.gmra.mxu0 %vm101_vm0, %v92_v2 }
 0x1d2   :  { %v7460_v4 = vpop.f32.mrf.mxu0 }
 0x1d5   :  { %6537 = vmatmul.msk.f32.gmra.mxu0 %vm101_vm0, %v93_v6 }
 0x1da   :  { %v7466_v8 = vpop.f32.mrf.mxu0 }
 0x1dd   :  { %6538 = vmatmul.msk.f32.gmra.mxu0 %vm101_vm0, %v94_v10 }
 0x1e2   :  { %v7472_v12 = vpop.f32.mrf.mxu0 }
 0x1e5   :  { %6539 = vmatmul.msk.f32.gmra.mxu0 %vm101_vm0, %v95_v16  ;;  %v12755_v16 = vmov 1.0  }
 0x1e6   :  { %539 = vmatmul.f32.vlgmr.msra.gmra.mxu2 %v12755_v16  ;;  %519 = vmatmul.f32.vlgmr.msra.gmra.mxu1 %v12755_v16 }
 0x1e7   :  { %683 = vmatmul.f32.vlgmr.msra.gmra.mxu3 %v12755_v16 }
 0x1ea   :  { %v7478_v18 = vpop.f32.mrf.mxu0 }
 0x1ed   :  { %6540 = vmatmul.msk.f32.gmra.mxu0 %vm101_vm0, %v96_v20 }
 0x1ee   :  { %663 = vmatmul.f32.vlgmr.msrb.gmra.mxu2 %v12755_v16 }
 0x1f2   :  { %v7484_v22 = vpop.f32.mrf.mxu0 }
 0x1f3   :  { %12908 = vst [vmem:[#allocation8_spill] sm:$0xff] %v7484_v22 }
 0x1f5   :  { %6541 = vmatmul.msk.f32.gmra.mxu0 %vm101_vm0, %v97_v24 }
 0x1fa   :  { %v7490_v30 = vpop.f32.mrf.mxu0 }
 0x1fb   :  { %12909 = vst [vmem:[#allocation9_spill] sm:$0xff] %v7490_v30  ;;  %543 = vmatpush.msrb.mxu0 %v7490_v30 }
 0x1fd   :  { %6542 = vmatmul.msk.f32.gmra.mxu0 %vm101_vm0, %v98_v32 }
 0x1fe   :  { %544 = vmatpush.msrb.mxu0 %v7484_v22 }
 0x200   :  { %545 = vmatpush.msrb.mxu0 %v7478_v18 }
 0x202   :  { %546 = vmatpush.msrb.mxu0 %v7472_v12  ;;  %v7500_v34 = vpop.f32.mrf.mxu0 }
 0x203   :  { %12910 = vst [vmem:[#allocation10_spill] sm:$0xff] %v7500_v34 }
 0x204   :  { %547 = vmatpush.msrb.mxu0 %v7466_v8 }
 0x206   :  { %548 = vmatpush.msrb.mxu0 %v7460_v4 }
 0x208   :  { %549 = vmatpush.msrb.mxu0 %v7454_v62 }
 0x20a   :  { %550 = vmatpush.msrb.mxu0 %v7448_v58  ;;  %v7506_v36 = vpop.f32.mrf.mxu0 }
 0x20b   :  { %12911 = vst [vmem:[#allocation11_spill] sm:$0xff] %v7506_v36 }
 0x20c   :  { %551 = vmatpush.msrb.mxu0 %v7442_v54 }
 0x20e   :  { %552 = vmatpush.msrb.mxu0 %v7430_v42 }
 0x210   :  { %553 = vmatpush.msrb.mxu0 %v7416_v28 }
 0x212   :  { %554 = vmatpush.msrb.mxu0 %v7402_v14  ;;  %v7512_v40 = vpop.f32.mrf.mxu0 }
 0x213   :  { %12912 = vst [vmem:[#allocation12_spill] sm:$0xff] %v7512_v40 }
 0x214   :  { %555 = vmatpush.msrb.mxu0 %v7386_v0 }
 0x216   :  { %556 = vmatpush.msrb.mxu0 %v7366_v50 }
 0x218   :  { %557 = vmatpush.msrb.mxu0 %v7348_v38 }
 0x21a   :  { %558 = vmatpush.msrb.mxu0 %v7330_v26  ;;  %v7518_v44 = vpop.f32.mrf.mxu0 }
 0x21b   :  { %12913 = vst [vmem:[#allocation13_spill] sm:$0xff] %v7518_v44  ;;  %559 = vmatmul.f32.vlgmr.msrb.gmra.mxu0 %v12755_v16 }
 0x222   :  { %v7520_v46 = vpop.f32.mrf.mxu0 }
 0x223   :  { %12914 = vst [vmem:[#allocation14_spill] sm:$0xff] %v7520_v46 }
 0x22a   :  { %v7522_v48 = vpop.f32.mrf.mxu0 }
 0x22b   :  { %12915 = vst [vmem:[#allocation15_spill] sm:$0xff] %v7522_v48 }
 0x232   :  { %v7524_v52 = vpop.f32.mrf.mxu0 }
 0x233   :  { %12916 = vst [vmem:[#allocation16_spill] sm:$0xff] %v7524_v52 }
 0x23a   :  { %v7526_v56 = vpop.f32.mrf.mxu0 }
 0x23b   :  { %12917 = vst [vmem:[#allocation17_spill] sm:$0xff] %v7526_v56 }
 0x242   :  { %v7528_v60 = vpop.f32.mrf.mxu0 }
 0x243   :  { %12918 = vst [vmem:[#allocation18_spill] sm:$0xff] %v7528_v60 }
 0x24a   :  { %v7530_v2 = vpop.f32.mrf.mxu0 }
 0x24b   :  { %12919 = vst [vmem:[#allocation19_spill] sm:$0xff] %v7530_v2 }
 0x252   :  { %v7532_v6 = vpop.f32.mrf.mxu0 }
 0x253   :  { %12920 = vst [vmem:[#allocation20_spill] sm:$0xff] %v7532_v6 }
 0x25a   :  { %v7534_v10 = vpop.f32.mrf.mxu0 }
 0x25b   :  { %12921 = vst [vmem:[#allocation21_spill] sm:$0xff] %v7534_v10  ;;  %v642_v9 = vmul.f32 %v7534_v10, %v7534_v10 }
 0x262   :  { %v7540_v20 = vpop.f32.mrf.mxu0 }
 0x263   :  { %12922 = vst [vmem:[#allocation22_spill] sm:$0xff] %v7540_v20  ;;  %v643_v11 = vmul.f32 %v7540_v20, %v7540_v20 }
 0x26a   :  { %v7543_v24 = vpop.f32.mrf.mxu0 }
 0x26b   :  { %12923 = vst [vmem:[#allocation23_spill] sm:$0xff] %v7543_v24  ;;  %v644_v16 = vmul.f32 %v7543_v24, %v7543_v24 }
 0x272   :  { %v7545_v32 = vpop.f32.mrf.mxu0 }
 0x273   :  { %12924 = vst [vmem:[#allocation24_spill] sm:$0xff] %v7545_v32  ;;  %v645_v13 = vmul.f32 %v7545_v32, %v7545_v32 }
 0x27a   :  { %v7547_v17 = vpop.f32.mrf.mxu0 }
 0x27b   :  { %v646_v15 = vmul.f32 %v7547_v17, %v7547_v17  ;;  %563 = vmatpush.msrb.mxu1 %v7547_v17 }
 0x27d   :  { %564 = vmatpush.msrb.mxu1 %v7545_v32  ;;  %707 = vmatpush.msra.mxu2 %v646_v15  ;;  %v641_v15 = vmul.f32 %v7532_v6, %v7532_v6  ;;  %v631_v32 = vmul.f32 %v7500_v34, %v7500_v34 }
 0x27f   :  { %565 = vmatpush.msrb.mxu1 %v7543_v24  ;;  %708 = vmatpush.msra.mxu2 %v645_v13  ;;  %v640_v13 = vmul.f32 %v7530_v2, %v7530_v2  ;;  %v627_v24 = vmul.f32 %v7472_v12, %v7472_v12 }
 0x281   :  { %566 = vmatpush.msrb.mxu1 %v7540_v20  ;;  %709 = vmatpush.msra.mxu2 %v644_v16  ;;  %v639_v16 = vmul.f32 %v7528_v60, %v7528_v60  ;;  %v625_v20 = vmul.f32 %v7460_v4, %v7460_v4 }
 0x283   :  { %567 = vmatpush.msrb.mxu1 %v7534_v10  ;;  %710 = vmatpush.msra.mxu2 %v643_v11  ;;  %v638_v11 = vmul.f32 %v7526_v56, %v7526_v56  ;;  %v1376_v10 = vld [vmem:[#allocation2 + $0x2] sm:$0xff] }
 0x285   :  { %568 = vmatpush.msrb.mxu1 %v7532_v6  ;;  %711 = vmatpush.msra.mxu2 %v642_v9  ;;  %v637_v9 = vmul.f32 %v7524_v52, %v7524_v52 }
 0x287   :  { %569 = vmatpush.msrb.mxu1 %v7530_v2  ;;  %712 = vmatpush.msra.mxu2 %v641_v15  ;;  %v636_v15 = vmul.f32 %v7522_v48, %v7522_v48 }
 0x289   :  { %570 = vmatpush.msrb.mxu1 %v7528_v60  ;;  %713 = vmatpush.msra.mxu2 %v640_v13  ;;  %v635_v13 = vmul.f32 %v7520_v46, %v7520_v46  ;;  %v684_v60 = vpop.f32.mrf.mxu3 }
 0x28b   :  { %571 = vmatpush.msrb.mxu1 %v7526_v56  ;;  %714 = vmatpush.msra.mxu2 %v639_v16  ;;  %v634_v16 = vmul.f32 %v7518_v44, %v7518_v44 }
 0x28d   :  { %572 = vmatpush.msrb.mxu1 %v7524_v52  ;;  %715 = vmatpush.msra.mxu2 %v638_v11  ;;  %v633_v11 = vmul.f32 %v7512_v40, %v7512_v40 }
 0x28f   :  { %573 = vmatpush.msrb.mxu1 %v7522_v48  ;;  %716 = vmatpush.msra.mxu2 %v637_v9  ;;  %v632_v9 = vmul.f32 %v7506_v36, %v7506_v36 }
 0x291   :  { %574 = vmatpush.msrb.mxu1 %v7520_v46  ;;  %717 = vmatpush.msra.mxu2 %v636_v15  ;;  %v630_v15 = vmul.f32 %v7490_v30, %v7490_v30 }
 0x293   :  { %575 = vmatpush.msrb.mxu1 %v7518_v44  ;;  %718 = vmatpush.msra.mxu2 %v635_v13  ;;  %v12925_v13 = vmov 1.0  }
 0x295   :  { %576 = vmatpush.msrb.mxu1 %v7512_v40  ;;  %719 = vmatpush.msra.mxu2 %v634_v16  ;;  %v629_v16 = vmul.f32 %v7484_v22, %v7484_v22 }
 0x297   :  { %577 = vmatpush.msrb.mxu1 %v7506_v36  ;;  %720 = vmatpush.msra.mxu2 %v633_v11  ;;  %v628_v11 = vmul.f32 %v7478_v18, %v7478_v18 }
 0x299   :  { %578 = vmatpush.msrb.mxu1 %v7500_v34  ;;  %721 = vmatpush.msra.mxu2 %v632_v9  ;;  %v626_v9 = vmul.f32 %v7466_v8, %v7466_v8 }
 0x29a   :  { %579 = vmatmul.f32.vlgmr.msrb.gmra.mxu1 %v12925_v13 }
 0x29b   :  { %687 = vmatpush.msra.mxu1 %v630_v15  ;;  %722 = vmatpush.msra.mxu2 %v631_v32  ;;  %v624_v32 = vmul.f32 %v7454_v62, %v7454_v62  ;;  %v623_v15 = vmul.f32 %v7448_v58, %v7448_v58 }
 0x29c   :  { %723 = vmatmul.f32.vlgmr.msra.gmra.mxu2 %v12925_v13 }
 0x29d   :  { %688 = vmatpush.msra.mxu1 %v629_v16  ;;  %v622_v16 = vmul.f32 %v7442_v54, %v7442_v54 }
 0x29f   :  { %689 = vmatpush.msra.mxu1 %v628_v11  ;;  %v620_v11 = vmul.f32 %v7416_v28, %v7416_v28 }
 0x2a1   :  { %690 = vmatpush.msra.mxu1 %v627_v24  ;;  %v621_v24 = vmul.f32 %v7430_v42, %v7430_v42 }
 0x2a3   :  { %691 = vmatpush.msra.mxu1 %v626_v9  ;;  %v618_v9 = vmul.f32 %v7386_v0, %v7386_v0 }
 0x2a5   :  { %692 = vmatpush.msra.mxu1 %v625_v20  ;;  %v619_v20 = vmul.f32 %v7402_v14, %v7402_v14 }
 0x2a7   :  { %693 = vmatpush.msra.mxu1 %v624_v32  ;;  %v617_v32 = vmul.f32 %v7366_v50, %v7366_v50 }
 0x2a9   :  { %694 = vmatpush.msra.mxu1 %v623_v15  ;;  %v616_v15 = vmul.f32 %v7348_v38, %v7348_v38 }
 0x2ab   :  { %695 = vmatpush.msra.mxu1 %v622_v16  ;;  %v615_v16 = vmul.f32 %v7330_v26, %v7330_v26 }
 0x2ad   :  { %696 = vmatpush.msra.mxu1 %v621_v24  ;;  %v1312_v24 = vld [vmem:[#allocation2 + $0x1] sm:$0xff] }
 0x2ae   :  { %1889 = vrot.lane.b32.xlu0 %v1312_v24, %s6763_s19 }
 0x2af   :  { %697 = vmatpush.msra.mxu1 %v620_v11  ;;  %v520_v11 = vpop.f32.mrf.mxu1 }
 0x2b1   :  { %698 = vmatpush.msra.mxu1 %v619_v20  ;;  %v540_v20 = vpop.f32.mrf.mxu2 }
 0x2b2   :  { %v541_v6 = vadd.f32 %v540_v20, %v520_v11  ;;  %v1791_v11 = vld [vmem:[#allocation2 + $0x19a] sm:$0xff] }
 0x2b3   :  { %699 = vmatpush.msra.mxu1 %v618_v9  ;;  %3741 = vrot.lane.b32.xlu1 %v1791_v11, %s6765_s21 }
 0x2b5   :  { %700 = vmatpush.msra.mxu1 %v617_v32  ;;  %v560_v32 = vpop.f32.mrf.mxu0 }
 0x2b6   :  { %2145 = vrot.lane.b32.xlu0 %v1376_v10, %s6764_s20  ;;  %v561_v2 = vadd.f32 %v560_v32, %v541_v6 }
 0x2b7   :  { %701 = vmatpush.msra.mxu1 %v616_v15 }
 0x2b9   :  { %702 = vmatpush.msra.mxu1 %v615_v16  ;;  %v664_v9 = vpop.f32.mrf.mxu2 }
 0x2ba   :  { %703 = vmatmul.f32.vlgmr.msra.gmra.mxu1 %v12925_v13  ;;  %v685_v16 = vadd.f32 %v684_v60, %v664_v9 }
 0x317   :  { %v580_v15 = vpop.f32.mrf.mxu1 }
 0x318   :  { %v581_v56 = vadd.f32 %v580_v15, %v561_v2  ;;  %v1313_v2 = vld [vmem:[#allocation2 + $0x9] sm:$0xff] }
 0x319   :  { %1891 = vrot.lane.b32.xlu2 %v1313_v2, %s6763_s19  ;;  %v7681_v2 = vld [vmem:[%s12740_s4] ss:$0 sm:$0xff] }
 0x31a   :  { %v727_v46 = vmul.f32 0.001953125, %v581_v56 }
 0x31c   :  { %v729_v24 = vmul.f32 %v727_v46, %v727_v46 }
 0x31f   :  { %v724_v13 = vpop.f32.mrf.mxu2 }
 0x337   :  { %v704_v52 = vpop.f32.mrf.mxu1 }
 0x338   :  { %v705_v48 = vadd.f32 %v704_v52, %v685_v16 }
 0x33a   :  { %v725_v44 = vadd.f32 %v724_v13, %v705_v48 }
 0x33c   :  { %v728_v40 = vmul.f32 0.001953125, %v725_v44 }
 0x33e   :  { %v730_v36 = vsub.f32 %v728_v40, %v729_v24  ;;  %v1377_v40 = vld [vmem:[#allocation2 + $0xa] sm:$0xff] }
 0x33f   :  { %2147 = vrot.lane.b32.xlu0 %v1377_v40, %s6764_s20  ;;  %v12926_v40 = vld [vmem:[#allocation3_spill] sm:$0xff] }
 0x340   :  { %v731_v34 = vmax.f32 %v730_v36, 0.0 }
 0x342   :  { %v797_v30 = vadd.f32 1e-05, %v731_v34  ;;  %v7637_v34 = vperm.slane %v727_v46, 0 }
 0x344   :  { %6691 = vrsqrt.f32 %v797_v30  ;;  %vm804_vm4 = vweird.f32 %v797_v30  ;;  %v796_v48 = vsub.f32 %v7547_v17, %v7637_v34  ;;  %v733_v9 = vsub.f32 %v6958_v19, %v7637_v34  ;;  %v12939_v19 = vld [vmem:[#allocation17_spill] sm:$0xff] }
 0x345   :  { %v735_v32 = vsub.f32 %v7004_v23, %v7637_v34  ;;  %v736_v46 = vsub.f32 %v7026_v25, %v7637_v34  ;;  %v737_v15 = vsub.f32 %v7048_v27, %v7637_v34  ;;  %v12946_v17 = vsub.f32 %v7070_v29, %v7637_v34 }
 0x34a   :  { %v6692_v10 = vpop.eup %6691 }
 0x34b   :  { %v799_v6 = vmul.f32 %v6692_v10, %v797_v30  ;;  %vm805_vm3 = vweird.f32 %v6692_v10  ;;  %v734_v30 = vsub.f32 %v6982_v21, %v7637_v34 }
 0x34c   :  { %vm806_vm5 = vmor %vm804_vm4, %vm805_vm3 }
 0x34d   :  { %v800_v20 = vmul.f32 %v6692_v10, %v799_v6 }
 0x34f   :  { %v801_v60 = vmul.f32 0.5, %v800_v20  ;;  %v12929_v20 = vld [vmem:[#allocation6_spill] sm:$0xff] }
 0x351   :  { %v802_v52 = vsub.f32 1.5, %v801_v60  ;;  %v12930_v60 = vld [vmem:[#allocation7_spill] sm:$0xff] }
 0x353   :  { %v803_v56 = vmul.f32 %v6692_v10, %v802_v52 }
 0x355   :  { %v807_v36 = vsel %vm806_vm5, %v6692_v10, %v803_v56  ;;  %v12950_v10 = vsub.f32 %v7136_v35, %v7637_v34 }
 0x356   :  { %v7639_v44 = vperm.slane %v807_v36, 0  ;;  %v12927_v36 = vld [vmem:[#allocation4_spill] sm:$0xff] }
 0x358   :  { %v872_v13 = vmul.f32 %v7639_v44, %v796_v48  ;;  %v12928_v48 = vld [vmem:[#allocation5_spill] sm:$0xff]  ;;  %v809_v56 = vmul.f32 %v7639_v44, %v733_v9  ;;  %v810_v22 = vmul.f32 %v7639_v44, %v734_v30  ;;  %v811_v25 = vmul.f32 %v7639_v44, %v735_v32  ;;  %v12941_v9 = vld [vmem:[#allocation19_spill] sm:$0xff] }
 0x359   :  { %v812_v16 = vmul.f32 %v7639_v44, %v736_v46  ;;  %v813_v6 = vmul.f32 %v7639_v44, %v737_v15  ;;  %v814_v27 = vmul.f32 %v7639_v44, %v12946_v17  ;;  %v7788_v32 = vld [vmem:[%s12741_s5] ss:$0 sm:$0xff]  ;;  %v12947_v15 = vsub.f32 %v7092_v31, %v7637_v34  ;;  %s6766_s5 = smov 28  }
 0x35a   :  { %v7722_v11 = vmul.f32 %v7681_v2, %v872_v13  ;;  %v877_v21 = vmul.f32 %v7681_v2, %v809_v56  ;;  %v878_v52 = vmul.f32 %v7681_v2, %v810_v22  ;;  %v879_v46 = vmul.f32 %v7681_v2, %v811_v25 }
 0x35b   :  { %v815_v23 = vmul.f32 %v7639_v44, %v12947_v15  ;;  %v12949_v17 = vsub.f32 %v7114_v33, %v7637_v34  ;;  %v817_v31 = vmul.f32 %v7639_v44, %v12950_v10  ;;  %v880_v15 = vmul.f32 %v7681_v2, %v812_v16 }
 0x35c   :  { %v12951_v22 = vsub.f32 %v7158_v37, %v7637_v34  ;;  %v12952_v56 = vsub.f32 %v7172_v39, %v7637_v34  ;;  %v12953_v33 = vsub.f32 %v7178_v41, %v7637_v34  ;;  %v881_v35 = vmul.f32 %v7681_v2, %v813_v6 }
 0x35d   :  { %v816_v13 = vmul.f32 %v7639_v44, %v12949_v17  ;;  %v12954_v16 = vsub.f32 %v7184_v43, %v7637_v34  ;;  %v12955_v37 = vsub.f32 %v7190_v45, %v7637_v34  ;;  %v12956_v39 = vsub.f32 %v7196_v47, %v7637_v34 }
 0x35e   :  { %v818_v25 = vmul.f32 %v7639_v44, %v12951_v22  ;;  %v819_v24 = vmul.f32 %v7639_v44, %v12952_v56  ;;  %v820_v17 = vmul.f32 %v7639_v44, %v12953_v33  ;;  %v882_v41 = vmul.f32 %v7681_v2, %v814_v27 }
 0x35f   :  { %v821_v10 = vmul.f32 %v7639_v44, %v12954_v16  ;;  %v822_v22 = vmul.f32 %v7639_v44, %v12955_v37  ;;  %v823_v56 = vmul.f32 %v7639_v44, %v12956_v39  ;;  %v883_v33 = vmul.f32 %v7681_v2, %v815_v23 }
 0x360   :  { %v945_v6 = vadd.f32 %v7788_v32, %v877_v21  ;;  %v946_v43 = vadd.f32 %v7788_v32, %v878_v52  ;;  %v947_v16 = vadd.f32 %v7788_v32, %v879_v46  ;;  %v12957_v45 = vsub.f32 %v7202_v49, %v7637_v34 }
 0x361   :  { %v12958_v47 = vsub.f32 %v7212_v51, %v7637_v34  ;;  %v884_v27 = vmul.f32 %v7681_v2, %v816_v13  ;;  %v948_v23 = vadd.f32 %v7788_v32, %v880_v15  ;;  %v12959_v21 = vsub.f32 %v7222_v53, %v7637_v34 }
 0x362   :  { %v824_v37 = vmul.f32 %v7639_v44, %v12957_v45  ;;  %v12960_v46 = vsub.f32 %v7232_v55, %v7637_v34  ;;  %v885_v45 = vmul.f32 %v7681_v2, %v817_v31  ;;  %v949_v51 = vadd.f32 %v7788_v32, %v881_v35 }
 0x363   :  { %v825_v39 = vmul.f32 %v7639_v44, %v12958_v47  ;;  %v826_v52 = vmul.f32 %v7639_v44, %v12959_v21  ;;  %v886_v47 = vmul.f32 %v7681_v2, %v818_v25  ;;  %v887_v13 = vmul.f32 %v7681_v2, %v819_v24 }
 0x364   :  { %v827_v49 = vmul.f32 %v7639_v44, %v12960_v46  ;;  %v950_v15 = vadd.f32 %v7788_v32, %v882_v41  ;;  %v7863_v53 = vadd.f32 %v7788_v32, %v7722_v11  ;;  %v951_v21 = vadd.f32 %v7788_v32, %v883_v33 }
 0x365   :  { %v1009_v29 = vmax.f32 %v945_v6, 0.0  ;;  %v1010_v55 = vmax.f32 %v946_v43, 0.0  ;;  %v1011_v30 = vmax.f32 %v947_v16, 0.0  ;;  %v12961_v31 = vsub.f32 %v7242_v57, %v7637_v34 }
 0x366   :  { %v888_v25 = vmul.f32 %v7681_v2, %v820_v17  ;;  %v952_v24 = vadd.f32 %v7788_v32, %v884_v27  ;;  %v1012_v46 = vmax.f32 %v948_v23, 0.0  ;;  %v12962_v41 = vsub.f32 %v7248_v59, %v7637_v34 }
 0x367   :  { %v828_v35 = vmul.f32 %v7639_v44, %v12961_v31  ;;  %v889_v33 = vmul.f32 %v7681_v2, %v821_v10  ;;  %v953_v6 = vadd.f32 %v7788_v32, %v885_v45  ;;  %v1013_v43 = vmax.f32 %v949_v51, 0.0  ;;  %1184 = vst.msk [vmem:[#allocation2 + $0x19] sm:$0xff] %vm1073_vm1, %v1009_v29 }
 0x368   :  { %v829_v11 = vmul.f32 %v7639_v44, %v12962_v41  ;;  %v12963_v57 = vsub.f32 %v7254_v61, %v7637_v34  ;;  %v890_v16 = vmul.f32 %v7681_v2, %v822_v22  ;;  %v954_v27 = vadd.f32 %v7788_v32, %v886_v47  ;;  %1185 = vst.msk [vmem:[#allocation2 + $0x21] sm:$0xff] %vm1073_vm1, %v1010_v55 }
 0x369   :  { %v1014_v23 = vmax.f32 %v950_v15, 0.0  ;;  %v12964_v59 = vsub.f32 %v7260_v63, %v7637_v34  ;;  %v891_v45 = vmul.f32 %v7681_v2, %v823_v56  ;;  %v955_v29 = vadd.f32 %v7788_v32, %v887_v13  ;;  %1186 = vst.msk [vmem:[#allocation2 + $0x31] sm:$0xff] %vm1073_vm1, %v1011_v30 }
 0x36a   :  { %v830_v17 = vmul.f32 %v7639_v44, %v12963_v57  ;;  %v1015_v51 = vmax.f32 %v951_v21, 0.0  ;;  %v12965_v61 = vsub.f32 %v7266_v1, %v7637_v34  ;;  %v892_v47 = vmul.f32 %v7681_v2, %v824_v37  ;;  %1187 = vst.msk [vmem:[#allocation2 + $0x39] sm:$0xff] %vm1073_vm1, %v1012_v46 }
 0x36b   :  { %v831_v10 = vmul.f32 %v7639_v44, %v12964_v59  ;;  %v956_v15 = vadd.f32 %v7788_v32, %v888_v25  ;;  %v1016_v55 = vmax.f32 %v952_v24, 0.0  ;;  %v12966_v63 = vsub.f32 %v7272_v3, %v7637_v34  ;;  %1188 = vst.msk [vmem:[#allocation2 + $0x49] sm:$0xff] %vm1073_vm1, %v1013_v43 }
 0x36c   :  { %v832_v22 = vmul.f32 %v7639_v44, %v12965_v61  ;;  %v893_v13 = vmul.f32 %v7681_v2, %v825_v39  ;;  %v957_v30 = vadd.f32 %v7788_v32, %v889_v33  ;;  %v1017_v21 = vmax.f32 %v953_v6, 0.0  ;;  %1189 = vst.msk [vmem:[#allocation2 + $0x51] sm:$0xff] %vm1073_vm1, %v1014_v23 }
 0x36d   :  { %v833_v56 = vmul.f32 %v7639_v44, %v12966_v63  ;;  %v12967_v1 = vsub.f32 %v7278_v5, %v7637_v34  ;;  %v894_v31 = vmul.f32 %v7681_v2, %v826_v52  ;;  %v958_v25 = vadd.f32 %v7788_v32, %v890_v16  ;;  %1190 = vst.msk [vmem:[#allocation2 + $0x61] sm:$0xff] %vm1073_vm1, %v1015_v51 }
 0x36e   :  { %v1018_v24 = vmax.f32 %v954_v27, 0.0  ;;  %v12968_v3 = vsub.f32 %v7284_v7, %v7637_v34  ;;  %v895_v46 = vmul.f32 %v7681_v2, %v827_v49  ;;  %v959_v41 = vadd.f32 %v7788_v32, %v891_v45  ;;  %1191 = vst.msk [vmem:[#allocation2 + $0x69] sm:$0xff] %vm1073_vm1, %v1016_v55 }
 0x36f   :  { %v834_v37 = vmul.f32 %v7639_v44, %v12967_v1  ;;  %v1019_v33 = vmax.f32 %v955_v29, 0.0  ;;  %v12969_v5 = vsub.f32 %v12926_v40, %v7637_v34  ;;  %v896_v6 = vmul.f32 %v7681_v2, %v828_v35  ;;  %1192 = vst.msk [vmem:[#allocation2 + $0x79] sm:$0xff] %vm1073_vm1, %v1017_v21 }
 0x370   :  { %v835_v39 = vmul.f32 %v7639_v44, %v12968_v3  ;;  %v960_v43 = vadd.f32 %v7788_v32, %v892_v47  ;;  %v1020_v57 = vmax.f32 %v956_v15, 0.0  ;;  %v12970_v7 = vsub.f32 %v12927_v36, %v7637_v34  ;;  %1193 = vst.msk [vmem:[#allocation2 + $0x81] sm:$0xff] %vm1073_vm1, %v1018_v24 }
 0x371   :  { %v836_v52 = vmul.f32 %v7639_v44, %v12969_v5  ;;  %v897_v16 = vmul.f32 %v7681_v2, %v829_v11  ;;  %v961_v27 = vadd.f32 %v7788_v32, %v893_v13  ;;  %v1021_v23 = vmax.f32 %v957_v30, 0.0  ;;  %1194 = vst.msk [vmem:[#allocation2 + $0x91] sm:$0xff] %vm1073_vm1, %v1019_v33 }
 0x372   :  { %v837_v49 = vmul.f32 %v7639_v44, %v12970_v7  ;;  %v12971_v40 = vsub.f32 %v12928_v48, %v7637_v34  ;;  %v898_v59 = vmul.f32 %v7681_v2, %v830_v17  ;;  %v962_v45 = vadd.f32 %v7788_v32, %v894_v31  ;;  %1195 = vst.msk [vmem:[#allocation2 + $0x99] sm:$0xff] %vm1073_vm1, %v1020_v57 }
 0x373   :  { %v1022_v29 = vmax.f32 %v958_v25, 0.0  ;;  %v12972_v36 = vsub.f32 %v12929_v20, %v7637_v34  ;;  %v899_v51 = vmul.f32 %v7681_v2, %v831_v10  ;;  %v963_v61 = vadd.f32 %v7788_v32, %v895_v46  ;;  %1196 = vst.msk [vmem:[#allocation2 + $0xa9] sm:$0xff] %vm1073_vm1, %v1021_v23 }
 0x374   :  { %v838_v35 = vmul.f32 %v7639_v44, %v12971_v40  ;;  %v1023_v47 = vmax.f32 %v959_v41, 0.0  ;;  %v12973_v48 = vsub.f32 %v12930_v60, %v7637_v34  ;;  %v900_v15 = vmul.f32 %v7681_v2, %v832_v22  ;;  %v1664_v41 = vld [vmem:[#allocation2 + $0x1a0] sm:$0xff] }
 0x375   :  { %v839_v11 = vmul.f32 %v7639_v44, %v12972_v36  ;;  %v964_v55 = vadd.f32 %v7788_v32, %v896_v6  ;;  %v1024_v63 = vmax.f32 %v960_v43, 0.0  ;;  %v12974_v20 = vsub.f32 %v7330_v26, %v7637_v34  ;;  %1197 = vst.msk [vmem:[#allocation2 + $0xb1] sm:$0xff] %vm1073_vm1, %v1022_v29  ;;  %v1727_v26 = vld [vmem:[#allocation2 + $0x199] sm:$0xff]  ;;  %3231 = vrot.lane.b32.xlu1 %v1664_v41, %s6767_s24 }
 0x376   :  { %v840_v17 = vmul.f32 %v7639_v44, %v12973_v48  ;;  %v901_v13 = vmul.f32 %v7681_v2, %v833_v56  ;;  %v965_v30 = vadd.f32 %v7788_v32, %v897_v16  ;;  %v1025_v21 = vmax.f32 %v961_v27, 0.0  ;;  %1198 = vst.msk [vmem:[#allocation2 + $0xc1] sm:$0xff] %vm1073_vm1, %v1023_v47  ;;  %3485 = vrot.lane.b32.xlu0 %v1727_v26, %s6766_s5 }
 0x377   :  { %v841_v10 = vmul.f32 %v7639_v44, %v12974_v20  ;;  %v12975_v60 = vsub.f32 %v7348_v38, %v7637_v34  ;;  %v902_v1 = vmul.f32 %v7681_v2, %v834_v37  ;;  %v966_v31 = vadd.f32 %v7788_v32, %v898_v59  ;;  %v1663_v37 = vld [vmem:[#allocation2 + $0x198] sm:$0xff]  ;;  %1199 = vst.msk [vmem:[#allocation2 + $0xc9] sm:$0xff] %vm1073_vm1, %v1024_v63 }
 0x378   :  { %v1026_v25 = vmax.f32 %v962_v45, 0.0  ;;  %v12976_v56 = vsub.f32 %v7366_v50, %v7637_v34  ;;  %v903_v3 = vmul.f32 %v7681_v2, %v835_v39  ;;  %v967_v46 = vadd.f32 %v7788_v32, %v899_v51  ;;  %3229 = vrot.lane.b32.xlu2 %v1663_v37, %s6767_s24  ;;  %1200 = vst.msk [vmem:[#allocation2 + $0xd9] sm:$0xff] %vm1073_vm1, %v1025_v21 }
 0x379   :  { %v842_v22 = vmul.f32 %v7639_v44, %v12975_v60  ;;  %v1027_v38 = vmax.f32 %v963_v61, 0.0  ;;  %v904_v33 = vmul.f32 %v7681_v2, %v836_v52  ;;  %v968_v5 = vadd.f32 %v7788_v32, %v900_v15  ;;  %v1344_v60 = vld [vmem:[#allocation2 + $0x1b1] sm:$0xff] }
 0x37a   :  { %v843_v24 = vmul.f32 %v7639_v44, %v12976_v56  ;;  %v1028_v6 = vmax.f32 %v964_v55, 0.0  ;;  %v12977_v50 = vsub.f32 %v7386_v0, %v7637_v34  ;;  %v905_v43 = vmul.f32 %v7681_v2, %v837_v49  ;;  %1201 = vst.msk [vmem:[#allocation2 + $0xe1] sm:$0xff] %vm1073_vm1, %v1026_v25 }
 0x37b   :  { %v969_v57 = vadd.f32 %v7788_v32, %v901_v13  ;;  %v1029_v52 = vmax.f32 %v965_v30, 0.0  ;;  %v12978_v7 = vsub.f32 %v7402_v14, %v7637_v34  ;;  %v906_v27 = vmul.f32 %v7681_v2, %v838_v35  ;;  %1202 = vst.msk [vmem:[#allocation2 + $0xf1] sm:$0xff] %vm1073_vm1, %v1027_v38 }
 0x37c   :  { %v844_v39 = vmul.f32 %v7639_v44, %v12977_v50  ;;  %v970_v23 = vadd.f32 %v7788_v32, %v902_v1  ;;  %v1030_v40 = vmax.f32 %v966_v31, 0.0  ;;  %v12979_v0 = vsub.f32 %v7416_v28, %v7637_v34  ;;  %1203 = vst.msk [vmem:[#allocation2 + $0xf9] sm:$0xff] %vm1073_vm1, %v1028_v6 }
 0x37d   :  { %v845_v16 = vmul.f32 %v7639_v44, %v12978_v7  ;;  %v907_v59 = vmul.f32 %v7681_v2, %v839_v11  ;;  %v971_v45 = vadd.f32 %v7788_v32, %v903_v3  ;;  %v1031_v29 = vmax.f32 %v967_v46, 0.0  ;;  %1204 = vst.msk [vmem:[#allocation2 + $0x109] sm:$0xff] %vm1073_vm1, %v1029_v52  ;;  %1953 = vrot.lane.b32.xlu1 %v1344_v60, %s6763_s19 }
 0x37e   :  { %v846_v49 = vmul.f32 %v7639_v44, %v12979_v0  ;;  %v12980_v14 = vsub.f32 %v7430_v42, %v7637_v34  ;;  %v908_v36 = vmul.f32 %v7681_v2, %v840_v17  ;;  %v972_v51 = vadd.f32 %v7788_v32, %v904_v33  ;;  %1205 = vst.msk [vmem:[#allocation2 + $0x111] sm:$0xff] %vm1073_vm1, %v1030_v40 }
 0x37f   :  { %v1032_v61 = vmax.f32 %v968_v5, 0.0  ;;  %v12981_v28 = vsub.f32 %v7442_v54, %v7637_v34  ;;  %v909_v47 = vmul.f32 %v7681_v2, %v841_v10  ;;  %v973_v48 = vadd.f32 %v7788_v32, %v905_v43  ;;  %v1792_v54 = vld [vmem:[#allocation2 + $0x1a2] sm:$0xff]  ;;  %1206 = vst.msk [vmem:[#allocation2 + $0x121] sm:$0xff] %vm1073_vm1, %v1031_v29 }
 0x380   :  { %v847_v35 = vmul.f32 %v7639_v44, %v12980_v14  ;;  %v1033_v15 = vmax.f32 %v969_v57, 0.0  ;;  %v12982_v42 = vsub.f32 %v7448_v58, %v7637_v34  ;;  %v910_v55 = vmul.f32 %v7681_v2, %v842_v22  ;;  %v1728_v22 = vld [vmem:[#allocation2 + $0x1a1] sm:$0xff]  ;;  %3743 = vrot.lane.b32.xlu0 %v1792_v54, %s6765_s21 }
 0x381   :  { %v848_v11 = vmul.f32 %v7639_v44, %v12981_v28  ;;  %v974_v63 = vadd.f32 %v7788_v32, %v906_v27  ;;  %v1034_v20 = vmax.f32 %v970_v23, 0.0  ;;  %v12983_v10 = vsub.f32 %v7454_v62, %v7637_v34  ;;  %1207 = vst.msk [vmem:[#allocation2 + $0x129] sm:$0xff] %vm1073_vm1, %v1032_v61  ;;  %3487 = vrot.lane.b32.xlu2 %v1728_v22, %s6766_s5 }
 0x382   :  { %v849_v17 = vmul.f32 %v7639_v44, %v12982_v42  ;;  %v911_v30 = vmul.f32 %v7681_v2, %v843_v24  ;;  %v975_v21 = vadd.f32 %v7788_v32, %v907_v59  ;;  %v1035_v58 = vmax.f32 %v971_v45, 0.0  ;;  %1208 = vst.msk [vmem:[#allocation2 + $0x139] sm:$0xff] %vm1073_vm1, %v1033_v15  ;;  %v1408_v15 = vld [vmem:[#allocation2 + $0x1b2] sm:$0xff] }
 0x383   :  { %v850_v13 = vmul.f32 %v7639_v44, %v12983_v10  ;;  %v912_v1 = vmul.f32 %v7681_v2, %v844_v39  ;;  %v976_v31 = vadd.f32 %v7788_v32, %v908_v36  ;;  %v1036_v25 = vmax.f32 %v972_v51, 0.0  ;;  %1209 = vst.msk [vmem:[#allocation2 + $0x141] sm:$0xff] %vm1073_vm1, %v1034_v20  ;;  %v12992_v36 = vld [vmem:[#allocation10_spill] sm:$0xff] }
 0x384   :  { %v12984_v62 = vsub.f32 %v7460_v4, %v7637_v34  ;;  %v913_v56 = vmul.f32 %v7681_v2, %v845_v16  ;;  %v977_v24 = vadd.f32 %v7788_v32, %v909_v47  ;;  %v1037_v3 = vmax.f32 %v973_v48, 0.0  ;;  %1210 = vst.msk [vmem:[#allocation2 + $0x151] sm:$0xff] %vm1073_vm1, %v1035_v58  ;;  %v1409_v48 = vld [vmem:[#allocation2 + $0x1ba] sm:$0xff] }
 0x385   :  { %v12985_v46 = vsub.f32 %v7466_v8, %v7637_v34  ;;  %v914_v41 = vmul.f32 %v7681_v2, %v846_v49  ;;  %v978_v37 = vadd.f32 %v7788_v32, %v910_v55  ;;  %v1038_v33 = vmax.f32 %v974_v63, 0.0  ;;  %1211 = vst.msk [vmem:[#allocation2 + $0x159] sm:$0xff] %vm1073_vm1, %v1036_v25  ;;  %2211 = vrot.lane.b32.xlu1 %v1409_v48, %s6764_s20  ;;  %v12994_v63 = vld [vmem:[#allocation11_spill] sm:$0xff]  ;;  %v12998_v25 = vld [vmem:[#allocation13_spill] sm:$0xff] }
 0x386   :  { %v851_v26 = vmul.f32 %v7639_v44, %v12984_v62  ;;  %v12986_v4 = vsub.f32 %v7472_v12, %v7637_v34  ;;  %v915_v6 = vmul.f32 %v7681_v2, %v847_v35  ;;  %v979_v50 = vadd.f32 %v7788_v32, %v911_v30  ;;  %v12988_v12 = vld [vmem:[#allocation8_spill] sm:$0xff]  ;;  %1212 = vst.msk [vmem:[#allocation2 + $0x169] sm:$0xff] %vm1073_vm1, %v1037_v3  ;;  %v1345_v35 = vld [vmem:[#allocation2 + $0x1b9] sm:$0xff] }
 0x387   :  { %v852_v38 = vmul.f32 %v7639_v44, %v12985_v46  ;;  %v1039_v39 = vmax.f32 %v975_v21, 0.0  ;;  %v12987_v8 = vsub.f32 %v7478_v18, %v7637_v34  ;;  %v916_v57 = vmul.f32 %v7681_v2, %v848_v11  ;;  %v12990_v18 = vld [vmem:[#allocation9_spill] sm:$0xff]  ;;  %1213 = vst.msk [vmem:[#allocation2 + $0x171] sm:$0xff] %vm1073_vm1, %v1038_v33  ;;  %v12996_v21 = vld [vmem:[#allocation12_spill] sm:$0xff]  ;;  %v13000_v46 = vld [vmem:[#allocation14_spill] sm:$0xff] }
 0x388   :  { %v853_v5 = vmul.f32 %v7639_v44, %v12986_v4  ;;  %v980_v52 = vadd.f32 %v7788_v32, %v912_v1  ;;  %v1040_v7 = vmax.f32 %v976_v31, 0.0  ;;  %v12989_v16 = vsub.f32 %v12988_v12, %v7637_v34  ;;  %1955 = vrot.lane.b32.xlu0 %v1345_v35, %s6763_s19  ;;  %v13004_v12 = vld [vmem:[#allocation16_spill] sm:$0xff] }
 0x389   :  { %v854_v43 = vmul.f32 %v7639_v44, %v12987_v8  ;;  %v917_v23 = vmul.f32 %v7681_v2, %v849_v17  ;;  %v981_v40 = vadd.f32 %v7788_v32, %v913_v56  ;;  %v1041_v0 = vmax.f32 %v977_v24, 0.0  ;;  %1214 = vst.msk [vmem:[#allocation2 + $0x181] sm:$0xff] %vm1073_vm1, %v1039_v39  ;;  %2209 = vrot.lane.b32.xlu2 %v1408_v15, %s6764_s20 }
 0x38a   :  { %v855_v27 = vmul.f32 %v7639_v44, %v12989_v16  ;;  %v12991_v49 = vsub.f32 %v12990_v18, %v7637_v34  ;;  %v918_v45 = vmul.f32 %v7681_v2, %v850_v13  ;;  %v982_v29 = vadd.f32 %v7788_v32, %v914_v41  ;;  %1215 = vst.msk [vmem:[#allocation2 + $0x189] sm:$0xff] %vm1073_vm1, %v1040_v7  ;;  %v8132_v7 = vld [vmem:[#allocation2 + $0x18] sm:$0xff] }
 0x38b   :  { %v1042_v14 = vmax.f32 %v978_v37, 0.0  ;;  %v12993_v51 = vsub.f32 %v12992_v36, %v7637_v34  ;;  %v919_v28 = vmul.f32 %v7681_v2, %v851_v26  ;;  %v983_v11 = vadd.f32 %v7788_v32, %v915_v6  ;;  %1216 = vst.msk [vmem:[#allocation2 + $0x1c9] sm:$0xff] %vm1073_vm1, %v1041_v0  ;;  %v13002_v6 = vld [vmem:[#allocation15_spill] sm:$0xff] }
 0x38c   :  { %v856_v59 = vmul.f32 %v7639_v44, %v12991_v49  ;;  %v1043_v47 = vmax.f32 %v979_v50, 0.0  ;;  %v920_v42 = vmul.f32 %v7681_v2, %v852_v38  ;;  %v984_v17 = vadd.f32 %v7788_v32, %v916_v57 }
 0x38d   :  { %v857_v61 = vmul.f32 %v7639_v44, %v12993_v51  ;;  %v1044_v55 = vmax.f32 %v980_v52, 0.0  ;;  %v12995_v20 = vsub.f32 %v12994_v63, %v7637_v34  ;;  %v921_v10 = vmul.f32 %v7681_v2, %v853_v5  ;;  %1217 = vst.msk [vmem:[#allocation2 + $0x1d1] sm:$0xff] %vm1073_vm1, %v1042_v14  ;;  %v8121_v5 = vld [vmem:[#allocation2 + $0x31] sm:$0xff]  ;;  %v8130_v52 = vld [vmem:[#allocation2 + $0x1a] sm:$0xff]  ;;  %2401 = vrot.lane.b32.xlu1 %v8132_v7, %s6769_s26  ;;  %v13010_v63 = vld [vmem:[#allocation20_spill] sm:$0xff] }
 0x38e   :  { %v985_v13 = vadd.f32 %v7788_v32, %v917_v23  ;;  %v1045_v30 = vmax.f32 %v981_v40, 0.0  ;;  %v12997_v58 = vsub.f32 %v12996_v21, %v7637_v34  ;;  %v922_v22 = vmul.f32 %v7681_v2, %v854_v43  ;;  %1218 = vst.msk [vmem:[#allocation2 + $0x1e1] sm:$0xff] %vm1073_vm1, %v1043_v47 }
 0x38f   :  { %v858_v54 = vmul.f32 %v7639_v44, %v12995_v20  ;;  %v986_v1 = vadd.f32 %v7788_v32, %v918_v45  ;;  %v1046_v31 = vmax.f32 %v982_v29, 0.0  ;;  %v12999_v62 = vsub.f32 %v12998_v25, %v7637_v34  ;;  %1219 = vst.msk [vmem:[#allocation2 + $0x1e9] sm:$0xff] %vm1073_vm1, %v1044_v55 }
 0x390   :  { %v859_v60 = vmul.f32 %v7639_v44, %v12997_v58  ;;  %v923_v56 = vmul.f32 %v7681_v2, %v855_v27  ;;  %v987_v24 = vadd.f32 %v7788_v32, %v919_v28  ;;  %v1047_v3 = vmax.f32 %v983_v11, 0.0  ;;  %1220 = vst.msk [vmem:[#allocation2 + $0x1f9] sm:$0xff] %vm1073_vm1, %v1045_v30  ;;  %3425 = vrot.lane.b32.xlu0 %v8121_v5, %s6766_s5 }
 0x391   :  { %v860_v26 = vmul.f32 %v7639_v44, %v12999_v62  ;;  %v13001_v38 = vsub.f32 %v13000_v46, %v7637_v34  ;;  %v924_v37 = vmul.f32 %v7681_v2, %v856_v59  ;;  %v988_v33 = vadd.f32 %v7788_v32, %v920_v42  ;;  %1221 = vst.msk [vmem:[#allocation2 + $0x201] sm:$0xff] %vm1073_vm1, %v1046_v31  ;;  %v13014_v31 = vld [vmem:[#allocation22_spill] sm:$0xff] }
 0x392   :  { %v1048_v4 = vmax.f32 %v984_v17, 0.0  ;;  %v13003_v50 = vsub.f32 %v13002_v6, %v7637_v34  ;;  %v925_v8 = vmul.f32 %v7681_v2, %v857_v61  ;;  %v989_v43 = vadd.f32 %v7788_v32, %v921_v10  ;;  %1222 = vst.msk [vmem:[#allocation2 + $0x211] sm:$0xff] %vm1073_vm1, %v1047_v3  ;;  %2913 = vrot.lane.b32.xlu2 %v8130_v52, %s6768_s25  ;;  %v13016_v3 = vld [vmem:[#allocation23_spill] sm:$0xff]  ;;  %v13018_v6 = vld [vmem:[#allocation24_spill] sm:$0xff] }
 0x393   :  { %v861_v41 = vmul.f32 %v7639_v44, %v13001_v38  ;;  %v1049_v57 = vmax.f32 %v985_v13, 0.0  ;;  %v13005_v16 = vsub.f32 %v13004_v12, %v7637_v34  ;;  %v926_v23 = vmul.f32 %v7681_v2, %v858_v54  ;;  %v8210_v12 = vld [vmem:[#allocation2 + $0x30] sm:$0xff] }
 0x394   :  { %v862_v39 = vmul.f32 %v7639_v44, %v13003_v50  ;;  %v990_v40 = vadd.f32 %v7788_v32, %v922_v22  ;;  %v1050_v0 = vmax.f32 %v986_v1, 0.0  ;;  %v13006_v18 = vsub.f32 %v12939_v19, %v7637_v34  ;;  %1223 = vst.msk [vmem:[#allocation2 + $0x219] sm:$0xff] %vm1073_vm1, %v1048_v4  ;;  %v13007_v19 = vld [vmem:[#allocation18_spill] sm:$0xff]  ;;  %v8199_v4 = vld [vmem:[#allocation2 + $0x22] sm:$0xff] }
 0x395   :  { %v863_v27 = vmul.f32 %v7639_v44, %v13005_v16  ;;  %v927_v59 = vmul.f32 %v7681_v2, %v859_v60  ;;  %v991_v45 = vadd.f32 %v7788_v32, %v923_v56  ;;  %v1051_v29 = vmax.f32 %v987_v24, 0.0  ;;  %1224 = vst.msk [vmem:[#allocation2 + $0x229] sm:$0xff] %vm1073_vm1, %v1049_v57  ;;  %v8212_v16 = vld [vmem:[#allocation2 + $0x19] sm:$0xff] }
 0x396   :  { %v864_v49 = vmul.f32 %v7639_v44, %v13006_v18  ;;  %v928_v14 = vmul.f32 %v7681_v2, %v860_v26  ;;  %v992_v35 = vadd.f32 %v7788_v32, %v924_v37  ;;  %v1052_v36 = vmax.f32 %v988_v33, 0.0  ;;  %1225 = vst.msk [vmem:[#allocation2 + $0x231] sm:$0xff] %vm1073_vm1, %v1050_v0  ;;  %2657 = vrot.lane.b32.xlu1 %v8212_v16, %s6770_s27 }
 0x397   :  { %v13008_v51 = vsub.f32 %v13007_v19, %v7637_v34  ;;  %v929_v28 = vmul.f32 %v7681_v2, %v861_v41  ;;  %v993_v11 = vadd.f32 %v7788_v32, %v925_v8  ;;  %v1053_v47 = vmax.f32 %v989_v43, 0.0  ;;  %1226 = vst.msk [vmem:[#allocation2 + $0x241] sm:$0xff] %vm1073_vm1, %v1051_v29 }
 0x398   :  { %v13009_v48 = vsub.f32 %v12941_v9, %v7637_v34  ;;  %v930_v42 = vmul.f32 %v7681_v2, %v862_v39  ;;  %v994_v17 = vadd.f32 %v7788_v32, %v926_v23  ;;  %v1054_v55 = vmax.f32 %v990_v40, 0.0  ;;  %v13012_v9 = vld [vmem:[#allocation21_spill] sm:$0xff]  ;;  %1227 = vst.msk [vmem:[#allocation2 + $0x249] sm:$0xff] %vm1073_vm1, %v1052_v36  ;;  %2915 = vrot.lane.b32.xlu0 %v8199_v4, %s6768_s25 }
 0x399   :  { %v865_v61 = vmul.f32 %v7639_v44, %v13008_v51  ;;  %v13011_v20 = vsub.f32 %v13010_v63, %v7637_v34  ;;  %v931_v10 = vmul.f32 %v7681_v2, %v863_v27  ;;  %v995_v13 = vadd.f32 %v7788_v32, %v927_v59  ;;  %1228 = vst.msk [vmem:[#allocation2 + $0x259] sm:$0xff] %vm1073_vm1, %v1053_v47 }
 0x39a   :  { %v866_v15 = vmul.f32 %v7639_v44, %v13009_v48  ;;  %v1055_v30 = vmax.f32 %v991_v45, 0.0  ;;  %v13013_v21 = vsub.f32 %v13012_v9, %v7637_v34  ;;  %v932_v60 = vmul.f32 %v7681_v2, %v864_v49  ;;  %1229 = vst.msk [vmem:[#allocation2 + $0x261] sm:$0xff] %vm1073_vm1, %v1054_v55  ;;  %3169 = vrot.lane.b32.xlu2 %v8210_v12, %s6767_s24  ;;  %v1505_v48 = vld [vmem:[#allocation2 + $0x21] sm:$0xff]  ;;  %v8293_v9 = vpop.permute.xlu2 %1891 }
 0x39b   :  { %v867_v54 = vmul.f32 %v7639_v44, %v13011_v20  ;;  %v996_v22 = vadd.f32 %v7788_v32, %v928_v14  ;;  %v1056_v1 = vmax.f32 %v992_v35, 0.0  ;;  %v13015_v25 = vsub.f32 %v13014_v31, %v7637_v34  ;;  %v8255_v20 = vld [vmem:[#allocation2 + $0x39] sm:$0xff]  ;;  %v8314_v31 = vld [vmem:[#allocation2 + $0x62] sm:$0xff] }
 0x39c   :  { %v868_v58 = vmul.f32 %v7639_v44, %v13013_v21  ;;  %v933_v26 = vmul.f32 %v7681_v2, %v865_v61  ;;  %v997_v56 = vadd.f32 %v7788_v32, %v929_v28  ;;  %v1057_v24 = vmax.f32 %v993_v11, 0.0  ;;  %1230 = vst.msk [vmem:[#allocation2 + $0x271] sm:$0xff] %vm1073_vm1, %v1055_v30  ;;  %v8286_v30 = vld [vmem:[#allocation2 + $0x51] sm:$0xff]  ;;  %v1890_v21 = vpop.permute.xlu0 %1889 }
 0x39d   :  { %v869_v62 = vmul.f32 %v7639_v44, %v13015_v25  ;;  %v13017_v46 = vsub.f32 %v13016_v3, %v7637_v34  ;;  %v934_v41 = vmul.f32 %v7681_v2, %v866_v15  ;;  %v998_v37 = vadd.f32 %v7788_v32, %v930_v42  ;;  %1231 = vst.msk [vmem:[#allocation2 + $0x279] sm:$0xff] %vm1073_vm1, %v1056_v1  ;;  %v1761_v15 = vld [vmem:[#allocation2 + $0x32] sm:$0xff] }
 0x39e   :  { %v1058_v33 = vmax.f32 %v994_v17, 0.0  ;;  %v13019_v50 = vsub.f32 %v13018_v6, %v7637_v34  ;;  %v935_v8 = vmul.f32 %v7681_v2, %v867_v54  ;;  %v999_v43 = vadd.f32 %v7788_v32, %v931_v10  ;;  %1232 = vst.msk [vmem:[#allocation2 + $0x289] sm:$0xff] %vm1073_vm1, %v1057_v24  ;;  %3681 = vrot.lane.b32.xlu1 %v1761_v15, %s6765_s21  ;;  %v8257_v54 = vld [vmem:[#allocation2 + $0x20] sm:$0xff]  ;;  %v8268_v10 = vld [vmem:[#allocation2 + $0x38] sm:$0xff]  ;;  %v4392_v6 = vld [vmem:[%s12742_s2 + $0x8] sm:$0xff] }
 0x39f   :  { %v870_v38 = vmul.f32 %v7639_v44, %v13017_v46  ;;  %v1059_v57 = vmax.f32 %v995_v13, 0.0  ;;  %v936_v27 = vmul.f32 %v7681_v2, %v868_v58  ;;  %v1000_v34 = vadd.f32 %v7788_v32, %v932_v60  ;;  %v8280_v13 = vld [vmem:[#allocation2 + $0x4a] sm:$0xff]  ;;  %v8318_v25 = vld [vmem:[#allocation2 + $0x52] sm:$0xff] }
 0x3a0   :  { %v871_v39 = vmul.f32 %v7639_v44, %v13019_v50  ;;  %v1060_v23 = vmax.f32 %v996_v22, 0.0  ;;  %v937_v44 = vmul.f32 %v7681_v2, %v869_v62  ;;  %v1001_v40 = vadd.f32 %v7788_v32, %v933_v26  ;;  %1233 = vst.msk [vmem:[#allocation2 + $0x291] sm:$0xff] %vm1073_vm1, %v1058_v33  ;;  %v8296_v58 = vld [vmem:[#allocation2 + $0x50] sm:$0xff] }
 0x3a1   :  { %v1061_v0 = vmax.f32 %v997_v56, 0.0  ;;  %v938_v18 = vmul.f32 %v7681_v2, %v870_v38  ;;  %v1002_v49 = vadd.f32 %v7788_v32, %v934_v41  ;;  %v1062_v59 = vmax.f32 %v998_v37, 0.0  ;;  %1234 = vst.msk [vmem:[#allocation2 + $0x2a1] sm:$0xff] %vm1073_vm1, %v1059_v57  ;;  %v8331_v56 = vld [vmem:[#allocation2 + $0x61] sm:$0xff]  ;;  %v4394_v41 = vld [vmem:[%s12742_s2 + $0x18] sm:$0xff]  ;;  %v4393_v33 = vld [vmem:[%s12742_s2 + $0x10] sm:$0xff] }
 0x3a2   :  { %v939_v45 = vmul.f32 %v7681_v2, %v871_v39  ;;  %v1003_v29 = vadd.f32 %v7788_v32, %v935_v8  ;;  %v1063_v14 = vmax.f32 %v999_v43, 0.0  ;;  %v1004_v35 = vadd.f32 %v7788_v32, %v936_v27  ;;  %1235 = vst.msk [vmem:[#allocation2 + $0x2a9] sm:$0xff] %vm1073_vm1, %v1060_v23  ;;  %v8236_v2 = vld [vmem:[#allocation2 + $0x3a] sm:$0xff]  ;;  %2659 = vrot.lane.b32.xlu2 %v1505_v48, %s6770_s27  ;;  %v8348_v37 = vld [vmem:[#allocation2 + $0x68] sm:$0xff] }
 0x3a3   :  { %v1064_v36 = vmax.f32 %v1000_v34, 0.0  ;;  %v1005_v19 = vadd.f32 %v7788_v32, %v937_v44  ;;  %v1065_v51 = vmax.f32 %v1001_v40, 0.0  ;;  %1236 = vst.msk [vmem:[#allocation2 + $0x2b9] sm:$0xff] %vm1073_vm1, %v1061_v0  ;;  %v1006_v61 = vadd.f32 %v7788_v32, %v938_v18  ;;  %3683 = vrot.lane.b32.xlu0 %v8236_v2, %s6765_s21  ;;  %v4395_v38 = vld [vmem:[%s12742_s2 + $0x20] sm:$0xf]  ;;  %v8382_v34 = vld [vmem:[#allocation2 + $0x6a] sm:$0xff] }
 0x3a4   :  { %v1066_v28 = vmax.f32 %v1002_v49, 0.0  ;;  %1237 = vst.msk [vmem:[#allocation2 + $0x2c1] sm:$0xff] %vm1073_vm1, %v1062_v59  ;;  %v1007_v11 = vadd.f32 %v7788_v32, %v939_v45  ;;  %v1067_v47 = vmax.f32 %v1003_v29, 0.0  ;;  %v1068_v42 = vmax.f32 %v1004_v35, 0.0  ;;  %v8304_v22 = vpop.permute.xlu0 %2145  ;;  %6543 = vmatpush.msk.msrb.mxu3 %vm4589_vm6, %v4395_v38  ;;  %v4391_v43 = vld [vmem:[%s12742_s2] sm:$0xff]  ;;  %v8393_v59 = vld [vmem:[#allocation2 + $0x69] sm:$0xff] }
 0x3a5   :  { %1238 = vst.msk [vmem:[#allocation2 + $0x2d1] sm:$0xff] %vm1073_vm1, %v1063_v14  ;;  %v1069_v17 = vmax.f32 %v1005_v19, 0.0  ;;  %v1070_v55 = vmax.f32 %v1006_v61, 0.0  ;;  %v1072_v63 = vmax.f32 %v7863_v53, 0.0  ;;  %v8264_v53 = vld [vmem:[#allocation2 + $0x48] sm:$0xff]  ;;  %v1248_v0 = vld [vmem:[#allocation2] sm:$0xff] }
 0x3a6   :  { %1239 = vst.msk [vmem:[#allocation2 + $0x2d9] sm:$0xff] %vm1073_vm1, %v1064_v36  ;;  %v1071_v32 = vmax.f32 %v1007_v11, 0.0  ;;  %2403 = vrot.lane.b32.xlu1 %v8257_v54, %s6769_s26  ;;  %4605 = vmatpush.msrb.mxu3 %v4394_v41  ;;  %v3873_v18 = vsel %vm1073_vm1, %v1248_v0, %v1890_v21  ;;  %v8389_v49 = vld [vmem:[#allocation2 + $0x79] sm:$0xff] }
 0x3a7   :  { %1240 = vst.msk [vmem:[#allocation2 + $0x2e9] sm:$0xff] %vm1073_vm1, %v1065_v51  ;;  %v3938_v45 = vsel %vm3937_vm7, %v3873_v18, %v8304_v22  ;;  %v8406_v61 = vld [vmem:[#allocation2 + $0x78] sm:$0xff] }
 0x3a8   :  { %1241 = vst.msk [vmem:[#allocation2 + $0x2f1] sm:$0xff] %vm1073_vm1, %v1066_v28  ;;  %4606 = vmatpush.msrb.mxu3 %v4393_v33  ;;  %v8445_v33 = vld [vmem:[#allocation2 + $0x81] sm:$0xff] }
 0x3a9   :  { %1242 = vst.msk [vmem:[#allocation2 + $0x301] sm:$0xff] %vm1073_vm1, %v1067_v47 }
 0x3aa   :  { %1243 = vst.msk [vmem:[#allocation2 + $0x309] sm:$0xff] %vm1073_vm1, %v1068_v42  ;;  %3427 = vrot.lane.b32.xlu2 %v8255_v20, %s6766_s5  ;;  %4607 = vmatpush.msrb.mxu3 %v4392_v6  ;;  %v1249_v42 = vld [vmem:[#allocation2 + $0x8] sm:$0xff] }
 0x3ab   :  { %1244 = vst.msk [vmem:[#allocation2 + $0x319] sm:$0xff] %vm1073_vm1, %v1069_v17  ;;  %2405 = vrot.lane.b32.xlu0 %v8210_v12, %s6769_s26  ;;  %v3874_v17 = vsel %vm1073_vm1, %v1249_v42, %v8293_v9  ;;  %v8432_v9 = vld [vmem:[#allocation2 + $0x7a] sm:$0xff]  ;;  %v8492_v42 = vld [vmem:[#allocation2 + $0x91] sm:$0xff] }
 0x3ac   :  { %1245 = vst.msk [vmem:[#allocation2 + $0x321] sm:$0xff] %vm1073_vm1, %v1070_v55  ;;  %4608 = vmatpush.msrb.mxu3 %v4391_v43 }
 0x3ad   :  { %1246 = vst.msk [vmem:[#allocation2 + $0x331] sm:$0xff] %vm1073_vm1, %v1071_v32 }
 0x3ae   :  { %1247 = vst.msk [vmem:[#allocation2 + $0x339] sm:$0xff] %vm1073_vm1, %v1072_v63  ;;  %3171 = vrot.lane.b32.xlu1 %v8268_v10, %s6767_s24 }
 0x3b1   :  { %v8320_v62 = vpop.permute.xlu0 %2147 }
 0x3b2   :  { %2149 = vrot.lane.b32.xlu2 %v8130_v52, %s6764_s20  ;;  %v1699_v52 = vld [vmem:[#allocation2 + $0x49] sm:$0xff] }
 0x3b3   :  { %3173 = vrot.lane.b32.xlu0 %v8264_v53, %s6767_s24 }
 0x3b6   :  { %1893 = vrot.lane.b32.xlu1 %v8212_v16, %s6763_s19 }
 0x3ba   :  { %2917 = vrot.lane.b32.xlu2 %v1761_v15, %s6768_s25 }
 0x3bb   :  { %1895 = vrot.lane.b32.xlu0 %v1505_v48, %s6763_s19 }
 0x3be   :  { %2661 = vrot.lane.b32.xlu1 %v8121_v5, %s6770_s27 }
 0x3c2   :  { %3685 = vrot.lane.b32.xlu2 %v8280_v13, %s6765_s21 }
 0x3c3   :  { %2663 = vrot.lane.b32.xlu0 %v8255_v20, %s6770_s27 }
 0x3c6   :  { %3429 = vrot.lane.b32.xlu1 %v1699_v52, %s6766_s5 }
 0x3ca   :  { %2407 = vrot.lane.b32.xlu2 %v8268_v10, %s6769_s26 }
 0x3cb   :  { %3431 = vrot.lane.b32.xlu0 %v8286_v30, %s6766_s5 }
 0x3ce   :  { %2151 = vrot.lane.b32.xlu1 %v8199_v4, %s6764_s20  ;;  %v8355_v4 = vld [vmem:[#allocation2 + $0x60] sm:$0xff] }
 0x3d2   :  { %3175 = vrot.lane.b32.xlu2 %v8296_v58, %s6767_s24  ;;  %v8302_v60 = vpop.permute.xlu2 %3229 }
 0x3d3   :  { %2153 = vrot.lane.b32.xlu0 %v1761_v15, %s6764_s20 }
 0x3d6   :  { %2919 = vrot.lane.b32.xlu1 %v8236_v2, %s6768_s25 }
 0x3da   :  { %1897 = vrot.lane.b32.xlu2 %v8121_v5, %s6763_s19  ;;  %v8325_v5 = vpop.permute.xlu1 %3741 }
 0x3db   :  { %2921 = vrot.lane.b32.xlu0 %v8280_v13, %s6768_s25  ;;  %v8312_v1 = vpop.permute.xlu2 %3487 }
 0x3de   :  { %3687 = vrot.lane.b32.xlu1 %v8318_v25, %s6765_s21 }
 0x3e2   :  { %2665 = vrot.lane.b32.xlu2 %v1699_v52, %s6770_s27 }
 0x3e3   :  { %3689 = vrot.lane.b32.xlu0 %v8314_v31, %s6765_s21  ;;  %v8327_v26 = vpop.permute.xlu2 %2209 }
 0x3e6   :  { %2409 = vrot.lane.b32.xlu1 %v8264_v53, %s6769_s26 }
 0x3e7   :  { %v8339_v3 = vpop.permute.xlu1 %3231 }
 0x3e8   :  { %v8337_v24 = vpop.permute.xlu0 %3485 }
 0x3ea   :  { %3433 = vrot.lane.b32.xlu2 %v8331_v56, %s6766_s5 }
 0x3eb   :  { %2411 = vrot.lane.b32.xlu0 %v8296_v58, %s6769_s26 }
 0x3ec   :  { %v2914_v46 = vpop.permute.xlu2 %2913 }
 0x3ee   :  { %3177 = vrot.lane.b32.xlu1 %v8355_v4, %s6767_s24 }
 0x3ef   :  { %v8366_v39 = vpop.permute.xlu1 %1953 }
 0x3f2   :  { %2155 = vrot.lane.b32.xlu2 %v8236_v2, %s6764_s20  ;;  %v8364_v50 = vpop.permute.xlu0 %3743 }
 0x3f3   :  { %3179 = vrot.lane.b32.xlu0 %v8348_v37, %s6767_s24 }
 0x3f4   :  { %v3170_v8 = vpop.permute.xlu2 %3169 }
 0x3f6   :  { %1899 = vrot.lane.b32.xlu1 %v8255_v20, %s6763_s19  ;;  %v3939_v20 = vsel %vm3937_vm7, %v3874_v17, %v8320_v62 }
 0x3f7   :  { %v8378_v16 = vpop.permute.xlu1 %2211 }
 0x3fa   :  { %2923 = vrot.lane.b32.xlu2 %v8318_v25, %s6768_s25  ;;  %v8376_v57 = vpop.permute.xlu0 %1955 }
 0x3fb   :  { %1901 = vrot.lane.b32.xlu0 %v1699_v52, %s6763_s19  ;;  %v8427_v52 = vld [vmem:[#allocation2 + $0x82] sm:$0xff] }
 0x3fc   :  { %v2660_v27 = vpop.permute.xlu2 %2659 }
 0x3fe   :  { %2667 = vrot.lane.b32.xlu1 %v8286_v30, %s6770_s27 }
 0x3ff   :  { %v2402_v40 = vpop.permute.xlu1 %2401 }
 0x400   :  { %v4003_v14 = vsel %vm4002_vm8, %v3938_v45, %v2402_v40 }
 0x402   :  { %3691 = vrot.lane.b32.xlu2 %v8382_v34, %s6765_s21  ;;  %v3426_v23 = vpop.permute.xlu0 %3425 }
 0x403   :  { %2669 = vrot.lane.b32.xlu0 %v8331_v56, %s6770_s27 }
 0x404   :  { %v3428_v44 = vpop.permute.xlu2 %3427 }
 0x406   :  { %3435 = vrot.lane.b32.xlu1 %v8393_v59, %s6766_s5 }
 0x408   :  { %v2658_v35 = vpop.permute.xlu1 %2657 }
 0x409   :  { %v4067_v19 = vsel %vm101_vm0, %v4003_v14, %v2658_v35 }
 0x40a   :  { %2413 = vrot.lane.b32.xlu2 %v8355_v4, %s6769_s26  ;;  %v2916_v29 = vpop.permute.xlu0 %2915  ;;  %v4132_v51 = vsel %vm4131_vm9, %v4067_v19, %v2914_v46 }
 0x40b   :  { %3437 = vrot.lane.b32.xlu0 %v8389_v49, %s6766_s5  ;;  %v4197_v28 = vsel %vm4196_vm10, %v4132_v51, %v3170_v8 }
 0x40c   :  { %v2150_v36 = vpop.permute.xlu2 %2149  ;;  %v4262_v11 = vsel %vm4261_vm11, %v4197_v28, %v3426_v23  ;;  %v8453_v23 = vld [vmem:[#allocation2 + $0x90] sm:$0xff] }
 0x40e   :  { %2157 = vrot.lane.b32.xlu1 %v8280_v13, %s6764_s20 }
 0x410   :  { %v3682_v47 = vpop.permute.xlu1 %3681 }
 0x411   :  { %v4327_v15 = vsel %vm4326_vm12, %v4262_v11, %v3682_v47 }
 0x412   :  { %3181 = vrot.lane.b32.xlu2 %v8406_v61, %s6767_s24  ;;  %6544 = vmatmul.msk.f32.vlgmr.msrb.gmra.mxu3 %vm4396_vm13, %v4327_v15  ;;  %v8488_v15 = vld [vmem:[#allocation2 + $0x99] sm:$0xff] }
 0x413   :  { %2159 = vrot.lane.b32.xlu0 %v8318_v25, %s6764_s20 }
 0x414   :  { %v2918_v48 = vpop.permute.xlu2 %2917 }
 0x415   :  { %v3684_v2 = vpop.permute.xlu0 %3683 }
 0x416   :  { %2925 = vrot.lane.b32.xlu1 %v8314_v31, %s6768_s25 }
 0x418   :  { %v2404_v32 = vpop.permute.xlu1 %2403 }
 0x419   :  { %v4004_v13 = vsel %vm4002_vm8, %v3939_v20, %v2404_v32 }
 0x41a   :  { %1903 = vrot.lane.b32.xlu2 %v8286_v30, %s6763_s19  ;;  %v4068_v21 = vsel %vm101_vm0, %v4004_v13, %v2660_v27 }
 0x41b   :  { %2927 = vrot.lane.b32.xlu0 %v8382_v34, %s6768_s25  ;;  %v4133_v22 = vsel %vm4131_vm9, %v4068_v21, %v2916_v29  ;;  %v8504_v21 = vld [vmem:[#allocation2 + $0x98] sm:$0xff] }
 0x41c   :  { %v3686_v63 = vpop.permute.xlu2 %3685 }
 0x41d   :  { %v2406_v55 = vpop.permute.xlu0 %2405 }
 0x41e   :  { %3693 = vrot.lane.b32.xlu1 %v8432_v9, %s6765_s21 }
 0x420   :  { %v3172_v25 = vpop.permute.xlu1 %3171 }
 0x421   :  { %v4198_v46 = vsel %vm4196_vm10, %v4133_v22, %v3172_v25 }
 0x422   :  { %2671 = vrot.lane.b32.xlu2 %v8393_v59, %s6770_s27  ;;  %v4263_v38 = vsel %vm4261_vm11, %v4198_v46, %v3428_v44  ;;  %v8457_v44 = vld [vmem:[#allocation2 + $0x80] sm:$0xff] }
 0x423   :  { %3695 = vrot.lane.b32.xlu0 %v8427_v52, %s6765_s21  ;;  %v4328_v41 = vsel %vm4326_vm12, %v4263_v38, %v3684_v2 }
 0x424   :  { %v2408_v62 = vpop.permute.xlu2 %2407  ;;  %6545 = vmatmul.msk.f32.gmra.mxu3 %vm4396_vm13, %v4328_v41 }
 0x425   :  { %v3174_v30 = vpop.permute.xlu0 %3173 }
 0x426   :  { %2415 = vrot.lane.b32.xlu1 %v8348_v37, %s6769_s26 }
 0x428   :  { %v1894_v43 = vpop.permute.xlu1 %1893 }
 0x429   :  { %v3875_v27 = vsel %vm1073_vm1, %v8132_v7, %v1894_v43  ;;  %v8523_v43 = vld [vmem:[#allocation2 + $0xaa] sm:$0xff] }
 0x42a   :  { %3439 = vrot.lane.b32.xlu2 %v8445_v33, %s6766_s5  ;;  %v3940_v40 = vsel %vm3937_vm7, %v3875_v27, %v2150_v36 }
 0x42b   :  { %2417 = vrot.lane.b32.xlu0 %v8406_v61, %s6769_s26  ;;  %v4005_v7 = vsel %vm4002_vm8, %v3940_v40, %v2406_v55 }
 0x42c   :  { %v3176_v8 = vpop.permute.xlu2 %3175 }
 0x42d   :  { %v1896_v6 = vpop.permute.xlu0 %1895 }
 0x42e   :  { %3183 = vrot.lane.b32.xlu1 %v8457_v44, %s6767_s24  ;;  %v3876_v47 = vsel %vm1073_vm1, %v8257_v54, %v1896_v6 }
 0x430   :  { %v2662_v45 = vpop.permute.xlu1 %2661 }
 0x431   :  { %v4069_v29 = vsel %vm101_vm0, %v4005_v7, %v2662_v45 }
 0x432   :  { %2161 = vrot.lane.b32.xlu2 %v8314_v31, %s6764_s20  ;;  %v4134_v14 = vsel %vm4131_vm9, %v4069_v29, %v2918_v48 }
 0x433   :  { %3185 = vrot.lane.b32.xlu0 %v8453_v23, %s6767_s24  ;;  %v4199_v19 = vsel %vm4196_vm10, %v4134_v14, %v3174_v30  ;;  %v8541_v14 = vld [vmem:[#allocation2 + $0xa9] sm:$0xff] }
 0x434   :  { %v1898_v18 = vpop.permute.xlu2 %1897 }
 0x435   :  { %v2664_v0 = vpop.permute.xlu0 %2663 }
 0x436   :  { %1905 = vrot.lane.b32.xlu1 %v8331_v56, %s6763_s19 }
 0x438   :  { %v3430_v36 = vpop.permute.xlu1 %3429 }
 0x439   :  { %v4264_v51 = vsel %vm4261_vm11, %v4199_v19, %v3430_v36 }
 0x43a   :  { %2929 = vrot.lane.b32.xlu2 %v8432_v9, %s6768_s25  ;;  %v4329_v28 = vsel %vm4326_vm12, %v4264_v51, %v3686_v63  ;;  %v8549_v51 = vld [vmem:[#allocation2 + $0xb0] sm:$0xff] }
 0x43b   :  { %1907 = vrot.lane.b32.xlu0 %v8393_v59, %s6763_s19  ;;  %6546 = vmatmul.msk.f32.gmra.mxu3 %vm4396_vm13, %v4329_v28  ;;  %v8479_v59 = vld [vmem:[#allocation2 + $0x92] sm:$0xff]  ;;  %v8553_v28 = vld [vmem:[#allocation2 + $0xa8] sm:$0xff] }
 0x43c   :  { %v2666_v35 = vpop.permute.xlu2 %2665 }
 0x43d   :  { %v3432_v31 = vpop.permute.xlu0 %3431 }
 0x43e   :  { %2673 = vrot.lane.b32.xlu1 %v8389_v49, %s6770_s27 }
 0x440   :  { %v2152_v11 = vpop.permute.xlu1 %2151 }
 0x441   :  { %v3941_v48 = vsel %vm3937_vm7, %v3876_v47, %v2152_v11 }
 0x442   :  { %3697 = vrot.lane.b32.xlu2 %v8479_v59, %s6765_s21  ;;  %v4006_v17 = vsel %vm4002_vm8, %v3941_v48, %v2408_v62 }
 0x443   :  { %2675 = vrot.lane.b32.xlu0 %v8445_v33, %s6770_s27  ;;  %v4070_v63 = vsel %vm101_vm0, %v4006_v17, %v2664_v0 }
 0x444   :  { %v3434_v2 = vpop.permute.xlu2 %3433 }
 0x445   :  { %v2154_v56 = vpop.permute.xlu0 %2153 }
 0x446   :  { %3441 = vrot.lane.b32.xlu1 %v8492_v42, %s6766_s5 }
 0x448   :  { %v2920_v54 = vpop.permute.xlu1 %2919 }
 0x449   :  { %v4135_v20 = vsel %vm4131_vm9, %v4070_v63, %v2920_v54 }
 0x44a   :  { %2419 = vrot.lane.b32.xlu2 %v8457_v44, %s6769_s26  ;;  %v4200_v13 = vsel %vm4196_vm10, %v4135_v20, %v3176_v8 }
 0x44b   :  { %3443 = vrot.lane.b32.xlu0 %v8488_v15, %s6766_s5  ;;  %v4265_v62 = vsel %vm4261_vm11, %v4200_v13, %v3432_v31 }
 0x44c   :  { %v2156_v32 = vpop.permute.xlu2 %2155 }
 0x44d   :  { %v2922_v55 = vpop.permute.xlu0 %2921 }
 0x44e   :  { %2163 = vrot.lane.b32.xlu1 %v8382_v34, %s6764_s20  ;;  %v3877_v34 = vsel %vm1073_vm1, %v8210_v12, %v1898_v18 }
 0x44f   :  { %v3942_v6 = vsel %vm3937_vm7, %v3877_v34, %v2154_v56 }
 0x450   :  { %v3688_v25 = vpop.permute.xlu1 %3687 }
 0x451   :  { %v4330_v46 = vsel %vm4326_vm12, %v4265_v62, %v3688_v25  ;;  %v8584_v62 = vld [vmem:[#allocation2 + $0xc1] sm:$0xff] }
 0x452   :  { %3187 = vrot.lane.b32.xlu2 %v8504_v21, %s6767_s24  ;;  %6547 = vmatmul.msk.f32.gmra.mxu3 %vm4396_vm13, %v4330_v46  ;;  %v8588_v46 = vld [vmem:[#allocation2 + $0xb1] sm:$0xff] }
 0x453   :  { %2165 = vrot.lane.b32.xlu0 %v8432_v9, %s6764_s20 }
 0x454   :  { %v2924_v22 = vpop.permute.xlu2 %2923 }
 0x455   :  { %v3690_v30 = vpop.permute.xlu0 %3689 }
 0x456   :  { %2931 = vrot.lane.b32.xlu1 %v8427_v52, %s6768_s25 }
 0x458   :  { %v2410_v41 = vpop.permute.xlu1 %2409 }
 0x459   :  { %v4007_v8 = vsel %vm4002_vm8, %v3942_v6, %v2410_v41 }
 0x45a   :  { %1909 = vrot.lane.b32.xlu2 %v8389_v49, %s6763_s19  ;;  %v4071_v27 = vsel %vm101_vm0, %v4007_v8, %v2666_v35  ;;  %v8528_v49 = vld [vmem:[#allocation2 + $0x9a] sm:$0xff] }
 0x45b   :  { %2933 = vrot.lane.b32.xlu0 %v8479_v59, %s6768_s25  ;;  %v4136_v0 = vsel %vm4131_vm9, %v4071_v27, %v2922_v55  ;;  %v8600_v27 = vld [vmem:[#allocation2 + $0xc0] sm:$0xff] }
 0x45c   :  { %v3692_v38 = vpop.permute.xlu2 %3691 }
 0x45d   :  { %v2412_v9 = vpop.permute.xlu0 %2411 }
 0x45e   :  { %3699 = vrot.lane.b32.xlu1 %v8528_v49, %s6765_s21 }
 0x460   :  { %v3178_v18 = vpop.permute.xlu1 %3177 }
 0x461   :  { %v4201_v45 = vsel %vm4196_vm10, %v4136_v0, %v3178_v18 }
 0x462   :  { %2677 = vrot.lane.b32.xlu2 %v8492_v42, %s6770_s27  ;;  %v4266_v7 = vsel %vm4261_vm11, %v4201_v45, %v3434_v2 }
 0x463   :  { %3701 = vrot.lane.b32.xlu0 %v8523_v43, %s6765_s21  ;;  %v4331_v29 = vsel %vm4326_vm12, %v4266_v7, %v3690_v30 }
 0x464   :  { %v2414_v40 = vpop.permute.xlu2 %2413  ;;  %6548 = vmatmul.msk.f32.gmra.mxu3 %vm4396_vm13, %v4331_v29 }
 0x465   :  { %v3180_v12 = vpop.permute.xlu0 %3179 }
 0x466   :  { %2421 = vrot.lane.b32.xlu1 %v8453_v23, %s6769_s26 }
 0x468   :  { %v1900_v36 = vpop.permute.xlu1 %1899 }
 0x469   :  { %v3878_v19 = vsel %vm1073_vm1, %v8268_v10, %v1900_v36  ;;  %v8619_v36 = vld [vmem:[#allocation2 + $0xca] sm:$0xff] }
 0x46a   :  { %3445 = vrot.lane.b32.xlu2 %v8541_v14, %s6766_s5  ;;  %v3943_v56 = vsel %vm3937_vm7, %v3878_v19, %v2156_v32 }
 0x46b   :  { %2423 = vrot.lane.b32.xlu0 %v8504_v21, %s6769_s26  ;;  %v4008_v10 = vsel %vm4002_vm8, %v3943_v56, %v2412_v9 }
 0x46c   :  { %v3182_v35 = vpop.permute.xlu2 %3181 }
 0x46d   :  { %v1902_v31 = vpop.permute.xlu0 %1901 }
 0x46e   :  { %3189 = vrot.lane.b32.xlu1 %v8553_v28, %s6767_s24 }
 0x470   :  { %v2668_v47 = vpop.permute.xlu1 %2667 }
 0x471   :  { %v4072_v48 = vsel %vm101_vm0, %v4008_v10, %v2668_v47 }
 0x472   :  { %2167 = vrot.lane.b32.xlu2 %v8427_v52, %s6764_s20  ;;  %v4137_v17 = vsel %vm4131_vm9, %v4072_v48, %v2924_v22  ;;  %v3879_v22 = vsel %vm1073_vm1, %v8264_v53, %v1902_v31 }
 0x473   :  { %3191 = vrot.lane.b32.xlu0 %v8549_v51, %s6767_s24  ;;  %v4202_v32 = vsel %vm4196_vm10, %v4137_v17, %v3180_v12  ;;  %v8637_v17 = vld [vmem:[#allocation2 + $0xc9] sm:$0xff] }
 0x474   :  { %v1904_v11 = vpop.permute.xlu2 %1903 }
 0x475   :  { %v2670_v2 = vpop.permute.xlu0 %2669 }
 0x476   :  { %1911 = vrot.lane.b32.xlu1 %v8445_v33, %s6763_s19 }
 0x478   :  { %v3436_v54 = vpop.permute.xlu1 %3435 }
 0x479   :  { %v4267_v63 = vsel %vm4261_vm11, %v4202_v32, %v3436_v54 }
 0x47a   :  { %2935 = vrot.lane.b32.xlu2 %v8528_v49, %s6768_s25  ;;  %v4332_v20 = vsel %vm4326_vm12, %v4267_v63, %v3692_v38  ;;  %v8645_v63 = vld [vmem:[#allocation2 + $0xd8] sm:$0xff] }
 0x47b   :  { %1913 = vrot.lane.b32.xlu0 %v8492_v42, %s6763_s19  ;;  %6549 = vmatmul.msk.f32.gmra.mxu3 %vm4396_vm13, %v4332_v20  ;;  %v8575_v42 = vld [vmem:[#allocation2 + $0xb2] sm:$0xff]  ;;  %v8649_v20 = vld [vmem:[#allocation2 + $0xc8] sm:$0xff] }
 0x47c   :  { %v2672_v55 = vpop.permute.xlu2 %2671 }
 0x47d   :  { %v3438_v52 = vpop.permute.xlu0 %3437 }
 0x47e   :  { %2679 = vrot.lane.b32.xlu1 %v8488_v15, %s6770_s27 }
 0x480   :  { %v2158_v30 = vpop.permute.xlu1 %2157 }
 0x481   :  { %v3944_v25 = vsel %vm3937_vm7, %v3879_v22, %v2158_v30 }
 0x482   :  { %3703 = vrot.lane.b32.xlu2 %v8575_v42, %s6765_s21  ;;  %v4009_v9 = vsel %vm4002_vm8, %v3944_v25, %v2414_v40 }
 0x483   :  { %2681 = vrot.lane.b32.xlu0 %v8541_v14, %s6770_s27  ;;  %v4073_v41 = vsel %vm101_vm0, %v4009_v9, %v2670_v2 }
 0x484   :  { %v3440_v13 = vpop.permute.xlu2 %3439 }
 0x485   :  { %v2160_v33 = vpop.permute.xlu0 %2159 }
 0x486   :  { %3447 = vrot.lane.b32.xlu1 %v8588_v46, %s6766_s5 }
 0x488   :  { %v2926_v53 = vpop.permute.xlu1 %2925 }
 0x489   :  { %v4138_v6 = vsel %vm4131_vm9, %v4073_v41, %v2926_v53 }
 0x48a   :  { %2425 = vrot.lane.b32.xlu2 %v8553_v28, %s6769_s26  ;;  %v4203_v8 = vsel %vm4196_vm10, %v4138_v6, %v3182_v35 }
 0x48b   :  { %3449 = vrot.lane.b32.xlu0 %v8584_v62, %s6766_s5  ;;  %v4268_v18 = vsel %vm4261_vm11, %v4203_v8, %v3438_v52 }
 0x48c   :  { %v2162_v38 = vpop.permute.xlu2 %2161 }
 0x48d   :  { %v2928_v34 = vpop.permute.xlu0 %2927 }
 0x48e   :  { %2169 = vrot.lane.b32.xlu1 %v8479_v59, %s6764_s20  ;;  %v3880_v59 = vsel %vm1073_vm1, %v8296_v58, %v1904_v11 }
 0x48f   :  { %v3945_v31 = vsel %vm3937_vm7, %v3880_v59, %v2160_v33 }
 0x490   :  { %v3694_v0 = vpop.permute.xlu1 %3693 }
 0x491   :  { %v4333_v45 = vsel %vm4326_vm12, %v4268_v18, %v3694_v0  ;;  %v8680_v18 = vld [vmem:[#allocation2 + $0xe1] sm:$0xff] }
 0x492   :  { %3193 = vrot.lane.b32.xlu2 %v8600_v27, %s6767_s24  ;;  %6550 = vmatmul.msk.f32.gmra.mxu3 %vm4396_vm13, %v4333_v45  ;;  %v8684_v45 = vld [vmem:[#allocation2 + $0xd9] sm:$0xff] }
 0x493   :  { %2171 = vrot.lane.b32.xlu0 %v8528_v49, %s6764_s20 }
 0x494   :  { %v2930_v40 = vpop.permute.xlu2 %2929 }
 0x495   :  { %v3696_v12 = vpop.permute.xlu0 %3695 }
 0x496   :  { %2937 = vrot.lane.b32.xlu1 %v8523_v43, %s6768_s25 }
 0x498   :  { %v2416_v29 = vpop.permute.xlu1 %2415 }
 0x499   :  { %v4010_v35 = vsel %vm4002_vm8, %v3945_v31, %v2416_v29 }
 0x49a   :  { %1915 = vrot.lane.b32.xlu2 %v8488_v15, %s6763_s19  ;;  %v4074_v19 = vsel %vm101_vm0, %v4010_v35, %v2672_v55  ;;  %v8624_v15 = vld [vmem:[#allocation2 + $0xc2] sm:$0xff] }
 0x49b   :  { %2939 = vrot.lane.b32.xlu0 %v8575_v42, %s6768_s25  ;;  %v4139_v2 = vsel %vm4131_vm9, %v4074_v19, %v2928_v34  ;;  %v8696_v19 = vld [vmem:[#allocation2 + $0xe0] sm:$0xff] }
 0x49c   :  { %v3698_v7 = vpop.permute.xlu2 %3697 }
 0x49d   :  { %v2418_v49 = vpop.permute.xlu0 %2417 }
 0x49e   :  { %3705 = vrot.lane.b32.xlu1 %v8624_v15, %s6765_s21 }
 0x4a0   :  { %v3184_v11 = vpop.permute.xlu1 %3183 }
 0x4a1   :  { %v4204_v47 = vsel %vm4196_vm10, %v4139_v2, %v3184_v11 }
 0x4a2   :  { %2683 = vrot.lane.b32.xlu2 %v8588_v46, %s6770_s27  ;;  %v4269_v10 = vsel %vm4261_vm11, %v4204_v47, %v3440_v13 }
 0x4a3   :  { %3707 = vrot.lane.b32.xlu0 %v8619_v36, %s6765_s21  ;;  %v4334_v48 = vsel %vm4326_vm12, %v4269_v10, %v3696_v12 }
 0x4a4   :  { %v2420_v56 = vpop.permute.xlu2 %2419  ;;  %6551 = vmatmul.msk.f32.gmra.mxu3 %vm4396_vm13, %v4334_v48 }
 0x4a5   :  { %v3186_v58 = vpop.permute.xlu0 %3185 }
 0x4a6   :  { %2427 = vrot.lane.b32.xlu1 %v8549_v51, %s6769_s26 }
 0x4a8   :  { %v1906_v32 = vpop.permute.xlu1 %1905 }
 0x4a9   :  { %v3881_v54 = vsel %vm1073_vm1, %v8355_v4, %v1906_v32  ;;  %v8715_v32 = vld [vmem:[#allocation2 + $0xf2] sm:$0xff] }
 0x4aa   :  { %3451 = vrot.lane.b32.xlu2 %v8637_v17, %s6766_s5  ;;  %v3946_v33 = vsel %vm3937_vm7, %v3881_v54, %v2162_v38 }
 0x4ab   :  { %2429 = vrot.lane.b32.xlu0 %v8600_v27, %s6769_s26  ;;  %v4011_v4 = vsel %vm4002_vm8, %v3946_v33, %v2418_v49 }
 0x4ac   :  { %v3188_v55 = vpop.permute.xlu2 %3187 }
 0x4ad   :  { %v1908_v52 = vpop.permute.xlu0 %1907 }
 0x4ae   :  { %3195 = vrot.lane.b32.xlu1 %v8649_v20, %s6767_s24 }
 0x4b0   :  { %v2674_v22 = vpop.permute.xlu1 %2673 }
 0x4b1   :  { %v4075_v25 = vsel %vm101_vm0, %v4011_v4, %v2674_v22 }
 0x4b2   :  { %2173 = vrot.lane.b32.xlu2 %v8523_v43, %s6764_s20  ;;  %v4140_v9 = vsel %vm4131_vm9, %v4075_v25, %v2930_v40  ;;  %v3882_v40 = vsel %vm1073_vm1, %v8348_v37, %v1908_v52 }
 0x4b3   :  { %3197 = vrot.lane.b32.xlu0 %v8645_v63, %s6767_s24  ;;  %v4205_v38 = vsel %vm4196_vm10, %v4140_v9, %v3186_v58  ;;  %v8733_v9 = vld [vmem:[#allocation2 + $0xf1] sm:$0xff] }
 0x4b4   :  { %v1910_v30 = vpop.permute.xlu2 %1909 }
 0x4b5   :  { %v2676_v13 = vpop.permute.xlu0 %2675 }
 0x4b6   :  { %1917 = vrot.lane.b32.xlu1 %v8541_v14, %s6763_s19 }
 0x4b8   :  { %v3442_v53 = vpop.permute.xlu1 %3441 }
 0x4b9   :  { %v4270_v41 = vsel %vm4261_vm11, %v4205_v38, %v3442_v53 }
 0x4ba   :  { %2941 = vrot.lane.b32.xlu2 %v8624_v15, %s6768_s25  ;;  %v4335_v6 = vsel %vm4326_vm12, %v4270_v41, %v3698_v7  ;;  %v8741_v41 = vld [vmem:[#allocation2 + $0xf8] sm:$0xff] }
 0x4bb   :  { %1919 = vrot.lane.b32.xlu0 %v8588_v46, %s6763_s19  ;;  %6552 = vmatmul.msk.f32.gmra.mxu3 %vm4396_vm13, %v4335_v6  ;;  %v8671_v46 = vld [vmem:[#allocation2 + $0xda] sm:$0xff]  ;;  %v8745_v6 = vld [vmem:[#allocation2 + $0xf0] sm:$0xff] }
 0x4bc   :  { %v2678_v34 = vpop.permute.xlu2 %2677 }
 0x4bd   :  { %v3444_v43 = vpop.permute.xlu0 %3443 }
 0x4be   :  { %2685 = vrot.lane.b32.xlu1 %v8584_v62, %s6770_s27 }
 0x4c0   :  { %v2164_v12 = vpop.permute.xlu1 %2163 }
 0x4c1   :  { %v3947_v0 = vsel %vm3937_vm7, %v3882_v40, %v2164_v12 }
 0x4c2   :  { %3709 = vrot.lane.b32.xlu2 %v8671_v46, %s6765_s21  ;;  %v4012_v49 = vsel %vm4002_vm8, %v3947_v0, %v2420_v56 }
 0x4c3   :  { %2687 = vrot.lane.b32.xlu0 %v8637_v17, %s6770_s27  ;;  %v4076_v29 = vsel %vm101_vm0, %v4012_v49, %v2676_v13 }
 0x4c4   :  { %v3446_v8 = vpop.permute.xlu2 %3445 }
 0x4c5   :  { %v2166_v14 = vpop.permute.xlu0 %2165 }
 0x4c6   :  { %3453 = vrot.lane.b32.xlu1 %v8684_v45, %s6766_s5 }
 0x4c8   :  { %v2932_v37 = vpop.permute.xlu1 %2931 }
 0x4c9   :  { %v4141_v31 = vsel %vm4131_vm9, %v4076_v29, %v2932_v37 }
 0x4ca   :  { %2431 = vrot.lane.b32.xlu2 %v8649_v20, %s6769_s26  ;;  %v4206_v35 = vsel %vm4196_vm10, %v4141_v31, %v3188_v55 }
 0x4cb   :  { %3455 = vrot.lane.b32.xlu0 %v8680_v18, %s6766_s5  ;;  %v4271_v11 = vsel %vm4261_vm11, %v4206_v35, %v3444_v43 }
 0x4cc   :  { %v2168_v7 = vpop.permute.xlu2 %2167 }
 0x4cd   :  { %v2934_v59 = vpop.permute.xlu0 %2933 }
 0x4ce   :  { %2175 = vrot.lane.b32.xlu1 %v8575_v42, %s6764_s20  ;;  %v3883_v42 = vsel %vm1073_vm1, %v8406_v61, %v1910_v30 }
 0x4cf   :  { %v3948_v52 = vsel %vm3937_vm7, %v3883_v42, %v2166_v14 }
 0x4d0   :  { %v3700_v2 = vpop.permute.xlu1 %3699 }
 0x4d1   :  { %v4336_v47 = vsel %vm4326_vm12, %v4271_v11, %v3700_v2  ;;  %v8776_v11 = vld [vmem:[#allocation2 + $0x109] sm:$0xff] }
 0x4d2   :  { %3199 = vrot.lane.b32.xlu2 %v8696_v19, %s6767_s24  ;;  %6553 = vmatmul.msk.f32.gmra.mxu3 %vm4396_vm13, %v4336_v47  ;;  %v8780_v47 = vld [vmem:[#allocation2 + $0xf9] sm:$0xff] }
 0x4d3   :  { %2177 = vrot.lane.b32.xlu0 %v8624_v15, %s6764_s20 }
 0x4d4   :  { %v2936_v56 = vpop.permute.xlu2 %2935 }
 0x4d5   :  { %v3702_v58 = vpop.permute.xlu0 %3701 }
 0x4d6   :  { %2943 = vrot.lane.b32.xlu1 %v8619_v36, %s6768_s25 }
 0x4d8   :  { %v2422_v48 = vpop.permute.xlu1 %2421 }
 0x4d9   :  { %v4013_v55 = vsel %vm4002_vm8, %v3948_v52, %v2422_v48 }
 0x4da   :  { %1921 = vrot.lane.b32.xlu2 %v8584_v62, %s6763_s19  ;;  %v4077_v54 = vsel %vm101_vm0, %v4013_v55, %v2678_v34  ;;  %v8720_v62 = vld [vmem:[#allocation2 + $0xe2] sm:$0xff] }
 0x4db   :  { %2945 = vrot.lane.b32.xlu0 %v8671_v46, %s6768_s25  ;;  %v4142_v13 = vsel %vm4131_vm9, %v4077_v54, %v2934_v59  ;;  %v8792_v54 = vld [vmem:[#allocation2 + $0x108] sm:$0xff] }
 0x4dc   :  { %v3704_v10 = vpop.permute.xlu2 %3703 }
 0x4dd   :  { %v2424_v15 = vpop.permute.xlu0 %2423 }
 0x4de   :  { %3711 = vrot.lane.b32.xlu1 %v8720_v62, %s6765_s21 }
 0x4e0   :  { %v3190_v30 = vpop.permute.xlu1 %3189 }
 0x4e1   :  { %v4207_v22 = vsel %vm4196_vm10, %v4142_v13, %v3190_v30 }
 0x4e2   :  { %2689 = vrot.lane.b32.xlu2 %v8684_v45, %s6770_s27  ;;  %v4272_v4 = vsel %vm4261_vm11, %v4207_v22, %v3446_v8 }
 0x4e3   :  { %3713 = vrot.lane.b32.xlu0 %v8715_v32, %s6765_s21  ;;  %v4337_v25 = vsel %vm4326_vm12, %v4272_v4, %v3702_v58 }
 0x4e4   :  { %v2426_v33 = vpop.permute.xlu2 %2425  ;;  %6554 = vmatmul.msk.f32.gmra.mxu3 %vm4396_vm13, %v4337_v25 }
 0x4e5   :  { %v3192_v61 = vpop.permute.xlu0 %3191 }
 0x4e6   :  { %2433 = vrot.lane.b32.xlu1 %v8645_v63, %s6769_s26 }
 0x4e8   :  { %v1912_v38 = vpop.permute.xlu1 %1911 }
 0x4e9   :  { %v3884_v53 = vsel %vm1073_vm1, %v8457_v44, %v1912_v38  ;;  %v8811_v38 = vld [vmem:[#allocation2 + $0x112] sm:$0xff] }
 0x4ea   :  { %3457 = vrot.lane.b32.xlu2 %v8733_v9, %s6766_s5  ;;  %v3949_v14 = vsel %vm3937_vm7, %v3884_v53, %v2168_v7 }
 0x4eb   :  { %2435 = vrot.lane.b32.xlu0 %v8696_v19, %s6769_s26  ;;  %v4014_v44 = vsel %vm4002_vm8, %v3949_v14, %v2424_v15 }
 0x4ec   :  { %v3194_v34 = vpop.permute.xlu2 %3193 }
 0x4ed   :  { %v1914_v43 = vpop.permute.xlu0 %1913 }
 0x4ee   :  { %3201 = vrot.lane.b32.xlu1 %v8745_v6, %s6767_s24 }
 0x4f0   :  { %v2680_v40 = vpop.permute.xlu1 %2679 }
 0x4f1   :  { %v4078_v0 = vsel %vm101_vm0, %v4014_v44, %v2680_v40 }
 0x4f2   :  { %2179 = vrot.lane.b32.xlu2 %v8619_v36, %s6764_s20  ;;  %v4143_v49 = vsel %vm4131_vm9, %v4078_v0, %v2936_v56  ;;  %v3885_v56 = vsel %vm1073_vm1, %v8453_v23, %v1914_v43 }
 0x4f3   :  { %3203 = vrot.lane.b32.xlu0 %v8741_v41, %s6767_s24  ;;  %v4208_v7 = vsel %vm4196_vm10, %v4143_v49, %v3192_v61  ;;  %v8829_v49 = vld [vmem:[#allocation2 + $0x111] sm:$0xff] }
 0x4f4   :  { %v1916_v12 = vpop.permute.xlu2 %1915 }
 0x4f5   :  { %v2682_v8 = vpop.permute.xlu0 %2681 }
 0x4f6   :  { %1923 = vrot.lane.b32.xlu1 %v8637_v17, %s6763_s19 }
 0x4f8   :  { %v3448_v37 = vpop.permute.xlu1 %3447 }
 0x4f9   :  { %v4273_v29 = vsel %vm4261_vm11, %v4208_v7, %v3448_v37 }
 0x4fa   :  { %2947 = vrot.lane.b32.xlu2 %v8720_v62, %s6768_s25  ;;  %v4338_v31 = vsel %vm4326_vm12, %v4273_v29, %v3704_v10  ;;  %v8837_v29 = vld [vmem:[#allocation2 + $0x120] sm:$0xff] }
 0x4fb   :  { %1925 = vrot.lane.b32.xlu0 %v8684_v45, %s6763_s19  ;;  %6555 = vmatmul.msk.f32.gmra.mxu3 %vm4396_vm13, %v4338_v31  ;;  %v8767_v45 = vld [vmem:[#allocation2 + $0xfa] sm:$0xff]  ;;  %v8841_v31 = vld [vmem:[#allocation2 + $0x110] sm:$0xff] }
 0x4fc   :  { %v2684_v59 = vpop.permute.xlu2 %2683 }
 0x4fd   :  { %v3450_v36 = vpop.permute.xlu0 %3449 }
 0x4fe   :  { %2691 = vrot.lane.b32.xlu1 %v8680_v18, %s6770_s27 }
 0x500   :  { %v2170_v58 = vpop.permute.xlu1 %2169 }
 0x501   :  { %v3950_v2 = vsel %vm3937_vm7, %v3885_v56, %v2170_v58 }
 0x502   :  { %3715 = vrot.lane.b32.xlu2 %v8767_v45, %s6765_s21  ;;  %v4015_v15 = vsel %vm4002_vm8, %v3950_v2, %v2426_v33 }
 0x503   :  { %2693 = vrot.lane.b32.xlu0 %v8733_v9, %s6770_s27  ;;  %v4079_v48 = vsel %vm101_vm0, %v4015_v15, %v2682_v8 }
 0x504   :  { %v3452_v35 = vpop.permute.xlu2 %3451 }
 0x505   :  { %v2172_v17 = vpop.permute.xlu0 %2171 }
 0x506   :  { %3459 = vrot.lane.b32.xlu1 %v8780_v47, %s6766_s5 }
 0x508   :  { %v2938_v23 = vpop.permute.xlu1 %2937 }
 0x509   :  { %v4144_v52 = vsel %vm4131_vm9, %v4079_v48, %v2938_v23 }
 0x50a   :  { %2437 = vrot.lane.b32.xlu2 %v8745_v6, %s6769_s26  ;;  %v4209_v55 = vsel %vm4196_vm10, %v4144_v52, %v3194_v34 }
 0x50b   :  { %3461 = vrot.lane.b32.xlu0 %v8776_v11, %s6766_s5  ;;  %v4274_v30 = vsel %vm4261_vm11, %v4209_v55, %v3450_v36 }
 0x50c   :  { %v2174_v10 = vpop.permute.xlu2 %2173 }
 0x50d   :  { %v2940_v42 = vpop.permute.xlu0 %2939 }
 0x50e   :  { %2181 = vrot.lane.b32.xlu1 %v8671_v46, %s6764_s20  ;;  %v3886_v46 = vsel %vm1073_vm1, %v8504_v21, %v1916_v12 }
 0x50f   :  { %v3951_v43 = vsel %vm3937_vm7, %v3886_v46, %v2172_v17 }
 0x510   :  { %v3706_v13 = vpop.permute.xlu1 %3705 }
 0x511   :  { %v4339_v22 = vsel %vm4326_vm12, %v4274_v30, %v3706_v13  ;;  %v8872_v30 = vld [vmem:[#allocation2 + $0x129] sm:$0xff] }
 0x512   :  { %3205 = vrot.lane.b32.xlu2 %v8792_v54, %s6767_s24  ;;  %6556 = vmatmul.msk.f32.gmra.mxu3 %vm4396_vm13, %v4339_v22  ;;  %v8876_v22 = vld [vmem:[#allocation2 + $0x121] sm:$0xff] }
 0x513   :  { %2183 = vrot.lane.b32.xlu0 %v8720_v62, %s6764_s20 }
 0x514   :  { %v2942_v33 = vpop.permute.xlu2 %2941 }
 0x515   :  { %v3708_v61 = vpop.permute.xlu0 %3707 }
 0x516   :  { %2949 = vrot.lane.b32.xlu1 %v8715_v32, %s6768_s25 }
 0x518   :  { %v2428_v25 = vpop.permute.xlu1 %2427 }
 0x519   :  { %v4016_v34 = vsel %vm4002_vm8, %v3951_v43, %v2428_v25 }
 0x51a   :  { %1927 = vrot.lane.b32.xlu2 %v8680_v18, %s6763_s19  ;;  %v4080_v53 = vsel %vm101_vm0, %v4016_v34, %v2684_v59  ;;  %v8816_v18 = vld [vmem:[#allocation2 + $0x10a] sm:$0xff] }
 0x51b   :  { %2951 = vrot.lane.b32.xlu0 %v8767_v45, %s6768_s25  ;;  %v4145_v8 = vsel %vm4131_vm9, %v4080_v53, %v2940_v42  ;;  %v8888_v53 = vld [vmem:[#allocation2 + $0x128] sm:$0xff] }
 0x51c   :  { %v3710_v4 = vpop.permute.xlu2 %3709 }
 0x51d   :  { %v2430_v62 = vpop.permute.xlu0 %2429 }
 0x51e   :  { %3717 = vrot.lane.b32.xlu1 %v8816_v18, %s6765_s21 }
 0x520   :  { %v3196_v12 = vpop.permute.xlu1 %3195 }
 0x521   :  { %v4210_v40 = vsel %vm4196_vm10, %v4145_v8, %v3196_v12 }
 0x522   :  { %2695 = vrot.lane.b32.xlu2 %v8780_v47, %s6770_s27  ;;  %v4275_v44 = vsel %vm4261_vm11, %v4210_v40, %v3452_v35 }
 0x523   :  { %3719 = vrot.lane.b32.xlu0 %v8811_v38, %s6765_s21  ;;  %v4340_v0 = vsel %vm4326_vm12, %v4275_v44, %v3708_v61 }
 0x524   :  { %v2432_v14 = vpop.permute.xlu2 %2431  ;;  %6557 = vmatmul.msk.f32.gmra.mxu3 %vm4396_vm13, %v4340_v0 }
 0x525   :  { %v3198_v21 = vpop.permute.xlu0 %3197 }
 0x526   :  { %2439 = vrot.lane.b32.xlu1 %v8741_v41, %s6769_s26 }
 0x528   :  { %v1918_v7 = vpop.permute.xlu1 %1917 }
 0x529   :  { %v3887_v37 = vsel %vm1073_vm1, %v8553_v28, %v1918_v7  ;;  %v8907_v7 = vld [vmem:[#allocation2 + $0x13a] sm:$0xff] }
 0x52a   :  { %3463 = vrot.lane.b32.xlu2 %v8829_v49, %s6766_s5  ;;  %v3952_v17 = vsel %vm3937_vm7, %v3887_v37, %v2174_v10  ;;  %v8909_v37 = vpop.f32.mrf.mxu3 }
 0x52b   :  { %2441 = vrot.lane.b32.xlu0 %v8792_v54, %s6769_s26  ;;  %v4017_v28 = vsel %vm4002_vm8, %v3952_v17, %v2430_v62 }
 0x52c   :  { %v3200_v59 = vpop.permute.xlu2 %3199 }
 0x52d   :  { %v1920_v36 = vpop.permute.xlu0 %1919 }
 0x52e   :  { %3207 = vrot.lane.b32.xlu1 %v8841_v31, %s6767_s24 }
 0x530   :  { %v2686_v56 = vpop.permute.xlu1 %2685 }
 0x531   :  { %v4081_v2 = vsel %vm101_vm0, %v4017_v28, %v2686_v56 }
 0x532   :  { %2185 = vrot.lane.b32.xlu2 %v8715_v32, %s6764_s20  ;;  %v4146_v15 = vsel %vm4131_vm9, %v4081_v2, %v2942_v33  ;;  %v3888_v33 = vsel %vm1073_vm1, %v8549_v51, %v1920_v36 }
 0x533   :  { %3209 = vrot.lane.b32.xlu0 %v8837_v29, %s6767_s24  ;;  %v4211_v10 = vsel %vm4196_vm10, %v4146_v15, %v3198_v21 }
 0x534   :  { %v1922_v58 = vpop.permute.xlu2 %1921 }
 0x535   :  { %v2688_v35 = vpop.permute.xlu0 %2687 }
 0x536   :  { %1929 = vrot.lane.b32.xlu1 %v8733_v9, %s6763_s19 }
 0x538   :  { %v3454_v23 = vpop.permute.xlu1 %3453 }
 0x539   :  { %v4276_v48 = vsel %vm4261_vm11, %v4211_v10, %v3454_v23 }
 0x53a   :  { %2953 = vrot.lane.b32.xlu2 %v8816_v18, %s6768_s25  ;;  %v4341_v52 = vsel %vm4326_vm12, %v4276_v48, %v3710_v4 }
 0x53b   :  { %1931 = vrot.lane.b32.xlu0 %v8780_v47, %s6763_s19  ;;  %6558 = vmatmul.msk.f32.gmra.mxu3 %vm4396_vm13, %v4341_v52  ;;  %v8863_v47 = vld [vmem:[#allocation2 + $0x122] sm:$0xff] }
 0x53c   :  { %v2690_v42 = vpop.permute.xlu2 %2689 }
 0x53d   :  { %v3456_v32 = vpop.permute.xlu0 %3455 }
 0x53e   :  { %2697 = vrot.lane.b32.xlu1 %v8776_v11, %s6770_s27 }
 0x540   :  { %v2176_v61 = vpop.permute.xlu1 %2175 }
 0x541   :  { %v3953_v13 = vsel %vm3937_vm7, %v3888_v33, %v2176_v61  ;;  %v8943_v61 = vld [vmem:[#allocation2 + $0x138] sm:$0xff] }
 0x542   :  { %3721 = vrot.lane.b32.xlu2 %v8863_v47, %s6765_s21  ;;  %v4018_v62 = vsel %vm4002_vm8, %v3953_v13, %v2432_v14 }
 0x543   :  { %2699 = vrot.lane.b32.xlu0 %v8829_v49, %s6770_s27  ;;  %v4082_v25 = vsel %vm101_vm0, %v4018_v62, %v2688_v35 }
 0x544   :  { %v3458_v55 = vpop.permute.xlu2 %3457 }
 0x545   :  { %v2178_v9 = vpop.permute.xlu0 %2177 }
 0x546   :  { %3465 = vrot.lane.b32.xlu1 %v8876_v22, %s6766_s5 }
 0x548   :  { %v2944_v51 = vpop.permute.xlu1 %2943 }
 0x549   :  { %v4147_v43 = vsel %vm4131_vm9, %v4082_v25, %v2944_v51 }
 0x54a   :  { %2443 = vrot.lane.b32.xlu2 %v8841_v31, %s6769_s26  ;;  %v4212_v34 = vsel %vm4196_vm10, %v4147_v43, %v3200_v59 }
 0x54b   :  { %3467 = vrot.lane.b32.xlu0 %v8872_v30, %s6766_s5  ;;  %v4277_v12 = vsel %vm4261_vm11, %v4212_v34, %v3456_v32  ;;  %v8925_v32 = vpop.f32.mrf.mxu3 }
 0x54c   :  { %v2180_v4 = vpop.permute.xlu2 %2179 }
 0x54d   :  { %v2946_v46 = vpop.permute.xlu0 %2945 }
 0x54e   :  { %2187 = vrot.lane.b32.xlu1 %v8767_v45, %s6764_s20  ;;  %v3889_v45 = vsel %vm1073_vm1, %v8600_v27, %v1922_v58 }
 0x54f   :  { %v3954_v36 = vsel %vm3937_vm7, %v3889_v45, %v2178_v9  ;;  %v8937_v9 = vld [vmem:[#allocation2 + $0x140] sm:$0xff] }
 0x550   :  { %v3712_v8 = vpop.permute.xlu1 %3711 }
 0x551   :  { %v4342_v40 = vsel %vm4326_vm12, %v4277_v12, %v3712_v8 }
 0x552   :  { %3211 = vrot.lane.b32.xlu2 %v8888_v53, %s6767_s24  ;;  %6559 = vmatmul.msk.f32.gmra.mxu3 %vm4396_vm13, %v4342_v40 }
 0x553   :  { %2189 = vrot.lane.b32.xlu0 %v8816_v18, %s6764_s20 }
 0x554   :  { %v2948_v14 = vpop.permute.xlu2 %2947 }
 0x555   :  { %v3714_v21 = vpop.permute.xlu0 %3713 }
 0x556   :  { %2955 = vrot.lane.b32.xlu1 %v8811_v38, %s6768_s25 }
 0x558   :  { %v2434_v0 = vpop.permute.xlu1 %2433 }
 0x559   :  { %v4019_v59 = vsel %vm4002_vm8, %v3954_v36, %v2434_v0  ;;  %v8978_v0 = vld [vmem:[#allocation2 + $0x151] sm:$0xff] }
 0x55a   :  { %1933 = vrot.lane.b32.xlu2 %v8776_v11, %s6763_s19  ;;  %v4083_v17 = vsel %vm101_vm0, %v4019_v59, %v2690_v42  ;;  %v8914_v11 = vld [vmem:[#allocation2 + $0x12a] sm:$0xff]  ;;  %v8929_v42 = vld [vmem:[#allocation2 + $0x139] sm:$0xff]  ;;  %v8984_v59 = vld [vmem:[#allocation2 + $0x141] sm:$0xff] }
 0x55b   :  { %2957 = vrot.lane.b32.xlu0 %v8863_v47, %s6768_s25  ;;  %v4148_v58 = vsel %vm4131_vm9, %v4083_v17, %v2946_v46 }
 0x55c   :  { %v3716_v44 = vpop.permute.xlu2 %3715 }
 0x55d   :  { %v2436_v18 = vpop.permute.xlu0 %2435 }
 0x55e   :  { %3723 = vrot.lane.b32.xlu1 %v8914_v11, %s6765_s21 }
 0x560   :  { %v3202_v56 = vpop.permute.xlu1 %3201 }
 0x561   :  { %v4213_v28 = vsel %vm4196_vm10, %v4148_v58, %v3202_v56 }
 0x562   :  { %2701 = vrot.lane.b32.xlu2 %v8876_v22, %s6770_s27  ;;  %v4278_v2 = vsel %vm4261_vm11, %v4213_v28, %v3458_v55  ;;  %v8939_v55 = vpop.f32.mrf.mxu3 }
 0x563   :  { %3725 = vrot.lane.b32.xlu0 %v8907_v7, %s6765_s21  ;;  %v4343_v15 = vsel %vm4326_vm12, %v4278_v2, %v3714_v21  ;;  %13020 = vst [vmem:[#allocation3_spill] sm:$0xff] %v8939_v55 }
 0x564   :  { %v2438_v35 = vpop.permute.xlu2 %2437  ;;  %6560 = vmatmul.msk.f32.gmra.mxu3 %vm4396_vm13, %v4343_v15 }
 0x565   :  { %v3204_v27 = vpop.permute.xlu0 %3203 }
 0x566   :  { %2445 = vrot.lane.b32.xlu1 %v8837_v29, %s6769_s26 }
 0x568   :  { %v1924_v48 = vpop.permute.xlu1 %1923 }
 0x569   :  { %v3890_v52 = vsel %vm1073_vm1, %v8649_v20, %v1924_v48 }
 0x56a   :  { %3469 = vrot.lane.b32.xlu2 %v8929_v42, %s6766_s5  ;;  %v3955_v33 = vsel %vm3937_vm7, %v3890_v52, %v2180_v4  ;;  %v8952_v25 = vpop.f32.mrf.mxu3 }
 0x56b   :  { %2447 = vrot.lane.b32.xlu0 %v8888_v53, %s6769_s26  ;;  %v4020_v46 = vsel %vm4002_vm8, %v3955_v33, %v2436_v18  ;;  %13021 = vst [vmem:[#allocation4_spill] sm:$0xff] %v8952_v25 }
 0x56c   :  { %v3206_v23 = vpop.permute.xlu2 %3205 }
 0x56d   :  { %v1926_v10 = vpop.permute.xlu0 %1925 }
 0x56e   :  { %3213 = vrot.lane.b32.xlu1 %v8943_v61, %s6767_s24  ;;  %v3891_v45 = vsel %vm1073_vm1, %v8645_v63, %v1926_v10 }
 0x570   :  { %v2692_v20 = vpop.permute.xlu1 %2691 }
 0x571   :  { %v4084_v51 = vsel %vm101_vm0, %v4020_v46, %v2692_v20 }
 0x572   :  { %2191 = vrot.lane.b32.xlu2 %v8811_v38, %s6764_s20  ;;  %v4149_v43 = vsel %vm4131_vm9, %v4084_v51, %v2948_v14  ;;  %v8965_v14 = vpop.f32.mrf.mxu3 }
 0x573   :  { %3215 = vrot.lane.b32.xlu0 %v8937_v9, %s6767_s24  ;;  %v4214_v34 = vsel %vm4196_vm10, %v4149_v43, %v3204_v27  ;;  %13022 = vst [vmem:[#allocation5_spill] sm:$0xff] %v8965_v14 }
 0x574   :  { %v1928_v62 = vpop.permute.xlu2 %1927 }
 0x575   :  { %v2694_v13 = vpop.permute.xlu0 %2693 }
 0x576   :  { %1935 = vrot.lane.b32.xlu1 %v8829_v49, %s6763_s19 }
 0x578   :  { %v3460_v21 = vpop.permute.xlu1 %3459 }
 0x579   :  { %v4279_v8 = vsel %vm4261_vm11, %v4214_v34, %v3460_v21 }
 0x57a   :  { %2959 = vrot.lane.b32.xlu2 %v8914_v11, %s6768_s25  ;;  %v4344_v12 = vsel %vm4326_vm12, %v4279_v8, %v3716_v44  ;;  %v8980_v36 = vpop.f32.mrf.mxu3 }
 0x57b   :  { %1937 = vrot.lane.b32.xlu0 %v8876_v22, %s6763_s19  ;;  %6561 = vmatmul.msk.f32.gmra.mxu3 %vm4396_vm13, %v4344_v12  ;;  %v8969_v22 = vld [vmem:[#allocation2 + $0x142] sm:$0xff] }
 0x57c   :  { %v2696_v4 = vpop.permute.xlu2 %2695 }
 0x57d   :  { %v3462_v38 = vpop.permute.xlu0 %3461 }
 0x57e   :  { %2703 = vrot.lane.b32.xlu1 %v8872_v30, %s6770_s27 }
 0x580   :  { %v2182_v18 = vpop.permute.xlu1 %2181 }
 0x581   :  { %v3956_v44 = vsel %vm3937_vm7, %v3891_v45, %v2182_v18 }
 0x582   :  { %3727 = vrot.lane.b32.xlu2 %v8969_v22, %s6765_s21  ;;  %v4021_v17 = vsel %vm4002_vm8, %v3956_v44, %v2438_v35  ;;  %v8993_v2 = vpop.f32.mrf.mxu3  ;;  %v8998_v35 = vld [vmem:[#allocation2 + $0x150] sm:$0xff]  ;;  %v9041_v44 = vld [vmem:[#allocation2 + $0x159] sm:$0xff] }
 0x583   :  { %2705 = vrot.lane.b32.xlu0 %v8929_v42, %s6770_s27  ;;  %v4085_v56 = vsel %vm101_vm0, %v4021_v17, %v2694_v13 }
 0x584   :  { %v3464_v40 = vpop.permute.xlu2 %3463 }
 0x585   :  { %v2184_v49 = vpop.permute.xlu0 %2183 }
 0x586   :  { %3471 = vrot.lane.b32.xlu1 %v8984_v59, %s6766_s5 }
 0x588   :  { %v2950_v58 = vpop.permute.xlu1 %2949 }
 0x589   :  { %v4150_v28 = vsel %vm4131_vm9, %v4085_v56, %v2950_v58  ;;  %v9049_v56 = vld [vmem:[#allocation2 + $0x168] sm:$0xff] }
 0x58a   :  { %2449 = vrot.lane.b32.xlu2 %v8943_v61, %s6769_s26  ;;  %v4215_v15 = vsel %vm4196_vm10, %v4150_v28, %v3206_v23  ;;  %v9007_v23 = vpop.f32.mrf.mxu3 }
 0x58b   :  { %3473 = vrot.lane.b32.xlu0 %v8978_v0, %s6766_s5  ;;  %v4280_v33 = vsel %vm4261_vm11, %v4215_v15, %v3462_v38  ;;  %13023 = vst [vmem:[#allocation6_spill] sm:$0xff] %v9007_v23  ;;  %v9019_v38 = vld [vmem:[#allocation2 + $0x15a] sm:$0xff] }
 0x58c   :  { %v2186_v27 = vpop.permute.xlu2 %2185  ;;  %v9055_v15 = vld [vmem:[#allocation2 + $0x158] sm:$0xff] }
 0x58d   :  { %v2952_v63 = vpop.permute.xlu0 %2951 }
 0x58e   :  { %2193 = vrot.lane.b32.xlu1 %v8863_v47, %s6764_s20 }
 0x590   :  { %v3718_v52 = vpop.permute.xlu1 %3717 }
 0x591   :  { %v4345_v13 = vsel %vm4326_vm12, %v4280_v33, %v3718_v52 }
 0x592   :  { %3217 = vrot.lane.b32.xlu2 %v8998_v35, %s6767_s24  ;;  %6562 = vmatmul.msk.f32.gmra.mxu3 %vm4396_vm13, %v4345_v13  ;;  %v9021_v34 = vpop.f32.mrf.mxu3 }
 0x593   :  { %2195 = vrot.lane.b32.xlu0 %v8914_v11, %s6764_s20  ;;  %v3892_v11 = vsel %vm1073_vm1, %v8696_v19, %v1928_v62  ;;  %13024 = vst [vmem:[#allocation7_spill] sm:$0xff] %v9021_v34 }
 0x594   :  { %v2954_v48 = vpop.permute.xlu2 %2953  ;;  %v3957_v51 = vsel %vm3937_vm7, %v3892_v11, %v2184_v49 }
 0x595   :  { %v3720_v10 = vpop.permute.xlu0 %3719 }
 0x596   :  { %2961 = vrot.lane.b32.xlu1 %v8907_v7, %s6768_s25 }
 0x598   :  { %v2440_v46 = vpop.permute.xlu1 %2439 }
 0x599   :  { %v4022_v43 = vsel %vm4002_vm8, %v3957_v51, %v2440_v46 }
 0x59a   :  { %1939 = vrot.lane.b32.xlu2 %v8872_v30, %s6763_s19  ;;  %v4086_v21 = vsel %vm101_vm0, %v4022_v43, %v2696_v4  ;;  %v9026_v30 = vld [vmem:[#allocation2 + $0x152] sm:$0xff]  ;;  %v9037_v45 = vpop.f32.mrf.mxu3 }
 0x59b   :  { %2963 = vrot.lane.b32.xlu0 %v8969_v22, %s6768_s25  ;;  %v4151_v8 = vsel %vm4131_vm9, %v4086_v21, %v2952_v63  ;;  %13025 = vst [vmem:[#allocation17_spill] sm:$0xff] %v9037_v45 }
 0x59c   :  { %v3722_v20 = vpop.permute.xlu2 %3721 }
 0x59d   :  { %v2442_v47 = vpop.permute.xlu0 %2441 }
 0x59e   :  { %3729 = vrot.lane.b32.xlu1 %v9026_v30, %s6765_s21 }
 0x5a0   :  { %v3208_v12 = vpop.permute.xlu1 %3207 }
 0x5a1   :  { %v4216_v49 = vsel %vm4196_vm10, %v4151_v8, %v3208_v12 }
 0x5a2   :  { %2707 = vrot.lane.b32.xlu2 %v8984_v59, %s6770_s27  ;;  %v4281_v4 = vsel %vm4261_vm11, %v4216_v49, %v3464_v40  ;;  %v9051_v28 = vpop.f32.mrf.mxu3 }
 0x5a3   :  { %3731 = vrot.lane.b32.xlu0 %v9019_v38, %s6765_s21  ;;  %v4346_v18 = vsel %vm4326_vm12, %v4281_v4, %v3720_v10  ;;  %13026 = vst [vmem:[#allocation19_spill] sm:$0xff] %v9051_v28  ;;  %v9090_v4 = vld [vmem:[#allocation2 + $0x171] sm:$0xff] }
 0x5a4   :  { %v2444_v62 = vpop.permute.xlu2 %2443  ;;  %6563 = vmatmul.msk.f32.gmra.mxu3 %vm4396_vm13, %v4346_v18 }
 0x5a5   :  { %v3210_v19 = vpop.permute.xlu0 %3209 }
 0x5a6   :  { %2451 = vrot.lane.b32.xlu1 %v8937_v9, %s6769_s26 }
 0x5a8   :  { %v1930_v40 = vpop.permute.xlu1 %1929 }
 0x5a9   :  { %v3893_v58 = vsel %vm1073_vm1, %v8745_v6, %v1930_v40  ;;  %v9096_v40 = vld [vmem:[#allocation2 + $0x169] sm:$0xff] }
 0x5aa   :  { %3475 = vrot.lane.b32.xlu2 %v9041_v44, %s6766_s5  ;;  %v3958_v10 = vsel %vm3937_vm7, %v3893_v58, %v2186_v27  ;;  %v9064_v46 = vpop.f32.mrf.mxu3 }
 0x5ab   :  { %2453 = vrot.lane.b32.xlu0 %v8998_v35, %s6769_s26  ;;  %v4023_v13 = vsel %vm4002_vm8, %v3958_v10, %v2442_v47  ;;  %13027 = vst [vmem:[#allocation8_spill] sm:$0xff] %v9064_v46 }
 0x5ac   :  { %v3212_v63 = vpop.permute.xlu2 %3211 }
 0x5ad   :  { %v1932_v17 = vpop.permute.xlu0 %1931 }
 0x5ae   :  { %3219 = vrot.lane.b32.xlu1 %v9055_v15, %s6767_s24 }
 0x5b0   :  { %v2698_v6 = vpop.permute.xlu1 %2697 }
 0x5b1   :  { %v4087_v11 = vsel %vm101_vm0, %v4023_v13, %v2698_v6 }
 0x5b2   :  { %2197 = vrot.lane.b32.xlu2 %v8907_v7, %s6764_s20  ;;  %v4152_v51 = vsel %vm4131_vm9, %v4087_v11, %v2954_v48  ;;  %v9077_v48 = vpop.f32.mrf.mxu3 }
 0x5b3   :  { %3221 = vrot.lane.b32.xlu0 %v9049_v56, %s6767_s24  ;;  %v4217_v43 = vsel %vm4196_vm10, %v4152_v51, %v3210_v19  ;;  %13028 = vst [vmem:[#allocation9_spill] sm:$0xff] %v9077_v48 }
 0x5b4   :  { %v1934_v33 = vpop.permute.xlu2 %1933 }
 0x5b5   :  { %v2700_v52 = vpop.permute.xlu0 %2699 }
 0x5b6   :  { %1941 = vrot.lane.b32.xlu1 %v8929_v42, %s6763_s19 }
 0x5b8   :  { %v3466_v47 = vpop.permute.xlu1 %3465 }
 0x5b9   :  { %v4282_v21 = vsel %vm4261_vm11, %v4217_v43, %v3466_v47 }
 0x5ba   :  { %2965 = vrot.lane.b32.xlu2 %v9026_v30, %s6768_s25  ;;  %v4347_v8 = vsel %vm4326_vm12, %v4282_v21, %v3722_v20  ;;  %v3894_v20 = vsel %vm1073_vm1, %v8741_v41, %v1932_v17  ;;  %v9092_v18 = vpop.f32.mrf.mxu3 }
 0x5bb   :  { %1943 = vrot.lane.b32.xlu0 %v8984_v59, %s6763_s19  ;;  %6564 = vmatmul.msk.f32.gmra.mxu3 %vm4396_vm13, %v4347_v8  ;;  %v9081_v59 = vld [vmem:[#allocation2 + $0x16a] sm:$0xff] }
 0x5bc   :  { %v2702_v27 = vpop.permute.xlu2 %2701 }
 0x5bd   :  { %v3468_v7 = vpop.permute.xlu0 %3467 }
 0x5be   :  { %2709 = vrot.lane.b32.xlu1 %v8978_v0, %s6770_s27 }
 0x5c0   :  { %v2188_v12 = vpop.permute.xlu1 %2187 }
 0x5c1   :  { %v3959_v49 = vsel %vm3937_vm7, %v3894_v20, %v2188_v12 }
 0x5c2   :  { %3733 = vrot.lane.b32.xlu2 %v9081_v59, %s6765_s21  ;;  %v4024_v58 = vsel %vm4002_vm8, %v3959_v49, %v2444_v62  ;;  %v9107_v11 = vpop.f32.mrf.mxu3  ;;  %v9112_v62 = vld [vmem:[#allocation2 + $0x170] sm:$0xff] }
 0x5c3   :  { %2711 = vrot.lane.b32.xlu0 %v9041_v44, %s6770_s27  ;;  %v4088_v6 = vsel %vm101_vm0, %v4024_v58, %v2700_v52 }
 0x5c4   :  { %v3470_v19 = vpop.permute.xlu2 %3469 }
 0x5c5   :  { %v2190_v42 = vpop.permute.xlu0 %2189 }
 0x5c6   :  { %3477 = vrot.lane.b32.xlu1 %v9096_v40, %s6766_s5 }
 0x5c8   :  { %v2956_v10 = vpop.permute.xlu1 %2955 }
 0x5c9   :  { %v4153_v13 = vsel %vm4131_vm9, %v4088_v6, %v2956_v10 }
 0x5ca   :  { %2455 = vrot.lane.b32.xlu2 %v9055_v15, %s6769_s26  ;;  %v4218_v51 = vsel %vm4196_vm10, %v4153_v13, %v3212_v63 }
 0x5cb   :  { %3479 = vrot.lane.b32.xlu0 %v9090_v4, %s6766_s5  ;;  %v4283_v21 = vsel %vm4261_vm11, %v4218_v51, %v3468_v7 }
 0x5cc   :  { %v9103_v17 = vpop.permute.xlu2 %2191 }
 0x5cd   :  { %v2958_v41 = vpop.permute.xlu0 %2957 }
 0x5ce   :  { %2199 = vrot.lane.b32.xlu1 %v8969_v22, %s6764_s20 }
 0x5d0   :  { %v3724_v52 = vpop.permute.xlu1 %3723 }
 0x5d1   :  { %v4348_v8 = vsel %vm4326_vm12, %v4283_v21, %v3724_v52  ;;  %v1725_v52 = vld [vmem:[#allocation2 + $0x181] sm:$0xff] }
 0x5d2   :  { %3223 = vrot.lane.b32.xlu2 %v9112_v62, %s6767_s24  ;;  %6565 = vmatmul.msk.f32.gmra.mxu3 %vm4396_vm13, %v4348_v8  ;;  %v9169_v8 = vld [vmem:[#allocation2 + $0x188] sm:$0xff] }
 0x5d3   :  { %2201 = vrot.lane.b32.xlu0 %v9026_v30, %s6764_s20  ;;  %v3895_v30 = vsel %vm1073_vm1, %v8792_v54, %v1934_v33  ;;  %v9144_v54 = vld [vmem:[#allocation2 + $0x172] sm:$0xff] }
 0x5d4   :  { %v9118_v47 = vpop.permute.xlu2 %2959  ;;  %v3960_v20 = vsel %vm3937_vm7, %v3895_v30, %v2190_v42  ;;  %v1661_v30 = vld [vmem:[#allocation2 + $0x180] sm:$0xff] }
 0x5d5   :  { %v3726_v43 = vpop.permute.xlu0 %3725  ;;  %v9123_v63 = vpop.f32.mrf.mxu3 }
 0x5d6   :  { %2967 = vrot.lane.b32.xlu1 %v9019_v38, %s6768_s25  ;;  %4802 = vmatpush.msra.mxu3 %v9123_v63 }
 0x5d8   :  { %v2446_v12 = vpop.permute.xlu1 %2445  ;;  %4803 = vmatpush.msra.mxu3 %v9107_v11 }
 0x5d9   :  { %v4025_v49 = vsel %vm4002_vm8, %v3960_v20, %v2446_v12 }
 0x5da   :  { %1945 = vrot.lane.b32.xlu2 %v8978_v0, %s6763_s19  ;;  %4804 = vmatpush.msra.mxu3 %v9092_v18  ;;  %v9138_v0 = vld [vmem:[#allocation2 + $0x182] sm:$0xff]  ;;  %v4089_v58 = vsel %vm101_vm0, %v4025_v49, %v2702_v27 }
 0x5db   :  { %2969 = vrot.lane.b32.xlu0 %v9081_v59, %s6768_s25  ;;  %v4154_v10 = vsel %vm4131_vm9, %v4089_v58, %v2958_v41 }
 0x5dc   :  { %v3728_v7 = vpop.permute.xlu2 %3727  ;;  %4805 = vmatpush.msra.mxu3 %v9077_v48 }
 0x5dd   :  { %v2448_v22 = vpop.permute.xlu0 %2447 }
 0x5de   :  { %3735 = vrot.lane.b32.xlu1 %v9144_v54, %s6765_s21  ;;  %4806 = vmatpush.msra.mxu3 %v9064_v46 }
 0x5e0   :  { %v3214_v27 = vpop.permute.xlu1 %3213  ;;  %4807 = vmatpush.msra.mxu3 %v9051_v28 }
 0x5e1   :  { %v4219_v6 = vsel %vm4196_vm10, %v4154_v10, %v3214_v27 }
 0x5e2   :  { %2713 = vrot.lane.b32.xlu2 %v9096_v40, %s6770_s27  ;;  %v4284_v13 = vsel %vm4261_vm11, %v4219_v6, %v3470_v19  ;;  %4808 = vmatpush.msra.mxu3 %v9037_v45 }
 0x5e3   :  { %3737 = vrot.lane.b32.xlu0 %v9138_v0, %s6765_s21  ;;  %v4349_v51 = vsel %vm4326_vm12, %v4284_v13, %v3726_v43 }
 0x5e4   :  { %v2450_v42 = vpop.permute.xlu2 %2449  ;;  %6566 = vmatmul.msk.f32.gmra.mxu3 %vm4396_vm13, %v4349_v51 }
 0x5e5   :  { %v3216_v33 = vpop.permute.xlu0 %3215  ;;  %4809 = vmatpush.msra.mxu3 %v9021_v34 }
 0x5e6   :  { %2457 = vrot.lane.b32.xlu1 %v9049_v56, %s6769_s26 }
 0x5e7   :  { %4810 = vmatpush.msra.mxu3 %v9007_v23 }
 0x5e8   :  { %v1936_v21 = vpop.permute.xlu1 %1935 }
 0x5e9   :  { %4811 = vmatpush.msra.mxu3 %v8993_v2  ;;  %v3896_v43 = vsel %vm1073_vm1, %v8841_v31, %v1936_v21 }
 0x5ea   :  { %3481 = vrot.lane.b32.xlu2 %v1725_v52, %s6766_s5  ;;  %v3961_v12 = vsel %vm3937_vm7, %v3896_v43, %v9103_v17 }
 0x5eb   :  { %2459 = vrot.lane.b32.xlu0 %v9112_v62, %s6769_s26  ;;  %4812 = vmatpush.msra.mxu3 %v8980_v36  ;;  %v4026_v58 = vsel %vm4002_vm8, %v3961_v12, %v2448_v22 }
 0x5ec   :  { %v3218_v41 = vpop.permute.xlu2 %3217 }
 0x5ed   :  { %v1938_v19 = vpop.permute.xlu0 %1937  ;;  %4813 = vmatpush.msra.mxu3 %v8965_v14 }
 0x5ee   :  { %3225 = vrot.lane.b32.xlu1 %v1661_v30, %s6767_s24 }
 0x5ef   :  { %4814 = vmatpush.msra.mxu3 %v8952_v25 }
 0x5f0   :  { %v2704_v49 = vpop.permute.xlu1 %2703 }
 0x5f1   :  { %4815 = vmatpush.msra.mxu3 %v8939_v55  ;;  %v4090_v10 = vsel %vm101_vm0, %v4026_v58, %v2704_v49 }
 0x5f2   :  { %2203 = vrot.lane.b32.xlu2 %v9019_v38, %s6764_s20  ;;  %v4155_v17 = vsel %vm4131_vm9, %v4090_v10, %v9118_v47 }
 0x5f3   :  { %3227 = vrot.lane.b32.xlu0 %v9169_v8, %s6767_s24  ;;  %4816 = vmatpush.msra.mxu3 %v8925_v32  ;;  %v4220_v27 = vsel %vm4196_vm10, %v4155_v17, %v3216_v33  ;;  %v3897_v33 = vsel %vm1073_vm1, %v8837_v29, %v1938_v19 }
 0x5f4   :  { %v1940_v20 = vpop.permute.xlu2 %1939 }
 0x5f5   :  { %v2706_v31 = vpop.permute.xlu0 %2705  ;;  %4817 = vmatpush.msra.mxu3 %v8909_v37 }
 0x5f6   :  { %1947 = vrot.lane.b32.xlu1 %v9041_v44, %s6763_s19 }
 0x5f8   :  { %v3472_v6 = vpop.permute.xlu1 %3471 }
 0x5f9   :  { %v4285_v13 = vsel %vm4261_vm11, %v4220_v27, %v3472_v6 }
 0x5fa   :  { %2971 = vrot.lane.b32.xlu2 %v9144_v54, %s6768_s25  ;;  %v4350_v47 = vsel %vm4326_vm12, %v4285_v13, %v3728_v7  ;;  %v1726_v7 = vld [vmem:[#allocation2 + $0x189] sm:$0xff] }
 0x5fb   :  { %1949 = vrot.lane.b32.xlu0 %v9096_v40, %s6763_s19  ;;  %6567 = vmatmul.msk.f32.gmra.mxu3 %vm4396_vm13, %v4350_v47  ;;  %v1790_v40 = vld [vmem:[#allocation2 + $0x18a] sm:$0xff]  ;;  %v9231_v47 = vld [vmem:[#allocation2 + $0x1e0] sm:$0xff] }
 0x5fc   :  { %v2708_v22 = vpop.permute.xlu2 %2707 }
 0x5fd   :  { %v3474_v38 = vpop.permute.xlu0 %3473 }
 0x5fe   :  { %2715 = vrot.lane.b32.xlu1 %v9090_v4, %s6770_s27 }
 0x600   :  { %v2194_v21 = vpop.permute.xlu1 %2193 }
 0x601   :  { %v3962_v43 = vsel %vm3937_vm7, %v3897_v33, %v2194_v21  ;;  %v1600_v21 = vld [vmem:[#allocation2 + $0x1ca] sm:$0xff] }
 0x602   :  { %3739 = vrot.lane.b32.xlu2 %v1790_v40, %s6765_s21 }
 0x603   :  { %2717 = vrot.lane.b32.xlu0 %v1725_v52, %s6770_s27  ;;  %v4027_v52 = vsel %vm4002_vm8, %v3962_v43, %v2450_v42 }
 0x604   :  { %v3476_v51 = vpop.permute.xlu2 %3475  ;;  %v4091_v10 = vsel %vm101_vm0, %v4027_v52, %v2706_v31  ;;  %v9220_v31 = vld [vmem:[#allocation2 + $0x1c8] sm:$0xff] }
 0x605   :  { %v2196_v44 = vpop.permute.xlu0 %2195  ;;  %v9248_v52 = vld [vmem:[#allocation2 + $0x1e2] sm:$0xff] }
 0x606   :  { %3483 = vrot.lane.b32.xlu1 %v1726_v7, %s6766_s5 }
 0x608   :  { %v2962_v58 = vpop.permute.xlu1 %2961 }
 0x609   :  { %v4156_v17 = vsel %vm4131_vm9, %v4091_v10, %v2962_v58 }
 0x60a   :  { %2461 = vrot.lane.b32.xlu2 %v1661_v30, %s6769_s26  ;;  %v4221_v29 = vsel %vm4196_vm10, %v4156_v17, %v3218_v41  ;;  %v9255_v17 = vld [vmem:[#allocation2 + $0x1e9] sm:$0xff] }
 0x60b   :  { %2207 = vrot.lane.b32.xlu0 %v9144_v54, %s6764_s20  ;;  %v4286_v19 = vsel %vm4261_vm11, %v4221_v29, %v3474_v38  ;;  %v9259_v29 = vld [vmem:[#allocation2 + $0x1d0] sm:$0xff] }
 0x60c   :  { %v2198_v49 = vpop.permute.xlu2 %2197 }
 0x60d   :  { %v2964_v12 = vpop.permute.xlu0 %2963 }
 0x60e   :  { %2205 = vrot.lane.b32.xlu1 %v9081_v59, %s6764_s20 }
 0x610   :  { %v3730_v30 = vpop.permute.xlu1 %3729 }
 0x611   :  { %v4351_v27 = vsel %vm4326_vm12, %v4286_v19, %v3730_v30 }
 0x612   :  { %1951 = vrot.lane.b32.xlu2 %v9090_v4, %s6763_s19  ;;  %6568 = vmatmul.msk.f32.gmra.mxu3 %vm4396_vm13, %v4351_v27  ;;  %v3898_v4 = vsel %vm1073_vm1, %v8888_v53, %v1940_v20 }
 0x613   :  { %2975 = vrot.lane.b32.xlu0 %v1790_v40, %s6768_s25  ;;  %v3963_v6 = vsel %vm3937_vm7, %v3898_v4, %v2196_v44 }
 0x614   :  { %v2966_v42 = vpop.permute.xlu2 %2965 }
 0x615   :  { %v3732_v54 = vpop.permute.xlu0 %3731 }
 0x616   :  { %2973 = vrot.lane.b32.xlu1 %v9138_v0, %s6768_s25 }
 0x618   :  { %v2452_v38 = vpop.permute.xlu1 %2451 }
 0x619   :  { %v4028_v13 = vsel %vm4002_vm8, %v3963_v6, %v2452_v38 }
 0x61a   :  { %2719 = vrot.lane.b32.xlu2 %v1726_v7, %s6770_s27  ;;  %v4092_v40 = vsel %vm101_vm0, %v4028_v13, %v2708_v22  ;;  %v9244_v7 = vld [vmem:[#allocation2 + $0x1d1] sm:$0xff]  ;;  %v9272_v13 = vld [vmem:[#allocation2 + $0x1e8] sm:$0xff] }
 0x61b   :  { %2465 = vrot.lane.b32.xlu0 %v9220_v31, %s6769_s26  ;;  %v4157_v20 = vsel %vm4131_vm9, %v4092_v40, %v2964_v12 }
 0x61c   :  { %v3734_v41 = vpop.permute.xlu2 %3733 }
 0x61d   :  { %v2454_v59 = vpop.permute.xlu0 %2453 }
 0x61e   :  { %2463 = vrot.lane.b32.xlu1 %v9169_v8, %s6769_s26  ;;  %v1536_v8 = vld [vmem:[#allocation2 + $0x1c9] sm:$0xff] }
 0x620   :  { %v3220_v44 = vpop.permute.xlu1 %3219 }
 0x621   :  { %v4222_v33 = vsel %vm4196_vm10, %v4157_v20, %v3220_v44 }
 0x622   :  { %2977 = vrot.lane.b32.xlu2 %v1600_v21, %s6768_s25  ;;  %v4287_v43 = vsel %vm4261_vm11, %v4222_v33, %v3476_v51 }
 0x623   :  { %3233 = vrot.lane.b32.xlu0 %v9231_v47, %s6767_s24  ;;  %v4352_v22 = vsel %vm4326_vm12, %v4287_v43, %v3732_v54  ;;  %v9261_v54 = vld [vmem:[#allocation2 + $0x1e1] sm:$0xff] }
 0x624   :  { %v2456_v0 = vpop.permute.xlu2 %2455  ;;  %6569 = vmatmul.msk.f32.gmra.mxu3 %vm4396_vm13, %v4352_v22 }
 0x625   :  { %v3222_v53 = vpop.permute.xlu0 %3221 }
 0x626   :  { %2721 = vrot.lane.b32.xlu1 %v1536_v8, %s6770_s27 }
 0x628   :  { %v1942_v51 = vpop.permute.xlu1 %1941 }
 0x629   :  { %v3899_v10 = vsel %vm1073_vm1, %v8943_v61, %v1942_v51 }
 0x62a   :  { %3745 = vrot.lane.b32.xlu2 %v9248_v52, %s6765_s21  ;;  %v3964_v19 = vsel %vm3937_vm7, %v3899_v10, %v2198_v49  ;;  %v1601_v49 = vld [vmem:[#allocation2 + $0x1d2] sm:$0xff]  ;;  %v9291_v10 = vld [vmem:[#allocation2 + $0x1fa] sm:$0xff] }
 0x62b   :  { %2723 = vrot.lane.b32.xlu0 %v9244_v7, %s6770_s27  ;;  %v4029_v4 = vsel %vm4002_vm8, %v3964_v19, %v2454_v59 }
 0x62c   :  { %v3224_v58 = vpop.permute.xlu2 %3223 }
 0x62d   :  { %v1944_v12 = vpop.permute.xlu0 %1943 }
 0x62e   :  { %3489 = vrot.lane.b32.xlu1 %v9261_v54, %s6766_s5  ;;  %v3900_v51 = vsel %vm1073_vm1, %v8937_v9, %v1944_v12 }
 0x630   :  { %v2710_v61 = vpop.permute.xlu1 %2709 }
 0x631   :  { %v4093_v38 = vsel %vm101_vm0, %v4029_v4, %v2710_v61 }
 0x632   :  { %2467 = vrot.lane.b32.xlu2 %v9259_v29, %s6769_s26  ;;  %v4158_v6 = vsel %vm4131_vm9, %v4093_v38, %v2966_v42  ;;  %v9283_v42 = vld [vmem:[#allocation2 + $0x1ea] sm:$0xff] }
 0x633   :  { %3491 = vrot.lane.b32.xlu0 %v9255_v17, %s6766_s5  ;;  %v4223_v44 = vsel %vm4196_vm10, %v4158_v6, %v3222_v53  ;;  %v9305_v6 = vld [vmem:[#allocation2 + $0x1f9] sm:$0xff] }
 0x634   :  { %v1946_v27 = vpop.permute.xlu2 %1945 }
 0x635   :  { %v2712_v30 = vpop.permute.xlu0 %2711 }
 0x636   :  { %2979 = vrot.lane.b32.xlu1 %v1601_v49, %s6768_s25 }
 0x638   :  { %v3478_v33 = vpop.permute.xlu1 %3477 }
 0x639   :  { %v4288_v59 = vsel %vm4261_vm11, %v4223_v44, %v3478_v33 }
 0x63a   :  { %3235 = vrot.lane.b32.xlu2 %v9272_v13, %s6767_s24  ;;  %v4353_v43 = vsel %vm4326_vm12, %v4288_v59, %v3734_v41 }
 0x63b   :  { %2213 = vrot.lane.b32.xlu0 %v1600_v21, %s6764_s20  ;;  %6570 = vmatmul.msk.f32.gmra.mxu3 %vm4396_vm13, %v4353_v43  ;;  %v9316_v43 = vld [vmem:[#allocation2 + $0x200] sm:$0xff] }
 0x63c   :  { %v2714_v20 = vpop.permute.xlu2 %2713 }
 0x63d   :  { %v3480_v40 = vpop.permute.xlu0 %3479 }
 0x63e   :  { %3747 = vrot.lane.b32.xlu1 %v9283_v42, %s6765_s21 }
 0x640   :  { %v2200_v53 = vpop.permute.xlu1 %2199 }
 0x641   :  { %v3965_v41 = vsel %vm3937_vm7, %v3900_v51, %v2200_v53  ;;  %v3901_v51 = vsel %vm1073_vm1, %v8998_v35, %v1946_v27 }
 0x642   :  { %1957 = vrot.lane.b32.xlu2 %v1536_v8, %s6763_s19  ;;  %v4030_v19 = vsel %vm4002_vm8, %v3965_v41, %v2456_v0  ;;  %v9307_v0 = vld [vmem:[#allocation2 + $0x1f8] sm:$0xff] }
 0x643   :  { %2981 = vrot.lane.b32.xlu0 %v9248_v52, %s6768_s25  ;;  %v4094_v9 = vsel %vm101_vm0, %v4030_v19, %v2712_v30 }
 0x644   :  { %v3482_v22 = vpop.permute.xlu2 %3481 }
 0x645   :  { %v2202_v21 = vpop.permute.xlu0 %2201 }
 0x646   :  { %2469 = vrot.lane.b32.xlu1 %v9231_v47, %s6769_s26  ;;  %v3966_v19 = vsel %vm3937_vm7, %v3901_v51, %v2202_v21 }
 0x648   :  { %v2968_v4 = vpop.permute.xlu1 %2967 }
 0x649   :  { %v4159_v12 = vsel %vm4131_vm9, %v4094_v9, %v2968_v4 }
 0x64a   :  { %2725 = vrot.lane.b32.xlu2 %v9261_v54, %s6770_s27  ;;  %v4224_v38 = vsel %vm4196_vm10, %v4159_v12, %v3224_v58 }
 0x64b   :  { %3749 = vrot.lane.b32.xlu0 %v9291_v10, %s6765_s21  ;;  %v4289_v30 = vsel %vm4261_vm11, %v4224_v38, %v3480_v40  ;;  %v9343_v38 = vld [vmem:[#allocation2 + $0x201] sm:$0xff] }
 0x64c   :  { %v2204_v61 = vpop.permute.xlu2 %2203 }
 0x64d   :  { %v2970_v8 = vpop.permute.xlu0 %2969 }
 0x64e   :  { %3237 = vrot.lane.b32.xlu1 %v9307_v0, %s6767_s24 }
 0x650   :  { %v3736_v59 = vpop.permute.xlu1 %3735 }
 0x651   :  { %v4354_v58 = vsel %vm4326_vm12, %v4289_v30, %v3736_v59  ;;  %v9351_v59 = vld [vmem:[#allocation2 + $0x211] sm:$0xff] }
 0x652   :  { %3493 = vrot.lane.b32.xlu2 %v9305_v6, %s6766_s5  ;;  %6571 = vmatmul.msk.f32.gmra.mxu3 %vm4396_vm13, %v4354_v58 }
 0x653   :  { %2471 = vrot.lane.b32.xlu0 %v9272_v13, %s6769_s26 }
 0x654   :  { %v2972_v33 = vpop.permute.xlu2 %2971 }
 0x655   :  { %v3738_v44 = vpop.permute.xlu0 %3737 }
 0x656   :  { %1959 = vrot.lane.b32.xlu1 %v9244_v7, %s6763_s19 }
 0x658   :  { %v2458_v41 = vpop.permute.xlu1 %2457 }
 0x659   :  { %v4031_v4 = vsel %vm4002_vm8, %v3966_v19, %v2458_v41 }
 0x65a   :  { %2215 = vrot.lane.b32.xlu2 %v1601_v49, %s6764_s20  ;;  %v4095_v9 = vsel %vm101_vm0, %v4031_v4, %v2714_v20 }
 0x65b   :  { %3239 = vrot.lane.b32.xlu0 %v9316_v43, %s6767_s24  ;;  %v4160_v35 = vsel %vm4131_vm9, %v4095_v9, %v2970_v8 }
 0x65c   :  { %v3740_v40 = vpop.permute.xlu2 %3739 }
 0x65d   :  { %v2460_v53 = vpop.permute.xlu0 %2459 }
 0x65e   :  { %2727 = vrot.lane.b32.xlu1 %v9255_v17, %s6770_s27 }
 0x660   :  { %v3226_v27 = vpop.permute.xlu1 %3225 }
 0x661   :  { %v4225_v21 = vsel %vm4196_vm10, %v4160_v35, %v3226_v27  ;;  %v9365_v35 = vld [vmem:[#allocation2 + $0x210] sm:$0xff] }
 0x662   :  { %2983 = vrot.lane.b32.xlu2 %v9283_v42, %s6768_s25  ;;  %v4290_v12 = vsel %vm4261_vm11, %v4225_v21, %v3482_v22 }
 0x663   :  { %1961 = vrot.lane.b32.xlu0 %v9261_v54, %s6763_s19  ;;  %v4355_v20 = vsel %vm4326_vm12, %v4290_v12, %v3738_v44  ;;  %v9341_v54 = vld [vmem:[#allocation2 + $0x202] sm:$0xff] }
 0x664   :  { %v2462_v49 = vpop.permute.xlu2 %2461  ;;  %6572 = vmatmul.msk.f32.gmra.mxu3 %vm4396_vm13, %v4355_v20 }
 0x665   :  { %v3228_v7 = vpop.permute.xlu0 %3227 }
 0x666   :  { %3495 = vrot.lane.b32.xlu1 %v9343_v38, %s6766_s5 }
 0x668   :  { %v1948_v22 = vpop.permute.xlu1 %1947 }
 0x669   :  { %v3902_v44 = vsel %vm1073_vm1, %v9055_v15, %v1948_v22 }
 0x66a   :  { %3751 = vrot.lane.b32.xlu2 %v9341_v54, %s6765_s21  ;;  %v3967_v58 = vsel %vm3937_vm7, %v3902_v44, %v2204_v61  ;;  %v9386_v44 = vld [vmem:[#allocation2 + $0x21a] sm:$0xff] }
 0x66b   :  { %2729 = vrot.lane.b32.xlu0 %v9305_v6, %s6770_s27  ;;  %v4032_v4 = vsel %vm4002_vm8, %v3967_v58, %v2460_v53 }
 0x66c   :  { %v1952_v30 = vpop.permute.xlu2 %1951 }
 0x66d   :  { %v1950_v8 = vpop.permute.xlu0 %1949 }
 0x66e   :  { %2217 = vrot.lane.b32.xlu1 %v9248_v52, %s6764_s20  ;;  %v3903_v22 = vsel %vm1073_vm1, %v9049_v56, %v1950_v8 }
 0x670   :  { %v2716_v19 = vpop.permute.xlu1 %2715 }
 0x671   :  { %v4096_v15 = vsel %vm101_vm0, %v4032_v4, %v2716_v19 }
 0x672   :  { %2473 = vrot.lane.b32.xlu2 %v9307_v0, %s6769_s26  ;;  %v4161_v9 = vsel %vm4131_vm9, %v4096_v15, %v2972_v33 }
 0x673   :  { %3497 = vrot.lane.b32.xlu0 %v9351_v59, %s6766_s5  ;;  %v4226_v27 = vsel %vm4196_vm10, %v4161_v9, %v3228_v7 }
 0x674   :  { %v2720_v41 = vpop.permute.xlu2 %2719 }
 0x675   :  { %v2718_v51 = vpop.permute.xlu0 %2717 }
 0x676   :  { %2985 = vrot.lane.b32.xlu1 %v9291_v10, %s6768_s25 }
 0x678   :  { %v3484_v53 = vpop.permute.xlu1 %3483 }
 0x679   :  { %v4291_v21 = vsel %vm4261_vm11, %v4226_v27, %v3484_v53  ;;  %v9406_v27 = vld [vmem:[#allocation2 + $0x219] sm:$0xff] }
 0x67a   :  { %3241 = vrot.lane.b32.xlu2 %v9365_v35, %s6767_s24  ;;  %v4356_v33 = vsel %vm4326_vm12, %v4291_v21, %v3740_v40 }
 0x67b   :  { %2219 = vrot.lane.b32.xlu0 %v9283_v42, %s6764_s20  ;;  %6573 = vmatmul.msk.f32.gmra.mxu3 %vm4396_vm13, %v4356_v33  ;;  %v9377_v42 = vld [vmem:[#allocation2 + $0x212] sm:$0xff] }
 0x67c   :  { %v2978_v61 = vpop.permute.xlu2 %2977 }
 0x67d   :  { %v2208_v52 = vpop.permute.xlu0 %2207 }
 0x67e   :  { %3753 = vrot.lane.b32.xlu1 %v9377_v42, %s6765_s21 }
 0x680   :  { %v2206_v20 = vpop.permute.xlu1 %2205 }
 0x681   :  { %v3968_v40 = vsel %vm3937_vm7, %v3903_v22, %v2206_v20  ;;  %v1280_v20 = vld [vmem:[#allocation2 + $0x1b0] sm:$0xff] }
 0x682   :  { %1963 = vrot.lane.b32.xlu2 %v9255_v17, %s6763_s19  ;;  %v4033_v58 = vsel %vm4002_vm8, %v3968_v40, %v2462_v49 }
 0x683   :  { %2987 = vrot.lane.b32.xlu0 %v9341_v54, %s6768_s25  ;;  %v4097_v4 = vsel %vm101_vm0, %v4033_v58, %v2718_v51  ;;  %v9408_v51 = vld [vmem:[#allocation2 + $0x218] sm:$0xff]  ;;  %v9420_v58 = vld [vmem:[#allocation2 + $0x228] sm:$0xff] }
 0x684   :  { %v3746_v7 = vpop.permute.xlu2 %3745 }
 0x685   :  { %v2976_v12 = vpop.permute.xlu0 %2975 }
 0x686   :  { %2475 = vrot.lane.b32.xlu1 %v9316_v43, %s6769_s26 }
 0x688   :  { %v2974_v56 = vpop.permute.xlu1 %2973 }
 0x689   :  { %v4162_v8 = vsel %vm4131_vm9, %v4097_v4, %v2974_v56 }
 0x68a   :  { %2731 = vrot.lane.b32.xlu2 %v9343_v38, %s6770_s27  ;;  %v4227_v15 = vsel %vm4196_vm10, %v4162_v8, %v8302_v60  ;;  %v3904_v60 = vsel %vm1073_vm1, %v9112_v62, %v1952_v30  ;;  %v3905_v62 = vsel %vm1073_vm1, %v1280_v20, %v8366_v39 }
 0x68b   :  { %3755 = vrot.lane.b32.xlu0 %v9386_v44, %s6765_s21  ;;  %v4292_v49 = vsel %vm4261_vm11, %v4227_v15, %v8337_v24  ;;  %v3970_v39 = vsel %vm3937_vm7, %v3905_v62, %v8327_v26  ;;  %v1281_v15 = vld [vmem:[#allocation2 + $0x1b8] sm:$0xff] }
 0x68c   :  { %v2468_v19 = vpop.permute.xlu2 %2467  ;;  %v4357_v9 = vsel %vm4326_vm12, %v4292_v49, %v8325_v5  ;;  %v3969_v5 = vsel %vm3937_vm7, %v3904_v60, %v2208_v52  ;;  %v9450_v49 = vpop.f32.mrf.mxu3  ;;  %v9460_v60 = vld [vmem:[#allocation2 + $0x229] sm:$0xff] }
 0x68d   :  { %v2466_v17 = vpop.permute.xlu0 %2465  ;;  %6574 = vmatmul.msk.f32.gmra.mxu3 %vm4396_vm13, %v4357_v9  ;;  %13029 = vst [vmem:[#allocation10_spill] sm:$0xff] %v9450_v49  ;;  %v9458_v9 = vld [vmem:[#allocation2 + $0x22a] sm:$0xff] }
 0x68e   :  { %3243 = vrot.lane.b32.xlu1 %v9408_v51, %s6767_s24  ;;  %v4035_v56 = vsel %vm4002_vm8, %v3970_v39, %v2466_v17 }
 0x690   :  { %v2464_v21 = vpop.permute.xlu1 %2463 }
 0x691   :  { %v4034_v33 = vsel %vm4002_vm8, %v3969_v5, %v2464_v21 }
 0x692   :  { %3499 = vrot.lane.b32.xlu2 %v9406_v27, %s6766_s5  ;;  %v4098_v22 = vsel %vm101_vm0, %v4034_v33, %v2720_v41 }
 0x693   :  { %2477 = vrot.lane.b32.xlu0 %v9365_v35, %s6769_s26  ;;  %v4163_v40 = vsel %vm4131_vm9, %v4098_v22, %v2976_v12 }
 0x694   :  { %v3236_v53 = vpop.permute.xlu2 %3235  ;;  %v4228_v4 = vsel %vm4196_vm10, %v4163_v40, %v8339_v3  ;;  %v9470_v20 = vpop.f32.mrf.mxu3  ;;  %v9473_v40 = vld [vmem:[#allocation2 + $0x231] sm:$0xff] }
 0x695   :  { %v3234_v24 = vpop.permute.xlu0 %3233  ;;  %v4293_v30 = vsel %vm4261_vm11, %v4228_v4, %v8312_v1  ;;  %13030 = vst [vmem:[#allocation11_spill] sm:$0xff] %v9470_v20 }
 0x696   :  { %1965 = vrot.lane.b32.xlu1 %v9305_v6, %s6763_s19  ;;  %v4358_v41 = vsel %vm4326_vm12, %v4293_v30, %v8364_v50 }
 0x697   :  { %6575 = vmatmul.msk.f32.gmra.mxu3 %vm4396_vm13, %v4358_v41 }
 0x698   :  { %v2722_v12 = vpop.permute.xlu1 %2721 }
 0x699   :  { %v4099_v1 = vsel %vm101_vm0, %v4035_v56, %v2722_v12 }
 0x69a   :  { %2221 = vrot.lane.b32.xlu2 %v9291_v10, %s6764_s20  ;;  %v4164_v10 = vsel %vm4131_vm9, %v4099_v1, %v2978_v61 }
 0x69b   :  { %3245 = vrot.lane.b32.xlu0 %v9420_v58, %s6767_s24  ;;  %v4229_v26 = vsel %vm4196_vm10, %v4164_v10, %v3234_v24 }
 0x69c   :  { %v1958_v52 = vpop.permute.xlu2 %1957 }
 0x69d   :  { %v2724_v3 = vpop.permute.xlu0 %2723  ;;  %v3907_v39 = vsel %vm1073_vm1, %v9220_v31, %v1958_v52 }
 0x69e   :  { %2733 = vrot.lane.b32.xlu1 %v9351_v59, %s6770_s27 }
 0x6a0   :  { %v3490_v8 = vpop.permute.xlu1 %3489 }
 0x6a1   :  { %v4294_v17 = vsel %vm4261_vm11, %v4229_v26, %v3490_v8  ;;  %v9504_v26 = vld [vmem:[#allocation2 + $0x232] sm:$0xff] }
 0x6a2   :  { %2989 = vrot.lane.b32.xlu2 %v9377_v42, %s6768_s25  ;;  %v4359_v61 = vsel %vm4326_vm12, %v4294_v17, %v3746_v7 }
 0x6a3   :  { %1967 = vrot.lane.b32.xlu0 %v9343_v38, %s6763_s19  ;;  %6576 = vmatmul.msk.f32.gmra.mxu3 %vm4396_vm13, %v4359_v61  ;;  %v3906_v38 = vsel %vm1073_vm1, %v1281_v15, %v8376_v57 }
 0x6a4   :  { %v2726_v6 = vpop.permute.xlu2 %2725  ;;  %v3971_v7 = vsel %vm3937_vm7, %v3906_v38, %v8378_v16 }
 0x6a5   :  { %v3492_v50 = vpop.permute.xlu0 %3491  ;;  %v4036_v5 = vsel %vm4002_vm8, %v3971_v7, %v2468_v19  ;;  %v9517_v7 = vld [vmem:[#allocation2 + $0x242] sm:$0xff] }
 0x6a6   :  { %3501 = vrot.lane.b32.xlu1 %v9460_v60, %s6766_s5  ;;  %v4100_v33 = vsel %vm101_vm0, %v4036_v5, %v2724_v3  ;;  %v9484_v3 = vpop.f32.mrf.mxu3 }
 0x6a7   :  { %13031 = vst [vmem:[#allocation12_spill] sm:$0xff] %v9484_v3 }
 0x6a8   :  { %v2980_v21 = vpop.permute.xlu1 %2979 }
 0x6a9   :  { %v4165_v22 = vsel %vm4131_vm9, %v4100_v33, %v2980_v21  ;;  %v9531_v33 = vld [vmem:[#allocation2 + $0x241] sm:$0xff] }
 0x6aa   :  { %3757 = vrot.lane.b32.xlu2 %v9458_v9, %s6765_s21  ;;  %v4230_v4 = vsel %vm4196_vm10, %v4165_v22, %v3236_v53  ;;  %v9489_v53 = vld [vmem:[#allocation2 + $0x230] sm:$0xff]  ;;  %v9533_v22 = vld [vmem:[#allocation2 + $0x240] sm:$0xff] }
 0x6ab   :  { %2735 = vrot.lane.b32.xlu0 %v9406_v27, %s6770_s27  ;;  %v4295_v62 = vsel %vm4261_vm11, %v4230_v4, %v3492_v50 }
 0x6ac   :  { %v3494_v57 = vpop.permute.xlu2 %3493 }
 0x6ad   :  { %v2214_v24 = vpop.permute.xlu0 %2213 }
 0x6ae   :  { %2223 = vrot.lane.b32.xlu1 %v9341_v54, %s6764_s20  ;;  %v3972_v1 = vsel %vm3937_vm7, %v3907_v39, %v2214_v24  ;;  %v9498_v10 = vpop.f32.mrf.mxu3  ;;  %v9544_v39 = vld [vmem:[#allocation2 + $0x248] sm:$0xff] }
 0x6af   :  { %13032 = vst [vmem:[#allocation13_spill] sm:$0xff] %v9498_v10 }
 0x6b0   :  { %v3748_v30 = vpop.permute.xlu1 %3747 }
 0x6b1   :  { %v4360_v41 = vsel %vm4326_vm12, %v4295_v62, %v3748_v30 }
 0x6b2   :  { %2479 = vrot.lane.b32.xlu2 %v9408_v51, %s6769_s26  ;;  %6577 = vmatmul.msk.f32.gmra.mxu3 %vm4396_vm13, %v4360_v41 }
 0x6b3   :  { %3503 = vrot.lane.b32.xlu0 %v9473_v40, %s6766_s5 }
 0x6b4   :  { %v2216_v19 = vpop.permute.xlu2 %2215 }
 0x6b5   :  { %v2982_v16 = vpop.permute.xlu0 %2981 }
 0x6b6   :  { %2991 = vrot.lane.b32.xlu1 %v9386_v44, %s6768_s25  ;;  %v9512_v61 = vpop.f32.mrf.mxu3 }
 0x6b7   :  { %13033 = vst [vmem:[#allocation14_spill] sm:$0xff] %v9512_v61 }
 0x6b8   :  { %v2470_v56 = vpop.permute.xlu1 %2469 }
 0x6ba   :  { %3247 = vrot.lane.b32.xlu2 %v9489_v53, %s6767_s24 }
 0x6bb   :  { %2225 = vrot.lane.b32.xlu0 %v9377_v42, %s6764_s20  ;;  %v4037_v42 = vsel %vm4002_vm8, %v3972_v1, %v2470_v56 }
 0x6bc   :  { %v2984_v12 = vpop.permute.xlu2 %2983  ;;  %v4101_v50 = vsel %vm101_vm0, %v4037_v42, %v2726_v6 }
 0x6bd   :  { %v3750_v54 = vpop.permute.xlu0 %3749  ;;  %v4166_v8 = vsel %vm4131_vm9, %v4101_v50, %v2982_v16 }
 0x6be   :  { %3759 = vrot.lane.b32.xlu1 %v9504_v26, %s6765_s21  ;;  %v9525_v21 = vpop.f32.mrf.mxu3 }
 0x6bf   :  { %13034 = vst [vmem:[#allocation15_spill] sm:$0xff] %v9525_v21 }
 0x6c0   :  { %v3238_v15 = vpop.permute.xlu1 %3237 }
 0x6c1   :  { %v4231_v17 = vsel %vm4196_vm10, %v4166_v8, %v3238_v15 }
 0x6c2   :  { %1969 = vrot.lane.b32.xlu2 %v9351_v59, %s6763_s19  ;;  %v4296_v6 = vsel %vm4261_vm11, %v4231_v17, %v3494_v57 }
 0x6c3   :  { %2993 = vrot.lane.b32.xlu0 %v9458_v9, %s6768_s25  ;;  %v4361_v38 = vsel %vm4326_vm12, %v4296_v6, %v3750_v54 }
 0x6c4   :  { %v3752_v52 = vpop.permute.xlu2 %3751  ;;  %6578 = vmatmul.msk.f32.gmra.mxu3 %vm4396_vm13, %v4361_v38  ;;  %v9574_v38 = vld [vmem:[#allocation2 + $0x249] sm:$0xff] }
 0x6c5   :  { %v2472_v31 = vpop.permute.xlu0 %2471 }
 0x6c6   :  { %2481 = vrot.lane.b32.xlu1 %v9420_v58, %s6769_s26  ;;  %v9541_v41 = vpop.f32.mrf.mxu3 }
 0x6c7   :  { %13035 = vst [vmem:[#allocation16_spill] sm:$0xff] %v9541_v41 }
 0x6c8   :  { %v1960_v5 = vpop.permute.xlu1 %1959 }
 0x6c9   :  { %v3908_v57 = vsel %vm1073_vm1, %v9259_v29, %v1960_v5 }
 0x6ca   :  { %2737 = vrot.lane.b32.xlu2 %v9460_v60, %s6770_s27  ;;  %v3973_v4 = vsel %vm3937_vm7, %v3908_v57, %v2216_v19 }
 0x6cb   :  { %3761 = vrot.lane.b32.xlu0 %v9517_v7, %s6765_s21  ;;  %v4038_v29 = vsel %vm4002_vm8, %v3973_v4, %v2472_v31 }
 0x6cc   :  { %v2474_v24 = vpop.permute.xlu2 %2473 }
 0x6cd   :  { %v3240_v59 = vpop.permute.xlu0 %3239 }
 0x6ce   :  { %3249 = vrot.lane.b32.xlu1 %v9533_v22, %s6767_s24  ;;  %v9555_v8 = vpop.f32.mrf.mxu3 }
 0x6cf   :  { %13036 = vst [vmem:[#allocation18_spill] sm:$0xff] %v9555_v8 }
 0x6d0   :  { %v2728_v30 = vpop.permute.xlu1 %2727 }
 0x6d1   :  { %v4102_v54 = vsel %vm101_vm0, %v4038_v29, %v2728_v30  ;;  %v9585_v29 = vld [vmem:[#allocation2 + $0x259] sm:$0xff] }
 0x6d2   :  { %3505 = vrot.lane.b32.xlu2 %v9531_v33, %s6766_s5  ;;  %v4167_v56 = vsel %vm4131_vm9, %v4102_v54, %v2984_v12 }
 0x6d3   :  { %2483 = vrot.lane.b32.xlu0 %v9489_v53, %s6769_s26  ;;  %v4232_v42 = vsel %vm4196_vm10, %v4167_v56, %v3240_v59 }
 0x6d4   :  { %v3242_v62 = vpop.permute.xlu2 %3241 }
 0x6d5   :  { %v1962_v16 = vpop.permute.xlu0 %1961 }
 0x6d6   :  { %1971 = vrot.lane.b32.xlu1 %v9406_v27, %s6763_s19  ;;  %v9565_v17 = vpop.f32.mrf.mxu3  ;;  %v3909_v6 = vsel %vm1073_vm1, %v9231_v47, %v1962_v16 }
 0x6d7   :  { %13037 = vst [vmem:[#allocation20_spill] sm:$0xff] %v9565_v17 }
 0x6d8   :  { %v3496_v50 = vpop.permute.xlu1 %3495 }
 0x6d9   :  { %v4297_v31 = vsel %vm4261_vm11, %v4232_v42, %v3496_v50 }
 0x6da   :  { %2227 = vrot.lane.b32.xlu2 %v9386_v44, %s6764_s20  ;;  %v4362_v12 = vsel %vm4326_vm12, %v4297_v31, %v3752_v52 }
 0x6db   :  { %3251 = vrot.lane.b32.xlu0 %v9544_v39, %s6767_s24  ;;  %6579 = vmatmul.msk.f32.gmra.mxu3 %vm4396_vm13, %v4362_v12 }
 0x6dc   :  { %v1964_v1 = vpop.permute.xlu2 %1963 }
 0x6dd   :  { %v2730_v19 = vpop.permute.xlu0 %2729  ;;  %v3910_v12 = vsel %vm1073_vm1, %v9272_v13, %v1964_v1 }
 0x6de   :  { %2739 = vrot.lane.b32.xlu1 %v9473_v40, %s6770_s27  ;;  %v9582_v16 = vpop.f32.mrf.mxu3 }
 0x6df   :  { %13038 = vst [vmem:[#allocation21_spill] sm:$0xff] %v9582_v16 }
 0x6e0   :  { %v2218_v15 = vpop.permute.xlu1 %2217 }
 0x6e1   :  { %v3974_v52 = vsel %vm3937_vm7, %v3909_v6, %v2218_v15 }
 0x6e2   :  { %2995 = vrot.lane.b32.xlu2 %v9504_v26, %s6768_s25  ;;  %v4039_v59 = vsel %vm4002_vm8, %v3974_v52, %v2474_v24 }
 0x6e3   :  { %1973 = vrot.lane.b32.xlu0 %v9460_v60, %s6763_s19  ;;  %v9572_v60 = vld [vmem:[#allocation2 + $0x24a] sm:$0xff]  ;;  %v4103_v4 = vsel %vm101_vm0, %v4039_v59, %v2730_v19 }
 0x6e4   :  { %v2732_v27 = vpop.permute.xlu2 %2731 }
 0x6e5   :  { %v3498_v44 = vpop.permute.xlu0 %3497 }
 0x6e6   :  { %3507 = vrot.lane.b32.xlu1 %v9574_v38, %s6766_s5  ;;  %v9596_v31 = vpop.f32.mrf.mxu3 }
 0x6e7   :  { %13039 = vst [vmem:[#allocation22_spill] sm:$0xff] %v9596_v31 }
 0x6e8   :  { %v2986_v47 = vpop.permute.xlu1 %2985 }
 0x6e9   :  { %v4168_v30 = vsel %vm4131_vm9, %v4103_v4, %v2986_v47  ;;  %v9616_v47 = vld [vmem:[#allocation2 + $0x25a] sm:$0xff] }
 0x6ea   :  { %3763 = vrot.lane.b32.xlu2 %v9572_v60, %s6765_s21  ;;  %v4233_v54 = vsel %vm4196_vm10, %v4168_v30, %v3242_v62  ;;  %v9601_v62 = vld [vmem:[#allocation2 + $0x258] sm:$0xff] }
 0x6eb   :  { %2741 = vrot.lane.b32.xlu0 %v9531_v33, %s6770_s27  ;;  %v4298_v19 = vsel %vm4261_vm11, %v4233_v54, %v3498_v44 }
 0x6ec   :  { %v3500_v57 = vpop.permute.xlu2 %3499 }
 0x6ed   :  { %v2220_v5 = vpop.permute.xlu0 %2219 }
 0x6ee   :  { %2229 = vrot.lane.b32.xlu1 %v9458_v9, %s6764_s20  ;;  %v3975_v6 = vsel %vm3937_vm7, %v3910_v12, %v2220_v5  ;;  %v9610_v52 = vpop.f32.mrf.mxu3 }
 0x6ef   :  { %13040 = vst [vmem:[#allocation23_spill] sm:$0xff] %v9610_v52 }
 0x6f0   :  { %v3754_v42 = vpop.permute.xlu1 %3753 }
 0x6f1   :  { %v4363_v50 = vsel %vm4326_vm12, %v4298_v19, %v3754_v42  ;;  %v9629_v42 = vld [vmem:[#allocation2 + $0x262] sm:$0xff] }
 0x6f2   :  { %2485 = vrot.lane.b32.xlu2 %v9533_v22, %s6769_s26  ;;  %6580 = vmatmul.msk.f32.gmra.mxu3 %vm4396_vm13, %v4363_v50 }
 0x6f3   :  { %3509 = vrot.lane.b32.xlu0 %v9585_v29, %s6766_s5 }
 0x6f4   :  { %v2222_v56 = vpop.permute.xlu2 %2221 }
 0x6f5   :  { %v2988_v24 = vpop.permute.xlu0 %2987 }
 0x6f6   :  { %2997 = vrot.lane.b32.xlu1 %v9517_v7, %s6768_s25  ;;  %v9624_v54 = vpop.f32.mrf.mxu3 }
 0x6f7   :  { %13041 = vst [vmem:[#allocation24_spill] sm:$0xff] %v9624_v54 }
 0x6f8   :  { %v2476_v15 = vpop.permute.xlu1 %2475 }
 0x6fa   :  { %3253 = vrot.lane.b32.xlu2 %v9601_v62, %s6767_s24 }
 0x6fb   :  { %2231 = vrot.lane.b32.xlu0 %v9504_v26, %s6764_s20  ;;  %v4040_v26 = vsel %vm4002_vm8, %v3975_v6, %v2476_v15  ;;  %v9645_v15 = vld [vmem:[#allocation2 + $0x260] sm:$0xff] }
 0x6fc   :  { %v2990_v44 = vpop.permute.xlu2 %2989  ;;  %v4104_v59 = vsel %vm101_vm0, %v4040_v26, %v2732_v27 }
 0x6fd   :  { %v3756_v9 = vpop.permute.xlu0 %3755  ;;  %v4169_v5 = vsel %vm4131_vm9, %v4104_v59, %v2988_v24 }
 0x6fe   :  { %3765 = vrot.lane.b32.xlu1 %v9616_v47, %s6765_s21  ;;  %v9637_v12 = vpop.f32.mrf.mxu3 }
 0x6ff   :  { %13042 = vst [vmem:[#allocation25_spill] sm:$0xff] %v9637_v12 }
 0x700   :  { %v3244_v4 = vpop.permute.xlu1 %3243 }
 0x701   :  { %v4234_v30 = vsel %vm4196_vm10, %v4169_v5, %v3244_v4 }
 0x702   :  { %1975 = vrot.lane.b32.xlu2 %v9473_v40, %s6763_s19  ;;  %v4299_v27 = vsel %vm4261_vm11, %v4234_v30, %v3500_v57 }
 0x703   :  { %2999 = vrot.lane.b32.xlu0 %v9572_v60, %s6768_s25  ;;  %v4364_v19 = vsel %vm4326_vm12, %v4299_v27, %v3756_v9  ;;  %v9643_v9 = vld [vmem:[#allocation2 + $0x261] sm:$0xff]  ;;  %v9656_v27 = vld [vmem:[#allocation2 + $0x270] sm:$0xff] }
 0x704   :  { %v3758_v1 = vpop.permute.xlu2 %3757  ;;  %6581 = vmatmul.msk.f32.gmra.mxu3 %vm4396_vm13, %v4364_v19 }
 0x705   :  { %v2478_v13 = vpop.permute.xlu0 %2477 }
 0x706   :  { %2487 = vrot.lane.b32.xlu1 %v9544_v39, %s6769_s26 }
 0x708   :  { %v1966_v50 = vpop.permute.xlu1 %1965 }
 0x709   :  { %v3911_v57 = vsel %vm1073_vm1, %v9307_v0, %v1966_v50 }
 0x70a   :  { %2743 = vrot.lane.b32.xlu2 %v9574_v38, %s6770_s27  ;;  %v3976_v6 = vsel %vm3937_vm7, %v3911_v57, %v2222_v56 }
 0x70b   :  { %3767 = vrot.lane.b32.xlu0 %v9629_v42, %s6765_s21  ;;  %v4041_v0 = vsel %vm4002_vm8, %v3976_v6, %v2478_v13 }
 0x70c   :  { %v2480_v24 = vpop.permute.xlu2 %2479 }
 0x70d   :  { %v3246_v40 = vpop.permute.xlu0 %3245 }
 0x70e   :  { %3255 = vrot.lane.b32.xlu1 %v9645_v15, %s6767_s24 }
 0x710   :  { %v2734_v5 = vpop.permute.xlu1 %2733  ;;  %v9654_v30 = vpop.f32.mrf.mxu3 }
 0x711   :  { %v4105_v4 = vsel %vm101_vm0, %v4041_v0, %v2734_v5  ;;  %13043 = vst [vmem:[#allocation26_spill] sm:$0xff] %v9654_v30 }
 0x712   :  { %3511 = vrot.lane.b32.xlu2 %v9643_v9, %s6766_s5  ;;  %v4170_v19 = vsel %vm4131_vm9, %v4105_v4, %v2990_v44  ;;  %v9690_v4 = vld [vmem:[#allocation2 + $0x271] sm:$0xff] }
 0x713   :  { %2489 = vrot.lane.b32.xlu0 %v9601_v62, %s6769_s26  ;;  %v4235_v13 = vsel %vm4196_vm10, %v4170_v19, %v3246_v40 }
 0x714   :  { %v3248_v59 = vpop.permute.xlu2 %3247 }
 0x715   :  { %v1968_v26 = vpop.permute.xlu0 %1967 }
 0x716   :  { %1977 = vrot.lane.b32.xlu1 %v9531_v33, %s6763_s19  ;;  %v3912_v40 = vsel %vm1073_vm1, %v9316_v43, %v1968_v26 }
 0x718   :  { %v3502_v57 = vpop.permute.xlu1 %3501 }
 0x719   :  { %v4300_v6 = vsel %vm4261_vm11, %v4235_v13, %v3502_v57 }
 0x71a   :  { %2233 = vrot.lane.b32.xlu2 %v9517_v7, %s6764_s20  ;;  %v9667_v5 = vpop.f32.mrf.mxu3  ;;  %v4365_v44 = vsel %vm4326_vm12, %v4300_v6, %v3758_v1 }
 0x71b   :  { %3257 = vrot.lane.b32.xlu0 %v9656_v27, %s6767_s24  ;;  %13044 = vst [vmem:[#allocation27_spill] sm:$0xff] %v9667_v5  ;;  %6582 = vmatmul.msk.f32.gmra.mxu3 %vm4396_vm13, %v4365_v44 }
 0x71c   :  { %v1970_v50 = vpop.permute.xlu2 %1969  ;;  %4822 = vmatpush.msrb.mxu2 %v9667_v5 }
 0x71d   :  { %v2736_v56 = vpop.permute.xlu0 %2735 }
 0x71e   :  { %4823 = vmatpush.msrb.mxu2 %v9654_v30  ;;  %2745 = vrot.lane.b32.xlu1 %v9585_v29, %s6770_s27 }
 0x720   :  { %4824 = vmatpush.msrb.mxu2 %v9637_v12  ;;  %v2224_v1 = vpop.permute.xlu1 %2223  ;;  %v10183_v12 = vld [vmem:[#allocation2 + $0x320] sm:$0xff] }
 0x721   :  { %v3977_v0 = vsel %vm3937_vm7, %v3912_v40, %v2224_v1 }
 0x722   :  { %3001 = vrot.lane.b32.xlu2 %v9616_v47, %s6768_s25  ;;  %4825 = vmatpush.msrb.mxu2 %v9624_v54  ;;  %v4042_v19 = vsel %vm4002_vm8, %v3977_v0, %v2480_v24  ;;  %v9702_v24 = vld [vmem:[#allocation2 + $0x279] sm:$0xff] }
 0x723   :  { %1979 = vrot.lane.b32.xlu0 %v9574_v38, %s6763_s19  ;;  %v9688_v38 = vld [vmem:[#allocation2 + $0x272] sm:$0xff]  ;;  %v4106_v57 = vsel %vm101_vm0, %v4042_v19, %v2736_v56  ;;  %v3913_v19 = vsel %vm1073_vm1, %v9365_v35, %v1970_v50 }
 0x724   :  { %v2738_v33 = vpop.permute.xlu2 %2737  ;;  %4826 = vmatpush.msrb.mxu2 %v9610_v52 }
 0x725   :  { %v3504_v7 = vpop.permute.xlu0 %3503 }
 0x726   :  { %4827 = vmatpush.msrb.mxu2 %v9596_v31  ;;  %3513 = vrot.lane.b32.xlu1 %v9690_v4, %s6766_s5 }
 0x728   :  { %4828 = vmatpush.msrb.mxu2 %v9582_v16  ;;  %v2992_v13 = vpop.permute.xlu1 %2991 }
 0x729   :  { %v4171_v6 = vsel %vm4131_vm9, %v4106_v57, %v2992_v13 }
 0x72a   :  { %3769 = vrot.lane.b32.xlu2 %v9688_v38, %s6765_s21  ;;  %4829 = vmatpush.msrb.mxu2 %v9565_v17  ;;  %v4236_v44 = vsel %vm4196_vm10, %v4171_v6, %v3248_v59 }
 0x72b   :  { %2747 = vrot.lane.b32.xlu0 %v9643_v9, %s6770_s27  ;;  %v4301_v40 = vsel %vm4261_vm11, %v4236_v44, %v3504_v7  ;;  %v13045_v44 = vmov 1.0  }
 0x72c   :  { %v3506_v26 = vpop.permute.xlu2 %3505  ;;  %4830 = vmatpush.msrb.mxu2 %v9555_v8 }
 0x72d   :  { %v2226_v43 = vpop.permute.xlu0 %2225 }
 0x72e   :  { %4831 = vmatpush.msrb.mxu2 %v9541_v41  ;;  %2235 = vrot.lane.b32.xlu1 %v9572_v60, %s6764_s20  ;;  %v9721_v60 = vld [vmem:[#allocation2 + $0x278] sm:$0xff]  ;;  %v3978_v6 = vsel %vm3937_vm7, %v3913_v19, %v2226_v43 }
 0x730   :  { %4832 = vmatpush.msrb.mxu2 %v9525_v21  ;;  %v3760_v0 = vpop.permute.xlu1 %3759  ;;  %v10071_v21 = vld [vmem:[#allocation2 + $0x300] sm:$0xff] }
 0x731   :  { %v4366_v59 = vsel %vm4326_vm12, %v4301_v40, %v3760_v0  ;;  %v9737_v0 = vld [vmem:[#allocation2 + $0x27a] sm:$0xff] }
 0x732   :  { %2491 = vrot.lane.b32.xlu2 %v9645_v15, %s6769_s26  ;;  %4833 = vmatpush.msrb.mxu2 %v9512_v61 }
 0x733   :  { %3515 = vrot.lane.b32.xlu0 %v9702_v24, %s6766_s5  ;;  %6583 = vmatmul.msk.f32.gmra.mxu3 %vm4396_vm13, %v4366_v59 }
 0x734   :  { %v2228_v1 = vpop.permute.xlu2 %2227  ;;  %4834 = vmatpush.msrb.mxu2 %v9498_v10 }
 0x735   :  { %v2994_v56 = vpop.permute.xlu0 %2993 }
 0x736   :  { %4835 = vmatpush.msrb.mxu2 %v9484_v3  ;;  %3003 = vrot.lane.b32.xlu1 %v9629_v42, %s6768_s25 }
 0x738   :  { %4836 = vmatpush.msrb.mxu2 %v9470_v20  ;;  %v2482_v57 = vpop.permute.xlu1 %2481 }
 0x73a   :  { %3259 = vrot.lane.b32.xlu2 %v9721_v60, %s6767_s24  ;;  %4837 = vmatpush.msrb.mxu2 %v9450_v49 }
 0x73b   :  { %2237 = vrot.lane.b32.xlu0 %v9616_v47, %s6764_s20  ;;  %v4043_v47 = vsel %vm4002_vm8, %v3978_v6, %v2482_v57  ;;  %4838 = vmatmul.f32.vlgmr.msrb.gmra.mxu2 %v13045_v44  ;;  %v9748_v6 = vld [vmem:[#allocation2 + $0x28a] sm:$0xff] }
 0x73c   :  { %v2996_v13 = vpop.permute.xlu2 %2995  ;;  %v4107_v40 = vsel %vm101_vm0, %v4043_v47, %v2738_v33 }
 0x73d   :  { %v3762_v7 = vpop.permute.xlu0 %3761  ;;  %v4172_v43 = vsel %vm4131_vm9, %v4107_v40, %v2994_v56  ;;  %v9762_v40 = vld [vmem:[#allocation2 + $0x288] sm:$0xff] }
 0x73e   :  { %3771 = vrot.lane.b32.xlu1 %v9737_v0, %s6765_s21 }
 0x740   :  { %v3250_v59 = vpop.permute.xlu1 %3249 }
 0x741   :  { %v4237_v19 = vsel %vm4196_vm10, %v4172_v43, %v3250_v59 }
 0x742   :  { %1981 = vrot.lane.b32.xlu2 %v9585_v29, %s6763_s19  ;;  %v4302_v33 = vsel %vm4261_vm11, %v4237_v19, %v3506_v26 }
 0x743   :  { %3005 = vrot.lane.b32.xlu0 %v9688_v38, %s6768_s25  ;;  %v4367_v57 = vsel %vm4326_vm12, %v4302_v33, %v3762_v7  ;;  %v9760_v7 = vld [vmem:[#allocation2 + $0x289] sm:$0xff] }
 0x744   :  { %v3764_v50 = vpop.permute.xlu2 %3763  ;;  %6584 = vmatmul.msk.f32.gmra.mxu3 %vm4396_vm13, %v4367_v57 }
 0x745   :  { %v2484_v35 = vpop.permute.xlu0 %2483 }
 0x746   :  { %2493 = vrot.lane.b32.xlu1 %v9656_v27, %s6769_s26 }
 0x748   :  { %v1972_v47 = vpop.permute.xlu1 %1971 }
 0x749   :  { %v3914_v26 = vsel %vm1073_vm1, %v9408_v51, %v1972_v47  ;;  %v9771_v47 = vld [vmem:[#allocation2 + $0x290] sm:$0xff] }
 0x74a   :  { %2749 = vrot.lane.b32.xlu2 %v9690_v4, %s6770_s27  ;;  %v3979_v43 = vsel %vm3937_vm7, %v3914_v26, %v2228_v1 }
 0x74b   :  { %3773 = vrot.lane.b32.xlu0 %v9748_v6, %s6765_s21  ;;  %v4044_v51 = vsel %vm4002_vm8, %v3979_v43, %v2484_v35 }
 0x74c   :  { %v2486_v56 = vpop.permute.xlu2 %2485 }
 0x74d   :  { %v3252_v29 = vpop.permute.xlu0 %3251 }
 0x74e   :  { %3261 = vrot.lane.b32.xlu1 %v9762_v40, %s6767_s24 }
 0x750   :  { %v2740_v33 = vpop.permute.xlu1 %2739 }
 0x751   :  { %v4108_v57 = vsel %vm101_vm0, %v4044_v51, %v2740_v33 }
 0x752   :  { %3517 = vrot.lane.b32.xlu2 %v9760_v7, %s6766_s5  ;;  %v4173_v49 = vsel %vm4131_vm9, %v4108_v57, %v2996_v13 }
 0x753   :  { %2495 = vrot.lane.b32.xlu0 %v9721_v60, %s6769_s26  ;;  %v4238_v20 = vsel %vm4196_vm10, %v4173_v49, %v3252_v29 }
 0x754   :  { %v3254_v19 = vpop.permute.xlu2 %3253 }
 0x755   :  { %v1974_v59 = vpop.permute.xlu0 %1973 }
 0x756   :  { %1983 = vrot.lane.b32.xlu1 %v9643_v9, %s6763_s19  ;;  %v3915_v49 = vsel %vm1073_vm1, %v9420_v58, %v1974_v59 }
 0x758   :  { %v3508_v35 = vpop.permute.xlu1 %3507 }
 0x759   :  { %v4303_v43 = vsel %vm4261_vm11, %v4238_v20, %v3508_v35 }
 0x75a   :  { %2239 = vrot.lane.b32.xlu2 %v9629_v42, %s6764_s20  ;;  %v4368_v33 = vsel %vm4326_vm12, %v4303_v43, %v3764_v50  ;;  %v9795_v50 = vld [vmem:[#allocation2 + $0x292] sm:$0xff]  ;;  %v9806_v43 = vld [vmem:[#allocation2 + $0x2a1] sm:$0xff] }
 0x75b   :  { %3263 = vrot.lane.b32.xlu0 %v9771_v47, %s6767_s24  ;;  %6585 = vmatmul.msk.f32.gmra.mxu3 %vm4396_vm13, %v4368_v33 }
 0x75c   :  { %v1976_v26 = vpop.permute.xlu2 %1975 }
 0x75d   :  { %v2742_v1 = vpop.permute.xlu0 %2741 }
 0x75e   :  { %2751 = vrot.lane.b32.xlu1 %v9702_v24, %s6770_s27 }
 0x760   :  { %v2230_v13 = vpop.permute.xlu1 %2229 }
 0x761   :  { %v3980_v20 = vsel %vm3937_vm7, %v3915_v49, %v2230_v13 }
 0x762   :  { %3007 = vrot.lane.b32.xlu2 %v9737_v0, %s6768_s25  ;;  %v4045_v29 = vsel %vm4002_vm8, %v3980_v20, %v2486_v56 }
 0x763   :  { %1985 = vrot.lane.b32.xlu0 %v9690_v4, %s6763_s19  ;;  %v9797_v4 = vld [vmem:[#allocation2 + $0x291] sm:$0xff]  ;;  %v4109_v59 = vsel %vm101_vm0, %v4045_v29, %v2742_v1 }
 0x764   :  { %v2744_v9 = vpop.permute.xlu2 %2743 }
 0x765   :  { %v3510_v42 = vpop.permute.xlu0 %3509 }
 0x766   :  { %3519 = vrot.lane.b32.xlu1 %v9797_v4, %s6766_s5 }
 0x768   :  { %v2998_v58 = vpop.permute.xlu1 %2997 }
 0x769   :  { %v4174_v35 = vsel %vm4131_vm9, %v4109_v59, %v2998_v58 }
 0x76a   :  { %3775 = vrot.lane.b32.xlu2 %v9795_v50, %s6765_s21  ;;  %v4239_v33 = vsel %vm4196_vm10, %v4174_v35, %v3254_v19  ;;  %v9820_v19 = vld [vmem:[#allocation2 + $0x2a0] sm:$0xff] }
 0x76b   :  { %2753 = vrot.lane.b32.xlu0 %v9760_v7, %s6770_s27  ;;  %v4304_v49 = vsel %vm4261_vm11, %v4239_v33, %v3510_v42  ;;  %v3916_v42 = vsel %vm1073_vm1, %v9489_v53, %v1976_v26  ;;  %v9833_v33 = vld [vmem:[#allocation2 + $0x2a2] sm:$0xff] }
 0x76c   :  { %v3512_v57 = vpop.permute.xlu2 %3511 }
 0x76d   :  { %v2232_v51 = vpop.permute.xlu0 %2231 }
 0x76e   :  { %2241 = vrot.lane.b32.xlu1 %v9688_v38, %s6764_s20  ;;  %v3981_v59 = vsel %vm3937_vm7, %v3916_v42, %v2232_v51  ;;  %v9844_v42 = vld [vmem:[#allocation2 + $0x2aa] sm:$0xff] }
 0x770   :  { %v3766_v1 = vpop.permute.xlu1 %3765 }
 0x771   :  { %v4369_v20 = vsel %vm4326_vm12, %v4304_v49, %v3766_v1 }
 0x772   :  { %2497 = vrot.lane.b32.xlu2 %v9762_v40, %s6769_s26  ;;  %6586 = vmatmul.msk.f32.gmra.mxu3 %vm4396_vm13, %v4369_v20 }
 0x773   :  { %3521 = vrot.lane.b32.xlu0 %v9806_v43, %s6766_s5 }
 0x774   :  { %v2234_v13 = vpop.permute.xlu2 %2233 }
 0x775   :  { %v3000_v56 = vpop.permute.xlu0 %2999 }
 0x776   :  { %3009 = vrot.lane.b32.xlu1 %v9748_v6, %s6768_s25 }
 0x778   :  { %v2488_v58 = vpop.permute.xlu1 %2487 }
 0x779   :  { %v4046_v35 = vsel %vm4002_vm8, %v3981_v59, %v2488_v58  ;;  %v9858_v59 = vld [vmem:[#allocation2 + $0x2a8] sm:$0xff] }
 0x77a   :  { %3265 = vrot.lane.b32.xlu2 %v9820_v19, %s6767_s24 }
 0x77b   :  { %2243 = vrot.lane.b32.xlu0 %v9737_v0, %s6764_s20  ;;  %v4110_v0 = vsel %vm101_vm0, %v4046_v35, %v2744_v9 }
 0x77c   :  { %v3002_v29 = vpop.permute.xlu2 %3001  ;;  %v4175_v49 = vsel %vm4131_vm9, %v4110_v0, %v3000_v56 }
 0x77d   :  { %v3768_v38 = vpop.permute.xlu0 %3767 }
 0x77e   :  { %3777 = vrot.lane.b32.xlu1 %v9833_v33, %s6765_s21 }
 0x780   :  { %v3256_v51 = vpop.permute.xlu1 %3255 }
 0x781   :  { %v4240_v1 = vsel %vm4196_vm10, %v4175_v49, %v3256_v51 }
 0x782   :  { %1987 = vrot.lane.b32.xlu2 %v9702_v24, %s6763_s19  ;;  %v4305_v9 = vsel %vm4261_vm11, %v4240_v1, %v3512_v57 }
 0x783   :  { %3011 = vrot.lane.b32.xlu0 %v9795_v50, %s6768_s25  ;;  %v4370_v20 = vsel %vm4326_vm12, %v4305_v9, %v3768_v38  ;;  %v9856_v38 = vld [vmem:[#allocation2 + $0x2a9] sm:$0xff]  ;;  %v9867_v9 = vld [vmem:[#allocation2 + $0x2b8] sm:$0xff] }
 0x784   :  { %v3770_v26 = vpop.permute.xlu2 %3769  ;;  %6587 = vmatmul.msk.f32.gmra.mxu3 %vm4396_vm13, %v4370_v20 }
 0x785   :  { %v2490_v53 = vpop.permute.xlu0 %2489 }
 0x786   :  { %2499 = vrot.lane.b32.xlu1 %v9771_v47, %s6769_s26 }
 0x788   :  { %v1978_v58 = vpop.permute.xlu1 %1977 }
 0x789   :  { %v3917_v57 = vsel %vm1073_vm1, %v9533_v22, %v1978_v58 }
 0x78a   :  { %2755 = vrot.lane.b32.xlu2 %v9797_v4, %s6770_s27  ;;  %v3982_v35 = vsel %vm3937_vm7, %v3917_v57, %v2234_v13 }
 0x78b   :  { %3779 = vrot.lane.b32.xlu0 %v9844_v42, %s6765_s21  ;;  %v4047_v22 = vsel %vm4002_vm8, %v3982_v35, %v2490_v53 }
 0x78c   :  { %v2492_v56 = vpop.permute.xlu2 %2491 }
 0x78d   :  { %v3258_v24 = vpop.permute.xlu0 %3257 }
 0x78e   :  { %3267 = vrot.lane.b32.xlu1 %v9858_v59, %s6767_s24 }
 0x790   :  { %v2746_v51 = vpop.permute.xlu1 %2745 }
 0x791   :  { %v4111_v1 = vsel %vm101_vm0, %v4047_v22, %v2746_v51 }
 0x792   :  { %3523 = vrot.lane.b32.xlu2 %v9856_v38, %s6766_s5  ;;  %v4176_v20 = vsel %vm4131_vm9, %v4111_v1, %v3002_v29 }
 0x793   :  { %2501 = vrot.lane.b32.xlu0 %v9820_v19, %s6769_s26  ;;  %v4241_v57 = vsel %vm4196_vm10, %v4176_v20, %v3258_v24 }
 0x794   :  { %v3260_v49 = vpop.permute.xlu2 %3259 }
 0x795   :  { %v1980_v0 = vpop.permute.xlu0 %1979 }
 0x796   :  { %1989 = vrot.lane.b32.xlu1 %v9760_v7, %s6763_s19  ;;  %v3918_v24 = vsel %vm1073_vm1, %v9544_v39, %v1980_v0 }
 0x798   :  { %v3514_v53 = vpop.permute.xlu1 %3513 }
 0x799   :  { %v4306_v35 = vsel %vm4261_vm11, %v4241_v57, %v3514_v53 }
 0x79a   :  { %2245 = vrot.lane.b32.xlu2 %v9748_v6, %s6764_s20  ;;  %v4371_v51 = vsel %vm4326_vm12, %v4306_v35, %v3770_v26  ;;  %v9891_v26 = vld [vmem:[#allocation2 + $0x2ba] sm:$0xff] }
 0x79b   :  { %3269 = vrot.lane.b32.xlu0 %v9867_v9, %s6767_s24  ;;  %6588 = vmatmul.msk.f32.gmra.mxu3 %vm4396_vm13, %v4371_v51  ;;  %v9902_v35 = vld [vmem:[#allocation2 + $0x2c1] sm:$0xff] }
 0x79c   :  { %v1982_v58 = vpop.permute.xlu2 %1981 }
 0x79d   :  { %v2748_v13 = vpop.permute.xlu0 %2747 }
 0x79e   :  { %2757 = vrot.lane.b32.xlu1 %v9806_v43, %s6770_s27 }
 0x7a0   :  { %v2236_v29 = vpop.permute.xlu1 %2235 }
 0x7a1   :  { %v3983_v22 = vsel %vm3937_vm7, %v3918_v24, %v2236_v29 }
 0x7a2   :  { %3013 = vrot.lane.b32.xlu2 %v9833_v33, %s6768_s25  ;;  %v4048_v1 = vsel %vm4002_vm8, %v3983_v22, %v2492_v56 }
 0x7a3   :  { %1991 = vrot.lane.b32.xlu0 %v9797_v4, %s6763_s19  ;;  %v9893_v4 = vld [vmem:[#allocation2 + $0x2b9] sm:$0xff]  ;;  %v4112_v0 = vsel %vm101_vm0, %v4048_v1, %v2748_v13 }
 0x7a4   :  { %v2750_v7 = vpop.permute.xlu2 %2749 }
 0x7a5   :  { %v3516_v6 = vpop.permute.xlu0 %3515 }
 0x7a6   :  { %3525 = vrot.lane.b32.xlu1 %v9893_v4, %s6766_s5 }
 0x7a8   :  { %v3004_v39 = vpop.permute.xlu1 %3003 }
 0x7a9   :  { %v4177_v53 = vsel %vm4131_vm9, %v4112_v0, %v3004_v39 }
 0x7aa   :  { %3781 = vrot.lane.b32.xlu2 %v9891_v26, %s6765_s21  ;;  %v4242_v51 = vsel %vm4196_vm10, %v4177_v53, %v3260_v49  ;;  %v9916_v49 = vld [vmem:[#allocation2 + $0x2c0] sm:$0xff] }
 0x7ab   :  { %2759 = vrot.lane.b32.xlu0 %v9856_v38, %s6770_s27  ;;  %v4307_v24 = vsel %vm4261_vm11, %v4242_v51, %v3516_v6  ;;  %v3919_v6 = vsel %vm1073_vm1, %v9601_v62, %v1982_v58  ;;  %v9929_v51 = vld [vmem:[#allocation2 + $0x2c2] sm:$0xff] }
 0x7ac   :  { %v3518_v57 = vpop.permute.xlu2 %3517 }
 0x7ad   :  { %v2238_v20 = vpop.permute.xlu0 %2237 }
 0x7ae   :  { %2247 = vrot.lane.b32.xlu1 %v9795_v50, %s6764_s20  ;;  %v3984_v0 = vsel %vm3937_vm7, %v3919_v6, %v2238_v20  ;;  %v9940_v6 = vld [vmem:[#allocation2 + $0x2d2] sm:$0xff] }
 0x7b0   :  { %v3772_v13 = vpop.permute.xlu1 %3771 }
 0x7b1   :  { %v4372_v22 = vsel %vm4326_vm12, %v4307_v24, %v3772_v13 }
 0x7b2   :  { %2503 = vrot.lane.b32.xlu2 %v9858_v59, %s6769_s26  ;;  %6589 = vmatmul.msk.f32.gmra.mxu3 %vm4396_vm13, %v4372_v22 }
 0x7b3   :  { %3527 = vrot.lane.b32.xlu0 %v9902_v35, %s6766_s5 }
 0x7b4   :  { %v2240_v29 = vpop.permute.xlu2 %2239 }
 0x7b5   :  { %v3006_v56 = vpop.permute.xlu0 %3005 }
 0x7b6   :  { %3015 = vrot.lane.b32.xlu1 %v9844_v42, %s6768_s25 }
 0x7b8   :  { %v2494_v39 = vpop.permute.xlu1 %2493 }
 0x7b9   :  { %v4049_v53 = vsel %vm4002_vm8, %v3984_v0, %v2494_v39  ;;  %v9954_v0 = vld [vmem:[#allocation2 + $0x2d0] sm:$0xff] }
 0x7ba   :  { %3271 = vrot.lane.b32.xlu2 %v9916_v49, %s6767_s24 }
 0x7bb   :  { %2249 = vrot.lane.b32.xlu0 %v9833_v33, %s6764_s20  ;;  %v4113_v33 = vsel %vm101_vm0, %v4049_v53, %v2750_v7 }
 0x7bc   :  { %v3008_v1 = vpop.permute.xlu2 %3007  ;;  %v4178_v24 = vsel %vm4131_vm9, %v4113_v33, %v3006_v56 }
 0x7bd   :  { %v3774_v50 = vpop.permute.xlu0 %3773 }
 0x7be   :  { %3783 = vrot.lane.b32.xlu1 %v9929_v51, %s6765_s21 }
 0x7c0   :  { %v3262_v20 = vpop.permute.xlu1 %3261 }
 0x7c1   :  { %v4243_v13 = vsel %vm4196_vm10, %v4178_v24, %v3262_v20 }
 0x7c2   :  { %1993 = vrot.lane.b32.xlu2 %v9806_v43, %s6763_s19  ;;  %v4308_v7 = vsel %vm4261_vm11, %v4243_v13, %v3518_v57 }
 0x7c3   :  { %3017 = vrot.lane.b32.xlu0 %v9891_v26, %s6768_s25  ;;  %v4373_v22 = vsel %vm4326_vm12, %v4308_v7, %v3774_v50  ;;  %v9952_v50 = vld [vmem:[#allocation2 + $0x2d1] sm:$0xff] }
 0x7c4   :  { %v3776_v58 = vpop.permute.xlu2 %3775  ;;  %6590 = vmatmul.msk.f32.gmra.mxu3 %vm4396_vm13, %v4373_v22  ;;  %v9963_v7 = vld [vmem:[#allocation2 + $0x2d8] sm:$0xff] }
 0x7c5   :  { %v2496_v62 = vpop.permute.xlu0 %2495 }
 0x7c6   :  { %2505 = vrot.lane.b32.xlu1 %v9867_v9, %s6769_s26 }
 0x7c8   :  { %v1984_v39 = vpop.permute.xlu1 %1983 }
 0x7c9   :  { %v3920_v57 = vsel %vm1073_vm1, %v9645_v15, %v1984_v39 }
 0x7ca   :  { %2761 = vrot.lane.b32.xlu2 %v9893_v4, %s6770_s27  ;;  %v3985_v53 = vsel %vm3937_vm7, %v3920_v57, %v2240_v29 }
 0x7cb   :  { %3785 = vrot.lane.b32.xlu0 %v9940_v6, %s6765_s21  ;;  %v4050_v15 = vsel %vm4002_vm8, %v3985_v53, %v2496_v62 }
 0x7cc   :  { %v2498_v56 = vpop.permute.xlu2 %2497 }
 0x7cd   :  { %v3264_v43 = vpop.permute.xlu0 %3263 }
 0x7ce   :  { %3273 = vrot.lane.b32.xlu1 %v9954_v0, %s6767_s24 }
 0x7d0   :  { %v2752_v20 = vpop.permute.xlu1 %2751 }
 0x7d1   :  { %v4114_v13 = vsel %vm101_vm0, %v4050_v15, %v2752_v20 }
 0x7d2   :  { %3529 = vrot.lane.b32.xlu2 %v9952_v50, %s6766_s5  ;;  %v4179_v22 = vsel %vm4131_vm9, %v4114_v13, %v3008_v1  ;;  %v9991_v13 = vpop.f32.mrf.mxu3 }
 0x7d3   :  { %2507 = vrot.lane.b32.xlu0 %v9916_v49, %s6769_s26  ;;  %v4244_v57 = vsel %vm4196_vm10, %v4179_v22, %v3264_v43 }
 0x7d4   :  { %v3266_v24 = vpop.permute.xlu2 %3265 }
 0x7d5   :  { %v1986_v33 = vpop.permute.xlu0 %1985 }
 0x7d6   :  { %1995 = vrot.lane.b32.xlu1 %v9856_v38, %s6763_s19  ;;  %v3921_v43 = vsel %vm1073_vm1, %v9656_v27, %v1986_v33 }
 0x7d8   :  { %v3520_v62 = vpop.permute.xlu1 %3519 }
 0x7d9   :  { %v4309_v53 = vsel %vm4261_vm11, %v4244_v57, %v3520_v62 }
 0x7da   :  { %2251 = vrot.lane.b32.xlu2 %v9844_v42, %s6764_s20  ;;  %v4374_v20 = vsel %vm4326_vm12, %v4309_v53, %v3776_v58  ;;  %v9987_v58 = vld [vmem:[#allocation2 + $0x2da] sm:$0xff] }
 0x7db   :  { %3275 = vrot.lane.b32.xlu0 %v9963_v7, %s6767_s24  ;;  %6591 = vmatmul.msk.f32.gmra.mxu3 %vm4396_vm13, %v4374_v20  ;;  %v10000_v20 = vld [vmem:[#allocation2 + $0x2e9] sm:$0xff] }
 0x7dc   :  { %v1988_v39 = vpop.permute.xlu2 %1987 }
 0x7dd   :  { %v2754_v29 = vpop.permute.xlu0 %2753 }
 0x7de   :  { %2763 = vrot.lane.b32.xlu1 %v9902_v35, %s6770_s27 }
 0x7e0   :  { %v2242_v1 = vpop.permute.xlu1 %2241 }
 0x7e1   :  { %v3986_v15 = vsel %vm3937_vm7, %v3921_v43, %v2242_v1 }
 0x7e2   :  { %3019 = vrot.lane.b32.xlu2 %v9929_v51, %s6768_s25  ;;  %v4051_v22 = vsel %vm4002_vm8, %v3986_v15, %v2498_v56  ;;  %v10005_v56 = vpop.f32.mrf.mxu3 }
 0x7e3   :  { %1997 = vrot.lane.b32.xlu0 %v9893_v4, %s6763_s19  ;;  %v9989_v4 = vld [vmem:[#allocation2 + $0x2d9] sm:$0xff]  ;;  %v4115_v62 = vsel %vm101_vm0, %v4051_v22, %v2754_v29 }
 0x7e4   :  { %v2756_v38 = vpop.permute.xlu2 %2755 }
 0x7e5   :  { %v3522_v42 = vpop.permute.xlu0 %3521 }
 0x7e6   :  { %3531 = vrot.lane.b32.xlu1 %v9989_v4, %s6766_s5 }
 0x7e8   :  { %v3010_v57 = vpop.permute.xlu1 %3009 }
 0x7e9   :  { %v4180_v53 = vsel %vm4131_vm9, %v4115_v62, %v3010_v57 }
 0x7ea   :  { %3787 = vrot.lane.b32.xlu2 %v9987_v58, %s6765_s21  ;;  %v4245_v1 = vsel %vm4196_vm10, %v4180_v53, %v3266_v24  ;;  %v10016_v24 = vld [vmem:[#allocation2 + $0x2e8] sm:$0xff]  ;;  %v10018_v62 = vpop.f32.mrf.mxu3 }
 0x7eb   :  { %2765 = vrot.lane.b32.xlu0 %v9952_v50, %s6770_s27  ;;  %v4310_v29 = vsel %vm4261_vm11, %v4245_v1, %v3522_v42  ;;  %v3922_v42 = vsel %vm1073_vm1, %v9721_v60, %v1988_v39 }
 0x7ec   :  { %v3524_v33 = vpop.permute.xlu2 %3523 }
 0x7ed   :  { %v2244_v27 = vpop.permute.xlu0 %2243 }
 0x7ee   :  { %2253 = vrot.lane.b32.xlu1 %v9891_v26, %s6764_s20 }
 0x7f0   :  { %v3778_v22 = vpop.permute.xlu1 %3777 }
 0x7f1   :  { %v4375_v57 = vsel %vm4326_vm12, %v4310_v29, %v3778_v22  ;;  %v3987_v29 = vsel %vm3937_vm7, %v3922_v42, %v2244_v27 }
 0x7f2   :  { %2509 = vrot.lane.b32.xlu2 %v9954_v0, %s6769_s26  ;;  %6592 = vmatmul.msk.f32.gmra.mxu3 %vm4396_vm13, %v4375_v57  ;;  %v10031_v57 = vld [vmem:[#allocation2 + $0x2ea] sm:$0xff]  ;;  %v10033_v3 = vpop.f32.mrf.mxu3 }
 0x7f3   :  { %3533 = vrot.lane.b32.xlu0 %v10000_v20, %s6766_s5 }
 0x7f4   :  { %v2246_v15 = vpop.permute.xlu2 %2245 }
 0x7f5   :  { %v3012_v43 = vpop.permute.xlu0 %3011 }
 0x7f6   :  { %3021 = vrot.lane.b32.xlu1 %v9940_v6, %s6768_s25 }
 0x7f8   :  { %v2500_v1 = vpop.permute.xlu1 %2499 }
 0x7fa   :  { %3277 = vrot.lane.b32.xlu2 %v10016_v24, %s6767_s24 }
 0x7fb   :  { %2255 = vrot.lane.b32.xlu0 %v9929_v51, %s6764_s20  ;;  %v4052_v51 = vsel %vm4002_vm8, %v3987_v29, %v2500_v1 }
 0x7fc   :  { %v3014_v53 = vpop.permute.xlu2 %3013  ;;  %v4116_v22 = vsel %vm101_vm0, %v4052_v51, %v2756_v38  ;;  %v10044_v51 = vld [vmem:[#allocation2 + $0x2f2] sm:$0xff] }
 0x7fd   :  { %v3780_v26 = vpop.permute.xlu0 %3779  ;;  %v4181_v27 = vsel %vm4131_vm9, %v4116_v22, %v3012_v43 }
 0x7fe   :  { %3789 = vrot.lane.b32.xlu1 %v10031_v57, %s6765_s21 }
 0x800   :  { %v3268_v42 = vpop.permute.xlu1 %3267 }
 0x801   :  { %v4246_v38 = vsel %vm4196_vm10, %v4181_v27, %v3268_v42  ;;  %v10058_v27 = vld [vmem:[#allocation2 + $0x2f1] sm:$0xff] }
 0x802   :  { %1999 = vrot.lane.b32.xlu2 %v9902_v35, %s6763_s19  ;;  %v4311_v1 = vsel %vm4261_vm11, %v4246_v38, %v3524_v33  ;;  %v10048_v35 = vpop.f32.mrf.mxu3  ;;  %v10060_v42 = vld [vmem:[#allocation2 + $0x2f0] sm:$0xff] }
 0x803   :  { %3023 = vrot.lane.b32.xlu0 %v9987_v58, %s6768_s25  ;;  %v4376_v29 = vsel %vm4326_vm12, %v4311_v1, %v3780_v26 }
 0x804   :  { %v3782_v39 = vpop.permute.xlu2 %3781  ;;  %6593 = vmatmul.msk.f32.gmra.mxu3 %vm4396_vm13, %v4376_v29 }
 0x805   :  { %v2502_v60 = vpop.permute.xlu0 %2501 }
 0x806   :  { %2511 = vrot.lane.b32.xlu1 %v9963_v7, %s6769_s26 }
 0x808   :  { %v1990_v33 = vpop.permute.xlu1 %1989 }
 0x809   :  { %v3923_v26 = vsel %vm1073_vm1, %v9762_v40, %v1990_v33 }
 0x80a   :  { %2767 = vrot.lane.b32.xlu2 %v9989_v4, %s6770_s27  ;;  %v10062_v38 = vpop.f32.mrf.mxu3  ;;  %v3988_v1 = vsel %vm3937_vm7, %v3923_v26, %v2246_v15 }
 0x80b   :  { %3791 = vrot.lane.b32.xlu0 %v10044_v51, %s6765_s21  ;;  %v4053_v33 = vsel %vm4002_vm8, %v3988_v1, %v2502_v60 }
 0x80c   :  { %v2504_v22 = vpop.permute.xlu2 %2503 }
 0x80d   :  { %v3270_v43 = vpop.permute.xlu0 %3269 }
 0x80e   :  { %3279 = vrot.lane.b32.xlu1 %v10060_v42, %s6767_s24 }
 0x810   :  { %v2758_v40 = vpop.permute.xlu1 %2757 }
 0x811   :  { %v4117_v61 = vsel %vm101_vm0, %v4053_v33, %v2758_v40  ;;  %v10101_v33 = vld [vmem:[#allocation2 + $0x301] sm:$0xff] }
 0x812   :  { %3535 = vrot.lane.b32.xlu2 %v10058_v27, %s6766_s5  ;;  %v4182_v41 = vsel %vm4131_vm9, %v4117_v61, %v3014_v53  ;;  %v10076_v15 = vpop.f32.mrf.mxu3 }
 0x813   :  { %2513 = vrot.lane.b32.xlu0 %v10016_v24, %s6769_s26  ;;  %v4247_v60 = vsel %vm4196_vm10, %v4182_v41, %v3270_v43 }
 0x814   :  { %v3272_v10 = vpop.permute.xlu2 %3271 }
 0x815   :  { %v1992_v29 = vpop.permute.xlu0 %1991 }
 0x816   :  { %2001 = vrot.lane.b32.xlu1 %v9952_v50, %s6763_s19  ;;  %v3924_v43 = vsel %vm1073_vm1, %v9771_v47, %v1992_v29 }
 0x818   :  { %v3526_v1 = vpop.permute.xlu1 %3525 }
 0x819   :  { %v4312_v40 = vsel %vm4261_vm11, %v4247_v60, %v3526_v1 }
 0x81a   :  { %2257 = vrot.lane.b32.xlu2 %v9940_v6, %s6764_s20  ;;  %v4377_v61 = vsel %vm4326_vm12, %v4312_v40, %v3782_v39  ;;  %v10088_v53 = vpop.f32.mrf.mxu3 }
 0x81b   :  { %3281 = vrot.lane.b32.xlu0 %v10071_v21, %s6767_s24  ;;  %6594 = vmatmul.msk.f32.gmra.mxu3 %vm4396_vm13, %v4377_v61 }
 0x81c   :  { %v1994_v8 = vpop.permute.xlu2 %1993 }
 0x81d   :  { %v2760_v26 = vpop.permute.xlu0 %2759 }
 0x81e   :  { %2769 = vrot.lane.b32.xlu1 %v10000_v20, %s6770_s27 }
 0x820   :  { %v2248_v50 = vpop.permute.xlu1 %2247 }
 0x821   :  { %v3989_v39 = vsel %vm3937_vm7, %v3924_v43, %v2248_v50  ;;  %v10112_v43 = vld [vmem:[#allocation2 + $0x309] sm:$0xff] }
 0x822   :  { %3025 = vrot.lane.b32.xlu2 %v10031_v57, %s6768_s25  ;;  %v10103_v60 = vpop.f32.mrf.mxu3  ;;  %v4054_v1 = vsel %vm4002_vm8, %v3989_v39, %v2504_v22 }
 0x823   :  { %2003 = vrot.lane.b32.xlu0 %v9989_v4, %s6763_s19  ;;  %v10099_v4 = vld [vmem:[#allocation2 + $0x302] sm:$0xff]  ;;  %v4118_v61 = vsel %vm101_vm0, %v4054_v1, %v2760_v26 }
 0x824   :  { %v2762_v41 = vpop.permute.xlu2 %2761 }
 0x825   :  { %v3528_v6 = vpop.permute.xlu0 %3527 }
 0x826   :  { %3537 = vrot.lane.b32.xlu1 %v10101_v33, %s6766_s5 }
 0x828   :  { %v3016_v40 = vpop.permute.xlu1 %3015 }
 0x829   :  { %v4183_v50 = vsel %vm4131_vm9, %v4118_v61, %v3016_v40 }
 0x82a   :  { %3793 = vrot.lane.b32.xlu2 %v10099_v4, %s6765_s21  ;;  %v4248_v17 = vsel %vm4196_vm10, %v4183_v50, %v3272_v10  ;;  %v10117_v22 = vpop.f32.mrf.mxu3  ;;  %v10128_v10 = vld [vmem:[#allocation2 + $0x308] sm:$0xff] }
 0x82b   :  { %2771 = vrot.lane.b32.xlu0 %v10058_v27, %s6770_s27  ;;  %v4313_v26 = vsel %vm4261_vm11, %v4248_v17, %v3528_v6  ;;  %v3925_v17 = vsel %vm1073_vm1, %v9820_v19, %v1994_v8 }
 0x82c   :  { %v3530_v29 = vpop.permute.xlu2 %3529 }
 0x82d   :  { %v2250_v47 = vpop.permute.xlu0 %2249 }
 0x82e   :  { %2259 = vrot.lane.b32.xlu1 %v9987_v58, %s6764_s20 }
 0x830   :  { %v3784_v1 = vpop.permute.xlu1 %3783 }
 0x831   :  { %v4378_v40 = vsel %vm4326_vm12, %v4313_v26, %v3784_v1  ;;  %v3990_v26 = vsel %vm3937_vm7, %v3925_v17, %v2250_v47 }
 0x832   :  { %2515 = vrot.lane.b32.xlu2 %v10060_v42, %s6769_s26  ;;  %6595 = vmatmul.msk.f32.gmra.mxu3 %vm4396_vm13, %v4378_v40  ;;  %v10130_v61 = vpop.f32.mrf.mxu3  ;;  %v10143_v40 = vld [vmem:[#allocation2 + $0x30a] sm:$0xff] }
 0x833   :  { %3539 = vrot.lane.b32.xlu0 %v10112_v43, %s6766_s5 }
 0x834   :  { %v2252_v16 = vpop.permute.xlu2 %2251 }
 0x835   :  { %v3018_v39 = vpop.permute.xlu0 %3017 }
 0x836   :  { %3027 = vrot.lane.b32.xlu1 %v10044_v51, %s6768_s25 }
 0x838   :  { %v2506_v50 = vpop.permute.xlu1 %2505 }
 0x83a   :  { %3283 = vrot.lane.b32.xlu2 %v10128_v10, %s6767_s24  ;;  %v10145_v31 = vpop.f32.mrf.mxu3 }
 0x83b   :  { %2261 = vrot.lane.b32.xlu0 %v10031_v57, %s6764_s20  ;;  %v4055_v57 = vsel %vm4002_vm8, %v3990_v26, %v2506_v50 }
 0x83c   :  { %v3020_v6 = vpop.permute.xlu2 %3019  ;;  %v4119_v1 = vsel %vm101_vm0, %v4055_v57, %v2762_v41  ;;  %v10156_v57 = vld [vmem:[#allocation2 + $0x31a] sm:$0xff] }
 0x83d   :  { %v3786_v58 = vpop.permute.xlu0 %3785  ;;  %v4184_v47 = vsel %vm4131_vm9, %v4119_v1, %v3018_v39 }
 0x83e   :  { %3795 = vrot.lane.b32.xlu1 %v10143_v40, %s6765_s21 }
 0x840   :  { %v3274_v17 = vpop.permute.xlu1 %3273 }
 0x841   :  { %v4249_v41 = vsel %vm4196_vm10, %v4184_v47, %v3274_v17  ;;  %v10170_v47 = vld [vmem:[#allocation2 + $0x319] sm:$0xff] }
 0x842   :  { %2005 = vrot.lane.b32.xlu2 %v10000_v20, %s6763_s19  ;;  %v4314_v50 = vsel %vm4261_vm11, %v4249_v41, %v3530_v29  ;;  %v10160_v20 = vpop.f32.mrf.mxu3  ;;  %v10172_v17 = vld [vmem:[#allocation2 + $0x318] sm:$0xff] }
 0x843   :  { %3029 = vrot.lane.b32.xlu0 %v10099_v4, %s6768_s25  ;;  %v4379_v26 = vsel %vm4326_vm12, %v4314_v50, %v3786_v58 }
 0x844   :  { %v3788_v19 = vpop.permute.xlu2 %3787  ;;  %6596 = vmatmul.msk.f32.gmra.mxu3 %vm4396_vm13, %v4379_v26 }
 0x845   :  { %v2508_v8 = vpop.permute.xlu0 %2507 }
 0x846   :  { %2517 = vrot.lane.b32.xlu1 %v10071_v21, %s6769_s26 }
 0x848   :  { %v1996_v29 = vpop.permute.xlu1 %1995 }
 0x849   :  { %v3926_v58 = vsel %vm1073_vm1, %v9858_v59, %v1996_v29 }
 0x84a   :  { %2773 = vrot.lane.b32.xlu2 %v10101_v33, %s6770_s27  ;;  %v10174_v41 = vpop.f32.mrf.mxu3  ;;  %v3991_v50 = vsel %vm3937_vm7, %v3926_v58, %v2252_v16 }
 0x84b   :  { %3797 = vrot.lane.b32.xlu0 %v10156_v57, %s6765_s21  ;;  %v4056_v29 = vsel %vm4002_vm8, %v3991_v50, %v2508_v8 }
 0x84c   :  { %v2510_v1 = vpop.permute.xlu2 %2509 }
 0x84d   :  { %v3276_v39 = vpop.permute.xlu0 %3275 }
 0x84e   :  { %3285 = vrot.lane.b32.xlu1 %v10172_v17, %s6767_s24 }
 0x850   :  { %v2764_v59 = vpop.permute.xlu1 %2763 }
 0x851   :  { %v4120_v54 = vsel %vm101_vm0, %v4056_v29, %v2764_v59  ;;  %v10217_v29 = vld [vmem:[#allocation2 + $0x321] sm:$0xff] }
 0x852   :  { %3541 = vrot.lane.b32.xlu2 %v10170_v47, %s6766_s5  ;;  %v4185_v30 = vsel %vm4131_vm9, %v4120_v54, %v3020_v6  ;;  %v10188_v16 = vpop.f32.mrf.mxu3 }
 0x853   :  { %2519 = vrot.lane.b32.xlu0 %v10128_v10, %s6769_s26  ;;  %v4250_v8 = vsel %vm4196_vm10, %v4185_v30, %v3276_v39  ;;  %v10215_v39 = vld [vmem:[#allocation2 + $0x322] sm:$0xff] }
 0x854   :  { %v3278_v52 = vpop.permute.xlu2 %3277 }
 0x855   :  { %v1998_v26 = vpop.permute.xlu0 %1997 }
 0x856   :  { %2007 = vrot.lane.b32.xlu1 %v10058_v27, %s6763_s19 }
 0x858   :  { %v3532_v50 = vpop.permute.xlu1 %3531 }
 0x859   :  { %v4315_v59 = vsel %vm4261_vm11, %v4250_v8, %v3532_v50 }
 0x85a   :  { %2263 = vrot.lane.b32.xlu2 %v10044_v51, %s6764_s20  ;;  %v4380_v54 = vsel %vm4326_vm12, %v4315_v59, %v3788_v19  ;;  %v3927_v19 = vsel %vm1073_vm1, %v9867_v9, %v1998_v26 }
 0x85b   :  { %3287 = vrot.lane.b32.xlu0 %v10183_v12, %s6767_s24  ;;  %6597 = vmatmul.msk.f32.gmra.mxu3 %vm4396_vm13, %v4380_v54 }
 0x85c   :  { %v2000_v5 = vpop.permute.xlu2 %1999 }
 0x85d   :  { %v2766_v58 = vpop.permute.xlu0 %2765 }
 0x85e   :  { %2775 = vrot.lane.b32.xlu1 %v10112_v43, %s6770_s27  ;;  %v10204_v51 = vpop.f32.mrf.mxu3 }
 0x85f   :  { %4842 = vmatpush.msrb.mxu1 %v10204_v51 }
 0x860   :  { %v2254_v6 = vpop.permute.xlu1 %2253 }
 0x861   :  { %4843 = vmatpush.msrb.mxu1 %v10188_v16 }
 0x862   :  { %3031 = vrot.lane.b32.xlu2 %v10143_v40, %s6768_s25 }
 0x863   :  { %2009 = vrot.lane.b32.xlu0 %v10101_v33, %s6763_s19  ;;  %v3992_v33 = vsel %vm3937_vm7, %v3927_v19, %v2254_v6  ;;  %4844 = vmatpush.msrb.mxu1 %v10174_v41 }
 0x864   :  { %v2768_v27 = vpop.permute.xlu2 %2767  ;;  %v4057_v8 = vsel %vm4002_vm8, %v3992_v33, %v2510_v1  ;;  %v10229_v1 = vld [vmem:[#allocation2 + $0x331] sm:$0xff] }
 0x865   :  { %v3534_v30 = vpop.permute.xlu0 %3533  ;;  %4845 = vmatpush.msrb.mxu1 %v10160_v20  ;;  %v4121_v59 = vsel %vm101_vm0, %v4057_v8, %v2766_v58 }
 0x866   :  { %3543 = vrot.lane.b32.xlu1 %v10217_v29, %s6766_s5 }
 0x867   :  { %4846 = vmatpush.msrb.mxu1 %v10145_v31 }
 0x868   :  { %v3022_v50 = vpop.permute.xlu1 %3021 }
 0x869   :  { %4847 = vmatpush.msrb.mxu1 %v10130_v61  ;;  %v4186_v54 = vsel %vm4131_vm9, %v4121_v59, %v3022_v50  ;;  %v3928_v50 = vsel %vm1073_vm1, %v9916_v49, %v2000_v5  ;;  %v10268_v5 = vld [vmem:[#allocation2 + $0x332] sm:$0xff] }
 0x86a   :  { %3799 = vrot.lane.b32.xlu2 %v10215_v39, %s6765_s21  ;;  %v4251_v6 = vsel %vm4196_vm10, %v4186_v54, %v3278_v52 }
 0x86b   :  { %2777 = vrot.lane.b32.xlu0 %v10170_v47, %s6770_s27  ;;  %4848 = vmatpush.msrb.mxu1 %v10117_v22  ;;  %v4316_v33 = vsel %vm4261_vm11, %v4251_v6, %v3534_v30 }
 0x86c   :  { %v3536_v26 = vpop.permute.xlu2 %3535 }
 0x86d   :  { %v2256_v9 = vpop.permute.xlu0 %2255  ;;  %4849 = vmatpush.msrb.mxu1 %v10103_v60 }
 0x86e   :  { %2265 = vrot.lane.b32.xlu1 %v10099_v4, %s6764_s20  ;;  %v1693_v4 = vld [vmem:[#allocation2 + $0x330] sm:$0xff]  ;;  %v3993_v6 = vsel %vm3937_vm7, %v3928_v50, %v2256_v9  ;;  %v4896_v9 = vmul.f32 %v9107_v11, %v9107_v11 }
 0x86f   :  { %4850 = vmatpush.msrb.mxu1 %v10088_v53 }
 0x870   :  { %v3790_v8 = vpop.permute.xlu1 %3789 }
 0x871   :  { %v4381_v52 = vsel %vm4326_vm12, %v4316_v33, %v3790_v8  ;;  %4851 = vmatpush.msrb.mxu1 %v10076_v15  ;;  %v4897_v33 = vmul.f32 %v9123_v63, %v9123_v63 }
 0x872   :  { %2521 = vrot.lane.b32.xlu2 %v10172_v17, %s6769_s26  ;;  %6598 = vmatmul.msk.f32.gmra.mxu3 %vm4396_vm13, %v4381_v52 }
 0x873   :  { %3545 = vrot.lane.b32.xlu0 %v10229_v1, %s6766_s5  ;;  %4852 = vmatpush.msrb.mxu1 %v10062_v38 }
 0x874   :  { %v10240_v19 = vpop.permute.xlu2 %2257 }
 0x875   :  { %v3024_v58 = vpop.permute.xlu0 %3023  ;;  %4853 = vmatpush.msrb.mxu1 %v10048_v35 }
 0x876   :  { %3033 = vrot.lane.b32.xlu1 %v10156_v57, %s6768_s25 }
 0x877   :  { %4854 = vmatpush.msrb.mxu1 %v10033_v3 }
 0x878   :  { %v2512_v54 = vpop.permute.xlu1 %2511 }
 0x879   :  { %4855 = vmatpush.msrb.mxu1 %v10018_v62 }
 0x87a   :  { %3289 = vrot.lane.b32.xlu2 %v1693_v4, %s6767_s24 }
 0x87b   :  { %2267 = vrot.lane.b32.xlu0 %v10143_v40, %s6764_s20  ;;  %v4058_v40 = vsel %vm4002_vm8, %v3993_v6, %v2512_v54  ;;  %4856 = vmatpush.msrb.mxu1 %v10005_v56 }
 0x87c   :  { %v10256_v59 = vpop.permute.xlu2 %3025  ;;  %v4122_v8 = vsel %vm101_vm0, %v4058_v40, %v2768_v27 }
 0x87d   :  { %v3792_v30 = vpop.permute.xlu0 %3791  ;;  %4857 = vmatpush.msrb.mxu1 %v9991_v13  ;;  %v4187_v27 = vsel %vm4131_vm9, %v4122_v8, %v3024_v58  ;;  %v10288_v58 = vld [vmem:[#allocation2 + $0x33a] sm:$0xff]  ;;  %v4893_v8 = vmul.f32 %v9064_v46, %v9064_v46 }
 0x87e   :  { %3801 = vrot.lane.b32.xlu1 %v10268_v5, %s6765_s21  ;;  %4858 = vmatmul.f32.vlgmr.msrb.gmra.mxu1 %v13045_v44 }
 0x87f   :  { %4946 = vmatpush.msra.mxu1 %v4897_v33  ;;  %v4894_v33 = vmul.f32 %v9077_v48, %v9077_v48 }
 0x880   :  { %v3280_v50 = vpop.permute.xlu1 %3279 }
 0x881   :  { %v4252_v54 = vsel %vm4196_vm10, %v4187_v27, %v3280_v50  ;;  %4947 = vmatpush.msra.mxu1 %v4896_v9  ;;  %v4891_v50 = vmul.f32 %v9037_v45, %v9037_v45 }
 0x882   :  { %2011 = vrot.lane.b32.xlu2 %v10112_v43, %s6763_s19  ;;  %v4895_v43 = vmul.f32 %v9092_v18, %v9092_v18  ;;  %v4317_v6 = vsel %vm4261_vm11, %v4252_v54, %v3536_v26 }
 0x883   :  { %3035 = vrot.lane.b32.xlu0 %v10215_v39, %s6768_s25  ;;  %v4382_v40 = vsel %vm4326_vm12, %v4317_v6, %v3792_v30  ;;  %v4892_v30 = vmul.f32 %v9051_v28, %v9051_v28  ;;  %v1758_v6 = vld [vmem:[#allocation2 + $0x339] sm:$0xff] }
 0x884   :  { %v10276_v52 = vpop.permute.xlu2 %3793  ;;  %4948 = vmatpush.msra.mxu1 %v4895_v43  ;;  %6599 = vmatmul.msk.f32.gmra.mxu3 %vm4396_vm13, %v4382_v40  ;;  %v4890_v43 = vmul.f32 %v9021_v34, %v9021_v34  ;;  %v10309_v40 = vld [vmem:[#allocation2 + $0x338] sm:$0xff] }
 0x885   :  { %v2514_v49 = vpop.permute.xlu0 %2513 }
 0x886   :  { %4949 = vmatpush.msra.mxu1 %v4894_v33  ;;  %2523 = vrot.lane.b32.xlu1 %v10183_v12, %s6769_s26  ;;  %v4889_v33 = vmul.f32 %v9007_v23, %v9007_v23 }
 0x888   :  { %4950 = vmatpush.msra.mxu1 %v4893_v8  ;;  %v2002_v27 = vpop.permute.xlu1 %2001 }
 0x889   :  { %v3929_v54 = vsel %vm1073_vm1, %v9954_v0, %v2002_v27 }
 0x88a   :  { %2779 = vrot.lane.b32.xlu2 %v10217_v29, %s6770_s27  ;;  %4951 = vmatpush.msra.mxu1 %v4892_v30  ;;  %v3994_v8 = vsel %vm3937_vm7, %v3929_v54, %v10240_v19  ;;  %v4888_v30 = vmul.f32 %v8993_v2, %v8993_v2  ;;  %v1695_v54 = vld [vmem:[#allocation2 + $0x348] sm:$0xff] }
 0x88b   :  { %3803 = vrot.lane.b32.xlu0 %v10288_v58, %s6765_s21 }
 0x88c   :  { %v10300_v9 = vpop.permute.xlu2 %2515  ;;  %4952 = vmatpush.msra.mxu1 %v4891_v50  ;;  %v4059_v50 = vsel %vm4002_vm8, %v3994_v8, %v2514_v49  ;;  %v4885_v49 = vmul.f32 %v8952_v25, %v8952_v25 }
 0x88d   :  { %v3282_v26 = vpop.permute.xlu0 %3281 }
 0x88e   :  { %4953 = vmatpush.msra.mxu1 %v4890_v43  ;;  %3291 = vrot.lane.b32.xlu1 %v10309_v40, %s6767_s24  ;;  %v4887_v43 = vmul.f32 %v8980_v36, %v8980_v36 }
 0x890   :  { %4954 = vmatpush.msra.mxu1 %v4889_v33  ;;  %v2770_v27 = vpop.permute.xlu1 %2769  ;;  %v4886_v33 = vmul.f32 %v8965_v14, %v8965_v14 }
 0x891   :  { %v4123_v19 = vsel %vm101_vm0, %v4059_v50, %v2770_v27 }
 0x892   :  { %3547 = vrot.lane.b32.xlu2 %v1758_v6, %s6766_s5  ;;  %4955 = vmatpush.msra.mxu1 %v4888_v30  ;;  %v4188_v48 = vsel %vm4131_vm9, %v4123_v19, %v10256_v59  ;;  %v4884_v30 = vmul.f32 %v8939_v55, %v8939_v55  ;;  %v4883_v19 = vmul.f32 %v8925_v32, %v8925_v32 }
 0x893   :  { %2525 = vrot.lane.b32.xlu0 %v1693_v4, %s6769_s26  ;;  %v4253_v59 = vsel %vm4196_vm10, %v4188_v48, %v3282_v26  ;;  %v4928_v48 = vmul.f32 %v10188_v16, %v10188_v16  ;;  %v4927_v26 = vmul.f32 %v10174_v41, %v10174_v41 }
 0x894   :  { %v10320_v4 = vpop.permute.xlu2 %3283  ;;  %4956 = vmatpush.msra.mxu1 %v4887_v43 }
 0x895   :  { %v2004_v0 = vpop.permute.xlu0 %2003 }
 0x896   :  { %4957 = vmatpush.msra.mxu1 %v4886_v33  ;;  %2013 = vrot.lane.b32.xlu1 %v10170_v47, %s6763_s19  ;;  %v4882_v47 = vmul.f32 %v8909_v37, %v8909_v37 }
 0x898   :  { %4958 = vmatpush.msra.mxu1 %v4885_v49  ;;  %v3538_v50 = vpop.permute.xlu1 %3537 }
 0x899   :  { %v4318_v43 = vsel %vm4261_vm11, %v4253_v59, %v3538_v50  ;;  %v1823_v59 = vld [vmem:[#allocation2 + $0x34a] sm:$0xff] }
 0x89a   :  { %2269 = vrot.lane.b32.xlu2 %v10156_v57, %s6764_s20  ;;  %4959 = vmatpush.msra.mxu1 %v4884_v30  ;;  %v4383_v57 = vsel %vm4326_vm12, %v4318_v43, %v10276_v52  ;;  %v3930_v30 = vsel %vm1073_vm1, %v9963_v7, %v2004_v0  ;;  %v1759_v50 = vld [vmem:[#allocation2 + $0x349] sm:$0xff]  ;;  %v4924_v43 = vmul.f32 %v10130_v61, %v10130_v61 }
 0x89b   :  { %3293 = vrot.lane.b32.xlu0 %v1695_v54, %s6767_s24  ;;  %6600 = vmatmul.msk.f32.gmra.mxu3 %vm4396_vm13, %v4383_v57  ;;  %v4929_v54 = vmul.f32 %v10204_v51, %v10204_v51  ;;  %v4923_v0 = vmul.f32 %v10117_v22, %v10117_v22 }
 0x89c   :  { %v10339_v27 = vpop.permute.xlu2 %2005  ;;  %4960 = vmatpush.msra.mxu1 %v4883_v19 }
 0x89d   :  { %v2772_v8 = vpop.permute.xlu0 %2771 }
 0x89e   :  { %4961 = vmatpush.msra.mxu1 %v4882_v47  ;;  %2781 = vrot.lane.b32.xlu1 %v10229_v1, %s6770_s27  ;;  %v4925_v1 = vmul.f32 %v10145_v31, %v10145_v31 }
 0x89f   :  { %4962 = vmatmul.f32.vlgmr.msra.gmra.mxu1 %v13045_v44 }
 0x8a0   :  { %4986 = vmatpush.msrb.mxu1 %v4929_v54  ;;  %v2260_v33 = vpop.permute.xlu1 %2259  ;;  %v4922_v54 = vmul.f32 %v10103_v60, %v10103_v60 }
 0x8a2   :  { %3037 = vrot.lane.b32.xlu2 %v10268_v5, %s6768_s25  ;;  %4987 = vmatpush.msrb.mxu1 %v4928_v48  ;;  %v3995_v5 = vsel %vm3937_vm7, %v3930_v30, %v2260_v33 }
 0x8a3   :  { %2015 = vrot.lane.b32.xlu0 %v10217_v29, %s6763_s19  ;;  %v4926_v29 = vmul.f32 %v10160_v20, %v10160_v20  ;;  %v4060_v19 = vsel %vm4002_vm8, %v3995_v5, %v10300_v9  ;;  %v1760_v9 = vld [vmem:[#allocation2 + $0x351] sm:$0xff] }
 0x8a4   :  { %v2774_v49 = vpop.permute.xlu2 %2773  ;;  %4988 = vmatpush.msrb.mxu1 %v4927_v26  ;;  %v4124_v47 = vsel %vm101_vm0, %v4060_v19, %v2772_v8  ;;  %v4921_v26 = vmul.f32 %v10088_v53, %v10088_v53  ;;  %v4920_v8 = vmul.f32 %v10076_v15, %v10076_v15  ;;  %v3931_v19 = vsel %vm1073_vm1, %v10016_v24, %v10339_v27 }
 0x8a5   :  { %v3540_v52 = vpop.permute.xlu0 %3539 }
 0x8a6   :  { %4989 = vmatpush.msrb.mxu1 %v4926_v29  ;;  %3549 = vrot.lane.b32.xlu1 %v1759_v50, %s6766_s5 }
 0x8a8   :  { %4990 = vmatpush.msrb.mxu1 %v4925_v1  ;;  %v3028_v57 = vpop.permute.xlu1 %3027  ;;  %v1696_v1 = vld [vmem:[#allocation2 + $0x350] sm:$0xff] }
 0x8aa   :  { %3805 = vrot.lane.b32.xlu2 %v1823_v59, %s6765_s21  ;;  %4991 = vmatpush.msrb.mxu1 %v4924_v43 }
 0x8ab   :  { %2783 = vrot.lane.b32.xlu0 %v1758_v6, %s6770_s27  ;;  %v4189_v6 = vsel %vm4131_vm9, %v4124_v47, %v3028_v57  ;;  %v4915_v57 = vmul.f32 %v10005_v56, %v10005_v56 }
 0x8ac   :  { %4992 = vmatpush.msrb.mxu1 %v4923_v0  ;;  %v3542_v48 = vpop.permute.xlu2 %3541  ;;  %v4254_v33 = vsel %vm4196_vm10, %v4189_v6, %v10320_v4  ;;  %v4919_v4 = vmul.f32 %v10062_v38, %v10062_v38 }
 0x8ad   :  { %v2262_v7 = vpop.permute.xlu0 %2261  ;;  %v4319_v30 = vsel %vm4261_vm11, %v4254_v33, %v3540_v52  ;;  %v4916_v52 = vmul.f32 %v10018_v62, %v10018_v62 }
 0x8ae   :  { %4993 = vmatpush.msrb.mxu1 %v4922_v54  ;;  %2271 = vrot.lane.b32.xlu1 %v10215_v39, %s6764_s20  ;;  %v4917_v39 = vmul.f32 %v10033_v3, %v10033_v3  ;;  %v3996_v47 = vsel %vm3937_vm7, %v3931_v19, %v2262_v7  ;;  %v4914_v54 = vmul.f32 %v9991_v13, %v9991_v13 }
 0x8b0   :  { %4994 = vmatpush.msrb.mxu1 %v4921_v26  ;;  %v3796_v5 = vpop.permute.xlu1 %3795 }
 0x8b1   :  { %v4384_v59 = vsel %vm4326_vm12, %v4319_v30, %v3796_v5 }
 0x8b2   :  { %2527 = vrot.lane.b32.xlu2 %v10309_v40, %s6769_s26  ;;  %4995 = vmatpush.msrb.mxu1 %v4920_v8  ;;  %v4918_v40 = vmul.f32 %v10048_v35, %v10048_v35 }
 0x8b3   :  { %3551 = vrot.lane.b32.xlu0 %v1760_v9, %s6766_s5  ;;  %6601 = vmatmul.msk.f32.gmra.mxu3 %vm4396_vm13, %v4384_v59 }
 0x8b4   :  { %4996 = vmatpush.msrb.mxu1 %v4919_v4  ;;  %v2264_v50 = vpop.permute.xlu2 %2263 }
 0x8b5   :  { %v3030_v29 = vpop.permute.xlu0 %3029 }
 0x8b6   :  { %4997 = vmatpush.msrb.mxu1 %v4918_v40  ;;  %3039 = vrot.lane.b32.xlu1 %v10288_v58, %s6768_s25  ;;  %v1824_v58 = vld [vmem:[#allocation2 + $0x352] sm:$0xff] }
 0x8b8   :  { %4998 = vmatpush.msrb.mxu1 %v4917_v39  ;;  %v2518_v0 = vpop.permute.xlu1 %2517 }
 0x8b9   :  { %v4061_v6 = vsel %vm4002_vm8, %v3996_v47, %v2518_v0 }
 0x8ba   :  { %3295 = vrot.lane.b32.xlu2 %v1696_v1, %s6767_s24  ;;  %4999 = vmatpush.msrb.mxu1 %v4916_v52  ;;  %v4125_v9 = vsel %vm101_vm0, %v4061_v6, %v2774_v49 }
 0x8bb   :  { %v4190_v26 = vsel %vm4131_vm9, %v4125_v9, %v3030_v29 }
 0x8bc   :  { %5000 = vmatpush.msrb.mxu1 %v4915_v57  ;;  %v3032_v24 = vpop.permute.xlu2 %3031 }
 0x8bd   :  { %v3798_v43 = vpop.permute.xlu0 %3797 }
 0x8be   :  { %5001 = vmatpush.msrb.mxu1 %v4914_v54  ;;  %3807 = vrot.lane.b32.xlu1 %v1824_v58, %s6765_s21 }
 0x8bf   :  { %5002 = vmatmul.f32.vlgmr.msrb.gmra.mxu1 %v13045_v44 }
 0x8c0   :  { %v3286_v33 = vpop.permute.xlu1 %3285 }
 0x8c1   :  { %v4255_v7 = vsel %vm4196_vm10, %v4190_v26, %v3286_v33 }
 0x8c2   :  { %v4320_v8 = vsel %vm4261_vm11, %v4255_v7, %v3542_v48 }
 0x8c3   :  { %v4385_v30 = vsel %vm4326_vm12, %v4320_v8, %v3798_v43 }
 0x8c4   :  { %6602 = vmatmul.msk.f32.gmra.mxu3 %vm4396_vm13, %v4385_v30  ;;  %v3800_v49 = vpop.permute.xlu2 %3799 }
 0x8c5   :  { %v2520_v27 = vpop.permute.xlu0 %2519 }
 0x8c8   :  { %v2008_v4 = vpop.permute.xlu1 %2007 }
 0x8c9   :  { %v3932_v59 = vsel %vm1073_vm1, %v10060_v42, %v2008_v4 }
 0x8ca   :  { %v3997_v40 = vsel %vm3937_vm7, %v3932_v59, %v2264_v50 }
 0x8cb   :  { %v4062_v29 = vsel %vm4002_vm8, %v3997_v40, %v2520_v27 }
 0x8cc   :  { %v2522_v19 = vpop.permute.xlu2 %2521 }
 0x8cd   :  { %v3288_v5 = vpop.permute.xlu0 %3287 }
 0x8d0   :  { %v2776_v39 = vpop.permute.xlu1 %2775 }
 0x8d1   :  { %v4126_v52 = vsel %vm101_vm0, %v4062_v29, %v2776_v39 }
 0x8d2   :  { %v4191_v48 = vsel %vm4131_vm9, %v4126_v52, %v3032_v24 }
 0x8d3   :  { %v4256_v0 = vsel %vm4196_vm10, %v4191_v48, %v3288_v5 }
 0x8d4   :  { %v3290_v42 = vpop.permute.xlu2 %3289 }
 0x8d5   :  { %v2010_v1 = vpop.permute.xlu0 %2009 }
 0x8d6   :  { %v3933_v58 = vsel %vm1073_vm1, %v10071_v21, %v2010_v1 }
 0x8d8   :  { %v3544_v57 = vpop.permute.xlu1 %3543 }
 0x8d9   :  { %v4321_v47 = vsel %vm4261_vm11, %v4256_v0, %v3544_v57 }
 0x8da   :  { %v4386_v6 = vsel %vm4326_vm12, %v4321_v47, %v3800_v49 }
 0x8db   :  { %6603 = vmatmul.msk.f32.gmra.mxu3 %vm4396_vm13, %v4386_v6 }
 0x8dc   :  { %v2012_v27 = vpop.permute.xlu2 %2011 }
 0x8dd   :  { %v2778_v43 = vpop.permute.xlu0 %2777  ;;  %v3934_v40 = vsel %vm1073_vm1, %v10128_v10, %v2012_v27 }
 0x8e0   :  { %v2266_v54 = vpop.permute.xlu1 %2265 }
 0x8e1   :  { %v3998_v9 = vsel %vm3937_vm7, %v3933_v58, %v2266_v54 }
 0x8e2   :  { %v4063_v24 = vsel %vm4002_vm8, %v3998_v9, %v2522_v19 }
 0x8e3   :  { %v4127_v33 = vsel %vm101_vm0, %v4063_v24, %v2778_v43 }
 0x8e4   :  { %v2780_v49 = vpop.permute.xlu2 %2779 }
 0x8e5   :  { %v3546_v50 = vpop.permute.xlu0 %3545 }
 0x8e8   :  { %v3034_v26 = vpop.permute.xlu1 %3033 }
 0x8e9   :  { %v4192_v8 = vsel %vm4131_vm9, %v4127_v33, %v3034_v26 }
 0x8ea   :  { %v4257_v30 = vsel %vm4196_vm10, %v4192_v8, %v3290_v42 }
 0x8eb   :  { %v4322_v5 = vsel %vm4261_vm11, %v4257_v30, %v3546_v50 }
 0x8ec   :  { %v3548_v52 = vpop.permute.xlu2 %3547 }
 0x8ed   :  { %v2268_v7 = vpop.permute.xlu0 %2267 }
 0x8ee   :  { %v3999_v39 = vsel %vm3937_vm7, %v3934_v40, %v2268_v7 }
 0x8f0   :  { %v3802_v4 = vpop.permute.xlu1 %3801 }
 0x8f1   :  { %v4387_v59 = vsel %vm4326_vm12, %v4322_v5, %v3802_v4 }
 0x8f2   :  { %6604 = vmatmul.msk.f32.gmra.mxu3 %vm4396_vm13, %v4387_v59 }
 0x8f4   :  { %v2270_v10 = vpop.permute.xlu2 %2269 }
 0x8f5   :  { %v3036_v21 = vpop.permute.xlu0 %3035 }
 0x8f8   :  { %v2524_v1 = vpop.permute.xlu1 %2523 }
 0x8f9   :  { %v4064_v29 = vsel %vm4002_vm8, %v3999_v39, %v2524_v1 }
 0x8fa   :  { %v4128_v19 = vsel %vm101_vm0, %v4064_v29, %v2780_v49 }
 0x8fb   :  { %v4193_v43 = vsel %vm4131_vm9, %v4128_v19, %v3036_v21 }
 0x8fc   :  { %v3038_v58 = vpop.permute.xlu2 %3037 }
 0x8fd   :  { %v3804_v48 = vpop.permute.xlu0 %3803 }
 0x900   :  { %v3292_v0 = vpop.permute.xlu1 %3291 }
 0x901   :  { %v4258_v57 = vsel %vm4196_vm10, %v4193_v43, %v3292_v0 }
 0x902   :  { %v4323_v47 = vsel %vm4261_vm11, %v4258_v57, %v3548_v52 }
 0x903   :  { %v4388_v6 = vsel %vm4326_vm12, %v4323_v47, %v3804_v48 }
 0x904   :  { %6605 = vmatmul.msk.f32.gmra.mxu3 %vm4396_vm13, %v4388_v6  ;;  %v3806_v8 = vpop.permute.xlu2 %3805 }
 0x905   :  { %v2526_v42 = vpop.permute.xlu0 %2525 }
 0x908   :  { %v2014_v50 = vpop.permute.xlu1 %2013 }
 0x909   :  { %v3935_v54 = vsel %vm1073_vm1, %v10172_v17, %v2014_v50 }
 0x90a   :  { %v4000_v9 = vsel %vm3937_vm7, %v3935_v54, %v2270_v10 }
 0x90b   :  { %v4065_v26 = vsel %vm4002_vm8, %v4000_v9, %v2526_v42 }
 0x90c   :  { %v2528_v21 = vpop.permute.xlu2 %2527 }
 0x90d   :  { %v3294_v27 = vpop.permute.xlu0 %3293 }
 0x910   :  { %v2782_v24 = vpop.permute.xlu1 %2781 }
 0x911   :  { %v4129_v33 = vsel %vm101_vm0, %v4065_v26, %v2782_v24 }
 0x912   :  { %v4194_v7 = vsel %vm4131_vm9, %v4129_v33, %v3038_v58 }
 0x913   :  { %v4259_v30 = vsel %vm4196_vm10, %v4194_v7, %v3294_v27 }
 0x914   :  { %v3296_v43 = vpop.permute.xlu2 %3295 }
 0x915   :  { %v2016_v17 = vpop.permute.xlu0 %2015 }
 0x916   :  { %v3936_v40 = vsel %vm1073_vm1, %v10183_v12, %v2016_v17  ;;  %v10476_v12 = vpop.f32.mrf.mxu3  ;;  %v13060_v17 = vld [vmem:[#allocation27_spill] sm:$0xff] }
 0x918   :  { %v3550_v5 = vpop.permute.xlu1 %3549 }
 0x919   :  { %v4324_v4 = vsel %vm4261_vm11, %v4259_v30, %v3550_v5 }
 0x91a   :  { %v4389_v49 = vsel %vm4326_vm12, %v4324_v4, %v3806_v8 }
 0x91b   :  { %6606 = vmatmul.msk.f32.gmra.mxu3 %vm4396_vm13, %v4389_v49 }
 0x91d   :  { %v2784_v39 = vpop.permute.xlu0 %2783 }
 0x91e   :  { %v10478_v42 = vpop.f32.mrf.mxu3 }
 0x91f   :  { %13046 = vst [vmem:[#allocation28_spill] sm:$0xff] %v10478_v42 }
 0x920   :  { %v2272_v59 = vpop.permute.xlu1 %2271 }
 0x921   :  { %v4001_v1 = vsel %vm3937_vm7, %v3936_v40, %v2272_v59  ;;  %v4913_v59 = vmul.f32 %v13060_v17, %v13060_v17 }
 0x922   :  { %v4066_v29 = vsel %vm4002_vm8, %v4001_v1, %v2528_v21  ;;  %v13061_v21 = vld [vmem:[#allocation26_spill] sm:$0xff]  ;;  %v13062_v1 = vld [vmem:[#allocation25_spill] sm:$0xff] }
 0x923   :  { %v4130_v19 = vsel %vm101_vm0, %v4066_v29, %v2784_v39  ;;  %v4912_v40 = vmul.f32 %v13061_v21, %v13061_v21  ;;  %v4911_v39 = vmul.f32 %v13062_v1, %v13062_v1  ;;  %v13063_v29 = vld [vmem:[#allocation24_spill] sm:$0xff] }
 0x925   :  { %v3552_v57 = vpop.permute.xlu0 %3551 }
 0x926   :  { %v10480_v50 = vpop.f32.mrf.mxu3 }
 0x927   :  { %13047 = vst [vmem:[#allocation29_spill] sm:$0xff] %v10480_v50 }
 0x928   :  { %v3040_v52 = vpop.permute.xlu1 %3039 }
 0x929   :  { %v4195_v48 = vsel %vm4131_vm9, %v4130_v19, %v3040_v52  ;;  %v4910_v52 = vmul.f32 %v13063_v29, %v13063_v29  ;;  %v13064_v19 = vld [vmem:[#allocation23_spill] sm:$0xff] }
 0x92a   :  { %v4260_v0 = vsel %vm4196_vm10, %v4195_v48, %v3296_v43  ;;  %v4909_v48 = vmul.f32 %v13064_v19, %v13064_v19  ;;  %v13065_v43 = vld [vmem:[#allocation22_spill] sm:$0xff] }
 0x92b   :  { %v4325_v47 = vsel %vm4261_vm11, %v4260_v0, %v3552_v57  ;;  %v4908_v0 = vmul.f32 %v13065_v43, %v13065_v43  ;;  %v13066_v57 = vld [vmem:[#allocation21_spill] sm:$0xff] }
 0x92e   :  { %v10482_v54 = vpop.f32.mrf.mxu3 }
 0x92f   :  { %13048 = vst [vmem:[#allocation30_spill] sm:$0xff] %v10482_v54 }
 0x930   :  { %v3808_v6 = vpop.permute.xlu1 %3807 }
 0x931   :  { %v4390_v10 = vsel %vm4326_vm12, %v4325_v47, %v3808_v6  ;;  %v4907_v47 = vmul.f32 %v13066_v57, %v13066_v57  ;;  %v13067_v6 = vld [vmem:[#allocation20_spill] sm:$0xff] }
 0x932   :  { %6607 = vmatmul.msk.f32.gmra.mxu3 %vm4396_vm13, %v4390_v10  ;;  %v4906_v10 = vmul.f32 %v13067_v6, %v13067_v6 }
 0x936   :  { %v10484_v58 = vpop.f32.mrf.mxu3 }
 0x937   :  { %13049 = vst [vmem:[#allocation31_spill] sm:$0xff] %v10484_v58 }
 0x93a   :  { %4818 = vmatmul.f32.vlgmr.msra.gmra.mxu3 %v13045_v44 }
 0x93e   :  { %v10486_v9 = vpop.f32.mrf.mxu3 }
 0x93f   :  { %13050 = vst [vmem:[#allocation32_spill] sm:$0xff] %v10486_v9 }
 0x946   :  { %v10488_v24 = vpop.f32.mrf.mxu3 }
 0x947   :  { %13051 = vst [vmem:[#allocation33_spill] sm:$0xff] %v10488_v24 }
 0x94e   :  { %v10490_v27 = vpop.f32.mrf.mxu3 }
 0x94f   :  { %13052 = vst [vmem:[#allocation34_spill] sm:$0xff] %v10490_v27 }
 0x956   :  { %v10492_v26 = vpop.f32.mrf.mxu3 }
 0x957   :  { %13053 = vst [vmem:[#allocation35_spill] sm:$0xff] %v10492_v26  ;;  %v4938_v23 = vmul.f32 %v10492_v26, %v10492_v26 }
 0x95e   :  { %v10494_v33 = vpop.f32.mrf.mxu3 }
 0x966   :  { %v10496_v7 = vpop.f32.mrf.mxu3 }
 0x967   :  { %13054 = vst [vmem:[#allocation36_spill] sm:$0xff] %v10496_v7 }
 0x96e   :  { %v10498_v8 = vpop.f32.mrf.mxu3 }
 0x96f   :  { %13055 = vst [vmem:[#allocation37_spill] sm:$0xff] %v10498_v8 }
 0x976   :  { %v10500_v30 = vpop.f32.mrf.mxu3 }
 0x977   :  { %13056 = vst [vmem:[#allocation38_spill] sm:$0xff] %v10500_v30 }
 0x987   :  { %v10502_v5 = vpop.f32.mrf.mxu3 }
 0x988   :  { %13057 = vst [vmem:[#allocation39_spill] sm:$0xff] %v10502_v5 }
 0x99e   :  { %v10504_v4 = vpop.f32.mrf.mxu3 }
 0x99f   :  { %13058 = vst [vmem:[#allocation40_spill] sm:$0xff] %v10504_v4 }
 0x9b5   :  { %v10506_v49 = vpop.f32.mrf.mxu3 }
 0x9b6   :  { %13059 = vst [vmem:[#allocation41_spill] sm:$0xff] %v10506_v49  ;;  %4862 = vmatpush.msra.mxu2 %v10506_v49 }
 0x9b8   :  { %4863 = vmatpush.msra.mxu2 %v10504_v4 }
 0x9ba   :  { %4864 = vmatpush.msra.mxu2 %v10502_v5 }
 0x9bc   :  { %4865 = vmatpush.msra.mxu2 %v10500_v30 }
 0x9be   :  { %4866 = vmatpush.msra.mxu2 %v10498_v8 }
 0x9c0   :  { %4867 = vmatpush.msra.mxu2 %v10496_v7 }
 0x9c2   :  { %4868 = vmatpush.msra.mxu2 %v10494_v33 }
 0x9c4   :  { %4869 = vmatpush.msra.mxu2 %v10492_v26 }
 0x9c6   :  { %4870 = vmatpush.msra.mxu2 %v10490_v27 }
 0x9c8   :  { %4871 = vmatpush.msra.mxu2 %v10488_v24 }
 0x9ca   :  { %4872 = vmatpush.msra.mxu2 %v10486_v9 }
 0x9cc   :  { %4873 = vmatpush.msra.mxu2 %v10484_v58 }
 0x9ce   :  { %4874 = vmatpush.msra.mxu2 %v10482_v54 }
 0x9d0   :  { %4875 = vmatpush.msra.mxu2 %v10480_v50 }
 0x9d2   :  { %4876 = vmatpush.msra.mxu2 %v10478_v42 }
 0x9d4   :  { %4877 = vmatpush.msra.mxu2 %v10476_v12 }
 0x9d5   :  { %4878 = vmatmul.f32.vlgmr.msra.gmra.mxu2 %v13045_v44 }
 0x9d6   :  { %4966 = vmatpush.msrb.mxu2 %v4913_v59  ;;  %v13068_v59 = vld [vmem:[#allocation18_spill] sm:$0xff] }
 0x9d8   :  { %4967 = vmatpush.msrb.mxu2 %v4912_v40  ;;  %v4905_v40 = vmul.f32 %v13068_v59, %v13068_v59 }
 0x9da   :  { %4968 = vmatpush.msrb.mxu2 %v4911_v39  ;;  %v13069_v39 = vld [vmem:[#allocation16_spill] sm:$0xff] }
 0x9dc   :  { %4969 = vmatpush.msrb.mxu2 %v4910_v52  ;;  %v4904_v52 = vmul.f32 %v13069_v39, %v13069_v39 }
 0x9de   :  { %4970 = vmatpush.msrb.mxu2 %v4909_v48  ;;  %v13070_v48 = vld [vmem:[#allocation15_spill] sm:$0xff] }
 0x9df   :  { %v4903_v46 = vmul.f32 %v13070_v48, %v13070_v48 }
 0x9e0   :  { %4971 = vmatpush.msrb.mxu2 %v4908_v0  ;;  %v13071_v0 = vld [vmem:[#allocation14_spill] sm:$0xff] }
 0x9e1   :  { %v4902_v28 = vmul.f32 %v13071_v0, %v13071_v0 }
 0x9e2   :  { %4972 = vmatpush.msrb.mxu2 %v4907_v47  ;;  %v13072_v47 = vld [vmem:[#allocation13_spill] sm:$0xff] }
 0x9e3   :  { %v4901_v45 = vmul.f32 %v13072_v47, %v13072_v47 }
 0x9e4   :  { %4973 = vmatpush.msrb.mxu2 %v4906_v10  ;;  %v13073_v10 = vld [vmem:[#allocation12_spill] sm:$0xff] }
 0x9e5   :  { %v4900_v34 = vmul.f32 %v13073_v10, %v13073_v10 }
 0x9e6   :  { %4974 = vmatpush.msrb.mxu2 %v4905_v40  ;;  %v13074_v40 = vld [vmem:[#allocation11_spill] sm:$0xff] }
 0x9e7   :  { %v4899_v14 = vmul.f32 %v13074_v40, %v13074_v40 }
 0x9e8   :  { %4975 = vmatpush.msrb.mxu2 %v4904_v52  ;;  %v13075_v52 = vld [vmem:[#allocation10_spill] sm:$0xff] }
 0x9e9   :  { %v4898_v25 = vmul.f32 %v13075_v52, %v13075_v52 }
 0x9ea   :  { %4976 = vmatpush.msrb.mxu2 %v4903_v46  ;;  %v4945_v46 = vmul.f32 %v10506_v49, %v10506_v49 }
 0x9ec   :  { %4977 = vmatpush.msrb.mxu2 %v4902_v28  ;;  %v4944_v28 = vmul.f32 %v10504_v4, %v10504_v4 }
 0x9ee   :  { %4978 = vmatpush.msrb.mxu2 %v4901_v45  ;;  %v4941_v45 = vmul.f32 %v10498_v8, %v10498_v8 }
 0x9f0   :  { %4979 = vmatpush.msrb.mxu2 %v4900_v34  ;;  %v4943_v34 = vmul.f32 %v10502_v5, %v10502_v5 }
 0x9f2   :  { %4980 = vmatpush.msrb.mxu2 %v4899_v14  ;;  %v4942_v14 = vmul.f32 %v10500_v30, %v10500_v30 }
 0x9f4   :  { %4981 = vmatpush.msrb.mxu2 %v4898_v25  ;;  %v4940_v25 = vmul.f32 %v10496_v7, %v10496_v7 }
 0x9f5   :  { %4982 = vmatmul.f32.vlgmr.msrb.gmra.mxu2 %v13045_v44 }
 0x9f6   :  { %5006 = vmatpush.msra.mxu2 %v4945_v46  ;;  %v4939_v46 = vmul.f32 %v10494_v33, %v10494_v33 }
 0x9f8   :  { %5007 = vmatpush.msra.mxu2 %v4944_v28  ;;  %v4937_v28 = vmul.f32 %v10490_v27, %v10490_v27  ;;  %v4819_v27 = vpop.f32.mrf.mxu3 }
 0x9fa   :  { %5008 = vmatpush.msra.mxu2 %v4943_v34  ;;  %v4936_v34 = vmul.f32 %v10488_v24, %v10488_v24 }
 0x9fc   :  { %5009 = vmatpush.msra.mxu2 %v4942_v14  ;;  %v4935_v14 = vmul.f32 %v10486_v9, %v10486_v9 }
 0x9fe   :  { %5010 = vmatpush.msra.mxu2 %v4941_v45  ;;  %v4934_v45 = vmul.f32 %v10484_v58, %v10484_v58 }
 0xa00   :  { %5011 = vmatpush.msra.mxu2 %v4940_v25  ;;  %v4933_v25 = vmul.f32 %v10482_v54, %v10482_v54 }
 0xa02   :  { %5012 = vmatpush.msra.mxu2 %v4939_v46  ;;  %v4932_v46 = vmul.f32 %v10480_v50, %v10480_v50 }
 0xa04   :  { %5013 = vmatpush.msra.mxu2 %v4938_v23  ;;  %v4931_v23 = vmul.f32 %v10478_v42, %v10478_v42 }
 0xa06   :  { %5014 = vmatpush.msra.mxu2 %v4937_v28  ;;  %v4930_v28 = vmul.f32 %v10476_v12, %v10476_v12 }
 0xa08   :  { %5015 = vmatpush.msra.mxu2 %v4936_v34  ;;  %v4839_v34 = vpop.f32.mrf.mxu2 }
 0xa09   :  { %v4840_v24 = vadd.f32 %v4839_v34, %v4819_v27 }
 0xa0a   :  { %5016 = vmatpush.msra.mxu2 %v4935_v14  ;;  %v4859_v14 = vpop.f32.mrf.mxu1 }
 0xa0b   :  { %v4860_v58 = vadd.f32 %v4859_v14, %v4840_v24 }
 0xa0c   :  { %5017 = vmatpush.msra.mxu2 %v4934_v45 }
 0xa0e   :  { %5018 = vmatpush.msra.mxu2 %v4933_v25 }
 0xa10   :  { %5019 = vmatpush.msra.mxu2 %v4932_v46 }
 0xa12   :  { %5020 = vmatpush.msra.mxu2 %v4931_v23  ;;  %v4963_v45 = vpop.f32.mrf.mxu1 }
 0xa14   :  { %5021 = vmatpush.msra.mxu2 %v4930_v28 }
 0xa15   :  { %5022 = vmatmul.f32.vlgmr.msra.gmra.mxu2 %v13045_v44 }
 0xa1a   :  { %v5003_v54 = vpop.f32.mrf.mxu1 }
 0xa58   :  { %v4879_v26 = vpop.f32.mrf.mxu2 }
 0xa59   :  { %v4880_v55 = vadd.f32 %v4879_v26, %v4860_v58 }
 0xa5b   :  { %v5026_v42 = vmul.f32 0.001953125, %v4880_v55 }
 0xa5d   :  { %v5028_v4 = vmul.f32 %v5026_v42, %v5026_v42  ;;  %v10591_v8 = vperm.slane %v5026_v42, 0 }
 0xa5f   :  { %v5037_v55 = vsub.f32 %v8980_v36, %v10591_v8  ;;  %v5045_v24 = vsub.f32 %v9092_v18, %v10591_v8  ;;  %v5046_v42 = vsub.f32 %v9107_v11, %v10591_v8  ;;  %v5047_v26 = vsub.f32 %v9123_v63, %v10591_v8 }
 0xa60   :  { %v5051_v18 = vsub.f32 %v13072_v47, %v10591_v8  ;;  %v5052_v11 = vsub.f32 %v13071_v0, %v10591_v8  ;;  %v5053_v63 = vsub.f32 %v13070_v48, %v10591_v8  ;;  %v5057_v47 = vsub.f32 %v13066_v57, %v10591_v8 }
 0xa61   :  { %v5058_v0 = vsub.f32 %v13065_v43, %v10591_v8  ;;  %v5059_v48 = vsub.f32 %v13064_v19, %v10591_v8  ;;  %v5062_v57 = vsub.f32 %v13061_v21, %v10591_v8  ;;  %v5063_v19 = vsub.f32 %v13060_v17, %v10591_v8 }
 0xa62   :  { %v5065_v43 = vsub.f32 %v10005_v56, %v10591_v8  ;;  %v5068_v21 = vsub.f32 %v10048_v35, %v10591_v8  ;;  %v5069_v17 = vsub.f32 %v10062_v38, %v10591_v8  ;;  %v5071_v56 = vsub.f32 %v10088_v53, %v10591_v8 }
 0xa63   :  { %v5074_v35 = vsub.f32 %v10130_v61, %v10591_v8  ;;  %v5075_v38 = vsub.f32 %v10145_v31, %v10591_v8  ;;  %v5078_v53 = vsub.f32 %v10188_v16, %v10591_v8  ;;  %v5089_v61 = vsub.f32 %v10494_v33, %v10591_v8  ;;  %v13076_v31 = vld [vmem:[#allocation36_spill] sm:$0xff] }
 0xa78   :  { %v4983_v9 = vpop.f32.mrf.mxu2 }
 0xa79   :  { %v4984_v25 = vadd.f32 %v4983_v9, %v4963_v45  ;;  %v5032_v9 = vsub.f32 %v8909_v37, %v10591_v8  ;;  %v5076_v45 = vsub.f32 %v10160_v20, %v10591_v8 }
 0xa7b   :  { %v5004_v50 = vadd.f32 %v5003_v54, %v4984_v25  ;;  %v5033_v54 = vsub.f32 %v8925_v32, %v10591_v8  ;;  %v5090_v25 = vsub.f32 %v13076_v31, %v10591_v8 }
 0xa98   :  { %v5023_v46 = vpop.f32.mrf.mxu2 }
 0xa99   :  { %v5024_v49 = vadd.f32 %v5023_v46, %v5004_v50  ;;  %v5038_v50 = vsub.f32 %v8993_v2, %v10591_v8 }
 0xa9b   :  { %v5027_v23 = vmul.f32 0.001953125, %v5024_v49 }
 0xa9d   :  { %v5029_v28 = vsub.f32 %v5027_v23, %v5028_v4  ;;  %v5050_v4 = vsub.f32 %v13073_v10, %v10591_v8  ;;  %v5056_v10 = vsub.f32 %v13067_v6, %v10591_v8 }
 0xa9f   :  { %v5030_v5 = vmax.f32 %v5029_v28, 0.0 }
 0xaa1   :  { %v5096_v44 = vadd.f32 1e-05, %v5030_v5  ;;  %v5049_v5 = vsub.f32 %v13074_v40, %v10591_v8  ;;  %v5055_v40 = vsub.f32 %v13068_v59, %v10591_v8  ;;  %v5372_v59 = vld [vmem:[%s12745_s3] sm:$0xf] }
 0xaa2   :  { %6608 = vmatpush.msk.msra.mxu0 %vm4589_vm6, %v5372_v59  ;;  %6673 = vmatpush.msk.msra.mxu1 %vm4589_vm6, %v5372_v59 }
 0xaa3   :  { %6693 = vrsqrt.f32 %v5096_v44  ;;  %vm5103_vm15 = vweird.f32 %v5096_v44  ;;  %6674 = vmatpush.msk.msrb.mxu2 %vm4589_vm6, %v5372_v59 }
 0xaa9   :  { %v6694_v30 = vpop.eup %6693 }
 0xaaa   :  { %v5098_v7 = vmul.f32 %v6694_v30, %v5096_v44  ;;  %vm5104_vm14 = vweird.f32 %v6694_v30  ;;  %v5061_v44 = vsub.f32 %v13062_v1, %v10591_v8  ;;  %v5066_v1 = vsub.f32 %v10018_v62, %v10591_v8 }
 0xaab   :  { %vm5105_vm2 = vmor %vm5103_vm15, %vm5104_vm14  ;;  %v5072_v62 = vsub.f32 %v10103_v60, %v10591_v8  ;;  %v5079_v60 = vsub.f32 %v10204_v51, %v10591_v8 }
 0xaac   :  { %v5099_v27 = vmul.f32 %v6694_v30, %v5098_v7  ;;  %v5048_v7 = vsub.f32 %v13075_v52, %v10591_v8  ;;  %v5054_v52 = vsub.f32 %v13069_v39, %v10591_v8  ;;  %v5060_v39 = vsub.f32 %v13063_v29, %v10591_v8 }
 0xaad   :  { %v5064_v29 = vsub.f32 %v9991_v13, %v10591_v8  ;;  %v5070_v13 = vsub.f32 %v10076_v15, %v10591_v8  ;;  %v5077_v15 = vsub.f32 %v10174_v41, %v10591_v8 }
 0xaae   :  { %v5100_v58 = vmul.f32 0.5, %v5099_v27 }
 0xab0   :  { %v5101_v49 = vsub.f32 1.5, %v5100_v58 }
 0xab2   :  { %v5102_v34 = vmul.f32 %v6694_v30, %v5101_v49 }
 0xab4   :  { %v5106_v6 = vsel %vm5105_vm2, %v6694_v30, %v5102_v34  ;;  %v5067_v30 = vsub.f32 %v10033_v3, %v10591_v8  ;;  %v5073_v3 = vsub.f32 %v10117_v22, %v10591_v8  ;;  %v5080_v22 = vsub.f32 %v10476_v12, %v10591_v8 }
 0xab5   :  { %v10657_v14 = vperm.slane %v5106_v6, 0 }
 0xab7   :  { %v10686_v20 = vmul.f32 %v10657_v14, %v5045_v24  ;;  %v10689_v41 = vmul.f32 %v10657_v14, %v5046_v42  ;;  %v10692_v16 = vmul.f32 %v10657_v14, %v5047_v26  ;;  %v10695_v51 = vmul.f32 %v10657_v14, %v5048_v7 }
 0xab8   :  { %v10698_v12 = vmul.f32 %v10657_v14, %v5049_v5  ;;  %v10701_v33 = vmul.f32 %v10657_v14, %v5050_v4  ;;  %v10704_v46 = vmul.f32 %v10657_v14, %v5051_v18  ;;  %v10707_v23 = vmul.f32 %v10657_v14, %v5052_v11 }
 0xab9   :  { %v10710_v28 = vmul.f32 %v10657_v14, %v5053_v63  ;;  %v10713_v27 = vmul.f32 %v10657_v14, %v5054_v52  ;;  %v5131_v58 = vmul.f32 %v10657_v14, %v5055_v40  ;;  %v5132_v24 = vmul.f32 %v10657_v14, %v5056_v10 }
 0xaba   :  { %v5133_v42 = vmul.f32 %v10657_v14, %v5057_v47  ;;  %v5134_v26 = vmul.f32 %v10657_v14, %v5058_v0  ;;  %v5135_v7 = vmul.f32 %v10657_v14, %v5059_v48  ;;  %v5136_v5 = vmul.f32 %v10657_v14, %v5060_v39 }
 0xabb   :  { %v5137_v4 = vmul.f32 %v10657_v14, %v5061_v44  ;;  %v5138_v49 = vmul.f32 %v10657_v14, %v5062_v57  ;;  %v5139_v18 = vmul.f32 %v10657_v14, %v5063_v19  ;;  %v5140_v11 = vmul.f32 %v10657_v14, %v5064_v29 }
 0xabc   :  { %v5141_v63 = vmul.f32 %v10657_v14, %v5065_v43  ;;  %v5142_v52 = vmul.f32 %v10657_v14, %v5066_v1  ;;  %v5143_v40 = vmul.f32 %v10657_v14, %v5067_v30  ;;  %v5144_v10 = vmul.f32 %v10657_v14, %v5068_v21  ;;  %v13077_v43 = vld [vmem:[#allocation37_spill] sm:$0xff]  ;;  %v13078_v30 = vld [vmem:[#allocation38_spill] sm:$0xff] }
 0xabd   :  { %v5145_v34 = vmul.f32 %v10657_v14, %v5069_v17  ;;  %v5146_v47 = vmul.f32 %v10657_v14, %v5070_v13  ;;  %v5147_v0 = vmul.f32 %v10657_v14, %v5071_v56  ;;  %v5148_v48 = vmul.f32 %v10657_v14, %v5072_v62  ;;  %v13079_v17 = vld [vmem:[#allocation39_spill] sm:$0xff] }
 0xabe   :  { %v5149_v39 = vmul.f32 %v10657_v14, %v5073_v3  ;;  %v5150_v59 = vmul.f32 %v10657_v14, %v5074_v35  ;;  %v5151_v44 = vmul.f32 %v10657_v14, %v5075_v38  ;;  %v5152_v57 = vmul.f32 %v10657_v14, %v5076_v45  ;;  %v10750_v62 = vld [vmem:[%s12743_s6] ss:$0 sm:$0xff]  ;;  %v13080_v3 = vld [vmem:[#allocation40_spill] sm:$0xff]  ;;  %v13081_v38 = vld [vmem:[#allocation41_spill] sm:$0xff] }
 0xabf   :  { %v5153_v6 = vmul.f32 %v10657_v14, %v5077_v15  ;;  %v5154_v19 = vmul.f32 %v10657_v14, %v5078_v53  ;;  %v5155_v29 = vmul.f32 %v10657_v14, %v5079_v60  ;;  %v5091_v1 = vsub.f32 %v13077_v43, %v10591_v8  ;;  %v13082_v60 = vld [vmem:[#allocation28_spill] sm:$0xff] }
 0xac0   :  { %v5092_v21 = vsub.f32 %v13078_v30, %v10591_v8  ;;  %v5093_v13 = vsub.f32 %v13079_v17, %v10591_v8  ;;  %v5156_v56 = vmul.f32 %v10657_v14, %v5080_v22  ;;  %v5094_v35 = vsub.f32 %v13080_v3, %v10591_v8 }
 0xac1   :  { %v5095_v45 = vsub.f32 %v13081_v38, %v10591_v8  ;;  %v5108_v15 = vmul.f32 %v10657_v14, %v5032_v9  ;;  %v5113_v53 = vmul.f32 %v10657_v14, %v5037_v55  ;;  %v5081_v22 = vsub.f32 %v13082_v60, %v10591_v8 }
 0xac2   :  { %v10767_v31 = vmul.f32 %v10657_v14, %v5089_v61  ;;  %v10770_v43 = vmul.f32 %v10657_v14, %v5090_v25  ;;  %v10773_v30 = vmul.f32 %v10657_v14, %v5091_v1  ;;  %v10776_v37 = vmul.f32 %v10657_v14, %v5092_v21  ;;  %v13083_v61 = vld [vmem:[#allocation29_spill] sm:$0xff] }
 0xac3   :  { %v10779_v9 = vmul.f32 %v10657_v14, %v5093_v13  ;;  %v10782_v36 = vmul.f32 %v10657_v14, %v5094_v35  ;;  %v10785_v55 = vmul.f32 %v10657_v14, %v5095_v45  ;;  %v5082_v17 = vsub.f32 %v13083_v61, %v10591_v8  ;;  %v13089_v61 = vld [vmem:[#allocation3_spill] sm:$0xff] }
 0xac4   :  { %v5109_v25 = vmul.f32 %v10657_v14, %v5033_v54  ;;  %v5114_v1 = vmul.f32 %v10657_v14, %v5038_v50  ;;  %v5157_v21 = vmul.f32 %v10657_v14, %v5081_v22  ;;  %v5176_v13 = vmul.f32 %v10750_v62, %v5108_v15 }
 0xac5   :  { %v5181_v3 = vmul.f32 %v10750_v62, %v5113_v53  ;;  %v10801_v35 = vmul.f32 %v10750_v62, %v5131_v58  ;;  %v10804_v38 = vmul.f32 %v10750_v62, %v5132_v24  ;;  %v10807_v32 = vmul.f32 %v10750_v62, %v5133_v42 }
 0xac6   :  { %v10810_v54 = vmul.f32 %v10750_v62, %v5134_v26  ;;  %v10813_v2 = vmul.f32 %v10750_v62, %v5135_v7  ;;  %v10816_v50 = vmul.f32 %v10750_v62, %v5136_v5  ;;  %v10819_v45 = vmul.f32 %v10750_v62, %v5137_v4  ;;  %v10833_v26 = vld [vmem:[%s12744_s7] ss:$0 sm:$0xff] }
 0xac7   :  { %v10822_v58 = vmul.f32 %v10750_v62, %v5138_v49  ;;  %v10825_v24 = vmul.f32 %v10750_v62, %v5139_v18  ;;  %v10828_v42 = vmul.f32 %v10750_v62, %v5140_v11  ;;  %v10836_v7 = vmul.f32 %v10750_v62, %v5141_v63 }
 0xac8   :  { %v10839_v5 = vmul.f32 %v10750_v62, %v5142_v52  ;;  %v10842_v4 = vmul.f32 %v10750_v62, %v5143_v40  ;;  %v10845_v49 = vmul.f32 %v10750_v62, %v5144_v10  ;;  %v10848_v18 = vmul.f32 %v10750_v62, %v5145_v34 }
 0xac9   :  { %v10851_v11 = vmul.f32 %v10750_v62, %v5146_v47  ;;  %v10854_v15 = vmul.f32 %v10750_v62, %v5147_v0  ;;  %v10857_v63 = vmul.f32 %v10750_v62, %v5148_v48  ;;  %v10860_v52 = vmul.f32 %v10750_v62, %v5149_v39 }
 0xaca   :  { %v10863_v40 = vmul.f32 %v10750_v62, %v5150_v59  ;;  %v10866_v10 = vmul.f32 %v10750_v62, %v5151_v44  ;;  %v10869_v34 = vmul.f32 %v10750_v62, %v5152_v57  ;;  %v10872_v47 = vmul.f32 %v10750_v62, %v5153_v6 }
 0xacb   :  { %v10875_v0 = vmul.f32 %v10750_v62, %v5154_v19  ;;  %v10878_v48 = vmul.f32 %v10750_v62, %v5155_v29  ;;  %v10881_v39 = vmul.f32 %v10750_v62, %v5156_v56  ;;  %v5158_v59 = vmul.f32 %v10657_v14, %v5082_v17 }
 0xacc   :  { %13084 = vst [vmem:[#allocation27_spill] sm:$0xff] %v10869_v34  ;;  %v5225_v44 = vmul.f32 %v10750_v62, %v5157_v21  ;;  %v5244_v53 = vadd.f32 %v10833_v26, %v5176_v13  ;;  %v5249_v57 = vadd.f32 %v10833_v26, %v5181_v3  ;;  %v5177_v6 = vmul.f32 %v10750_v62, %v5109_v25  ;;  %v13091_v25 = vld [vmem:[#allocation30_spill] sm:$0xff] }
 0xacd   :  { %13085 = vst [vmem:[#allocation26_spill] sm:$0xff] %v10872_v47  ;;  %v5182_v29 = vmul.f32 %v10750_v62, %v5114_v1  ;;  %v5034_v56 = vsub.f32 %v13089_v61, %v10591_v8  ;;  %v5226_v21 = vmul.f32 %v10750_v62, %v5158_v59  ;;  %v5083_v13 = vsub.f32 %v13091_v25, %v10591_v8  ;;  %v13094_v61 = vld [vmem:[#allocation7_spill] sm:$0xff] }
 0xace   :  { %13086 = vst [vmem:[#allocation25_spill] sm:$0xff] %v10875_v0  ;;  %v5293_v60 = vadd.f32 %v10833_v26, %v5225_v44  ;;  %v5308_v19 = vmax.f32 %v5244_v53, 0.0  ;;  %v5313_v22 = vmax.f32 %v5249_v57, 0.0  ;;  %v5245_v44 = vadd.f32 %v10833_v26, %v5177_v6  ;;  %v13092_v57 = vld [vmem:[#allocation4_spill] sm:$0xff] }
 0xacf   :  { %13087 = vst [vmem:[#allocation24_spill] sm:$0xff] %v10878_v48  ;;  %v5110_v3 = vmul.f32 %v10657_v14, %v5034_v56  ;;  %v5159_v53 = vmul.f32 %v10657_v14, %v5083_v13  ;;  %v5294_v59 = vadd.f32 %v10833_v26, %v5226_v21  ;;  %v5040_v56 = vsub.f32 %v13094_v61, %v10591_v8  ;;  %v13095_v13 = vld [vmem:[#allocation17_spill] sm:$0xff] }
 0xad0   :  { %13088 = vst [vmem:[#allocation23_spill] sm:$0xff] %v10881_v39  ;;  %v13090_v39 = vld [vmem:[#allocation6_spill] sm:$0xff]  ;;  %v5357_v48 = vmax.f32 %v5293_v60, 0.0  ;;  %6609 = vmatmul.msk.f32.vlgmr.msra.gmra.mxu0 %vm1073_vm1, %v5308_v19  ;;  %6614 = vmatmul.msk.f32.vlgmr.msra.gmra.mxu1 %vm1073_vm1, %v5313_v22  ;;  %v5035_v60 = vsub.f32 %v13092_v57, %v10591_v8  ;;  %v13093_v19 = vld [vmem:[#allocation5_spill] sm:$0xff]  ;;  %v5309_v6 = vmax.f32 %v5245_v44, 0.0  ;;  %v5041_v0 = vsub.f32 %v13095_v13, %v10591_v8  ;;  %v13096_v57 = vld [vmem:[#allocation31_spill] sm:$0xff] }
 0xad1   :  { %v5039_v17 = vsub.f32 %v13090_v39, %v10591_v8  ;;  %v5250_v39 = vadd.f32 %v10833_v26, %v5182_v29  ;;  %v5036_v22 = vsub.f32 %v13093_v19, %v10591_v8  ;;  %v5084_v21 = vsub.f32 %v13096_v57, %v10591_v8  ;;  %v13097_v19 = vld [vmem:[#allocation32_spill] sm:$0xff] }
 0xad2   :  { %6658 = vmatmul.msk.f32.vlgmr.msrb.gmra.mxu2 %vm1073_vm1, %v5357_v48  ;;  %v5111_v48 = vmul.f32 %v10657_v14, %v5035_v60  ;;  %v5227_v47 = vmul.f32 %v10750_v62, %v5159_v53  ;;  %v5085_v34 = vsub.f32 %v13097_v19, %v10591_v8  ;;  %v5233_v53 = vmul.f32 %v10750_v62, %v10767_v31 }
 0xad3   :  { %v5115_v1 = vmul.f32 %v10657_v14, %v5039_v17  ;;  %v5178_v17 = vmul.f32 %v10750_v62, %v5110_v3  ;;  %v5314_v25 = vmax.f32 %v5250_v39, 0.0  ;;  %v5112_v61 = vmul.f32 %v10657_v14, %v5036_v22 }
 0xad4   :  { %v5116_v3 = vmul.f32 %v10657_v14, %v5040_v56  ;;  %v5189_v39 = vmul.f32 %v10750_v62, %v10686_v20  ;;  %v5190_v60 = vmul.f32 %v10750_v62, %v10689_v41  ;;  %v5160_v22 = vmul.f32 %v10657_v14, %v5084_v21 }
 0xad5   :  { %v5183_v29 = vmul.f32 %v10750_v62, %v5115_v1  ;;  %v5358_v1 = vmax.f32 %v5294_v59, 0.0  ;;  %v5246_v44 = vadd.f32 %v10833_v26, %v5178_v17  ;;  %v5179_v56 = vmul.f32 %v10750_v62, %v5111_v48 }
 0xad6   :  { %v5234_v59 = vmul.f32 %v10750_v62, %v10770_v43  ;;  %v5295_v17 = vadd.f32 %v10833_v26, %v5227_v47  ;;  %v10941_v20 = vadd.f32 %v10833_v26, %v5189_v39  ;;  %v10944_v31 = vadd.f32 %v10833_v26, %v5233_v53 }
 0xad7   :  { %v10947_v41 = vadd.f32 %v10833_v26, %v5190_v60  ;;  %v5235_v43 = vmul.f32 %v10750_v62, %v10773_v30  ;;  %v5192_v47 = vmul.f32 %v10750_v62, %v10695_v51  ;;  %v5310_v13 = vmax.f32 %v5246_v44, 0.0 }
 0xad8   :  { %6610 = vmatmul.msk.f32.gmra.mxu0 %vm1073_vm1, %v5309_v6  ;;  %6615 = vmatmul.msk.f32.gmra.mxu1 %vm1073_vm1, %v5314_v25  ;;  %v5251_v6 = vadd.f32 %v10833_v26, %v5183_v29  ;;  %v10950_v48 = vadd.f32 %v10833_v26, %v5234_v59  ;;  %v5191_v25 = vmul.f32 %v10750_v62, %v10692_v16  ;;  %v5359_v44 = vmax.f32 %v5295_v17, 0.0 }
 0xad9   :  { %v5117_v29 = vmul.f32 %v10657_v14, %v5041_v0  ;;  %v5184_v57 = vmul.f32 %v10750_v62, %v5116_v3  ;;  %v5236_v21 = vmul.f32 %v10750_v62, %v10776_v37  ;;  %v10966_v16 = vadd.f32 %v10833_v26, %v5235_v43 }
 0xada   :  { %6659 = vmatmul.msk.f32.gmra.mxu2 %vm1073_vm1, %v5358_v1  ;;  %v5315_v19 = vmax.f32 %v5251_v6, 0.0  ;;  %v10963_v1 = vadd.f32 %v10833_v26, %v5191_v25  ;;  %v10969_v30 = vadd.f32 %v10833_v26, %v5192_v47  ;;  %v5193_v0 = vmul.f32 %v10750_v62, %v10698_v12 }
 0xadb   :  { %v10972_v51 = vadd.f32 %v10833_v26, %v5236_v21  ;;  %v5237_v3 = vmul.f32 %v10750_v62, %v10779_v9  ;;  %v5194_v37 = vmul.f32 %v10750_v62, %v10701_v33  ;;  %v5247_v39 = vadd.f32 %v10833_v26, %v5179_v56 }
 0xadc   :  { %v5228_v53 = vmul.f32 %v10750_v62, %v5160_v22  ;;  %v5238_v60 = vmul.f32 %v10750_v62, %v10782_v36  ;;  %v5252_v12 = vadd.f32 %v10833_v26, %v5184_v57  ;;  %v10988_v6 = vadd.f32 %v10833_v26, %v5193_v0 }
 0xadd   :  { %v10991_v9 = vadd.f32 %v10833_v26, %v5237_v3  ;;  %v10994_v33 = vadd.f32 %v10833_v26, %v5194_v37  ;;  %v5195_v22 = vmul.f32 %v10750_v62, %v10704_v46  ;;  %v5239_v36 = vmul.f32 %v10750_v62, %v10785_v55  ;;  %v13098_v3 = vld [vmem:[#allocation19_spill] sm:$0xff] }
 0xade   :  { %v10998_v56 = vadd.f32 %v10833_v26, %v5238_v60  ;;  %v5196_v59 = vmul.f32 %v10750_v62, %v10707_v23  ;;  %v5161_v17 = vmul.f32 %v10657_v14, %v5085_v34  ;;  %v5180_v25 = vmul.f32 %v10750_v62, %v5112_v61 }
 0xadf   :  { %v5197_v43 = vmul.f32 %v10750_v62, %v10710_v28  ;;  %v5296_v47 = vadd.f32 %v10833_v26, %v5228_v53  ;;  %v11015_v46 = vadd.f32 %v10833_v26, %v5239_v36  ;;  %v5198_v34 = vmul.f32 %v10750_v62, %v10713_v27 }
 0xae0   :  { %6611 = vmatmul.msk.f32.gmra.mxu0 %vm1073_vm1, %v5310_v13  ;;  %6616 = vmatmul.msk.f32.gmra.mxu1 %vm1073_vm1, %v5315_v19  ;;  %v11012_v13 = vadd.f32 %v10833_v26, %v5195_v22  ;;  %v11018_v55 = vadd.f32 %v10833_v26, %v5196_v59  ;;  %v11027_v28 = vadd.f32 %v10833_v26, %v10801_v35  ;;  %v5311_v57 = vmax.f32 %v5247_v39, 0.0  ;;  %v13099_v39 = vld [vmem:[#allocation33_spill] sm:$0xff] }
 0xae1   :  { %v11021_v23 = vadd.f32 %v10833_v26, %v5197_v43  ;;  %v11031_v61 = vadd.f32 %v10833_v26, %v10804_v38  ;;  %v5316_v21 = vmax.f32 %v5252_v12, 0.0  ;;  %v5185_v19 = vmul.f32 %v10750_v62, %v5117_v29 }
 0xae2   :  { %6660 = vmatmul.msk.f32.gmra.mxu2 %vm1073_vm1, %v5359_v44  ;;  %v11036_v0 = vadd.f32 %v10833_v26, %v10807_v32  ;;  %v5042_v37 = vsub.f32 %v13098_v3, %v10591_v8  ;;  %v5229_v27 = vmul.f32 %v10750_v62, %v5161_v17  ;;  %v11042_v35 = vadd.f32 %v10833_v26, %v5198_v34  ;;  %v13100_v34 = vld [vmem:[#allocation8_spill] sm:$0xff] }
 0xae3   :  { %v5360_v38 = vmax.f32 %v5296_v47, 0.0  ;;  %v11048_v29 = vadd.f32 %v10833_v26, %v10810_v54  ;;  %v11052_v32 = vadd.f32 %v10833_v26, %v10813_v2  ;;  %v11056_v44 = vadd.f32 %v10833_v26, %v10816_v50 }
 0xae4   :  { %v5086_v53 = vsub.f32 %v13099_v39, %v10591_v8  ;;  %v11062_v60 = vadd.f32 %v10833_v26, %v10819_v45  ;;  %v11066_v12 = vadd.f32 %v10833_v26, %v10822_v58  ;;  %v11070_v54 = vadd.f32 %v10833_v26, %v10825_v24  ;;  %v13104_v39 = vld [vmem:[#allocation24_spill] sm:$0xff] }
 0xae5   :  { %v5118_v2 = vmul.f32 %v10657_v14, %v5042_v37  ;;  %v5248_v50 = vadd.f32 %v10833_v26, %v5180_v25  ;;  %v5253_v22 = vadd.f32 %v10833_v26, %v5185_v19  ;;  %v11078_v45 = vadd.f32 %v10833_v26, %v10828_v42  ;;  %v13101_v19 = vld [vmem:[#allocation27_spill] sm:$0xff]  ;;  %v13102_v37 = vld [vmem:[#allocation26_spill] sm:$0xff] }
 0xae6   :  { %v5162_v36 = vmul.f32 %v10657_v14, %v5086_v53  ;;  %v11083_v58 = vadd.f32 %v10833_v26, %v10836_v7  ;;  %v5297_v24 = vadd.f32 %v10833_v26, %v5229_v27  ;;  %v11088_v59 = vadd.f32 %v10833_v26, %v10839_v5  ;;  %v13103_v27 = vld [vmem:[#allocation25_spill] sm:$0xff]  ;;  %v13105_v53 = vld [vmem:[#allocation34_spill] sm:$0xff] }
 0xae7   :  { %v11092_v17 = vadd.f32 %v10833_v26, %v10842_v4  ;;  %v11096_v42 = vadd.f32 %v10833_v26, %v10845_v49  ;;  %v11100_v25 = vadd.f32 %v10833_v26, %v10848_v18  ;;  %v11104_v7 = vadd.f32 %v10833_v26, %v10851_v11 }
 0xae8   :  { %6612 = vmatmul.msk.f32.gmra.mxu0 %vm1073_vm1, %v5311_v57  ;;  %6617 = vmatmul.msk.f32.gmra.mxu1 %vm1073_vm1, %v5316_v21  ;;  %v11108_v5 = vadd.f32 %v10833_v26, %v10854_v15  ;;  %v5312_v43 = vmax.f32 %v5248_v50, 0.0  ;;  %v5317_v47 = vmax.f32 %v5253_v22, 0.0  ;;  %v5186_v4 = vmul.f32 %v10750_v62, %v5118_v2  ;;  %v13106_v22 = vld [vmem:[#allocation23_spill] sm:$0xff] }
 0xae9   :  { %v11113_v49 = vadd.f32 %v10833_v26, %v10857_v63  ;;  %v5043_v18 = vsub.f32 %v13100_v34, %v10591_v8  ;;  %v5230_v57 = vmul.f32 %v10750_v62, %v5162_v36  ;;  %v11120_v11 = vadd.f32 %v10833_v26, %v10860_v52 }
 0xaea   :  { %6661 = vmatmul.msk.f32.gmra.mxu2 %vm1073_vm1, %v5360_v38  ;;  %v5361_v15 = vmax.f32 %v5297_v24, 0.0  ;;  %v11126_v21 = vadd.f32 %v10833_v26, %v10863_v40  ;;  %v11130_v63 = vadd.f32 %v10833_v26, %v10866_v10  ;;  %v11134_v3 = vadd.f32 %v10833_v26, %v13101_v19  ;;  %v13107_v19 = vld [vmem:[#allocation9_spill] sm:$0xff] }
 0xaeb   :  { %v11138_v52 = vadd.f32 %v10833_v26, %v13102_v37  ;;  %v11142_v38 = vadd.f32 %v10833_v26, %v13103_v27  ;;  %v11146_v40 = vadd.f32 %v10833_v26, %v13104_v39  ;;  %v5087_v10 = vsub.f32 %v13105_v53, %v10591_v8 }
 0xaec   :  { %v5119_v2 = vmul.f32 %v10657_v14, %v5043_v18  ;;  %v5254_v50 = vadd.f32 %v10833_v26, %v5186_v4  ;;  %v11155_v36 = vadd.f32 %v10833_v26, %v13106_v22  ;;  %v5044_v37 = vsub.f32 %v13107_v19, %v10591_v8  ;;  %v13108_v4 = vld [vmem:[#allocation35_spill] sm:$0xff] }
 0xaed   :  { %v5163_v24 = vmul.f32 %v10657_v14, %v5087_v10  ;;  %v5088_v27 = vsub.f32 %v13108_v4, %v10591_v8  ;;  %v5365_v19 = vmax.f32 %v10944_v31, 0.0  ;;  %v5324_v31 = vmax.f32 %v10969_v30, 0.0 }
 0xaee   :  { %v5187_v34 = vmul.f32 %v10750_v62, %v5119_v2  ;;  %v5120_v39 = vmul.f32 %v10657_v14, %v5044_v37  ;;  %v5323_v37 = vmax.f32 %v10963_v1, 0.0  ;;  %v5369_v1 = vmax.f32 %v10991_v9, 0.0 }
 0xaef   :  { %v5164_v53 = vmul.f32 %v10657_v14, %v5088_v27  ;;  %v5370_v30 = vmax.f32 %v10998_v56, 0.0  ;;  %v5328_v9 = vmax.f32 %v11018_v55, 0.0  ;;  %v5332_v4 = vmax.f32 %v11031_v61, 0.0 }
 0xaf0   :  { %6613 = vmatmul.msk.f32.gmra.mxu0 %vm1073_vm1, %v5312_v43  ;;  %6618 = vmatmul.msk.f32.gmra.mxu1 %vm1073_vm1, %v5317_v47  ;;  %v5298_v43 = vadd.f32 %v10833_v26, %v5230_v57  ;;  %v5318_v47 = vmax.f32 %v5254_v50, 0.0  ;;  %v5255_v57 = vadd.f32 %v10833_v26, %v5187_v34  ;;  %v5188_v50 = vmul.f32 %v10750_v62, %v5120_v39 }
 0xaf1   :  { %v5321_v34 = vmax.f32 %v10941_v20, 0.0  ;;  %v5367_v20 = vmax.f32 %v10966_v16, 0.0  ;;  %v5326_v16 = vmax.f32 %v10994_v33, 0.0  ;;  %v5329_v33 = vmax.f32 %v11021_v23, 0.0 }
 0xaf2   :  { %6662 = vmatmul.msk.f32.gmra.mxu2 %vm1073_vm1, %v5361_v15  ;;  %v5362_v18 = vmax.f32 %v5298_v43, 0.0  ;;  %v5231_v15 = vmul.f32 %v10750_v62, %v5163_v24  ;;  %v5319_v2 = vmax.f32 %v5255_v57, 0.0  ;;  %v5232_v24 = vmul.f32 %v10750_v62, %v5164_v53 }
 0xaf3   :  { %v5256_v8 = vadd.f32 %v10833_v26, %v5188_v50  ;;  %v5322_v62 = vmax.f32 %v10947_v41, 0.0  ;;  %v5368_v41 = vmax.f32 %v10972_v51, 0.0  ;;  %v5327_v51 = vmax.f32 %v11012_v13, 0.0 }
 0xaf4   :  { %v5299_v10 = vadd.f32 %v10833_v26, %v5231_v15  ;;  %v5300_v43 = vadd.f32 %v10833_v26, %v5232_v24  ;;  %v5366_v26 = vmax.f32 %v10950_v48, 0.0  ;;  %v5325_v48 = vmax.f32 %v10988_v6, 0.0 }
 0xaf5   :  { %v5371_v6 = vmax.f32 %v11015_v46, 0.0  ;;  %v5330_v13 = vmax.f32 %v11042_v35, 0.0  ;;  %v5331_v46 = vmax.f32 %v11027_v28, 0.0  ;;  %v5333_v27 = vmax.f32 %v11036_v0, 0.0 }
 0xaf6   :  { %v5363_v22 = vmax.f32 %v5299_v10, 0.0  ;;  %v5364_v14 = vmax.f32 %v5300_v43, 0.0  ;;  %v5334_v39 = vmax.f32 %v11048_v29, 0.0  ;;  %v5335_v57 = vmax.f32 %v11052_v32, 0.0 }
 0xaf7   :  { %v5336_v53 = vmax.f32 %v11056_v44, 0.0  ;;  %v5337_v29 = vmax.f32 %v11062_v60, 0.0  ;;  %v5338_v32 = vmax.f32 %v11066_v12, 0.0  ;;  %v5339_v44 = vmax.f32 %v11070_v54, 0.0 }
 0xaf8   :  { %6619 = vmatmul.msk.f32.gmra.mxu1 %vm1073_vm1, %v5318_v47  ;;  %v5320_v47 = vmax.f32 %v5256_v8, 0.0  ;;  %v5340_v12 = vmax.f32 %v11078_v45, 0.0  ;;  %v5341_v43 = vmax.f32 %v11083_v58, 0.0 }
 0xafa   :  { %6663 = vmatmul.msk.f32.gmra.mxu2 %vm1073_vm1, %v5362_v18 }
 0xb00   :  { %6620 = vmatmul.msk.f32.gmra.mxu1 %vm1073_vm1, %v5319_v2 }
 0xb02   :  { %6664 = vmatmul.msk.f32.gmra.mxu2 %vm1073_vm1, %v5363_v22 }
 0xb08   :  { %6621 = vmatmul.msk.f32.gmra.mxu1 %vm1073_vm1, %v5320_v47 }
 0xb0a   :  { %6665 = vmatmul.msk.f32.gmra.mxu2 %vm1073_vm1, %v5364_v14  ;;  %v5342_v14 = vmax.f32 %v11088_v59, 0.0  ;;  %v5344_v59 = vmax.f32 %v11096_v42, 0.0 }
 0xb10   :  { %6622 = vmatmul.msk.f32.gmra.mxu1 %vm1073_vm1, %v5321_v34  ;;  %v5343_v34 = vmax.f32 %v11092_v17, 0.0 }
 0xb12   :  { %6666 = vmatmul.msk.f32.gmra.mxu2 %vm1073_vm1, %v5365_v19 }
 0xb18   :  { %6623 = vmatmul.msk.f32.gmra.mxu1 %vm1073_vm1, %v5322_v62 }
 0xb1a   :  { %6667 = vmatmul.msk.f32.gmra.mxu2 %vm1073_vm1, %v5366_v26  ;;  %v5345_v26 = vmax.f32 %v11100_v25, 0.0 }
 0xb20   :  { %6624 = vmatmul.msk.f32.gmra.mxu1 %vm1073_vm1, %v5323_v37 }
 0xb22   :  { %6668 = vmatmul.msk.f32.gmra.mxu2 %vm1073_vm1, %v5367_v20  ;;  %v5346_v20 = vmax.f32 %v11104_v7, 0.0 }
 0xb28   :  { %6625 = vmatmul.msk.f32.gmra.mxu1 %vm1073_vm1, %v5324_v31  ;;  %v5347_v31 = vmax.f32 %v11108_v5, 0.0 }
 0xb2a   :  { %6669 = vmatmul.msk.f32.gmra.mxu2 %vm1073_vm1, %v5368_v41  ;;  %v5348_v41 = vmax.f32 %v11113_v49, 0.0 }
 0xb30   :  { %6626 = vmatmul.msk.f32.gmra.mxu1 %vm1073_vm1, %v5325_v48  ;;  %v5349_v48 = vmax.f32 %v11120_v11, 0.0 }
 0xb32   :  { %6670 = vmatmul.msk.f32.gmra.mxu2 %vm1073_vm1, %v5369_v1  ;;  %v5350_v1 = vmax.f32 %v11126_v21, 0.0 }
 0xb38   :  { %6627 = vmatmul.msk.f32.gmra.mxu1 %vm1073_vm1, %v5326_v16  ;;  %v5351_v16 = vmax.f32 %v11130_v63, 0.0 }
 0xb3a   :  { %6671 = vmatmul.msk.f32.gmra.mxu2 %vm1073_vm1, %v5370_v30  ;;  %v5352_v30 = vmax.f32 %v11134_v3, 0.0 }
 0xb40   :  { %6628 = vmatmul.msk.f32.gmra.mxu1 %vm1073_vm1, %v5327_v51  ;;  %v5353_v51 = vmax.f32 %v11138_v52, 0.0  ;;  %v5356_v52 = vmax.f32 %v11155_v36, 0.0 }
 0xb42   :  { %6672 = vmatmul.msk.f32.gmra.mxu2 %vm1073_vm1, %v5371_v6  ;;  %v5354_v6 = vmax.f32 %v11142_v38, 0.0 }
 0xb48   :  { %6629 = vmatmul.msk.f32.gmra.mxu1 %vm1073_vm1, %v5328_v9  ;;  %v5355_v9 = vmax.f32 %v11146_v40, 0.0  ;;  %v13111_v40 = vmov 1.0  }
 0xb4d   :  { %v11209_v18 = vpop.f32.mrf.mxu1  ;;  %v11241_v0 = vpop.f32.mrf.mxu0 }
 0xb50   :  { %6630 = vmatmul.msk.f32.gmra.mxu1 %vm1073_vm1, %v5329_v33 }
 0xb55   :  { %v11213_v56 = vpop.f32.mrf.mxu1  ;;  %v11247_v2 = vpop.f32.mrf.mxu0 }
 0xb56   :  { %v11359_v33 = vpop.f32.mrf.mxu2 }
 0xb57   :  { %13112 = vst [vmem:[#allocation20_spill] sm:$0xff] %v11359_v33 }
 0xb58   :  { %6631 = vmatmul.msk.f32.gmra.mxu1 %vm1073_vm1, %v5330_v13 }
 0xb5d   :  { %v11217_v15 = vpop.f32.mrf.mxu1  ;;  %v11257_v24 = vpop.f32.mrf.mxu0 }
 0xb5e   :  { %v11368_v13 = vpop.f32.mrf.mxu2 }
 0xb5f   :  { %13113 = vst [vmem:[#allocation18_spill] sm:$0xff] %v11368_v13 }
 0xb60   :  { %6632 = vmatmul.msk.f32.gmra.mxu1 %vm1073_vm1, %v5331_v46 }
 0xb65   :  { %v11221_v55 = vpop.f32.mrf.mxu1  ;;  %v11269_v54 = vpop.f32.mrf.mxu0 }
 0xb68   :  { %6633 = vmatmul.msk.f32.gmra.mxu1 %vm1073_vm1, %v5332_v4  ;;  %v11375_v4 = vpop.f32.mrf.mxu2 }
 0xb69   :  { %13114 = vst [vmem:[#allocation16_spill] sm:$0xff] %v11375_v4 }
 0xb6d   :  { %v11225_v23 = vpop.f32.mrf.mxu1  ;;  %v11280_v45 = vpop.f32.mrf.mxu0 }
 0xb70   :  { %6634 = vmatmul.msk.f32.gmra.mxu1 %vm1073_vm1, %v5333_v27 }
 0xb75   :  { %v11229_v35 = vpop.f32.mrf.mxu1 }
 0xb78   :  { %6635 = vmatmul.msk.f32.gmra.mxu1 %vm1073_vm1, %v5334_v39 }
 0xb7d   :  { %v11233_v28 = vpop.f32.mrf.mxu1 }
 0xb80   :  { %6636 = vmatmul.msk.f32.gmra.mxu1 %vm1073_vm1, %v5335_v57  ;;  %v11381_v57 = vpop.f32.mrf.mxu2 }
 0xb81   :  { %13115 = vst [vmem:[#allocation15_spill] sm:$0xff] %v11381_v57 }
 0xb85   :  { %v11237_v61 = vpop.f32.mrf.mxu1 }
 0xb88   :  { %6637 = vmatmul.msk.f32.gmra.mxu1 %vm1073_vm1, %v5336_v53 }
 0xb8d   :  { %v11243_v10 = vpop.f32.mrf.mxu1 }
 0xb90   :  { %6638 = vmatmul.msk.f32.gmra.mxu1 %vm1073_vm1, %v5337_v29  ;;  %v11385_v29 = vpop.f32.mrf.mxu2 }
 0xb91   :  { %13116 = vst [vmem:[#allocation14_spill] sm:$0xff] %v11385_v29 }
 0xb95   :  { %v11249_v50 = vpop.f32.mrf.mxu1 }
 0xb96   :  { %13109 = vst [vmem:[#allocation22_spill] sm:$0xff] %v11249_v50 }
 0xb98   :  { %6639 = vmatmul.msk.f32.gmra.mxu1 %vm1073_vm1, %v5338_v32 }
 0xb9d   :  { %v11253_v22 = vpop.f32.mrf.mxu1 }
 0xb9e   :  { %13110 = vst [vmem:[#allocation21_spill] sm:$0xff] %v11253_v22  ;;  %5777 = vmatpush.msrb.mxu1 %v11253_v22 }
 0xba0   :  { %6640 = vmatmul.msk.f32.gmra.mxu1 %vm1073_vm1, %v5339_v44  ;;  %v11389_v44 = vpop.f32.mrf.mxu2 }
 0xba1   :  { %5778 = vmatpush.msrb.mxu1 %v11249_v50  ;;  %13117 = vst [vmem:[#allocation13_spill] sm:$0xff] %v11389_v44 }
 0xba3   :  { %5779 = vmatpush.msrb.mxu1 %v11243_v10 }
 0xba5   :  { %5780 = vmatpush.msrb.mxu1 %v11237_v61  ;;  %v11263_v60 = vpop.f32.mrf.mxu1 }
 0xba7   :  { %5781 = vmatpush.msrb.mxu1 %v11233_v28 }
 0xba8   :  { %6641 = vmatmul.msk.f32.gmra.mxu1 %vm1073_vm1, %v5340_v12 }
 0xba9   :  { %5782 = vmatpush.msrb.mxu1 %v11229_v35 }
 0xbab   :  { %5783 = vmatpush.msrb.mxu1 %v11225_v23 }
 0xbad   :  { %5784 = vmatpush.msrb.mxu1 %v11221_v55  ;;  %v11273_v8 = vpop.f32.mrf.mxu1 }
 0xbaf   :  { %5785 = vmatpush.msrb.mxu1 %v11217_v15 }
 0xbb0   :  { %6642 = vmatmul.msk.f32.gmra.mxu1 %vm1073_vm1, %v5341_v43  ;;  %v11393_v43 = vpop.f32.mrf.mxu2 }
 0xbb1   :  { %5786 = vmatpush.msrb.mxu1 %v11213_v56  ;;  %13119 = vst [vmem:[#allocation11_spill] sm:$0xff] %v11393_v43 }
 0xbb3   :  { %5787 = vmatpush.msrb.mxu1 %v11209_v18 }
 0xbb5   :  { %5788 = vmatpush.msrb.mxu1 %v11280_v45  ;;  %v11283_v47 = vpop.f32.mrf.mxu1 }
 0xbb7   :  { %5789 = vmatpush.msrb.mxu1 %v11269_v54 }
 0xbb8   :  { %6643 = vmatmul.msk.f32.gmra.mxu1 %vm1073_vm1, %v5342_v14 }
 0xbb9   :  { %5790 = vmatpush.msrb.mxu1 %v11257_v24 }
 0xbbb   :  { %5791 = vmatpush.msrb.mxu1 %v11247_v2 }
 0xbbd   :  { %5792 = vmatpush.msrb.mxu1 %v11241_v0  ;;  %v11291_v58 = vpop.f32.mrf.mxu1 }
 0xbc0   :  { %6644 = vmatmul.msk.f32.gmra.mxu1 %vm1073_vm1, %v5343_v34 }
 0xbc5   :  { %v11295_v19 = vpop.f32.mrf.mxu1 }
 0xbc8   :  { %6645 = vmatmul.msk.f32.gmra.mxu1 %vm1073_vm1, %v5344_v59  ;;  %v11399_v59 = vpop.f32.mrf.mxu2 }
 0xbc9   :  { %13122 = vst [vmem:[#allocation37_spill] sm:$0xff] %v11399_v59 }
 0xbcd   :  { %v11299_v62 = vpop.f32.mrf.mxu1 }
 0xbd0   :  { %6646 = vmatmul.msk.f32.gmra.mxu1 %vm1073_vm1, %v5345_v26 }
 0xbd5   :  { %v11303_v37 = vpop.f32.mrf.mxu1 }
 0xbd8   :  { %6647 = vmatmul.msk.f32.gmra.mxu1 %vm1073_vm1, %v5346_v20  ;;  %v11403_v20 = vpop.f32.mrf.mxu2 }
 0xbd9   :  { %13124 = vst [vmem:[#allocation39_spill] sm:$0xff] %v11403_v20 }
 0xbdd   :  { %v11307_v17 = vpop.f32.mrf.mxu1 }
 0xbe0   :  { %6648 = vmatmul.msk.f32.gmra.mxu1 %vm1073_vm1, %v5347_v31 }
 0xbe5   :  { %v11311_v42 = vpop.f32.mrf.mxu1 }
 0xbe8   :  { %6649 = vmatmul.msk.f32.gmra.mxu1 %vm1073_vm1, %v5348_v41  ;;  %v11407_v41 = vpop.f32.mrf.mxu2 }
 0xbe9   :  { %13126 = vst [vmem:[#allocation41_spill] sm:$0xff] %v11407_v41 }
 0xbed   :  { %v11315_v25 = vpop.f32.mrf.mxu1 }
 0xbf0   :  { %6650 = vmatmul.msk.f32.gmra.mxu1 %vm1073_vm1, %v5349_v48 }
 0xbf5   :  { %v11319_v7 = vpop.f32.mrf.mxu1 }
 0xbf8   :  { %6651 = vmatmul.msk.f32.gmra.mxu1 %vm1073_vm1, %v5350_v1  ;;  %v11411_v1 = vpop.f32.mrf.mxu2 }
 0xbf9   :  { %13128 = vst [vmem:[#allocation29_spill] sm:$0xff] %v11411_v1 }
 0xbfd   :  { %v11323_v5 = vpop.f32.mrf.mxu1 }
 0xc00   :  { %6652 = vmatmul.msk.f32.gmra.mxu1 %vm1073_vm1, %v5351_v16 }
 0xc05   :  { %v11327_v49 = vpop.f32.mrf.mxu1 }
 0xc08   :  { %6653 = vmatmul.msk.f32.gmra.mxu1 %vm1073_vm1, %v5352_v30 }
 0xc0d   :  { %v11331_v11 = vpop.f32.mrf.mxu1 }
 0xc10   :  { %6654 = vmatmul.msk.f32.gmra.mxu1 %vm1073_vm1, %v5353_v51  ;;  %v11417_v51 = vpop.f32.mrf.mxu2 }
 0xc11   :  { %13131 = vst [vmem:[#allocation30_spill] sm:$0xff] %v11417_v51 }
 0xc15   :  { %v11335_v21 = vpop.f32.mrf.mxu1 }
 0xc18   :  { %6655 = vmatmul.msk.f32.gmra.mxu1 %vm1073_vm1, %v5354_v6  ;;  %v11424_v6 = vpop.f32.mrf.mxu2 }
 0xc19   :  { %13132 = vst [vmem:[#allocation4_spill] sm:$0xff] %v11424_v6 }
 0xc1d   :  { %v11339_v63 = vpop.f32.mrf.mxu1 }
 0xc1e   :  { %5797 = vmatpush.msra.mxu2 %v11339_v63 }
 0xc20   :  { %6656 = vmatmul.msk.f32.gmra.mxu1 %vm1073_vm1, %v5355_v9  ;;  %5798 = vmatpush.msra.mxu2 %v11335_v21  ;;  %v11431_v9 = vpop.f32.mrf.mxu2 }
 0xc21   :  { %13133 = vst [vmem:[#allocation5_spill] sm:$0xff] %v11431_v9 }
 0xc22   :  { %5799 = vmatpush.msra.mxu2 %v11331_v11 }
 0xc24   :  { %5800 = vmatpush.msra.mxu2 %v11327_v49 }
 0xc25   :  { %v11347_v3 = vpop.f32.mrf.mxu1 }
 0xc26   :  { %5801 = vmatpush.msra.mxu2 %v11323_v5 }
 0xc28   :  { %6657 = vmatmul.msk.f32.gmra.mxu1 %vm1073_vm1, %v5356_v52  ;;  %5802 = vmatpush.msra.mxu2 %v11319_v7  ;;  %v11438_v52 = vpop.f32.mrf.mxu2 }
 0xc2a   :  { %5803 = vmatpush.msra.mxu2 %v11315_v25 }
 0xc2c   :  { %5804 = vmatpush.msra.mxu2 %v11311_v42 }
 0xc2d   :  { %v11355_v38 = vpop.f32.mrf.mxu1 }
 0xc2e   :  { %5805 = vmatpush.msra.mxu2 %v11307_v17 }
 0xc30   :  { %5793 = vmatmul.f32.vlgmr.msrb.gmra.mxu1 %v13111_v40  ;;  %5806 = vmatpush.msra.mxu2 %v11303_v37 }
 0xc32   :  { %5807 = vmatpush.msra.mxu2 %v11299_v62 }
 0xc34   :  { %5808 = vmatpush.msra.mxu2 %v11295_v19 }
 0xc35   :  { %v11364_v36 = vpop.f32.mrf.mxu1 }
 0xc36   :  { %5809 = vmatpush.msra.mxu2 %v11291_v58 }
 0xc38   :  { %5810 = vmatpush.msra.mxu2 %v11283_v47 }
 0xc3a   :  { %5811 = vmatpush.msra.mxu2 %v11273_v8 }
 0xc3c   :  { %5812 = vmatpush.msra.mxu2 %v11263_v60 }
 0xc3d   :  { %v11372_v46 = vpop.f32.mrf.mxu1  ;;  %5813 = vmatmul.f32.vlgmr.msra.gmra.mxu2 %v13111_v40 }
 0xc45   :  { %v11377_v27 = vpop.f32.mrf.mxu1 }
 0xc4d   :  { %v11379_v39 = vpop.f32.mrf.mxu1 }
 0xc55   :  { %v11383_v53 = vpop.f32.mrf.mxu1 }
 0xc5d   :  { %v11387_v32 = vpop.f32.mrf.mxu1 }
 0xc65   :  { %v11391_v12 = vpop.f32.mrf.mxu1 }
 0xc66   :  { %13118 = vst [vmem:[#allocation12_spill] sm:$0xff] %v11391_v12 }
 0xc6d   :  { %v11395_v14 = vpop.f32.mrf.mxu1 }
 0xc6e   :  { %13120 = vst [vmem:[#allocation10_spill] sm:$0xff] %v11395_v14 }
 0xc75   :  { %v11397_v34 = vpop.f32.mrf.mxu1 }
 0xc76   :  { %13121 = vst [vmem:[#allocation36_spill] sm:$0xff] %v11397_v34 }
 0xc7d   :  { %v11401_v26 = vpop.f32.mrf.mxu1 }
 0xc7e   :  { %13123 = vst [vmem:[#allocation38_spill] sm:$0xff] %v11401_v26 }
 0xc85   :  { %v11405_v31 = vpop.f32.mrf.mxu1 }
 0xc86   :  { %13125 = vst [vmem:[#allocation40_spill] sm:$0xff] %v11405_v31 }
 0xc8d   :  { %v11409_v48 = vpop.f32.mrf.mxu1 }
 0xc8e   :  { %13127 = vst [vmem:[#allocation28_spill] sm:$0xff] %v11409_v48 }
 0xc95   :  { %v11413_v16 = vpop.f32.mrf.mxu1 }
 0xc96   :  { %13129 = vst [vmem:[#allocation3_spill] sm:$0xff] %v11413_v16 }
 0xc9d   :  { %v11415_v30 = vpop.f32.mrf.mxu1 }
 0xc9e   :  { %13130 = vst [vmem:[#allocation6_spill] sm:$0xff] %v11415_v30  ;;  %5817 = vmatpush.msrb.mxu2 %v11415_v30 }
 0xca0   :  { %5818 = vmatpush.msrb.mxu2 %v11413_v16 }
 0xca2   :  { %5819 = vmatpush.msrb.mxu2 %v11409_v48 }
 0xca4   :  { %5820 = vmatpush.msrb.mxu2 %v11405_v31 }
 0xca6   :  { %5821 = vmatpush.msrb.mxu2 %v11401_v26 }
 0xca8   :  { %5822 = vmatpush.msrb.mxu2 %v11397_v34 }
 0xcaa   :  { %5823 = vmatpush.msrb.mxu2 %v11395_v14 }
 0xcac   :  { %5824 = vmatpush.msrb.mxu2 %v11391_v12 }
 0xcae   :  { %5825 = vmatpush.msrb.mxu2 %v11387_v32 }
 0xcb0   :  { %5826 = vmatpush.msrb.mxu2 %v11383_v53 }
 0xcb2   :  { %5827 = vmatpush.msrb.mxu2 %v11379_v39 }
 0xcb4   :  { %5828 = vmatpush.msrb.mxu2 %v11377_v27 }
 0xcb6   :  { %5829 = vmatpush.msrb.mxu2 %v11372_v46 }
 0xcb8   :  { %5830 = vmatpush.msrb.mxu2 %v11364_v36 }
 0xcba   :  { %5831 = vmatpush.msrb.mxu2 %v11355_v38 }
 0xcbc   :  { %5832 = vmatpush.msrb.mxu2 %v11347_v3 }
 0xcbd   :  { %5833 = vmatmul.f32.vlgmr.msrb.gmra.mxu2 %v13111_v40 }
 0xcbe   :  { %5837 = vmatpush.msra.mxu2 %v11438_v52 }
 0xcc0   :  { %5838 = vmatpush.msra.mxu2 %v11431_v9 }
 0xcc2   :  { %5839 = vmatpush.msra.mxu2 %v11424_v6 }
 0xcc4   :  { %5840 = vmatpush.msra.mxu2 %v11417_v51 }
 0xcc6   :  { %5841 = vmatpush.msra.mxu2 %v11411_v1  ;;  %v11457_v1 = vpop.f32.mrf.mxu1 }
 0xcc7   :  { %13134 = vst [vmem:[#allocation7_spill] sm:$0xff] %v11457_v1 }
 0xcc8   :  { %5842 = vmatpush.msra.mxu2 %v11407_v41 }
 0xcca   :  { %5843 = vmatpush.msra.mxu2 %v11403_v20  ;;  %v5872_v20 = vmul.f32 %v11253_v22, %v11253_v22  ;;  %v5868_v22 = vmul.f32 %v11233_v28, %v11233_v28 }
 0xccc   :  { %5844 = vmatpush.msra.mxu2 %v11399_v59 }
 0xcce   :  { %5845 = vmatpush.msra.mxu2 %v11393_v43 }
 0xcd0   :  { %5846 = vmatpush.msra.mxu2 %v11389_v44 }
 0xcd2   :  { %5847 = vmatpush.msra.mxu2 %v11385_v29  ;;  %v5871_v29 = vmul.f32 %v11249_v50, %v11249_v50  ;;  %v5888_v50 = vmul.f32 %v11339_v63, %v11339_v63 }
 0xcd4   :  { %5848 = vmatpush.msra.mxu2 %v11381_v57 }
 0xcd6   :  { %5849 = vmatpush.msra.mxu2 %v11375_v4  ;;  %v5870_v4 = vmul.f32 %v11243_v10, %v11243_v10 }
 0xcd8   :  { %5850 = vmatpush.msra.mxu2 %v11368_v13 }
 0xcda   :  { %5851 = vmatpush.msra.mxu2 %v11359_v33  ;;  %v5869_v33 = vmul.f32 %v11237_v61, %v11237_v61 }
 0xcdc   :  { %5852 = vmatpush.msra.mxu2 %v11457_v1  ;;  %v5867_v1 = vmul.f32 %v11229_v35, %v11229_v35 }
 0xcdd   :  { %5853 = vmatmul.f32.vlgmr.msra.gmra.mxu2 %v13111_v40 }
 0xcde   :  { %5921 = vmatpush.msrb.mxu2 %v5872_v20  ;;  %v5866_v20 = vmul.f32 %v11225_v23, %v11225_v23 }
 0xce0   :  { %5922 = vmatpush.msrb.mxu2 %v5871_v29  ;;  %v5865_v29 = vmul.f32 %v11221_v55, %v11221_v55 }
 0xce2   :  { %5923 = vmatpush.msrb.mxu2 %v5870_v4  ;;  %v5864_v4 = vmul.f32 %v11217_v15, %v11217_v15 }
 0xce4   :  { %5924 = vmatpush.msrb.mxu2 %v5869_v33  ;;  %v5863_v33 = vmul.f32 %v11213_v56, %v11213_v56 }
 0xce6   :  { %5925 = vmatpush.msrb.mxu2 %v5868_v22  ;;  %v5862_v22 = vmul.f32 %v11209_v18, %v11209_v18 }
 0xce8   :  { %5926 = vmatpush.msrb.mxu2 %v5867_v1  ;;  %v5861_v1 = vmul.f32 %v11280_v45, %v11280_v45 }
 0xcea   :  { %5927 = vmatpush.msrb.mxu2 %v5866_v20  ;;  %v5860_v20 = vmul.f32 %v11269_v54, %v11269_v54 }
 0xcec   :  { %5928 = vmatpush.msrb.mxu2 %v5865_v29  ;;  %v5859_v29 = vmul.f32 %v11257_v24, %v11257_v24 }
 0xcee   :  { %5929 = vmatpush.msrb.mxu2 %v5864_v4  ;;  %v5858_v4 = vmul.f32 %v11247_v2, %v11247_v2 }
 0xcf0   :  { %5930 = vmatpush.msrb.mxu2 %v5863_v33  ;;  %v5857_v33 = vmul.f32 %v11241_v0, %v11241_v0 }
 0xcf2   :  { %5931 = vmatpush.msrb.mxu2 %v5862_v22  ;;  %v5887_v22 = vmul.f32 %v11335_v21, %v11335_v21 }
 0xcf4   :  { %5932 = vmatpush.msrb.mxu2 %v5861_v1  ;;  %v5886_v1 = vmul.f32 %v11331_v11, %v11331_v11 }
 0xcf6   :  { %5933 = vmatpush.msrb.mxu2 %v5860_v20  ;;  %v5885_v20 = vmul.f32 %v11327_v49, %v11327_v49 }
 0xcf8   :  { %5934 = vmatpush.msrb.mxu2 %v5859_v29  ;;  %v5884_v29 = vmul.f32 %v11323_v5, %v11323_v5 }
 0xcfa   :  { %5935 = vmatpush.msrb.mxu2 %v5858_v4  ;;  %v5883_v4 = vmul.f32 %v11319_v7, %v11319_v7 }
 0xcfc   :  { %5936 = vmatpush.msrb.mxu2 %v5857_v33  ;;  %v5881_v33 = vmul.f32 %v11311_v42, %v11311_v42 }
 0xcfd   :  { %5937 = vmatmul.f32.vlgmr.msrb.gmra.mxu2 %v13111_v40 }
 0xcfe   :  { %5941 = vmatpush.msra.mxu2 %v5888_v50  ;;  %v5882_v50 = vmul.f32 %v11315_v25, %v11315_v25 }
 0xd00   :  { %5942 = vmatpush.msra.mxu2 %v5887_v22  ;;  %v5880_v22 = vmul.f32 %v11307_v17, %v11307_v17 }
 0xd02   :  { %5943 = vmatpush.msra.mxu2 %v5886_v1  ;;  %v5879_v1 = vmul.f32 %v11303_v37, %v11303_v37 }
 0xd04   :  { %5944 = vmatpush.msra.mxu2 %v5885_v20  ;;  %v5878_v20 = vmul.f32 %v11299_v62, %v11299_v62 }
 0xd06   :  { %5945 = vmatpush.msra.mxu2 %v5884_v29  ;;  %v5877_v29 = vmul.f32 %v11295_v19, %v11295_v19 }
 0xd08   :  { %5946 = vmatpush.msra.mxu2 %v5883_v4  ;;  %v5876_v4 = vmul.f32 %v11291_v58, %v11291_v58 }
 0xd0a   :  { %5947 = vmatpush.msra.mxu2 %v5882_v50  ;;  %v5875_v50 = vmul.f32 %v11283_v47, %v11283_v47 }
 0xd0c   :  { %5948 = vmatpush.msra.mxu2 %v5881_v33  ;;  %v5874_v33 = vmul.f32 %v11273_v8, %v11273_v8 }
 0xd0e   :  { %5949 = vmatpush.msra.mxu2 %v5880_v22  ;;  %v5873_v22 = vmul.f32 %v11263_v60, %v11263_v60 }
 0xd10   :  { %5950 = vmatpush.msra.mxu2 %v5879_v1  ;;  %v5904_v1 = vmul.f32 %v11415_v30, %v11415_v30 }
 0xd12   :  { %5951 = vmatpush.msra.mxu2 %v5878_v20  ;;  %v5903_v20 = vmul.f32 %v11413_v16, %v11413_v16 }
 0xd14   :  { %5952 = vmatpush.msra.mxu2 %v5877_v29  ;;  %v5902_v29 = vmul.f32 %v11409_v48, %v11409_v48 }
 0xd16   :  { %5953 = vmatpush.msra.mxu2 %v5876_v4  ;;  %v5901_v4 = vmul.f32 %v11405_v31, %v11405_v31 }
 0xd18   :  { %5954 = vmatpush.msra.mxu2 %v5875_v50  ;;  %v5900_v50 = vmul.f32 %v11401_v26, %v11401_v26 }
 0xd1a   :  { %5955 = vmatpush.msra.mxu2 %v5874_v33  ;;  %v5899_v33 = vmul.f32 %v11397_v34, %v11397_v34 }
 0xd1c   :  { %5956 = vmatpush.msra.mxu2 %v5873_v22  ;;  %v5898_v22 = vmul.f32 %v11395_v14, %v11395_v14 }
 0xd1d   :  { %5957 = vmatmul.f32.vlgmr.msra.gmra.mxu2 %v13111_v40 }
 0xd1e   :  { %5961 = vmatpush.msrb.mxu2 %v5904_v1  ;;  %v5897_v1 = vmul.f32 %v11391_v12, %v11391_v12 }
 0xd20   :  { %5962 = vmatpush.msrb.mxu2 %v5903_v20  ;;  %v5896_v20 = vmul.f32 %v11387_v32, %v11387_v32 }
 0xd22   :  { %5963 = vmatpush.msrb.mxu2 %v5902_v29  ;;  %v5895_v29 = vmul.f32 %v11383_v53, %v11383_v53 }
 0xd24   :  { %5964 = vmatpush.msrb.mxu2 %v5901_v4  ;;  %v5894_v4 = vmul.f32 %v11379_v39, %v11379_v39 }
 0xd26   :  { %5965 = vmatpush.msrb.mxu2 %v5900_v50  ;;  %v5893_v50 = vmul.f32 %v11377_v27, %v11377_v27 }
 0xd28   :  { %5966 = vmatpush.msrb.mxu2 %v5899_v33  ;;  %v5892_v33 = vmul.f32 %v11372_v46, %v11372_v46 }
 0xd2a   :  { %5967 = vmatpush.msrb.mxu2 %v5898_v22  ;;  %v5891_v22 = vmul.f32 %v11364_v36, %v11364_v36 }
 0xd2c   :  { %5968 = vmatpush.msrb.mxu2 %v5897_v1  ;;  %v5890_v1 = vmul.f32 %v11355_v38, %v11355_v38 }
 0xd2e   :  { %5969 = vmatpush.msrb.mxu2 %v5896_v20  ;;  %v5889_v20 = vmul.f32 %v11347_v3, %v11347_v3 }
 0xd30   :  { %5970 = vmatpush.msrb.mxu2 %v5895_v29  ;;  %v5920_v29 = vmul.f32 %v11438_v52, %v11438_v52 }
 0xd32   :  { %5971 = vmatpush.msrb.mxu2 %v5894_v4  ;;  %v5919_v4 = vmul.f32 %v11431_v9, %v11431_v9  ;;  %v13136_v9 = vld [vmem:[#allocation39_spill] sm:$0xff] }
 0xd34   :  { %5972 = vmatpush.msrb.mxu2 %v5893_v50  ;;  %v5918_v50 = vmul.f32 %v11424_v6, %v11424_v6  ;;  %v5913_v6 = vmul.f32 %v11399_v59, %v11399_v59 }
 0xd36   :  { %5973 = vmatpush.msrb.mxu2 %v5892_v33  ;;  %v5917_v33 = vmul.f32 %v11417_v51, %v11417_v51 }
 0xd38   :  { %5974 = vmatpush.msrb.mxu2 %v5891_v22  ;;  %v13135_v22 = vld [vmem:[#allocation29_spill] sm:$0xff] }
 0xd3a   :  { %5975 = vmatpush.msrb.mxu2 %v5890_v1  ;;  %v5916_v1 = vmul.f32 %v13135_v22, %v13135_v22 }
 0xd3c   :  { %5976 = vmatpush.msrb.mxu2 %v5889_v20  ;;  %v5915_v20 = vmul.f32 %v11407_v41, %v11407_v41 }
 0xd3d   :  { %5977 = vmatmul.f32.vlgmr.msrb.gmra.mxu2 %v13111_v40 }
 0xd3e   :  { %5981 = vmatpush.msra.mxu2 %v5920_v29  ;;  %v5914_v29 = vmul.f32 %v13136_v9, %v13136_v9 }
 0xd40   :  { %5982 = vmatpush.msra.mxu2 %v5919_v4  ;;  %v5912_v4 = vmul.f32 %v11393_v43, %v11393_v43 }
 0xd42   :  { %5983 = vmatpush.msra.mxu2 %v5918_v50  ;;  %v5911_v50 = vmul.f32 %v11389_v44, %v11389_v44  ;;  %v5794_v44 = vpop.f32.mrf.mxu1 }
 0xd44   :  { %5984 = vmatpush.msra.mxu2 %v5917_v33  ;;  %v13137_v33 = vld [vmem:[#allocation14_spill] sm:$0xff] }
 0xd45   :  { %v5910_v51 = vmul.f32 %v13137_v33, %v13137_v33 }
 0xd46   :  { %5985 = vmatpush.msra.mxu2 %v5916_v1  ;;  %v5909_v1 = vmul.f32 %v11381_v57, %v11381_v57 }
 0xd48   :  { %5986 = vmatpush.msra.mxu2 %v5915_v20  ;;  %v13138_v20 = vld [vmem:[#allocation16_spill] sm:$0xff] }
 0xd49   :  { %v5908_v22 = vmul.f32 %v13138_v20, %v13138_v20 }
 0xd4a   :  { %5987 = vmatpush.msra.mxu2 %v5914_v29  ;;  %v5907_v29 = vmul.f32 %v11368_v13, %v11368_v13 }
 0xd4c   :  { %5988 = vmatpush.msra.mxu2 %v5913_v6  ;;  %v13139_v6 = vld [vmem:[#allocation20_spill] sm:$0xff] }
 0xd4d   :  { %v5906_v41 = vmul.f32 %v13139_v6, %v13139_v6 }
 0xd4e   :  { %5989 = vmatpush.msra.mxu2 %v5912_v4  ;;  %v13140_v4 = vld [vmem:[#allocation7_spill] sm:$0xff] }
 0xd4f   :  { %v5905_v9 = vmul.f32 %v13140_v4, %v13140_v4 }
 0xd50   :  { %5990 = vmatpush.msra.mxu2 %v5911_v50 }
 0xd52   :  { %5991 = vmatpush.msra.mxu2 %v5910_v51  ;;  %v5814_v51 = vpop.f32.mrf.mxu2 }
 0xd53   :  { %v5815_v33 = vadd.f32 %v5814_v51, %v5794_v44  ;;  %v13165_v51 = vld [vmem:[#allocation4_spill] sm:$0xff] }
 0xd54   :  { %5992 = vmatpush.msra.mxu2 %v5909_v1 }
 0xd56   :  { %5993 = vmatpush.msra.mxu2 %v5908_v22 }
 0xd58   :  { %5994 = vmatpush.msra.mxu2 %v5907_v29 }
 0xd5a   :  { %5995 = vmatpush.msra.mxu2 %v5906_v41  ;;  %v5834_v50 = vpop.f32.mrf.mxu2 }
 0xd5b   :  { %v5835_v22 = vadd.f32 %v5834_v50, %v5815_v33  ;;  %v13146_v50 = vld [vmem:[#allocation36_spill] sm:$0xff] }
 0xd5c   :  { %5996 = vmatpush.msra.mxu2 %v5905_v9 }
 0xd5d   :  { %5997 = vmatmul.f32.vlgmr.msra.gmra.mxu2 %v13111_v40 }
 0xd62   :  { %v5854_v59 = vpop.f32.mrf.mxu2 }
 0xd63   :  { %v5855_v20 = vadd.f32 %v5854_v59, %v5835_v22  ;;  %v13145_v22 = vld [vmem:[#allocation10_spill] sm:$0xff] }
 0xd65   :  { %v6001_v6 = vmul.f32 0.001953125, %v5855_v20 }
 0xd67   :  { %v6003_v4 = vmul.f32 %v6001_v6, %v6001_v6  ;;  %v11593_v59 = vperm.slane %v6001_v6, 0 }
 0xd69   :  { %v13167_v6 = vsub.f32 %v11241_v0, %v11593_v59  ;;  %v13168_v33 = vsub.f32 %v11247_v2, %v11593_v59  ;;  %v13171_v0 = vsub.f32 %v11280_v45, %v11593_v59  ;;  %v13172_v2 = vsub.f32 %v11209_v18, %v11593_v59 }
 0xd6a   :  { %v13175_v45 = vsub.f32 %v11221_v55, %v11593_v59  ;;  %v13176_v18 = vsub.f32 %v11225_v23, %v11593_v59 }
 0xd80   :  { %v5938_v43 = vpop.f32.mrf.mxu2 }
 0xda0   :  { %v5958_v1 = vpop.f32.mrf.mxu2 }
 0xda1   :  { %v5959_v13 = vadd.f32 %v5958_v1, %v5938_v43  ;;  %v13141_v1 = vld [vmem:[#allocation22_spill] sm:$0xff] }
 0xdc0   :  { %v5978_v57 = vpop.f32.mrf.mxu2 }
 0xdc1   :  { %v5979_v29 = vadd.f32 %v5978_v57, %v5959_v13  ;;  %v6070_v57 = vsub.f32 %v11438_v52, %v11593_v59  ;;  %v13169_v52 = vsub.f32 %v11257_v24, %v11593_v59  ;;  %v13173_v24 = vsub.f32 %v11213_v56, %v11593_v59 }
 0xdc2   :  { %v13177_v56 = vsub.f32 %v11229_v35, %v11593_v59 }
 0xde0   :  { %v5998_v30 = vpop.f32.mrf.mxu2 }
 0xde1   :  { %v5999_v16 = vadd.f32 %v5998_v30, %v5979_v29  ;;  %v13142_v29 = vld [vmem:[#allocation21_spill] sm:$0xff] }
 0xde3   :  { %v6002_v41 = vmul.f32 0.001953125, %v5999_v16  ;;  %v13163_v16 = vld [vmem:[#allocation29_spill] sm:$0xff] }
 0xde5   :  { %v6004_v9 = vsub.f32 %v6002_v41, %v6003_v4  ;;  %v13144_v41 = vld [vmem:[#allocation12_spill] sm:$0xff]  ;;  %v13166_v4 = vld [vmem:[#allocation5_spill] sm:$0xff] }
 0xde7   :  { %v6005_v48 = vmax.f32 %v6004_v9, 0.0  ;;  %v11635_v9 = vld [vmem:[%s12746_s8] ss:$0 sm:$0xff] }
 0xde8   :  { %13143 = vst [vmem:[#allocation17_spill] sm:$0xff] %v11635_v9 }
 0xde9   :  { %v6071_v40 = vadd.f32 1e-05, %v6005_v48 }
 0xdeb   :  { %6695 = vrsqrt.f32 %v6071_v40  ;;  %vm6078_vm3 = vweird.f32 %v6071_v40 }
 0xdf1   :  { %v6696_v31 = vpop.eup %6695 }
 0xdf2   :  { %v6073_v26 = vmul.f32 %v6696_v31, %v6071_v40  ;;  %vm6079_vm1 = vweird.f32 %v6696_v31  ;;  %v13147_v40 = vld [vmem:[#allocation38_spill] sm:$0xff] }
 0xdf3   :  { %vm6080_vm4 = vmor %vm6078_vm3, %vm6079_vm1 }
 0xdf4   :  { %v6074_v34 = vmul.f32 %v6696_v31, %v6073_v26 }
 0xdf6   :  { %v6075_v14 = vmul.f32 0.5, %v6074_v34  ;;  %v13160_v34 = vld [vmem:[#allocation37_spill] sm:$0xff] }
 0xdf8   :  { %v6076_v12 = vsub.f32 1.5, %v6075_v14 }
 0xdfa   :  { %v6077_v44 = vmul.f32 %v6696_v31, %v6076_v12  ;;  %v13161_v12 = vld [vmem:[#allocation39_spill] sm:$0xff] }
 0xdfc   :  { %v6081_v43 = vsel %vm6080_vm4, %v6696_v31, %v6077_v44  ;;  %v13170_v31 = vsub.f32 %v11269_v54, %v11593_v59  ;;  %v13174_v54 = vsub.f32 %v11217_v15, %v11593_v59 }
 0xdfd   :  { %v11595_v13 = vperm.slane %v6081_v43, 0  ;;  %v13149_v43 = vld [vmem:[#allocation28_spill] sm:$0xff] }
 0xdff   :  { %v6146_v48 = vmul.f32 %v11595_v13, %v6070_v57  ;;  %v13150_v57 = vld [vmem:[#allocation3_spill] sm:$0xff]  ;;  %v6083_v20 = vmul.f32 %v11595_v13, %v13167_v6  ;;  %v6084_v14 = vmul.f32 %v11595_v13, %v13168_v33  ;;  %v6085_v30 = vmul.f32 %v11595_v13, %v13169_v52 }
 0xe00   :  { %v6086_v26 = vmul.f32 %v11595_v13, %v13170_v31  ;;  %v6087_v6 = vmul.f32 %v11595_v13, %v13171_v0  ;;  %v6088_v33 = vmul.f32 %v11595_v13, %v13172_v2  ;;  %v6089_v52 = vmul.f32 %v11595_v13, %v13173_v24 }
 0xe01   :  { %v11668_v44 = vmul.f32 %v11635_v9, %v6146_v48  ;;  %v13148_v48 = vld [vmem:[#allocation40_spill] sm:$0xff]  ;;  %v13164_v9 = vld [vmem:[#allocation30_spill] sm:$0xff]  ;;  %v11766_v31 = vmul.f32 %v11595_v13, %v13174_v54  ;;  %v11772_v0 = vmul.f32 %v11595_v13, %v13175_v45  ;;  %v11778_v2 = vmul.f32 %v11595_v13, %v13176_v18 }
 0xe02   :  { %v11784_v15 = vmul.f32 %v11595_v13, %v13177_v56  ;;  %v13178_v24 = vsub.f32 %v11233_v28, %v11593_v59  ;;  %v13179_v54 = vsub.f32 %v11237_v61, %v11593_v59  ;;  %v13180_v45 = vsub.f32 %v11243_v10, %v11593_v59 }
 0xe03   :  { %v13181_v18 = vsub.f32 %v13141_v1, %v11593_v59  ;;  %v13182_v56 = vsub.f32 %v13142_v29, %v11593_v59  ;;  %v13183_v10 = vsub.f32 %v11263_v60, %v11593_v59  ;;  %v13184_v1 = vsub.f32 %v11273_v8, %v11593_v59 }
 0xe04   :  { %v11790_v55 = vmul.f32 %v11595_v13, %v13178_v24  ;;  %v11796_v23 = vmul.f32 %v11595_v13, %v13179_v54  ;;  %v11802_v35 = vmul.f32 %v11595_v13, %v13180_v45  ;;  %v11819_v24 = vld [vmem:[%s12747_s9] ss:$0 sm:$0xff]  ;;  %v13185_v29 = vsub.f32 %v11283_v47, %v11593_v59 }
 0xe05   :  { %v11808_v28 = vmul.f32 %v11595_v13, %v13181_v18  ;;  %v11814_v61 = vmul.f32 %v11595_v13, %v13182_v56  ;;  %v11825_v54 = vmul.f32 %v11595_v13, %v13183_v10  ;;  %v11831_v45 = vmul.f32 %v11595_v13, %v13184_v1 }
 0xe06   :  { %v11837_v18 = vmul.f32 %v11595_v13, %v13185_v29  ;;  %v13186_v56 = vsub.f32 %v11291_v58, %v11593_v59  ;;  %v13187_v10 = vsub.f32 %v11295_v19, %v11593_v59  ;;  %v13188_v1 = vsub.f32 %v11299_v62, %v11593_v59 }
 0xe07   :  { %v13189_v29 = vsub.f32 %v11303_v37, %v11593_v59 }
 0xe08   :  { %v11843_v60 = vmul.f32 %v11595_v13, %v13186_v56  ;;  %v11849_v8 = vmul.f32 %v11595_v13, %v13187_v10  ;;  %v11855_v47 = vmul.f32 %v11595_v13, %v13188_v1  ;;  %v13190_v56 = vsub.f32 %v11307_v17, %v11593_v59 }
 0xe09   :  { %v11861_v58 = vmul.f32 %v11595_v13, %v13189_v29  ;;  %v13191_v10 = vsub.f32 %v11311_v42, %v11593_v59  ;;  %v13192_v1 = vsub.f32 %v11315_v25, %v11593_v59  ;;  %v13193_v29 = vsub.f32 %v11319_v7, %v11593_v59 }
 0xe0a   :  { %v11867_v19 = vmul.f32 %v11595_v13, %v13190_v56  ;;  %v13194_v56 = vsub.f32 %v11323_v5, %v11593_v59 }
 0xe0b   :  { %v11873_v62 = vmul.f32 %v11595_v13, %v13191_v10  ;;  %v11879_v37 = vmul.f32 %v11595_v13, %v13192_v1  ;;  %v11885_v17 = vmul.f32 %v11595_v13, %v13193_v29  ;;  %v13195_v10 = vsub.f32 %v11327_v49, %v11593_v59 }
 0xe0c   :  { %v11891_v42 = vmul.f32 %v11595_v13, %v13194_v56  ;;  %v13196_v1 = vsub.f32 %v11331_v11, %v11593_v59  ;;  %v13197_v29 = vsub.f32 %v11335_v21, %v11593_v59  ;;  %v11913_v56 = vadd.f32 %v11819_v24, %v11668_v44 }
 0xe0d   :  { %v11897_v25 = vmul.f32 %v11595_v13, %v13195_v10  ;;  %v13199_v49 = vsub.f32 %v11339_v63, %v11593_v59  ;;  %v13200_v11 = vsub.f32 %v11347_v3, %v11593_v59  ;;  %v13201_v21 = vsub.f32 %v11355_v38, %v11593_v59 }
 0xe0e   :  { %v11903_v7 = vmul.f32 %v11595_v13, %v13196_v1  ;;  %v11909_v5 = vmul.f32 %v11595_v13, %v13197_v29  ;;  %13198 = vst [vmem:[#allocation31_spill] sm:$0xff] %v11913_v56  ;;  %v13202_v44 = vsub.f32 %v11364_v36, %v11593_v59 }
 0xe0f   :  { %v11919_v10 = vmul.f32 %v11595_v13, %v13199_v49  ;;  %v11925_v1 = vmul.f32 %v11595_v13, %v13200_v11  ;;  %v11931_v29 = vmul.f32 %v11595_v13, %v13201_v21  ;;  %v13203_v49 = vsub.f32 %v11372_v46, %v11593_v59 }
 0xe10   :  { %v11937_v63 = vmul.f32 %v11595_v13, %v13202_v44  ;;  %v13204_v11 = vsub.f32 %v11377_v27, %v11593_v59  ;;  %v13205_v21 = vsub.f32 %v11379_v39, %v11593_v59  ;;  %v13206_v44 = vsub.f32 %v11383_v53, %v11593_v59 }
 0xe11   :  { %v11943_v3 = vmul.f32 %v11595_v13, %v13203_v49  ;;  %v13207_v49 = vsub.f32 %v11387_v32, %v11593_v59 }
 0xe12   :  { %v11949_v38 = vmul.f32 %v11595_v13, %v13204_v11  ;;  %v11955_v36 = vmul.f32 %v11595_v13, %v13205_v21  ;;  %v11961_v46 = vmul.f32 %v11595_v13, %v13206_v44  ;;  %v13208_v11 = vsub.f32 %v13144_v41, %v11593_v59 }
 0xe13   :  { %v11967_v27 = vmul.f32 %v11595_v13, %v13207_v49  ;;  %v13209_v21 = vsub.f32 %v13145_v22, %v11593_v59  ;;  %v13210_v44 = vsub.f32 %v13146_v50, %v11593_v59  ;;  %v13211_v49 = vsub.f32 %v13147_v40, %v11593_v59 }
 0xe14   :  { %v11973_v39 = vmul.f32 %v11595_v13, %v13208_v11  ;;  %v13213_v11 = vsub.f32 %v13148_v48, %v11593_v59 }
 0xe15   :  { %v11979_v53 = vmul.f32 %v11595_v13, %v13209_v21  ;;  %v11985_v32 = vmul.f32 %v11595_v13, %v13210_v44  ;;  %v11991_v41 = vmul.f32 %v11595_v13, %v13211_v49  ;;  %v13215_v21 = vsub.f32 %v13149_v43, %v11593_v59  ;;  %v13219_v49 = vld [vmem:[#allocation6_spill] sm:$0xff] }
 0xe16   :  { %v11997_v22 = vmul.f32 %v11595_v13, %v13213_v11  ;;  %v13217_v44 = vsub.f32 %v13150_v57, %v11593_v59  ;;  %v13220_v56 = vsub.f32 %v13219_v49, %v11593_v59  ;;  %v13222_v11 = vld [vmem:[#allocation17_spill] sm:$0xff] }
 0xe17   :  { %13212 = vst [vmem:[#allocation32_spill] sm:$0xff] %v11991_v41  ;;  %v12003_v50 = vmul.f32 %v11595_v13, %v13215_v21  ;;  %v6152_v41 = vmul.f32 %v13222_v11, %v6084_v14  ;;  %v6153_v43 = vmul.f32 %v13222_v11, %v6085_v30  ;;  %v13223_v21 = vld [vmem:[#allocation7_spill] sm:$0xff]  ;;  %v6154_v14 = vmul.f32 %v13222_v11, %v6086_v26  ;;  %v13232_v30 = vld [vmem:[#allocation16_spill] sm:$0xff] }
 0xe18   :  { %13214 = vst [vmem:[#allocation19_spill] sm:$0xff] %v11997_v22  ;;  %v12009_v40 = vmul.f32 %v11595_v13, %v13217_v44  ;;  %v12015_v48 = vmul.f32 %v11595_v13, %v13220_v56  ;;  %v6151_v22 = vmul.f32 %v13222_v11, %v6083_v20  ;;  %v13226_v44 = vld [vmem:[#allocation20_spill] sm:$0xff]  ;;  %v13229_v56 = vld [vmem:[#allocation18_spill] sm:$0xff]  ;;  %v6155_v26 = vmul.f32 %v13222_v11, %v6087_v6 }
 0xe19   :  { %13216 = vst [vmem:[#allocation33_spill] sm:$0xff] %v12003_v50  ;;  %v13224_v50 = vsub.f32 %v13223_v21, %v11593_v59  ;;  %v13233_v21 = vsub.f32 %v13232_v30, %v11593_v59  ;;  %v6156_v6 = vmul.f32 %v13222_v11, %v6088_v33  ;;  %v6158_v33 = vmul.f32 %v13222_v11, %v11766_v31 }
 0xe1a   :  { %13218 = vst [vmem:[#allocation8_spill] sm:$0xff] %v12009_v40  ;;  %v13227_v40 = vsub.f32 %v13226_v44, %v11593_v59  ;;  %v13252_v31 = vsub.f32 %v13165_v51, %v11593_v59  ;;  %v6698_v51 = vld [vmem:[%s12739_s0 + $0x8] sm:$0xff] }
 0xe1b   :  { %13221 = vst [vmem:[#allocation27_spill] sm:$0xff] %v12015_v48  ;;  %v12024_v57 = vmul.f32 %v11595_v13, %v13224_v50  ;;  %v13230_v48 = vsub.f32 %v13229_v56, %v11593_v59  ;;  %v12043_v50 = vmul.f32 %v11595_v13, %v13233_v21 }
 0xe1c   :  { %v12030_v49 = vmul.f32 %v11595_v13, %v13227_v40 }
 0xe1d   :  { %13225 = vst [vmem:[#allocation26_spill] sm:$0xff] %v12024_v57  ;;  %v12036_v20 = vmul.f32 %v11595_v13, %v13230_v48  ;;  %v13235_v57 = vld [vmem:[#allocation15_spill] sm:$0xff] }
 0xe1e   :  { %13228 = vst [vmem:[#allocation25_spill] sm:$0xff] %v12030_v49  ;;  %v13236_v44 = vsub.f32 %v13235_v57, %v11593_v59  ;;  %v13237_v49 = vld [vmem:[#allocation14_spill] sm:$0xff] }
 0xe1f   :  { %13231 = vst [vmem:[#allocation24_spill] sm:$0xff] %v12036_v20  ;;  %v13238_v56 = vsub.f32 %v13237_v49, %v11593_v59  ;;  %v13240_v20 = vld [vmem:[#allocation13_spill] sm:$0xff]  ;;  %v13245_v49 = vsub.f32 %v13160_v34, %v11593_v59 }
 0xe20   :  { %13234 = vst [vmem:[#allocation34_spill] sm:$0xff] %v12043_v50  ;;  %v12049_v40 = vmul.f32 %v11595_v13, %v13236_v44  ;;  %v13241_v30 = vsub.f32 %v13240_v20, %v11593_v59  ;;  %v13243_v50 = vld [vmem:[#allocation11_spill] sm:$0xff]  ;;  %v6219_v20 = vadd.f32 %v11819_v24, %v6151_v22  ;;  %v13248_v34 = vld [vmem:[#allocation41_spill] sm:$0xff] }
 0xe21   :  { %v12055_v48 = vmul.f32 %v11595_v13, %v13238_v56  ;;  %v13244_v57 = vsub.f32 %v13243_v50, %v11593_v59  ;;  %v12074_v56 = vmul.f32 %v11595_v13, %v13245_v49  ;;  %v13247_v50 = vsub.f32 %v13161_v12, %v11593_v59 }
 0xe22   :  { %v12062_v21 = vmul.f32 %v11595_v13, %v13241_v30  ;;  %v6220_v30 = vadd.f32 %v11819_v24, %v6152_v41  ;;  %v13249_v49 = vsub.f32 %v13248_v34, %v11593_v59  ;;  %v13250_v41 = vsub.f32 %v13163_v16, %v11593_v59 }
 0xe23   :  { %13239 = vst [vmem:[#allocation23_spill] sm:$0xff] %v12055_v48  ;;  %v12068_v44 = vmul.f32 %v11595_v13, %v13244_v57  ;;  %v6157_v48 = vmul.f32 %v13222_v11, %v6089_v52  ;;  %v12085_v57 = vmul.f32 %v11595_v13, %v13247_v50  ;;  %v6222_v52 = vadd.f32 %v11819_v24, %v6154_v14 }
 0xe24   :  { %13242 = vst [vmem:[#allocation9_spill] sm:$0xff] %v12062_v21  ;;  %v6221_v21 = vadd.f32 %v11819_v24, %v6153_v43  ;;  %v12100_v22 = vmul.f32 %v11595_v13, %v13250_v41  ;;  %v13251_v12 = vsub.f32 %v13164_v9, %v11593_v59  ;;  %v6159_v50 = vmul.f32 %v13222_v11, %v11772_v0  ;;  %v6697_v0 = vld [vmem:[%s12739_s0] sm:$0xff] }
 0xe25   :  { %13246 = vst [vmem:[#allocation35_spill] sm:$0xff] %v12074_v56  ;;  %v12091_v56 = vmul.f32 %v11595_v13, %v13249_v49  ;;  %v6223_v34 = vadd.f32 %v11819_v24, %v6155_v26  ;;  %v12115_v14 = vmul.f32 %v11595_v13, %v13252_v31  ;;  %v6160_v16 = vmul.f32 %v13222_v11, %v11778_v2  ;;  %v6699_v2 = vld [vmem:[%s12739_s0 + $0x10] sm:$0xff] }
 0xe26   :  { %v12106_v43 = vmul.f32 %v11595_v13, %v13251_v12  ;;  %v6161_v9 = vmul.f32 %v13222_v11, %v11784_v15  ;;  %v6224_v49 = vadd.f32 %v11819_v24, %v6156_v6  ;;  %v6225_v41 = vadd.f32 %v11819_v24, %v6157_v48 }
 0xe27   :  { %v6283_v26 = vadd.f32 %v6697_v0, %v6219_v20  ;;  %v6284_v12 = vadd.f32 %v6698_v51, %v6220_v30  ;;  %v6285_v31 = vadd.f32 %v6699_v2, %v6221_v21  ;;  %v13253_v15 = vsub.f32 %v13166_v4, %v11593_v59  ;;  %v6700_v30 = vld [vmem:[%s12739_s0 + $0x18] sm:$0xff] }
 0xe28   :  { %v6162_v6 = vmul.f32 %v13222_v11, %v11790_v55  ;;  %v6226_v20 = vadd.f32 %v11819_v24, %v6158_v33  ;;  %v6286_v0 = vadd.f32 %v6700_v30, %v6222_v52  ;;  %v6163_v51 = vmul.f32 %v13222_v11, %v11796_v23  ;;  %v6702_v23 = vld [vmem:[%s12739_s0 + $0x28] sm:$0xff] }
 0xe29   :  { %v12136_v48 = vmul.f32 %v11595_v13, %v13253_v15  ;;  %v6164_v21 = vmul.f32 %v13222_v11, %v11802_v35  ;;  %v6227_v59 = vadd.f32 %v11819_v24, %v6159_v50  ;;  %v6701_v13 = vld [vmem:[%s12739_s0 + $0x20] sm:$0xff]  ;;  %v6165_v55 = vmul.f32 %v13222_v11, %v11808_v28  ;;  %v6703_v35 = vld [vmem:[%s12739_s0 + $0x30] sm:$0xff] }
 0xe2a   :  { %v6287_v4 = vadd.f32 %v6701_v13, %v6223_v34  ;;  %v6228_v33 = vadd.f32 %v11819_v24, %v6160_v16  ;;  %v6229_v52 = vadd.f32 %v11819_v24, %v6161_v9  ;;  %v6288_v2 = vadd.f32 %v6702_v23, %v6224_v49  ;;  %v6704_v9 = vld [vmem:[%s12739_s0 + $0x38] sm:$0xff] }
 0xe2b   :  { %13254 = vst [vmem:[#allocation22_spill] sm:$0xff] %v12136_v48  ;;  %v6289_v50 = vadd.f32 %v6703_v35, %v6225_v41  ;;  %v6347_v15 = vmax.f32 %v6283_v26, 0.0  ;;  %v6348_v30 = vmax.f32 %v6284_v12, 0.0  ;;  %v6349_v34 = vmax.f32 %v6285_v31, 0.0  ;;  %v6705_v41 = vld [vmem:[%s12739_s0 + $0x40] sm:$0xff] }
 0xe2c   :  { %v6166_v28 = vmul.f32 %v13222_v11, %v11814_v61  ;;  %v6230_v16 = vadd.f32 %v11819_v24, %v6162_v6  ;;  %v6290_v13 = vadd.f32 %v6704_v9, %v6226_v20  ;;  %v6350_v48 = vmax.f32 %v6286_v0, 0.0 }
 0xe2d   :  { %v6167_v49 = vmul.f32 %v13222_v11, %v11825_v54  ;;  %v6231_v23 = vadd.f32 %v11819_v24, %v6163_v51  ;;  %v6291_v26 = vadd.f32 %v6705_v41, %v6227_v59  ;;  %v6351_v12 = vmax.f32 %v6287_v4, 0.0  ;;  %6411 = vst.msk [vmem:[%s12748_s10] sm:$0xff] %vm101_vm0, %v6347_v15  ;;  %v6706_v54 = vld [vmem:[%s12739_s0 + $0x48] sm:$0xff] }
 0xe2e   :  { %v6168_v61 = vmul.f32 %v13222_v11, %v11831_v45  ;;  %v6232_v31 = vadd.f32 %v11819_v24, %v6164_v21  ;;  %v6292_v6 = vadd.f32 %v6706_v54, %v6228_v33  ;;  %v6352_v20 = vmax.f32 %v6288_v2, 0.0  ;;  %6412 = vst.msk [vmem:[%s12748_s10 + $0x8] sm:$0xff] %vm101_vm0, %v6348_v30  ;;  %v6707_v45 = vld [vmem:[%s12739_s0 + $0x50] sm:$0xff] }
 0xe2f   :  { %v6169_v0 = vmul.f32 %v13222_v11, %v11837_v18  ;;  %v6233_v51 = vadd.f32 %v11819_v24, %v6165_v55  ;;  %v6293_v21 = vadd.f32 %v6707_v45, %v6229_v52  ;;  %v6353_v59 = vmax.f32 %v6289_v50, 0.0  ;;  %6413 = vst.msk [vmem:[%s12748_s10 + $0x10] sm:$0xff] %vm101_vm0, %v6349_v34  ;;  %v6708_v18 = vld [vmem:[%s12739_s0 + $0x58] sm:$0xff] }
 0xe30   :  { %v6170_v4 = vmul.f32 %v13222_v11, %v11843_v60  ;;  %v6234_v33 = vadd.f32 %v11819_v24, %v6166_v28  ;;  %v6294_v55 = vadd.f32 %v6708_v18, %v6230_v16  ;;  %v6354_v2 = vmax.f32 %v6290_v13, 0.0  ;;  %6414 = vst.msk [vmem:[%s12748_s10 + $0x18] sm:$0xff] %vm101_vm0, %v6350_v48  ;;  %v6709_v60 = vld [vmem:[%s12739_s0 + $0x60] sm:$0xff] }
 0xe31   :  { %v6171_v52 = vmul.f32 %v13222_v11, %v11849_v8  ;;  %v6235_v35 = vadd.f32 %v11819_v24, %v6167_v49  ;;  %v6295_v50 = vadd.f32 %v6709_v60, %v6231_v23  ;;  %v6355_v15 = vmax.f32 %v6291_v26, 0.0  ;;  %6415 = vst.msk [vmem:[%s12748_s10 + $0x20] sm:$0xff] %vm101_vm0, %v6351_v12  ;;  %v6710_v8 = vld [vmem:[%s12739_s0 + $0x68] sm:$0xff] }
 0xe32   :  { %v6172_v30 = vmul.f32 %v13222_v11, %v11855_v47  ;;  %v6236_v48 = vadd.f32 %v11819_v24, %v6168_v61  ;;  %v6296_v34 = vadd.f32 %v6710_v8, %v6232_v31  ;;  %v6356_v28 = vmax.f32 %v6292_v6, 0.0  ;;  %6416 = vst.msk [vmem:[%s12748_s10 + $0x28] sm:$0xff] %vm101_vm0, %v6352_v20  ;;  %v6711_v47 = vld [vmem:[%s12739_s0 + $0x70] sm:$0xff] }
 0xe33   :  { %v6173_v16 = vmul.f32 %v13222_v11, %v11861_v58  ;;  %v6237_v9 = vadd.f32 %v11819_v24, %v6169_v0  ;;  %v6297_v13 = vadd.f32 %v6711_v47, %v6233_v51  ;;  %v6357_v49 = vmax.f32 %v6293_v21, 0.0  ;;  %6417 = vst.msk [vmem:[%s12748_s10 + $0x30] sm:$0xff] %vm101_vm0, %v6353_v59  ;;  %v6712_v58 = vld [vmem:[%s12739_s0 + $0x78] sm:$0xff] }
 0xe34   :  { %v6174_v23 = vmul.f32 %v13222_v11, %v11867_v19  ;;  %v6238_v41 = vadd.f32 %v11819_v24, %v6170_v4  ;;  %v6298_v26 = vadd.f32 %v6712_v58, %v6234_v33  ;;  %v6358_v12 = vmax.f32 %v6294_v55, 0.0  ;;  %6418 = vst.msk [vmem:[%s12748_s10 + $0x38] sm:$0xff] %vm101_vm0, %v6354_v2  ;;  %v6713_v19 = vld [vmem:[%s12739_s0 + $0x80] sm:$0xff] }
 0xe35   :  { %v6175_v61 = vmul.f32 %v13222_v11, %v11873_v62  ;;  %v6239_v31 = vadd.f32 %v11819_v24, %v6171_v52  ;;  %v6299_v54 = vadd.f32 %v6713_v19, %v6235_v35  ;;  %v6359_v6 = vmax.f32 %v6295_v50, 0.0  ;;  %6419 = vst.msk [vmem:[%s12748_s10 + $0x40] sm:$0xff] %vm101_vm0, %v6355_v15  ;;  %v6714_v62 = vld [vmem:[%s12739_s0 + $0x88] sm:$0xff] }
 0xe36   :  { %v6176_v20 = vmul.f32 %v13222_v11, %v11879_v37  ;;  %v6240_v0 = vadd.f32 %v11819_v24, %v6172_v30  ;;  %v6300_v51 = vadd.f32 %v6714_v62, %v6236_v48  ;;  %v6360_v45 = vmax.f32 %v6296_v34, 0.0  ;;  %6420 = vst.msk [vmem:[%s12748_s10 + $0x48] sm:$0xff] %vm101_vm0, %v6356_v28  ;;  %v6715_v37 = vld [vmem:[%s12739_s0 + $0x90] sm:$0xff] }
 0xe37   :  { %v6177_v21 = vmul.f32 %v13222_v11, %v11885_v17  ;;  %v6241_v59 = vadd.f32 %v11819_v24, %v6173_v16  ;;  %v6301_v4 = vadd.f32 %v6715_v37, %v6237_v9  ;;  %v6361_v33 = vmax.f32 %v6297_v13, 0.0  ;;  %6421 = vst.msk [vmem:[%s12748_s10 + $0x50] sm:$0xff] %vm101_vm0, %v6357_v49  ;;  %v6716_v17 = vld [vmem:[%s12739_s0 + $0x98] sm:$0xff] }
 0xe38   :  { %v6178_v18 = vmul.f32 %v13222_v11, %v11891_v42  ;;  %v6242_v55 = vadd.f32 %v11819_v24, %v6174_v23  ;;  %v6302_v2 = vadd.f32 %v6716_v17, %v6238_v41  ;;  %v6362_v52 = vmax.f32 %v6298_v26, 0.0  ;;  %6422 = vst.msk [vmem:[%s12748_s10 + $0x58] sm:$0xff] %vm101_vm0, %v6358_v12  ;;  %v6717_v42 = vld [vmem:[%s12739_s0 + $0xa0] sm:$0xff] }
 0xe39   :  { %v6179_v35 = vmul.f32 %v13222_v11, %v11897_v25  ;;  %v6243_v60 = vadd.f32 %v11819_v24, %v6175_v61  ;;  %v6303_v50 = vadd.f32 %v6717_v42, %v6239_v31  ;;  %v6363_v15 = vmax.f32 %v6299_v54, 0.0  ;;  %6423 = vst.msk [vmem:[%s12748_s10 + $0x60] sm:$0xff] %vm101_vm0, %v6359_v6  ;;  %v6718_v25 = vld [vmem:[%s12739_s0 + $0xa8] sm:$0xff] }
 0xe3a   :  { %v6180_v30 = vmul.f32 %v13222_v11, %v11903_v7  ;;  %v6244_v48 = vadd.f32 %v11819_v24, %v6176_v20  ;;  %v6304_v8 = vadd.f32 %v6718_v25, %v6240_v0  ;;  %v6364_v34 = vmax.f32 %v6300_v51, 0.0  ;;  %6424 = vst.msk [vmem:[%s12748_s10 + $0x68] sm:$0xff] %vm101_vm0, %v6360_v45  ;;  %v6719_v7 = vld [vmem:[%s12739_s0 + $0xb0] sm:$0xff] }
 0xe3b   :  { %v6181_v28 = vmul.f32 %v13222_v11, %v11909_v5  ;;  %v6245_v16 = vadd.f32 %v11819_v24, %v6177_v21  ;;  %v6305_v9 = vadd.f32 %v6719_v7, %v6241_v59  ;;  %v6365_v47 = vmax.f32 %v6301_v4, 0.0  ;;  %6425 = vst.msk [vmem:[%s12748_s10 + $0x70] sm:$0xff] %vm101_vm0, %v6361_v33  ;;  %v6720_v5 = vld [vmem:[%s12739_s0 + $0xb8] sm:$0xff] }
 0xe3c   :  { %v6182_v13 = vmul.f32 %v13222_v11, %v11919_v10  ;;  %v6246_v49 = vadd.f32 %v11819_v24, %v6178_v18  ;;  %v6306_v23 = vadd.f32 %v6720_v5, %v6242_v55  ;;  %v6366_v41 = vmax.f32 %v6302_v2, 0.0  ;;  %6426 = vst.msk [vmem:[%s12748_s10 + $0x78] sm:$0xff] %vm101_vm0, %v6362_v52  ;;  %v6721_v10 = vld [vmem:[%s12739_s0 + $0xc0] sm:$0xff] }
 0xe3d   :  { %v6183_v58 = vmul.f32 %v13222_v11, %v11925_v1  ;;  %v6247_v26 = vadd.f32 %v11819_v24, %v6179_v35  ;;  %v6307_v12 = vadd.f32 %v6721_v10, %v6243_v60  ;;  %v6367_v61 = vmax.f32 %v6303_v50, 0.0  ;;  %6427 = vst.msk [vmem:[%s12748_s10 + $0x80] sm:$0xff] %vm101_vm0, %v6363_v15  ;;  %v6722_v1 = vld [vmem:[%s12739_s0 + $0xc8] sm:$0xff] }
 0xe3e   :  { %v6184_v31 = vmul.f32 %v13222_v11, %v11931_v29  ;;  %v6248_v19 = vadd.f32 %v11819_v24, %v6180_v30  ;;  %v6308_v54 = vadd.f32 %v6722_v1, %v6244_v48  ;;  %v6368_v6 = vmax.f32 %v6304_v8, 0.0  ;;  %6428 = vst.msk [vmem:[%s12748_s10 + $0x88] sm:$0xff] %vm101_vm0, %v6364_v34  ;;  %v6723_v29 = vld [vmem:[%s12739_s0 + $0xd0] sm:$0xff] }
 0xe3f   :  { %v6185_v20 = vmul.f32 %v13222_v11, %v11937_v63  ;;  %v6249_v0 = vadd.f32 %v11819_v24, %v6181_v28  ;;  %v6309_v62 = vadd.f32 %v6723_v29, %v6245_v16  ;;  %v6369_v51 = vmax.f32 %v6305_v9, 0.0  ;;  %6429 = vst.msk [vmem:[%s12748_s10 + $0x90] sm:$0xff] %vm101_vm0, %v6365_v47  ;;  %v6724_v63 = vld [vmem:[%s12739_s0 + $0xd8] sm:$0xff]  ;;  %v13257_v29 = vld [vmem:[#allocation33_spill] sm:$0xff] }
 0xe40   :  { %v6186_v45 = vmul.f32 %v13222_v11, %v11943_v3  ;;  %v6250_v21 = vadd.f32 %v11819_v24, %v6182_v13  ;;  %v6310_v59 = vadd.f32 %v6724_v63, %v6246_v49  ;;  %v6370_v37 = vmax.f32 %v6306_v23, 0.0  ;;  %6430 = vst.msk [vmem:[%s12748_s10 + $0x98] sm:$0xff] %vm101_vm0, %v6366_v41  ;;  %v6725_v3 = vld [vmem:[%s12739_s0 + $0xe0] sm:$0xff] }
 0xe41   :  { %v6187_v4 = vmul.f32 %v13222_v11, %v11949_v38  ;;  %v6251_v33 = vadd.f32 %v11819_v24, %v6183_v58  ;;  %v6311_v18 = vadd.f32 %v6725_v3, %v6247_v26  ;;  %v6371_v55 = vmax.f32 %v6307_v12, 0.0  ;;  %6431 = vst.msk [vmem:[%s12748_s10 + $0xa0] sm:$0xff] %vm101_vm0, %v6367_v61  ;;  %v6726_v38 = vld [vmem:[%s12739_s0 + $0xe8] sm:$0xff] }
 0xe42   :  { %v6188_v17 = vmul.f32 %v13222_v11, %v11955_v36  ;;  %v6252_v2 = vadd.f32 %v11819_v24, %v6184_v31  ;;  %v6312_v52 = vadd.f32 %v6726_v38, %v6248_v19  ;;  %v6372_v35 = vmax.f32 %v6308_v54, 0.0  ;;  %6432 = vst.msk [vmem:[%s12748_s10 + $0xa8] sm:$0xff] %vm101_vm0, %v6368_v6  ;;  %v6727_v36 = vld [vmem:[%s12739_s0 + $0xf0] sm:$0xff]  ;;  %v13255_v26 = vld [vmem:[#allocation32_spill] sm:$0xff]  ;;  %v13256_v19 = vld [vmem:[#allocation19_spill] sm:$0xff] }
 0xe43   :  { %v6189_v60 = vmul.f32 %v13222_v11, %v11961_v46  ;;  %v6253_v42 = vadd.f32 %v11819_v24, %v6185_v20  ;;  %v6313_v50 = vadd.f32 %v6727_v36, %v6249_v0  ;;  %v6373_v15 = vmax.f32 %v6309_v62, 0.0  ;;  %6433 = vst.msk [vmem:[%s12748_s10 + $0xb0] sm:$0xff] %vm101_vm0, %v6369_v51  ;;  %v6728_v46 = vld [vmem:[%s12739_s0 + $0xf8] sm:$0xff]  ;;  %v6733_v6 = vld [vmem:[%s12739_s0 + $0x120] sm:$0xff] }
 0xe44   :  { %v6190_v30 = vmul.f32 %v13222_v11, %v11967_v27  ;;  %v6254_v48 = vadd.f32 %v11819_v24, %v6186_v45  ;;  %v6314_v25 = vadd.f32 %v6728_v46, %v6250_v21  ;;  %v6374_v8 = vmax.f32 %v6310_v59, 0.0  ;;  %6434 = vst.msk [vmem:[%s12748_s10 + $0xb8] sm:$0xff] %vm101_vm0, %v6370_v37  ;;  %v6729_v27 = vld [vmem:[%s12739_s0 + $0x100] sm:$0xff]  ;;  %v6734_v45 = vld [vmem:[%s12739_s0 + $0x128] sm:$0xff]  ;;  %v6736_v38 = vld [vmem:[%s12739_s0 + $0x138] sm:$0xff] }
 0xe45   :  { %v6191_v34 = vmul.f32 %v13222_v11, %v11973_v39  ;;  %v6255_v28 = vadd.f32 %v11819_v24, %v6187_v4  ;;  %v6315_v16 = vadd.f32 %v6729_v27, %v6251_v33  ;;  %v6375_v7 = vmax.f32 %v6311_v18, 0.0  ;;  %6435 = vst.msk [vmem:[%s12748_s10 + $0xc0] sm:$0xff] %vm101_vm0, %v6371_v55  ;;  %v6730_v39 = vld [vmem:[%s12739_s0 + $0x108] sm:$0xff]  ;;  %v6735_v33 = vld [vmem:[%s12739_s0 + $0x130] sm:$0xff]  ;;  %v13259_v55 = vld [vmem:[#allocation27_spill] sm:$0xff] }
 0xe46   :  { %v6192_v9 = vmul.f32 %v13222_v11, %v11979_v53  ;;  %v6256_v47 = vadd.f32 %v11819_v24, %v6188_v17  ;;  %v6316_v13 = vadd.f32 %v6730_v39, %v6252_v2  ;;  %v6376_v49 = vmax.f32 %v6312_v52, 0.0  ;;  %6436 = vst.msk [vmem:[%s12748_s10 + $0xc8] sm:$0xff] %vm101_vm0, %v6372_v35  ;;  %v6731_v53 = vld [vmem:[%s12739_s0 + $0x110] sm:$0xff]  ;;  %v13258_v59 = vld [vmem:[#allocation8_spill] sm:$0xff] }
 0xe47   :  { %v6193_v5 = vmul.f32 %v13222_v11, %v11985_v32  ;;  %v6257_v23 = vadd.f32 %v11819_v24, %v6189_v60  ;;  %v6317_v41 = vadd.f32 %v6731_v53, %v6253_v42  ;;  %v6377_v58 = vmax.f32 %v6313_v50, 0.0  ;;  %6437 = vst.msk [vmem:[%s12748_s10 + $0xd0] sm:$0xff] %vm101_vm0, %v6373_v15  ;;  %v6732_v32 = vld [vmem:[%s12739_s0 + $0x118] sm:$0xff]  ;;  %v6737_v50 = vld [vmem:[%s12739_s0 + $0x140] sm:$0xff]  ;;  %v13262_v27 = vld [vmem:[#allocation24_spill] sm:$0xff] }
 0xe48   :  { %v6194_v10 = vmul.f32 %v13222_v11, %v13255_v26  ;;  %v6258_v12 = vadd.f32 %v11819_v24, %v6190_v30  ;;  %v6318_v61 = vadd.f32 %v6732_v32, %v6254_v48  ;;  %v6378_v31 = vmax.f32 %v6314_v25, 0.0  ;;  %6438 = vst.msk [vmem:[%s12748_s10 + $0xd8] sm:$0xff] %vm101_vm0, %v6374_v8  ;;  %v13260_v60 = vld [vmem:[#allocation26_spill] sm:$0xff]  ;;  %v13261_v48 = vld [vmem:[#allocation25_spill] sm:$0xff]  ;;  %v6738_v8 = vld [vmem:[%s12739_s0 + $0x148] sm:$0xff] }
 0xe49   :  { %v6195_v1 = vmul.f32 %v13222_v11, %v13256_v19  ;;  %v6259_v54 = vadd.f32 %v11819_v24, %v6191_v34  ;;  %v6319_v20 = vadd.f32 %v6733_v6, %v6255_v28  ;;  %v6379_v0 = vmax.f32 %v6315_v16, 0.0  ;;  %6439 = vst.msk [vmem:[%s12748_s10 + $0xe0] sm:$0xff] %vm101_vm0, %v6375_v7  ;;  %v13265_v6 = vld [vmem:[#allocation9_spill] sm:$0xff] }
 0xe4a   :  { %v6196_v62 = vmul.f32 %v13222_v11, %v13257_v29  ;;  %v6260_v51 = vadd.f32 %v11819_v24, %v6192_v9  ;;  %v6320_v21 = vadd.f32 %v6734_v45, %v6256_v47  ;;  %v6380_v63 = vmax.f32 %v6316_v13, 0.0  ;;  %6440 = vst.msk [vmem:[%s12748_s10 + $0xe8] sm:$0xff] %vm101_vm0, %v6376_v49  ;;  %v6739_v9 = vld [vmem:[%s12739_s0 + $0x150] sm:$0xff]  ;;  %v13263_v13 = vld [vmem:[#allocation34_spill] sm:$0xff] }
 0xe4b   :  { %v6197_v37 = vmul.f32 %v13222_v11, %v13258_v59  ;;  %v6261_v4 = vadd.f32 %v11819_v24, %v6193_v5  ;;  %v6321_v3 = vadd.f32 %v6735_v33, %v6257_v23  ;;  %v6381_v18 = vmax.f32 %v6317_v41, 0.0  ;;  %6441 = vst.msk [vmem:[%s12748_s10 + $0xf0] sm:$0xff] %vm101_vm0, %v6377_v58  ;;  %v6740_v23 = vld [vmem:[%s12739_s0 + $0x158] sm:$0xff]  ;;  %v6743_v29 = vld [vmem:[%s12739_s0 + $0x170] sm:$0xff] }
 0xe4c   :  { %v6198_v17 = vmul.f32 %v13222_v11, %v13259_v55  ;;  %v6262_v2 = vadd.f32 %v11819_v24, %v6194_v10  ;;  %v6322_v52 = vadd.f32 %v6736_v38, %v6258_v12  ;;  %v6382_v35 = vmax.f32 %v6318_v61, 0.0  ;;  %6442 = vst.msk [vmem:[%s12748_s10 + $0xf8] sm:$0xff] %vm101_vm0, %v6378_v31  ;;  %v6741_v10 = vld [vmem:[%s12739_s0 + $0x160] sm:$0xff]  ;;  %v6746_v38 = vld [vmem:[%s12739_s0 + $0x188] sm:$0xff] }
 0xe4d   :  { %v6199_v42 = vmul.f32 %v13222_v11, %v13260_v60  ;;  %v6263_v36 = vadd.f32 %v11819_v24, %v6195_v1  ;;  %v6323_v15 = vadd.f32 %v6737_v50, %v6259_v54  ;;  %v6383_v30 = vmax.f32 %v6319_v20, 0.0  ;;  %6443 = vst.msk [vmem:[%s12748_s10 + $0x100] sm:$0xff] %vm101_vm0, %v6379_v0  ;;  %v13264_v61 = vld [vmem:[#allocation23_spill] sm:$0xff] }
 0xe4e   :  { %v6200_v46 = vmul.f32 %v13222_v11, %v13261_v48  ;;  %v6264_v25 = vadd.f32 %v11819_v24, %v6196_v62  ;;  %v6324_v34 = vadd.f32 %v6738_v8, %v6260_v51  ;;  %v6384_v28 = vmax.f32 %v6320_v21, 0.0  ;;  %6444 = vst.msk [vmem:[%s12748_s10 + $0x108] sm:$0xff] %vm101_vm0, %v6380_v63  ;;  %v6744_v63 = vld [vmem:[%s12739_s0 + $0x178] sm:$0xff] }
 0xe4f   :  { %v6201_v16 = vmul.f32 %v13222_v11, %v13262_v27  ;;  %v6265_v7 = vadd.f32 %v11819_v24, %v6197_v37  ;;  %v6325_v47 = vadd.f32 %v6739_v9, %v6261_v4  ;;  %v6385_v39 = vmax.f32 %v6321_v3, 0.0  ;;  %6445 = vst.msk [vmem:[%s12748_s10 + $0x110] sm:$0xff] %vm101_vm0, %v6381_v18  ;;  %v13266_v4 = vld [vmem:[#allocation35_spill] sm:$0xff] }
 0xe50   :  { %v6202_v49 = vmul.f32 %v13222_v11, %v13263_v13  ;;  %v6266_v5 = vadd.f32 %v11819_v24, %v6198_v17  ;;  %v6326_v53 = vadd.f32 %v6740_v23, %v6262_v2  ;;  %v6386_v41 = vmax.f32 %v6322_v52, 0.0  ;;  %6446 = vst.msk [vmem:[%s12748_s10 + $0x118] sm:$0xff] %vm101_vm0, %v6382_v35 }
 0xe51   :  { %v6203_v58 = vmul.f32 %v13222_v11, %v12049_v40  ;;  %v6267_v26 = vadd.f32 %v11819_v24, %v6199_v42  ;;  %v6327_v12 = vadd.f32 %v6741_v10, %v6263_v36  ;;  %v6387_v32 = vmax.f32 %v6323_v15, 0.0  ;;  %6447 = vst.msk [vmem:[%s12748_s10 + $0x120] sm:$0xff] %vm101_vm0, %v6383_v30  ;;  %v6742_v40 = vld [vmem:[%s12739_s0 + $0x168] sm:$0xff] }
 0xe52   :  { %v6204_v31 = vmul.f32 %v13222_v11, %v13264_v61  ;;  %v6268_v19 = vadd.f32 %v11819_v24, %v6200_v46  ;;  %v6328_v1 = vadd.f32 %v6742_v40, %v6264_v25  ;;  %v6388_v54 = vmax.f32 %v6324_v34, 0.0  ;;  %6448 = vst.msk [vmem:[%s12748_s10 + $0x128] sm:$0xff] %vm101_vm0, %v6384_v28  ;;  %v6754_v61 = vld [vmem:[%s12739_s0 + $0x1c8] sm:$0xff] }
 0xe53   :  { %v6205_v20 = vmul.f32 %v13222_v11, %v13265_v6  ;;  %v6269_v0 = vadd.f32 %v11819_v24, %v6201_v16  ;;  %v6329_v62 = vadd.f32 %v6743_v29, %v6265_v7  ;;  %v6389_v51 = vmax.f32 %v6325_v47, 0.0  ;;  %6449 = vst.msk [vmem:[%s12748_s10 + $0x130] sm:$0xff] %vm101_vm0, %v6385_v39  ;;  %v13267_v47 = vld [vmem:[#allocation22_spill] sm:$0xff] }
 0xe54   :  { %v6206_v45 = vmul.f32 %v13222_v11, %v12068_v44  ;;  %v6270_v21 = vadd.f32 %v11819_v24, %v6202_v49  ;;  %v6330_v59 = vadd.f32 %v6744_v63, %v6266_v5  ;;  %v6390_v37 = vmax.f32 %v6326_v53, 0.0  ;;  %6450 = vst.msk [vmem:[%s12748_s10 + $0x138] sm:$0xff] %vm101_vm0, %v6386_v41  ;;  %v6745_v44 = vld [vmem:[%s12739_s0 + $0x180] sm:$0xff]  ;;  %v6752_v53 = vld [vmem:[%s12739_s0 + $0x1b8] sm:$0xff] }
 0xe55   :  { %v6207_v33 = vmul.f32 %v13222_v11, %v13266_v4  ;;  %v6271_v3 = vadd.f32 %v11819_v24, %v6203_v58  ;;  %v6331_v18 = vadd.f32 %v6745_v44, %v6267_v26  ;;  %v6391_v55 = vmax.f32 %v6327_v12, 0.0  ;;  %6451 = vst.msk [vmem:[%s12748_s10 + $0x140] sm:$0xff] %vm101_vm0, %v6387_v32  ;;  %v6753_v26 = vld [vmem:[%s12739_s0 + $0x1c0] sm:$0xff] }
 0xe56   :  { %v6208_v17 = vmul.f32 %v13222_v11, %v12085_v57  ;;  %v6272_v2 = vadd.f32 %v11819_v24, %v6204_v31  ;;  %v6332_v52 = vadd.f32 %v6746_v38, %v6268_v19  ;;  %v6392_v35 = vmax.f32 %v6328_v1, 0.0  ;;  %6452 = vst.msk [vmem:[%s12748_s10 + $0x148] sm:$0xff] %vm101_vm0, %v6388_v54  ;;  %v6747_v57 = vld [vmem:[%s12739_s0 + $0x190] sm:$0xff] }
 0xe57   :  { %v6209_v60 = vmul.f32 %v13222_v11, %v12091_v56  ;;  %v6273_v42 = vadd.f32 %v11819_v24, %v6205_v20  ;;  %v6333_v36 = vadd.f32 %v6747_v57, %v6269_v0  ;;  %v6393_v50 = vmax.f32 %v6329_v62, 0.0  ;;  %6453 = vst.msk [vmem:[%s12748_s10 + $0x150] sm:$0xff] %vm101_vm0, %v6389_v51  ;;  %v6748_v56 = vld [vmem:[%s12739_s0 + $0x198] sm:$0xff]  ;;  %v6755_v1 = vld [vmem:[%s12739_s0 + $0x1d0] sm:$0xff] }
 0xe58   :  { %v6210_v15 = vmul.f32 %v13222_v11, %v12100_v22  ;;  %v6274_v30 = vadd.f32 %v11819_v24, %v6206_v45  ;;  %v6334_v48 = vadd.f32 %v6748_v56, %v6270_v21  ;;  %v6394_v46 = vmax.f32 %v6330_v59, 0.0  ;;  %6454 = vst.msk [vmem:[%s12748_s10 + $0x158] sm:$0xff] %vm101_vm0, %v6390_v37  ;;  %v6749_v22 = vld [vmem:[%s12739_s0 + $0x1a0] sm:$0xff]  ;;  %v6756_v20 = vld [vmem:[%s12739_s0 + $0x1d8] sm:$0xff]  ;;  %v6758_v45 = vld [vmem:[%s12739_s0 + $0x1e8] sm:$0xff] }
 0xe59   :  { %v6211_v25 = vmul.f32 %v13222_v11, %v12106_v43  ;;  %v6275_v8 = vadd.f32 %v11819_v24, %v6207_v33  ;;  %v6335_v34 = vadd.f32 %v6749_v22, %v6271_v3  ;;  %v6395_v28 = vmax.f32 %v6331_v18, 0.0  ;;  %6455 = vst.msk [vmem:[%s12748_s10 + $0x160] sm:$0xff] %vm101_vm0, %v6391_v55  ;;  %v6750_v43 = vld [vmem:[%s12739_s0 + $0x1a8] sm:$0xff]  ;;  %v6759_v59 = vld [vmem:[%s12739_s0 + $0x1f0] sm:$0xff]  ;;  %v6760_v33 = vld [vmem:[%s12739_s0 + $0x1f8] sm:$0xff] }
 0xe5a   :  { %v6212_v27 = vmul.f32 %v13222_v11, %v12115_v14  ;;  %v6276_v16 = vadd.f32 %v11819_v24, %v6208_v17  ;;  %v6336_v7 = vadd.f32 %v6750_v43, %v6272_v2  ;;  %v6396_v9 = vmax.f32 %v6332_v52, 0.0  ;;  %6456 = vst.msk [vmem:[%s12748_s10 + $0x168] sm:$0xff] %vm101_vm0, %v6392_v35  ;;  %v6751_v14 = vld [vmem:[%s12739_s0 + $0x1b0] sm:$0xff]  ;;  %v13268_v3 = vld [vmem:[#allocation31_spill] sm:$0xff] }
 0xe5b   :  { %v6213_v39 = vmul.f32 %v13222_v11, %v13267_v47  ;;  %v6277_v13 = vadd.f32 %v11819_v24, %v6209_v60  ;;  %v6337_v49 = vadd.f32 %v6751_v14, %v6273_v42  ;;  %v6397_v5 = vmax.f32 %v6333_v36, 0.0  ;;  %6457 = vst.msk [vmem:[%s12748_s10 + $0x170] sm:$0xff] %vm101_vm0, %v6393_v50 }
 0xe5c   :  { %v6278_v23 = vadd.f32 %v11819_v24, %v6210_v15  ;;  %v6338_v11 = vadd.f32 %v6752_v53, %v6274_v30  ;;  %v6398_v41 = vmax.f32 %v6334_v48, 0.0  ;;  %6458 = vst.msk [vmem:[%s12748_s10 + $0x178] sm:$0xff] %vm101_vm0, %v6394_v46  ;;  %v6279_v58 = vadd.f32 %v11819_v24, %v6211_v25 }
 0xe5d   :  { %v6339_v10 = vadd.f32 %v6753_v26, %v6275_v8  ;;  %v6399_v12 = vmax.f32 %v6335_v34, 0.0  ;;  %6459 = vst.msk [vmem:[%s12748_s10 + $0x180] sm:$0xff] %vm101_vm0, %v6395_v28  ;;  %v6280_v32 = vadd.f32 %v11819_v24, %v6212_v27  ;;  %v6340_v31 = vadd.f32 %v6754_v61, %v6276_v16 }
 0xe5e   :  { %v6400_v19 = vmax.f32 %v6336_v7, 0.0  ;;  %6460 = vst.msk [vmem:[%s12748_s10 + $0x188] sm:$0xff] %vm101_vm0, %v6396_v9  ;;  %v6281_v40 = vadd.f32 %v11819_v24, %v6213_v39  ;;  %v6341_v54 = vadd.f32 %v6755_v1, %v6277_v13  ;;  %v6401_v6 = vmax.f32 %v6337_v49, 0.0  ;;  %v6757_v24 = vld [vmem:[%s12739_s0 + $0x1e0] sm:$0xff] }
 0xe5f   :  { %6461 = vst.msk [vmem:[%s12748_s10 + $0x190] sm:$0xff] %vm101_vm0, %v6397_v5  ;;  %v6342_v0 = vadd.f32 %v6756_v20, %v6278_v23  ;;  %v6402_v29 = vmax.f32 %v6338_v11, 0.0  ;;  %v6343_v62 = vadd.f32 %v6757_v24, %v6279_v58  ;;  %v6403_v51 = vmax.f32 %v6339_v10, 0.0 }
 0xe60   :  { %6462 = vst.msk [vmem:[%s12748_s10 + $0x198] sm:$0xff] %vm101_vm0, %v6398_v41  ;;  %v6344_v21 = vadd.f32 %v6758_v45, %v6280_v32  ;;  %v6404_v63 = vmax.f32 %v6340_v31, 0.0  ;;  %v6345_v37 = vadd.f32 %v6759_v59, %v6281_v40  ;;  %v6405_v4 = vmax.f32 %v6341_v54, 0.0 }
 0xe61   :  { %6463 = vst.msk [vmem:[%s12748_s10 + $0x1a0] sm:$0xff] %vm101_vm0, %v6399_v12  ;;  %v6346_v44 = vadd.f32 %v6760_v33, %v13268_v3  ;;  %v6406_v18 = vmax.f32 %v6342_v0, 0.0  ;;  %v6407_v55 = vmax.f32 %v6343_v62, 0.0 }
 0xe62   :  { %6464 = vst.msk [vmem:[%s12748_s10 + $0x1a8] sm:$0xff] %vm101_vm0, %v6400_v19  ;;  %v6408_v17 = vmax.f32 %v6344_v21, 0.0  ;;  %v6409_v2 = vmax.f32 %v6345_v37, 0.0 }
 0xe63   :  { %6465 = vst.msk [vmem:[%s12748_s10 + $0x1b0] sm:$0xff] %vm101_vm0, %v6401_v6  ;;  %v6410_v38 = vmax.f32 %v6346_v44, 0.0 }
 0xe64   :  { %6466 = vst.msk [vmem:[%s12748_s10 + $0x1b8] sm:$0xff] %vm101_vm0, %v6402_v29 }
 0xe65   :  { %6467 = vst.msk [vmem:[%s12748_s10 + $0x1c0] sm:$0xff] %vm101_vm0, %v6403_v51 }
 0xe66   :  { %6468 = vst.msk [vmem:[%s12748_s10 + $0x1c8] sm:$0xff] %vm101_vm0, %v6404_v63 }
 0xe67   :  { %6469 = vst.msk [vmem:[%s12748_s10 + $0x1d0] sm:$0xff] %vm101_vm0, %v6405_v4 }
 0xe68   :  { %6470 = vst.msk [vmem:[%s12748_s10 + $0x1d8] sm:$0xff] %vm101_vm0, %v6406_v18 }
 0xe69   :  { %6471 = vst.msk [vmem:[%s12748_s10 + $0x1e0] sm:$0xff] %vm101_vm0, %v6407_v55 }
 0xe6a   :  { %6472 = vst.msk [vmem:[%s12748_s10 + $0x1e8] sm:$0xff] %vm101_vm0, %v6408_v17 }
 0xe6b   :  { %6473 = vst.msk [vmem:[%s12748_s10 + $0x1f0] sm:$0xff] %vm101_vm0, %v6409_v2 }
 0xe6c   :  { %6474 = vst.msk [vmem:[%s12748_s10 + $0x1f8] sm:$0xff] %vm101_vm0, %v6410_v38 }

</bundles_post_ra>
